<compile_context>
chip_gen: v6e
topology: v6e:2x2x1
jax: 0.10.0
libtpu: 0.0.40
codegen_flags: <defaults>
</compile_context>

<pallas_src>
import functools
import math

import jax
import jax.numpy as jnp
from jax.experimental import pallas as pl
from jax.experimental.pallas import tpu as pltpu

_LANE = 128
_WIDE_BLOCK_BYTES = 3 * 1024 * 1024       # ~3 MiB lane-dense output per grid step
_COL_TILE_M = 8192                        # fallback (masked-store) tile rows
_VMEM_LIMIT_BYTES = 40 * 1024 * 1024      # fits v5e/v6e (128 MiB) and v7x (64 MiB)


# ----------------------------------------------------------------------------- kernels
def _smear_wide_kernel(d_ref, e_ref, offt_ref, cofft_ref, out_ref, *, centered):
    """Lane-dense-output kernel.

    d_ref:     (R, 128)        f32 distances, lane-dense DMA.
    e_ref:     (384, 128*ng)   bf16 one-hot expansion matrix (3 stacked copies,
                               one per bf16 term of the f32 distance split).
    offt_ref:  (1, 128*ng)     f32, offsets tiled 128x (j -> offset[j % ng]).
    cofft_ref: (1, 128*ng)     f32, coefficients tiled 128x.
    out_ref:   (R, 128*ng)     lane-dense output block (free reshape of (R*128, ng)).
    """
    d = d_ref[...]
    # Exact 3-term bf16 split of the f32 distances (hi + mid + lo reconstructs d
    # to ~2^-27 relative), so the one-hot expansion matmul is exact regardless
    # of the backend's matmul precision policy, using cheap bf16 MXU passes.
    hi = d.astype(jnp.bfloat16)
    r1 = d - hi.astype(jnp.float32)
    mid = r1.astype(jnp.bfloat16)
    lo = (r1 - mid.astype(jnp.float32)).astype(jnp.bfloat16)
    lhs = jnp.concatenate([hi, mid, lo], axis=1)            # (R, 384) bf16
    # d_rep[r, k*ng + g] == d[r, k]  (lane-repeat via one-hot matmul, idle MXU).
    d_rep = jnp.dot(lhs, e_ref[...], preferred_element_type=jnp.float32)
    if centered:
        val = jnp.exp(cofft_ref[...] * (d_rep * d_rep))
    else:
        diff = d_rep - offt_ref[...]
        val = jnp.exp(cofft_ref[...] * (diff * diff))
    out_ref[...] = val.astype(out_ref.dtype)


def _smear_col_kernel(d_ref, off_ref, coeff_ref, out_ref, *, centered):
    """Fallback kernel for m % 128 != 0 (output last dim = ng, masked stores)."""
    d = d_ref[...]                                          # (tile_m, 1)
    if centered:
        val = jnp.exp((d * d) * coeff_ref[...])
    else:
        diff = d - off_ref[...]
        val = jnp.exp(coeff_ref[...] * (diff * diff))
    out_ref[...] = val.astype(out_ref.dtype)


# ----------------------------------------------------------------------------- tiling
def _pick_wide_tile_rows(num_super_rows, wide):
    """Super-rows (of 128 distances each) per grid step, ~3 MiB of output."""
    rows = int(_WIDE_BLOCK_BYTES // (wide * 4))
    rows = max(8, min(256, (rows // 8) * 8))
    if num_super_rows <= rows:
        if num_super_rows % 8 == 0:
            return num_super_rows                 # single full-extent block
        return max(8, (num_super_rows // 8) * 8)  # ragged last block (masked)
    return rows


# ----------------------------------------------------------------------------- drivers
def _smear_wide(d_flat, offsets, coeff, centered, out_dtype):
    m = d_flat.shape[0]
    ng = offsets.shape[0]
    s = m // _LANE                       # number of 128-distance "super-rows"
    wide = _LANE * ng                    # lane-dense output row width (mult. of 128)
    d_rows = d_flat.reshape(s, _LANE)    # free metadata reshape, wide input DMA

    # One-hot expansion matrix, stacked 3x for the hi/mid/lo bf16 distance split:
    #   E3[t*128 + k, j] = 1  iff  k == j // ng
    k_idx = jax.lax.broadcasted_iota(jnp.int32, (3 * _LANE, wide), 0) % _LANE
    j_idx = jax.lax.broadcasted_iota(jnp.int32, (3 * _LANE, wide), 1)
    expand3 = (k_idx == j_idx // ng).astype(jnp.bfloat16)

    offt = jnp.tile(offsets, _LANE).reshape(1, wide)    # j -> offset[j % ng]
    cofft = jnp.tile(coeff, _LANE).reshape(1, wide)

    tile_rows = _pick_wide_tile_rows(s, wide)
    grid = (pl.cdiv(s, tile_rows),)

    out = pl.pallas_call(
        functools.partial(_smear_wide_kernel, centered=centered),
        out_shape=jax.ShapeDtypeStruct((s, wide), out_dtype),
        grid_spec=pltpu.PrefetchScalarGridSpec(
            num_scalar_prefetch=0,
            grid=grid,
            in_specs=[
                pl.BlockSpec((tile_rows, _LANE), lambda i: (i, 0)),
                pl.BlockSpec((3 * _LANE, wide), lambda i: (0, 0)),
                pl.BlockSpec((1, wide), lambda i: (0, 0)),
                pl.BlockSpec((1, wide), lambda i: (0, 0)),
            ],
            out_specs=pl.BlockSpec((tile_rows, wide), lambda i: (i, 0)),
        ),
        # NOTE(v7x): per the review, if a single "parallel" axis does not split
        # across the two TensorCores, switch to pltpu.CORE_PARALLEL here.
        compiler_params=pltpu.CompilerParams(
            dimension_semantics=("parallel",),
            vmem_limit_bytes=_VMEM_LIMIT_BYTES),
    )(d_rows, expand3, offt, cofft)
    # (s, 128*ng) -> (m, ng) is a pure row-major metadata reshape (free).
    return out.reshape(m, ng)


def _smear_column(d_flat, offsets, coeff, centered, out_dtype):
    m = d_flat.shape[0]
    ng = offsets.shape[0]
    d_col = d_flat.reshape(m, 1)
    off2 = offsets.reshape(1, ng)
    co2 = coeff.reshape(1, ng)
    tile_m = m if m <= _COL_TILE_M else _COL_TILE_M
    grid = (pl.cdiv(m, tile_m),)

    return pl.pallas_call(
        functools.partial(_smear_col_kernel, centered=centered),
        out_shape=jax.ShapeDtypeStruct((m, ng), out_dtype),
        grid_spec=pltpu.PrefetchScalarGridSpec(
            num_scalar_prefetch=0,
            grid=grid,
            in_specs=[
                pl.BlockSpec((tile_m, 1), lambda i: (i, 0)),
                pl.BlockSpec((1, ng), lambda i: (0, 0)),
                pl.BlockSpec((1, ng), lambda i: (0, 0)),
            ],
            out_specs=pl.BlockSpec((tile_m, ng), lambda i: (i, 0)),
        ),
        compiler_params=pltpu.CompilerParams(
            dimension_semantics=("parallel",),
            vmem_limit_bytes=_VMEM_LIMIT_BYTES),
    )(d_col, off2, co2)


# ----------------------------------------------------------------------------- public API
@functools.partial(jax.jit, static_argnames=("centered", "out_dtype"))
def gaussian_smearing_pallas(distances, offsets, widths, centered=False,
                             out_dtype=jnp.float32):
    """distances: (..., ) e.g. (N_b, N_at, N_nbh) -> (..., N_g).

    out_dtype=jnp.bfloat16 halves the dominant HBM writeback (compute stays f32);
    default float32 matches the PyTorch reference.
    """
    distances = jnp.asarray(distances, jnp.float32)
    offsets = jnp.asarray(offsets, jnp.float32).reshape(-1)
    widths = jnp.asarray(widths, jnp.float32).reshape(-1)
    ng = offsets.shape[0]
    shape = distances.shape
    m = int(math.prod(shape))
    d_flat = distances.reshape(m)

    if centered:
        # Matches the reference; offsets containing 0 -> -inf coeff (documented).
        coeff = -0.5 / (offsets * offsets)
    else:
        coeff = -0.5 / (widths * widths)

    # Static (trace-time) path selection -- no runtime probes, no globals.
    if (m % _LANE == 0) and (m >= 1024) and (ng <= _LANE):
        out2d = _smear_wide(d_flat, offsets, coeff, bool(centered), out_dtype)
    else:
        out2d = _smear_column(d_flat, offsets, coeff, bool(centered), out_dtype)
    return out2d.reshape(*shape, ng)


def gaussian_smearing(distances, offset, widths, centered=False):
    """Functional API mirroring the PyTorch reference signature."""
    return gaussian_smearing_pallas(distances, offset, widths, centered=centered)


class GaussianSmearingPallas:
    """Mirror of lightMolNet GaussianSmearing (buffers; forward only)."""

    def __init__(self, start=0.0, stop=5.0, n_gaussians=50, centered=False,
                 trainable=False):
        offsets = jnp.linspace(start, stop, n_gaussians, dtype=jnp.float32)
        if n_gaussians > 1:
            width_val = offsets[1] - offsets[0]
        else:
            width_val = jnp.float32(1.0)
        self.offsets = offsets
        self.widths = width_val * jnp.ones_like(offsets)
        self.centered = centered
        # `trainable` only changes parameter registration in PyTorch; the
        # forward math is identical, so it is accepted and ignored here.

    def __call__(self, distances):
        return gaussian_smearing_pallas(
            distances, self.offsets, self.widths, centered=self.centered)


# ----------------------------------------------------------------------------- reference & test
def _reference(distances, offsets, widths, centered=False):
    distances = jnp.asarray(distances, jnp.float32)
    offsets = jnp.asarray(offsets, jnp.float32)
    widths = jnp.asarray(widths, jnp.float32)
    if not centered:
        coeff = -0.5 / widths ** 2
        diff = distances[..., None] - offsets
    else:
        coeff = -0.5 / offsets ** 2
        diff = distances[..., None]
    return jnp.exp(coeff * diff ** 2)


if __name__ == "__main__":
    key = jax.random.PRNGKey(0)
    k1, k2, k3, k4 = jax.random.split(key, 4)
    mod = GaussianSmearingPallas(start=0.0, stop=5.0, n_gaussians=50, centered=False)

    # Case 1: m = 3200 (multiple of 128) -> lane-dense-output path.
    d1 = jax.random.uniform(k1, (4, 32, 25), jnp.float32, minval=0.0, maxval=5.0)
    out1 = jax.block_until_ready(mod(d1))
    ref1 = _reference(d1, mod.offsets, mod.widths, centered=False)
    assert out1.shape == (4, 32, 25, 50), out1.shape
    assert jnp.allclose(out1, ref1, atol=1e-5, rtol=1e-4)

    # Case 2: m = 16384 -> lane-dense path with a multi-step grid (ragged edge).
    d2 = jax.random.uniform(k2, (16, 32, 32), jnp.float32, minval=0.0, maxval=5.0)
    out2 = jax.block_until_ready(mod(d2))
    ref2 = _reference(d2, mod.offsets, mod.widths, centered=False)
    assert out2.shape == (16, 32, 32, 50), out2.shape
    assert jnp.allclose(out2, ref2, atol=1e-5, rtol=1e-4)

    # Case 3: small m = 256 -> column (masked-store) path.
    d3 = jax.random.uniform(k3, (2, 8, 16), jnp.float32, minval=0.0, maxval=5.0)
    out3 = jax.block_until_ready(mod(d3))
    ref3 = _reference(d3, mod.offsets, mod.widths, centered=False)
    assert out3.shape == (2, 8, 16, 50), out3.shape
    assert jnp.allclose(out3, ref3, atol=1e-5, rtol=1e-4)

    # Case 4: ragged m = 126 (not a multiple of 128) -> column path.
    d4 = jax.random.uniform(k4, (2, 7, 9), jnp.float32, minval=0.0, maxval=5.0)
    out4 = jax.block_until_ready(mod(d4))
    ref4 = _reference(d4, mod.offsets, mod.widths, centered=False)
    assert out4.shape == (2, 7, 9, 50), out4.shape
    assert jnp.allclose(out4, ref4, atol=1e-5, rtol=1e-4)

    # Case 5: centered variant (start > 0 avoids -inf coeff), both paths.
    mod_c = GaussianSmearingPallas(start=0.5, stop=5.0, n_gaussians=50, centered=True)
    out5 = jax.block_until_ready(mod_c(d1))
    ref5 = _reference(d1, mod_c.offsets, mod_c.widths, centered=True)
    assert jnp.allclose(out5, ref5, atol=1e-5, rtol=1e-4)
    out6 = jax.block_until_ready(mod_c(d3))
    ref6 = _reference(d3, mod_c.offsets, mod_c.widths, centered=True)
    assert jnp.allclose(out6, ref6, atol=1e-5, rtol=1e-4)

    print("KERNEL_OK")
</pallas_src>

<mosaic_0001>
module attributes {stable_mosaic.version = 11 : i64} {
  func.func @_smear_wide_kernel(%arg0: i32, %arg1: memref<24x128xf32, #tpu.memory_space<vmem>>, %arg2: memref<384x6400xbf16, #tpu.memory_space<vmem>>, %arg3: memref<1x6400xf32, #tpu.memory_space<vmem>>, %arg4: memref<1x6400xf32, #tpu.memory_space<vmem>>, %arg5: memref<24x6400xf32, #tpu.memory_space<vmem>>) attributes {dimension_semantics = [#tpu.dimension_semantics<parallel>], iteration_bounds = array<i64: 2>, scalar_prefetch = 0 : i64, scratch_operands = 0 : i64, tpu.core_type = #tpu.core_type<tc>, window_params = [{transform_indices = @transform_0, window_bounds = array<i64: 24, 128>}, {pipeline_mode = #tpu.pipeline_mode<synchronous>, transform_indices = @transform_1, window_bounds = array<i64: 384, 6400>}, {pipeline_mode = #tpu.pipeline_mode<synchronous>, transform_indices = @transform_2, window_bounds = array<i64: 1, 6400>}, {pipeline_mode = #tpu.pipeline_mode<synchronous>, transform_indices = @transform_3, window_bounds = array<i64: 1, 6400>}, {transform_indices = @transform_4, window_bounds = array<i64: 24, 6400>}]} {
    %c0 = arith.constant 0 : index
    %c0_0 = arith.constant 0 : index
    %0 = vector.load %arg1[%c0, %c0_0] : memref<24x128xf32, #tpu.memory_space<vmem>>, vector<24x128xf32>
    %1 = arith.truncf %0 : vector<24x128xf32> to vector<24x128xbf16>
    %2 = arith.extf %1 : vector<24x128xbf16> to vector<24x128xf32>
    %3 = arith.subf %0, %2 : vector<24x128xf32>
    %4 = arith.truncf %3 : vector<24x128xf32> to vector<24x128xbf16>
    %5 = arith.extf %4 : vector<24x128xbf16> to vector<24x128xf32>
    %6 = arith.subf %3, %5 : vector<24x128xf32>
    %7 = arith.truncf %6 : vector<24x128xf32> to vector<24x128xbf16>
    %8 = tpu.concatenate %1, %4, %7 in 1 : vector<24x128xbf16>, vector<24x128xbf16>, vector<24x128xbf16> -> vector<24x384xbf16>
    %c0_1 = arith.constant 0 : index
    %c0_2 = arith.constant 0 : index
    %9 = vector.load %arg2[%c0_1, %c0_2] : memref<384x6400xbf16, #tpu.memory_space<vmem>>, vector<384x6400xbf16>
    %cst = arith.constant dense<0.000000e+00> : vector<24x6400xf32>
    %10 = tpu.matmul %8, %9, %cst {dimension_numbers = #tpu.dot_dimension_numbers<[1], [0], [0], [1], [0, 0, 1, 1], [], []>} : vector<24x384xbf16>, vector<384x6400xbf16>, vector<24x6400xf32> -> vector<24x6400xf32>
    %c0_3 = arith.constant 0 : index
    %c0_4 = arith.constant 0 : index
    %11 = vector.load %arg3[%c0_3, %c0_4] : memref<1x6400xf32, #tpu.memory_space<vmem>>, vector<1x6400xf32>
    %12 = vector.broadcast %11 : vector<1x6400xf32> to vector<24x6400xf32>
    %13 = arith.subf %10, %12 : vector<24x6400xf32>
    %c0_5 = arith.constant 0 : index
    %c0_6 = arith.constant 0 : index
    %14 = vector.load %arg4[%c0_5, %c0_6] : memref<1x6400xf32, #tpu.memory_space<vmem>>, vector<1x6400xf32>
    %15 = arith.mulf %13, %13 : vector<24x6400xf32>
    %16 = vector.broadcast %14 : vector<1x6400xf32> to vector<24x6400xf32>
    %17 = arith.mulf %16, %15 : vector<24x6400xf32>
    %18 = math.exp %17 : vector<24x6400xf32>
    %c0_7 = arith.constant 0 : index
    %c0_8 = arith.constant 0 : index
    %19 = vector.load %arg5[%c0_7, %c0_8] : memref<24x6400xf32, #tpu.memory_space<vmem>>, vector<24x6400xf32>
    tpu.vector_store %arg5[%c0_7, %c0_8], %18 {strides = array<i32>} : memref<24x6400xf32, #tpu.memory_space<vmem>>, vector<24x6400xf32>,
    return
  }
  func.func @transform_0(%arg0: i32) -> (i32, i32) {
    %c0_i32 = arith.constant 0 : i32
    %c0_i32_0 = arith.constant 0 : i32
    return %arg0, %c0_i32 : i32, i32
  }
  func.func @transform_1(%arg0: i32) -> (i32, i32) {
    %c0_i32 = arith.constant 0 : i32
    %c0_i32_0 = arith.constant 0 : i32
    %c0_i32_1 = arith.constant 0 : i32
    return %c0_i32, %c0_i32_0 : i32, i32
  }
  func.func @transform_2(%arg0: i32) -> (i32, i32) {
    %c0_i32 = arith.constant 0 : i32
    %c0_i32_0 = arith.constant 0 : i32
    %c0_i32_1 = arith.constant 0 : i32
    return %c0_i32, %c0_i32_0 : i32, i32
  }
  func.func @transform_3(%arg0: i32) -> (i32, i32) {
    %c0_i32 = arith.constant 0 : i32
    %c0_i32_0 = arith.constant 0 : i32
    %c0_i32_1 = arith.constant 0 : i32
    return %c0_i32, %c0_i32_0 : i32, i32
  }
  func.func @transform_4(%arg0: i32) -> (i32, i32) {
    %c0_i32 = arith.constant 0 : i32
    %c0_i32_0 = arith.constant 0 : i32
    return %arg0, %c0_i32 : i32, i32
  }
}

</mosaic_0001>

<bundles_post_ra>
// kernel: tile.18
= control target key start
LH: loop header
LB: loop body
LE: loop exit
PB: predicated region body
PF: predicated region fallthrough
CT: control target
= control target key end

     0   :  { %s112_s0 = inlined_call_operand.vmem [shape: f32[50], index: 0, kind: input, shape index: {}]   ;;  %s113_s1 = inlined_call_operand.vmem [shape: f32[128,50], index: 1, kind: output, shape index: {}]  }
   0x1   :  { %v4_v0 = vld [vmem:[%s112_s0] ss:$0 sm:$0xff] }
   0x2   :  { %5 = vst [vmem:[%s113_s1] sm:$0xff] %v4_v0  ;;  %36 = vst [vmem:[%s113_s1 + $0x8] sm:$0xff] %v4_v0 }
   0x3   :  { %37 = vst [vmem:[%s113_s1 + $0x10] sm:$0xff] %v4_v0  ;;  %38 = vst [vmem:[%s113_s1 + $0x18] sm:$0xff] %v4_v0 }
   0x4   :  { %39 = vst [vmem:[%s113_s1 + $0x20] sm:$0xff] %v4_v0  ;;  %40 = vst [vmem:[%s113_s1 + $0x28] sm:$0xff] %v4_v0 }
   0x5   :  { %41 = vst [vmem:[%s113_s1 + $0x30] sm:$0xff] %v4_v0  ;;  %42 = vst [vmem:[%s113_s1 + $0x38] sm:$0xff] %v4_v0 }
   0x6   :  { %43 = vst [vmem:[%s113_s1 + $0x40] sm:$0xff] %v4_v0  ;;  %44 = vst [vmem:[%s113_s1 + $0x48] sm:$0xff] %v4_v0 }
   0x7   :  { %45 = vst [vmem:[%s113_s1 + $0x50] sm:$0xff] %v4_v0  ;;  %46 = vst [vmem:[%s113_s1 + $0x58] sm:$0xff] %v4_v0 }
   0x8   :  { %47 = vst [vmem:[%s113_s1 + $0x60] sm:$0xff] %v4_v0  ;;  %48 = vst [vmem:[%s113_s1 + $0x68] sm:$0xff] %v4_v0 }
   0x9   :  { %49 = vst [vmem:[%s113_s1 + $0x70] sm:$0xff] %v4_v0  ;;  %50 = vst [vmem:[%s113_s1 + $0x78] sm:$0xff] %v4_v0 }

// kernel: tile.13
= control target key start
LH: loop header
LB: loop body
LE: loop exit
PB: predicated region body
PF: predicated region fallthrough
CT: control target
= control target key end

     0   :  { %2 = vsyncpa [#allocation1], 0  ;;  %s87_s6 = smov [#allocation0]   ;;  %s149_s0 = inlined_call_operand.hbm [shape: f32[50], index: 0, kind: input, shape index: {}]   ;;  %s150_s1 = inlined_call_operand.vmem [shape: f32[128,50], index: 1, kind: output, shape index: {}]  }
   0x1   :  { %s9_s7 = sshll.u32 %s87_s6, 4  ;;  %s10_s7 = int_to_ptr.vmem [resolvable:$true] %s9_s7 }
   0x2   :  { %s73_s8 = scalar_lea.vmem %s10_s7, 16  ;;  %s77_s9 = scalar_lea.vmem %s10_s7, 32 }
   0x3   :  { %p74_p0 = scmp.ne.s32.totalorder %s10_s7, %s73_s8  ;;  %p78_p1 = scmp.lt.s32.totalorder %s10_s7, %s10_s7 }
   0x4   :  { %p79_p2 = scmp.lt.s32.totalorder %s77_s9, %s73_s8 }
   0x6   :  { %p80_p3 = por %p79_p2, %p78_p1 }
   0x8   :  { %p81_p4 = pnand %p80_p3, %p74_p0 }
   0xa   :  { %84 = shalt.err (!%p81_p4)
}
   0xb   :  { %12 = dma.hbm_to_vmem [thread:$0]  %s149_s0, 16, %s10_s7, [#allocation1]  }
   0xc   :  { %85 = dma.done.wait [#allocation1], 16  }
   0xd   :  { %86 = vsyncadd [#allocation1], 4294967280  ;;  %v16_v0 = vld [vmem:[#allocation0] ss:$0 sm:$0xff] }
   0xe   :  { %17 = vst [vmem:[%s150_s1] sm:$0xff] %v16_v0  ;;  %49 = vst [vmem:[%s150_s1 + $0x8] sm:$0xff] %v16_v0 }
   0xf   :  { %50 = vst [vmem:[%s150_s1 + $0x10] sm:$0xff] %v16_v0  ;;  %51 = vst [vmem:[%s150_s1 + $0x18] sm:$0xff] %v16_v0 }
  0x10   :  { %52 = vst [vmem:[%s150_s1 + $0x20] sm:$0xff] %v16_v0  ;;  %53 = vst [vmem:[%s150_s1 + $0x28] sm:$0xff] %v16_v0 }
  0x11   :  { %54 = vst [vmem:[%s150_s1 + $0x30] sm:$0xff] %v16_v0  ;;  %55 = vst [vmem:[%s150_s1 + $0x38] sm:$0xff] %v16_v0 }
  0x12   :  { %56 = vst [vmem:[%s150_s1 + $0x40] sm:$0xff] %v16_v0  ;;  %57 = vst [vmem:[%s150_s1 + $0x48] sm:$0xff] %v16_v0 }
  0x13   :  { %58 = vst [vmem:[%s150_s1 + $0x50] sm:$0xff] %v16_v0  ;;  %59 = vst [vmem:[%s150_s1 + $0x58] sm:$0xff] %v16_v0 }
  0x14   :  { %60 = vst [vmem:[%s150_s1 + $0x60] sm:$0xff] %v16_v0  ;;  %61 = vst [vmem:[%s150_s1 + $0x68] sm:$0xff] %v16_v0 }
  0x15   :  { %62 = vst [vmem:[%s150_s1 + $0x70] sm:$0xff] %v16_v0  ;;  %63 = vst [vmem:[%s150_s1 + $0x78] sm:$0xff] %v16_v0 }
  0x16   :  { %48 = vsyncpa [#allocation1], 1 }

// kernel: tile.19
= control target key start
LH: loop header
LB: loop body
LE: loop exit
PB: predicated region body
PF: predicated region fallthrough
CT: control target
= control target key end

     0   :  { %vm5_vm0 = vcmask 1041409   ;;  %vm2538_vm1 = vcmask 15360   ;;  %vm2540_vm2 = vcmask 48128   ;;  %vm2539_vm3 = vcmask 31744   ;;  %s1649_s24 = smov 126   ;;  %s1650_s6 = smov 122   ;;  %s2536_s0 = inlined_call_operand.vmem [shape: f32[128,50], index: 0, kind: input, shape index: {}]   ;;  %s2537_s1 = inlined_call_operand.vmem [shape: f32[1,6400], index: 1, kind: output, shape index: {}]  }
   0x1   :  { %v1363_v0 = vld [vmem:[%s2536_s0 + $0x17] sm:$0x1]   ;;  %v1371_v6 = vld [vmem:[%s2536_s0 + $0x5] sm:$0x1]   ;;  %v1367_v12 = vld [vmem:[%s2536_s0 + $0x2e] sm:$0x1]  }
   0x2   :  { %v1364_v1 = vld [vmem:[%s2536_s0 + $0x56] sm:$0x2]   ;;  %v1372_v7 = vld [vmem:[%s2536_s0 + $0x44] sm:$0x2]   ;;  %v1368_v14 = vld [vmem:[%s2536_s0 + $0x6d] sm:$0x2]  }
   0x3   :  { %v14_v2 = vsel %vm5_vm0, %v1364_v1, %v1363_v0  ;;  %v1365_v3 = vld [vmem:[%s2536_s0 + $0x17] sm:$0x1]   ;;  %v1373_v8 = vld [vmem:[%s2536_s0 + $0x5] sm:$0x1]   ;;  %v58_v10 = vsel %vm5_vm0, %v1372_v7, %v1371_v6  ;;  %v1369_v15 = vld [vmem:[%s2536_s0 + $0x2e] sm:$0x1]   ;;  %v36_v18 = vsel %vm5_vm0, %v1368_v14, %v1367_v12 }
   0x4   :  { %v1366_v4 = vld [vmem:[%s2536_s0 + $0x56] sm:$0x2]   ;;  %v1374_v11 = vld [vmem:[%s2536_s0 + $0x44] sm:$0x2]   ;;  %v1370_v16 = vld [vmem:[%s2536_s0 + $0x6d] sm:$0x2]  }
   0x5   :  { %v20_v5 = vsel %vm5_vm0, %v1366_v4, %v1365_v3  ;;  %v64_v13 = vsel %vm5_vm0, %v1374_v11, %v1373_v8  ;;  %v42_v19 = vsel %vm5_vm0, %v1370_v16, %v1369_v15  ;;  %v1375_v20 = vld [vmem:[%s2536_s0 + $0x5c] sm:$0x1]   ;;  %vm2541_vm4 = vcmask 64512   ;;  %v1379_v27 = vld [vmem:[%s2536_s0 + $0x33] sm:$0x1]   ;;  %s1651_s17 = smov 124  }
   0x6   :  { %v22_v9 = vsel %vm2538_vm1, %v20_v5, %v14_v2  ;;  %v66_v17 = vsel %vm2540_vm2, %v64_v13, %v58_v10  ;;  %v1376_v21 = vld [vmem:[%s2536_s0 + $0x1b] sm:$0x2]   ;;  %v44_v22 = vsel %vm2539_vm3, %v42_v19, %v36_v18  ;;  %vm2542_vm5 = vcmask 80896   ;;  %v1380_v28 = vld [vmem:[%s2536_s0 + $0x72] sm:$0x2]   ;;  %s1652_s28 = smov 120  }
   0x7   :  { %23 = vrot.lane.b32.xlu0 %v22_v9, %s1649_s24  ;;  %67 = vrot.lane.b32.xlu1 %v66_v17, %s1650_s6  ;;  %v80_v23 = vsel %vm5_vm0, %v1376_v21, %v1375_v20  ;;  %v1377_v24 = vld [vmem:[%s2536_s0 + $0x1c] sm:$0x1]   ;;  %v1381_v29 = vld [vmem:[%s2536_s0 + $0x73] sm:$0x1]   ;;  %v102_v31 = vsel %vm5_vm0, %v1380_v28, %v1379_v27  ;;  %vm2543_vm6 = vcmask 97280   ;;  %vm2544_vm7 = vcmask 113664  }
   0x8   :  { %v1378_v25 = vld [vmem:[%s2536_s0 + $0x5b] sm:$0x2]   ;;  %v1382_v32 = vld [vmem:[%s2536_s0 + $0x32] sm:$0x2]   ;;  %v1383_v33 = vld [vmem:[%s2536_s0 + $0xa] sm:$0x1]  }
   0x9   :  { %v86_v26 = vsel %vm5_vm0, %v1378_v25, %v1377_v24  ;;  %v108_v34 = vsel %vm5_vm0, %v1382_v32, %v1381_v29  ;;  %v1384_v35 = vld [vmem:[%s2536_s0 + $0x49] sm:$0x2]   ;;  %v1387_v41 = vld [vmem:[%s2536_s0 + $0x21] sm:$0x1]   ;;  %vm2545_vm8 = vcmask 130048   ;;  %s1653_s8 = smov 118  }
   0xa   :  { %v88_v30 = vsel %vm2541_vm4, %v86_v26, %v80_v23  ;;  %v1385_v36 = vld [vmem:[%s2536_s0 + $0x4a] sm:$0x1]   ;;  %v110_v38 = vsel %vm2542_vm5, %v108_v34, %v102_v31  ;;  %v124_v39 = vsel %vm5_vm0, %v1384_v35, %v1383_v33  ;;  %v1388_v42 = vld [vmem:[%s2536_s0 + $0x60] sm:$0x2]   ;;  %v1391_v48 = vld [vmem:[%s2536_s0 + $0x38] sm:$0x1]  }
   0xb   :  { %45 = vrot.lane.b32.xlu0 %v44_v22, %s1651_s17  ;;  %v1386_v37 = vld [vmem:[%s2536_s0 + $0x9] sm:$0x2]   ;;  %89 = vrot.lane.b32.xlu1 %v88_v30, %s1652_s28  ;;  %v146_v44 = vsel %vm5_vm0, %v1388_v42, %v1387_v41  ;;  %v1389_v45 = vld [vmem:[%s2536_s0 + $0x21] sm:$0x1]   ;;  %vm2546_vm9 = vcmask 146432   ;;  %s1654_s19 = smov 116  }
   0xc   :  { %v130_v40 = vsel %vm5_vm0, %v1386_v37, %v1385_v36  ;;  %v1390_v46 = vld [vmem:[%s2536_s0 + $0x60] sm:$0x2]   ;;  %v1392_v49 = vld [vmem:[%s2536_s0 + $0x77] sm:$0x2]   ;;  %v1395_v54 = vld [vmem:[%s2536_s0 + $0xf] sm:$0x1]  }
   0xd   :  { %v132_v43 = vsel %vm2543_vm6, %v130_v40, %v124_v39  ;;  %v152_v47 = vsel %vm5_vm0, %v1390_v46, %v1389_v45  ;;  %v1393_v50 = vld [vmem:[%s2536_s0 + $0x38] sm:$0x1]   ;;  %v168_v52 = vsel %vm5_vm0, %v1392_v49, %v1391_v48  ;;  %v1396_v56 = vld [vmem:[%s2536_s0 + $0x4e] sm:$0x2]   ;;  %v1399_v62 = vld [vmem:[%s2536_s0 + $0x66] sm:$0x1]  }
   0xe   :  { %v154_v51 = vsel %vm2544_vm7, %v152_v47, %v146_v44  ;;  %v1394_v53 = vld [vmem:[%s2536_s0 + $0x77] sm:$0x2]   ;;  %v1397_v57 = vld [vmem:[%s2536_s0 + $0xf] sm:$0x1]   ;;  %v190_v60 = vsel %vm5_vm0, %v1396_v56, %v1395_v54  ;;  %v1400_v63 = vld [vmem:[%s2536_s0 + $0x25] sm:$0x2]  }
   0xf   :  { %111 = vrot.lane.b32.xlu0 %v110_v38, %s1653_s8  ;;  %133 = vrot.lane.b32.xlu1 %v132_v43, %s1654_s19  ;;  %v174_v55 = vsel %vm5_vm0, %v1394_v53, %v1393_v50  ;;  %v1398_v58 = vld [vmem:[%s2536_s0 + $0x4e] sm:$0x2]   ;;  %s1655_s30 = smov 114   ;;  %v212_v0 = vsel %vm5_vm0, %v1400_v63, %v1399_v62  ;;  %v1401_v1 = vld [vmem:[%s2536_s0 + $0x26] sm:$0x1]   ;;  %vm2547_vm10 = vcmask 162816  }
  0x10   :  { %v176_v59 = vsel %vm2545_vm8, %v174_v55, %v168_v52  ;;  %v196_v61 = vsel %vm5_vm0, %v1398_v58, %v1397_v57  ;;  %v1402_v2 = vld [vmem:[%s2536_s0 + $0x65] sm:$0x2]   ;;  %v1403_v5 = vld [vmem:[%s2536_s0 + $0x3d] sm:$0x1]   ;;  %s1656_s12 = smov 112   ;;  %vm2548_vm11 = vcmask 179200  }
  0x11   :  { %v198_v3 = vsel %vm2546_vm9, %v196_v61, %v190_v60  ;;  %v218_v4 = vsel %vm5_vm0, %v1402_v2, %v1401_v1  ;;  %v1404_v6 = vld [vmem:[%s2536_s0 + $0x7c] sm:$0x2]   ;;  %v1407_v10 = vld [vmem:[%s2536_s0 + $0x14] sm:$0x1]   ;;  %s1657_s23 = smov 110   ;;  %vm263_vm12 = vcmask 195584  }
  0x12   :  { %v1405_v7 = vld [vmem:[%s2536_s0 + $0x7d] sm:$0x1]   ;;  %v234_v8 = vsel %vm5_vm0, %v1404_v6, %v1403_v5  ;;  %v220_v11 = vsel %vm2547_vm10, %v218_v4, %v212_v0  ;;  %v1408_v13 = vld [vmem:[%s2536_s0 + $0x53] sm:$0x2]   ;;  %v1411_v18 = vld [vmem:[%s2536_s0 + $0x2b] sm:$0x1]  }
  0x13   :  { %155 = vrot.lane.b32.xlu0 %v154_v51, %s1655_s30  ;;  %177 = vrot.lane.b32.xlu1 %v176_v59, %s1656_s12  ;;  %v1406_v9 = vld [vmem:[%s2536_s0 + $0x3c] sm:$0x2]   ;;  %v1409_v14 = vld [vmem:[%s2536_s0 + $0x54] sm:$0x1]   ;;  %v256_v16 = vsel %vm5_vm0, %v1408_v13, %v1407_v10  ;;  %vm267_vm13 = vcmask 211968   ;;  %s1658_s3 = smov 108  }
  0x14   :  { %v240_v12 = vsel %vm5_vm0, %v1406_v9, %v1405_v7  ;;  %v1410_v15 = vld [vmem:[%s2536_s0 + $0x13] sm:$0x2]   ;;  %v1412_v19 = vld [vmem:[%s2536_s0 + $0x6a] sm:$0x2]   ;;  %v1415_v25 = vld [vmem:[%s2536_s0 + $0x2] sm:$0x1]  }
  0x15   :  { %v262_v17 = vsel %vm5_vm0, %v1410_v15, %v1409_v14  ;;  %v242_v20 = vsel %vm2548_vm11, %v240_v12, %v234_v8  ;;  %v1413_v21 = vld [vmem:[%s2536_s0 + $0x2b] sm:$0x1]   ;;  %v278_v23 = vsel %vm5_vm0, %v1412_v19, %v1411_v18  ;;  %v1416_v26 = vld [vmem:[%s2536_s0 + $0x41] sm:$0x2]   ;;  %vm245_vm14 = vcmask 228352   ;;  %s1659_s14 = smov 106  }
  0x16   :  { %v1414_v22 = vld [vmem:[%s2536_s0 + $0x6a] sm:$0x2]   ;;  %v1417_v27 = vld [vmem:[%s2536_s0 + $0x2] sm:$0x1]   ;;  %v264_v28 = vsel %vm263_vm12, %v262_v17, %v256_v16  ;;  %v1419_v30 = vld [vmem:[%s2536_s0 + $0x19] sm:$0x1]   ;;  %v300_v31 = vsel %vm5_vm0, %v1416_v26, %v1415_v25 }
  0x17   :  { %199 = vrot.lane.b32.xlu0 %v198_v3, %s1657_s23  ;;  %221 = vrot.lane.b32.xlu1 %v220_v11, %s1658_s3  ;;  %v284_v24 = vsel %vm5_vm0, %v1414_v22, %v1413_v21  ;;  %v1418_v29 = vld [vmem:[%s2536_s0 + $0x41] sm:$0x2]   ;;  %v1420_v33 = vld [vmem:[%s2536_s0 + $0x58] sm:$0x2]   ;;  %s1660_s25 = smov 104   ;;  %vm223_vm15 = vcmask 244736  }
  0x18   :  { %v306_v32 = vsel %vm5_vm0, %v1418_v29, %v1417_v27  ;;  %v1421_v34 = vld [vmem:[%s2536_s0 + $0x19] sm:$0x1]   ;;  %v286_v36 = vsel %vm267_vm13, %v284_v24, %v278_v23  ;;  %v1423_v37 = vld [vmem:[%s2536_s0 + $0x70] sm:$0x1]   ;;  %v321_v39 = vsel %vm5_vm0, %v1420_v33, %v1419_v30  ;;  %v1427_v44 = vld [vmem:[%s2536_s0 + $0x47] sm:$0x1]  }
  0x19   :  { %v1422_v35 = vld [vmem:[%s2536_s0 + $0x58] sm:$0x2]   ;;  %v1424_v38 = vld [vmem:[%s2536_s0 + $0x2f] sm:$0x2]   ;;  %v308_v43 = vsel %vm245_vm14, %v306_v32, %v300_v31  ;;  %v1428_v45 = vld [vmem:[%s2536_s0 + $0x6] sm:$0x2]  }
  0x1a   :  { %v327_v40 = vsel %vm5_vm0, %v1422_v35, %v1421_v34  ;;  %v1425_v41 = vld [vmem:[%s2536_s0 + $0x30] sm:$0x1]   ;;  %v1429_v46 = vld [vmem:[%s2536_s0 + $0x7] sm:$0x1]   ;;  %s1661_s7 = smov 102   ;;  %vm201_vm1 = vcmask 261120   ;;  %v343_v47 = vsel %vm5_vm0, %v1424_v38, %v1423_v37  ;;  %v365_v55 = vsel %vm5_vm0, %v1428_v45, %v1427_v44 }
  0x1b   :  { %243 = vrot.lane.b32.xlu0 %v242_v20, %s1659_s14  ;;  %265 = vrot.lane.b32.xlu1 %v264_v28, %s1660_s25  ;;  %v1426_v42 = vld [vmem:[%s2536_s0 + $0x6f] sm:$0x2]   ;;  %v1430_v49 = vld [vmem:[%s2536_s0 + $0x46] sm:$0x2]   ;;  %v329_v51 = vsel %vm223_vm15, %v327_v40, %v321_v39  ;;  %s1662_s18 = smov 100   ;;  %vm179_vm3 = vcmask 277504  }
  0x1c   :  { %v349_v48 = vsel %vm5_vm0, %v1426_v42, %v1425_v41  ;;  %v1431_v50 = vld [vmem:[%s2536_s0 + $0x1e] sm:$0x1]   ;;  %v371_v56 = vsel %vm5_vm0, %v1430_v49, %v1429_v46  ;;  %v1435_v57 = vld [vmem:[%s2536_s0 + $0x35] sm:$0x1]   ;;  %s1663_s27 = smov 98   ;;  %vm157_vm2 = vcmask 293888  }
  0x1d   :  { %v1432_v52 = vld [vmem:[%s2536_s0 + $0x5d] sm:$0x2]   ;;  %v351_v58 = vsel %vm201_vm1, %v349_v48, %v343_v47  ;;  %v1436_v59 = vld [vmem:[%s2536_s0 + $0x74] sm:$0x2]   ;;  %v1439_v0 = vld [vmem:[%s2536_s0 + $0xc] sm:$0x1]   ;;  %v373_v1 = vsel %vm179_vm3, %v371_v56, %v365_v55 }
  0x1e   :  { %v1433_v53 = vld [vmem:[%s2536_s0 + $0x5e] sm:$0x1]   ;;  %v1437_v60 = vld [vmem:[%s2536_s0 + $0x35] sm:$0x1]   ;;  %v387_v62 = vsel %vm5_vm0, %v1432_v52, %v1431_v50  ;;  %v1440_v2 = vld [vmem:[%s2536_s0 + $0x4b] sm:$0x2]   ;;  %v409_v5 = vsel %vm5_vm0, %v1436_v59, %v1435_v57 }
  0x1f   :  { %287 = vrot.lane.b32.xlu0 %v286_v36, %s1661_s7  ;;  %v1434_v54 = vld [vmem:[%s2536_s0 + $0x1d] sm:$0x2]   ;;  %309 = vrot.lane.b32.xlu1 %v308_v43, %s1662_s18  ;;  %v1438_v61 = vld [vmem:[%s2536_s0 + $0x74] sm:$0x2]   ;;  %s1664_s7 = smov 96   ;;  %vm135_vm4 = vcmask 310272   ;;  %v431_v12 = vsel %vm5_vm0, %v1440_v2, %v1439_v0 }
  0x20   :  { %v393_v63 = vsel %vm5_vm0, %v1434_v54, %v1433_v53  ;;  %v1441_v3 = vld [vmem:[%s2536_s0 + $0xc] sm:$0x1]   ;;  %v415_v6 = vsel %vm5_vm0, %v1438_v61, %v1437_v60  ;;  %v1443_v7 = vld [vmem:[%s2536_s0 + $0x23] sm:$0x1]   ;;  %s1665_s16 = smov 94   ;;  %vm113_vm5 = vcmask 326656  }
  0x21   :  { %v1442_v4 = vld [vmem:[%s2536_s0 + $0x4b] sm:$0x2]   ;;  %v395_v8 = vsel %vm157_vm2, %v393_v63, %v387_v62  ;;  %v1444_v9 = vld [vmem:[%s2536_s0 + $0x62] sm:$0x2]   ;;  %v1447_v14 = vld [vmem:[%s2536_s0 + $0x7a] sm:$0x1]   ;;  %v417_v15 = vsel %vm135_vm4, %v415_v6, %v409_v5 }
  0x22   :  { %v1445_v10 = vld [vmem:[%s2536_s0 + $0x23] sm:$0x1]   ;;  %v437_v13 = vsel %vm5_vm0, %v1442_v4, %v1441_v3  ;;  %v1448_v16 = vld [vmem:[%s2536_s0 + $0x39] sm:$0x2]   ;;  %s1666_s25 = smov 92   ;;  %vm91_vm6 = vcmask 343040   ;;  %v453_v19 = vsel %vm5_vm0, %v1444_v9, %v1443_v7 }
  0x23   :  { %330 = vrot.lane.b32.xlu0 %v329_v51, %s1663_s27  ;;  %352 = vrot.lane.b32.xlu1 %v351_v58, %s1664_s7  ;;  %v1446_v11 = vld [vmem:[%s2536_s0 + $0x62] sm:$0x2]   ;;  %v1449_v17 = vld [vmem:[%s2536_s0 + $0x3a] sm:$0x1]   ;;  %v439_v22 = vsel %vm113_vm5, %v437_v13, %v431_v12  ;;  %s1667_s5 = smov 90   ;;  %vm69_vm7 = vcmask 359424   ;;  %v475_v26 = vsel %vm5_vm0, %v1448_v16, %v1447_v14 }
  0x24   :  { %v1450_v18 = vld [vmem:[%s2536_s0 + $0x79] sm:$0x2]   ;;  %v459_v20 = vsel %vm5_vm0, %v1446_v11, %v1445_v10  ;;  %v1451_v21 = vld [vmem:[%s2536_s0 + $0x51] sm:$0x1]   ;;  %v1455_v28 = vld [vmem:[%s2536_s0 + $0x28] sm:$0x1]  }
  0x25   :  { %v1452_v23 = vld [vmem:[%s2536_s0 + $0x10] sm:$0x2]   ;;  %v481_v27 = vsel %vm5_vm0, %v1450_v18, %v1449_v17  ;;  %v461_v29 = vsel %vm91_vm6, %v459_v20, %v453_v19  ;;  %v1456_v30 = vld [vmem:[%s2536_s0 + $0x67] sm:$0x2]   ;;  %s1668_s14 = smov 88   ;;  %vm47_vm8 = vcmask 375808  }
  0x26   :  { %v1453_v24 = vld [vmem:[%s2536_s0 + $0x11] sm:$0x1]   ;;  %v1457_v31 = vld [vmem:[%s2536_s0 + $0x68] sm:$0x1]   ;;  %v497_v33 = vsel %vm5_vm0, %v1452_v23, %v1451_v21  ;;  %v483_v35 = vsel %vm69_vm7, %v481_v27, %v475_v26  ;;  %s1669_s15 = smov 86   ;;  %vm25_vm9 = vcmask 392192   ;;  %v519_v36 = vsel %vm5_vm0, %v1456_v30, %v1455_v28 }
  0x27   :  { %374 = vrot.lane.b32.xlu0 %v373_v1, %s1665_s16  ;;  %396 = vrot.lane.b32.xlu1 %v395_v8, %s1666_s25  ;;  %v1454_v25 = vld [vmem:[%s2536_s0 + $0x50] sm:$0x2]   ;;  %v1458_v32 = vld [vmem:[%s2536_s0 + $0x27] sm:$0x2]   ;;  %s1670_s16 = smov 84   ;;  %s1671_s21 = smov 82  }
  0x28   :  { %v503_v34 = vsel %vm5_vm0, %v1454_v25, %v1453_v24  ;;  %v525_v37 = vsel %vm5_vm0, %v1458_v32, %v1457_v31  ;;  %v1459_v39 = vld [vmem:[%s2536_s0 + $0x3f] sm:$0x1]   ;;  %v1461_v42 = vld [vmem:[%s2536_s0 + $0x16] sm:$0x1]   ;;  %s1672_s26 = smov 80   ;;  %s1673_s2 = smov 78  }
  0x29   :  { %v505_v38 = vsel %vm47_vm8, %v503_v34, %v497_v33  ;;  %v1460_v40 = vld [vmem:[%s2536_s0 + $0x7e] sm:$0x2]   ;;  %v527_v41 = vsel %vm25_vm9, %v525_v37, %v519_v36  ;;  %v1462_v43 = vld [vmem:[%s2536_s0 + $0x55] sm:$0x2]   ;;  %v1463_v45 = vld [vmem:[%s2536_s0 + $0x2d] sm:$0x1]  }
  0x2a   :  { %v541_v44 = vsel %vm5_vm0, %v1460_v40, %v1459_v39  ;;  %v1464_v46 = vld [vmem:[%s2536_s0 + $0x6c] sm:$0x2]   ;;  %v552_v47 = vsel %vm5_vm0, %v1462_v43, %v1461_v42  ;;  %v1465_v48 = vld [vmem:[%s2536_s0 + $0x4] sm:$0x1]   ;;  %s1674_s7 = smov 76   ;;  %s1675_s12 = smov 74  }
  0x2b   :  { %418 = vrot.lane.b32.xlu0 %v417_v15, %s1667_s5  ;;  %440 = vrot.lane.b32.xlu1 %v439_v22, %s1668_s14  ;;  %v1466_v49 = vld [vmem:[%s2536_s0 + $0x43] sm:$0x2]   ;;  %v563_v50 = vsel %vm5_vm0, %v1464_v46, %v1463_v45  ;;  %v1467_v51 = vld [vmem:[%s2536_s0 + $0x1b] sm:$0x1]   ;;  %s1676_s17 = smov 72   ;;  %s1677_s22 = smov 70  }
  0x2c   :  { %v1468_v52 = vld [vmem:[%s2536_s0 + $0x5a] sm:$0x2]   ;;  %v574_v53 = vsel %vm5_vm0, %v1466_v49, %v1465_v48  ;;  %v1469_v54 = vld [vmem:[%s2536_s0 + $0x72] sm:$0x1]   ;;  %v1471_v57 = vld [vmem:[%s2536_s0 + $0x49] sm:$0x1]  }
  0x2d   :  { %v1470_v55 = vld [vmem:[%s2536_s0 + $0x31] sm:$0x2]   ;;  %v585_v56 = vsel %vm5_vm0, %v1468_v52, %v1467_v51  ;;  %v1472_v58 = vld [vmem:[%s2536_s0 + $0x8] sm:$0x2]   ;;  %v1473_v60 = vld [vmem:[%s2536_s0 + $0x20] sm:$0x1]  }
  0x2e   :  { %v596_v59 = vsel %vm5_vm0, %v1470_v55, %v1469_v54  ;;  %v1474_v61 = vld [vmem:[%s2536_s0 + $0x5f] sm:$0x2]   ;;  %v607_v62 = vsel %vm5_vm0, %v1472_v58, %v1471_v57  ;;  %s1678_s27 = smov 68   ;;  %v1475_v63 = vld [vmem:[%s2536_s0 + $0x37] sm:$0x1]   ;;  %s1679_s3 = smov 66  }
  0x2f   :  { %462 = vrot.lane.b32.xlu0 %v461_v29, %s1669_s15  ;;  %484 = vrot.lane.b32.xlu1 %v483_v35, %s1670_s16  ;;  %v1476_v0 = vld [vmem:[%s2536_s0 + $0x76] sm:$0x2]   ;;  %v618_v1 = vsel %vm5_vm0, %v1474_v61, %v1473_v60  ;;  %v1477_v2 = vld [vmem:[%s2536_s0 + $0xe] sm:$0x1]   ;;  %s1680_s8 = smov 64   ;;  %s1681_s13 = smov 62  }
  0x30   :  { %v1478_v3 = vld [vmem:[%s2536_s0 + $0x4d] sm:$0x2]   ;;  %v629_v4 = vsel %vm5_vm0, %v1476_v0, %v1475_v63  ;;  %v1479_v5 = vld [vmem:[%s2536_s0 + $0x25] sm:$0x1]   ;;  %v1481_v8 = vld [vmem:[%s2536_s0 + $0x7c] sm:$0x1]  }
  0x31   :  { %v1480_v6 = vld [vmem:[%s2536_s0 + $0x64] sm:$0x2]   ;;  %v640_v7 = vsel %vm5_vm0, %v1478_v3, %v1477_v2  ;;  %v1482_v9 = vld [vmem:[%s2536_s0 + $0x3b] sm:$0x2]   ;;  %s1682_s18 = smov 60   ;;  %s1683_s23 = smov 58  }
  0x32   :  { %v651_v10 = vsel %vm5_vm0, %v1480_v6, %v1479_v5  ;;  %v1483_v11 = vld [vmem:[%s2536_s0 + $0x53] sm:$0x1]   ;;  %v662_v13 = vsel %vm5_vm0, %v1482_v9, %v1481_v8  ;;  %v1485_v14 = vld [vmem:[%s2536_s0 + $0x2a] sm:$0x1]   ;;  %s1684_s28 = smov 56   ;;  %vm7_vm10 = vcmask 408576  }
  0x33   :  { %506 = vrot.lane.b32.xlu0 %v505_v38, %s1671_s21  ;;  %528 = vrot.lane.b32.xlu1 %v527_v41, %s1672_s26  ;;  %v1484_v12 = vld [vmem:[%s2536_s0 + $0x12] sm:$0x2]   ;;  %v1486_v15 = vld [vmem:[%s2536_s0 + $0x69] sm:$0x2]   ;;  %s1690_s4 = smov 44   ;;  %s1691_s9 = smov 42  }
  0x34   :  { %v673_v16 = vsel %vm5_vm0, %v1484_v12, %v1483_v11  ;;  %v1487_v17 = vld [vmem:[%s2536_s0 + $0x1] sm:$0x1]   ;;  %v2_v19 = vld [vmem:[%s2536_s0] sm:$0x1]   ;;  %v684_v20 = vsel %vm5_vm0, %v1486_v15, %v1485_v14  ;;  %v1489_v22 = vld [vmem:[%s2536_s0 + $0x18] sm:$0x1]  }
  0x35   :  { %v1488_v18 = vld [vmem:[%s2536_s0 + $0x40] sm:$0x2]   ;;  %v1362_v21 = vld [vmem:[%s2536_s0 + $0x3f] sm:$0x2]   ;;  %v1490_v23 = vld [vmem:[%s2536_s0 + $0x57] sm:$0x2]  }
  0x36   :  { %v6_v24 = vsel %vm5_vm0, %v1362_v21, %v2_v19  ;;  %v695_v25 = vsel %vm5_vm0, %v1488_v18, %v1487_v17  ;;  %v1491_v26 = vld [vmem:[%s2536_s0 + $0x2f] sm:$0x1]   ;;  %v705_v28 = vsel %vm5_vm0, %v1490_v23, %v1489_v22  ;;  %v1493_v29 = vld [vmem:[%s2536_s0 + $0x6] sm:$0x1]   ;;  %v1495_v32 = vld [vmem:[%s2536_s0 + $0x5d] sm:$0x1]  }
  0x37   :  { %542 = vrot.lane.b32.xlu0 %v541_v44, %s1673_s2  ;;  %553 = vrot.lane.b32.xlu1 %v552_v47, %s1674_s7  ;;  %8 = vst.msk [vmem:[#allocation0] ss:$200 sm:$0x3] %vm7_vm10, %v6_v24   ;;  %v1492_v27 = vld [vmem:[%s2536_s0 + $0x6e] sm:$0x2]   ;;  %s1692_s14 = smov 40  }
  0x38   :  { %v1494_v30 = vld [vmem:[%s2536_s0 + $0x45] sm:$0x2]   ;;  %v716_v31 = vsel %vm5_vm0, %v1492_v27, %v1491_v26  ;;  %v1496_v33 = vld [vmem:[%s2536_s0 + $0x1c] sm:$0x2]   ;;  %v1497_v35 = vld [vmem:[%s2536_s0 + $0x34] sm:$0x1]  }
  0x39   :  { %v727_v34 = vsel %vm5_vm0, %v1494_v30, %v1493_v29  ;;  %v1498_v36 = vld [vmem:[%s2536_s0 + $0x73] sm:$0x2]   ;;  %v738_v37 = vsel %vm5_vm0, %v1496_v33, %v1495_v32  ;;  %v1499_v38 = vld [vmem:[%s2536_s0 + $0xb] sm:$0x1]   ;;  %v1501_v41 = vld [vmem:[%s2536_s0 + $0x22] sm:$0x1]  }
  0x3a   :  { %v1500_v39 = vld [vmem:[%s2536_s0 + $0x4a] sm:$0x2]   ;;  %v749_v40 = vsel %vm5_vm0, %v1498_v36, %v1497_v35  ;;  %v1502_v42 = vld [vmem:[%s2536_s0 + $0x61] sm:$0x2]   ;;  %v1503_v44 = vld [vmem:[%s2536_s0 + $0x39] sm:$0x1]  }
  0x3b   :  { %564 = vrot.lane.b32.xlu0 %v563_v50, %s1675_s12  ;;  %575 = vrot.lane.b32.xlu1 %v574_v53, %s1676_s17  ;;  %v760_v43 = vsel %vm5_vm0, %v1500_v39, %v1499_v38  ;;  %v1504_v45 = vld [vmem:[%s2536_s0 + $0x78] sm:$0x2]   ;;  %v771_v46 = vsel %vm5_vm0, %v1502_v42, %v1501_v41  ;;  %s1693_s19 = smov 38   ;;  %v1505_v47 = vld [vmem:[%s2536_s0 + $0x10] sm:$0x1]   ;;  %s1694_s24 = smov 36  }
  0x3c   :  { %v1506_v48 = vld [vmem:[%s2536_s0 + $0x4f] sm:$0x2]   ;;  %v782_v49 = vsel %vm5_vm0, %v1504_v45, %v1503_v44  ;;  %v1507_v50 = vld [vmem:[%s2536_s0 + $0x67] sm:$0x1]   ;;  %s1695_s29 = smov 34   ;;  %s1696_s5 = smov 32  }
  0x3d   :  { %v1508_v51 = vld [vmem:[%s2536_s0 + $0x26] sm:$0x2]   ;;  %v793_v52 = vsel %vm5_vm0, %v1506_v48, %v1505_v47  ;;  %v1509_v53 = vld [vmem:[%s2536_s0 + $0x3e] sm:$0x1]   ;;  %v1512_v57 = vld [vmem:[%s2536_s0 + $0x54] sm:$0x2]  }
  0x3e   :  { %v1510_v54 = vld [vmem:[%s2536_s0 + $0x7d] sm:$0x2]   ;;  %v804_v55 = vsel %vm5_vm0, %v1508_v51, %v1507_v50  ;;  %s1697_s10 = smov 30   ;;  %v1514_v60 = vld [vmem:[%s2536_s0 + $0x6b] sm:$0x2]   ;;  %s1698_s15 = smov 28  }
  0x3f   :  { %586 = vrot.lane.b32.xlu0 %v585_v56, %s1677_s22  ;;  %597 = vrot.lane.b32.xlu1 %v596_v59, %s1678_s27  ;;  %v1511_v56 = vld [vmem:[%s2536_s0 + $0x15] sm:$0x1]   ;;  %v815_v58 = vsel %vm5_vm0, %v1510_v54, %v1509_v53  ;;  %v1513_v59 = vld [vmem:[%s2536_s0 + $0x2c] sm:$0x1]   ;;  %s1699_s20 = smov 26   ;;  %s1700_s25 = smov 24  }
  0x40   :  { %v826_v61 = vsel %vm5_vm0, %v1512_v57, %v1511_v56  ;;  %v1516_v63 = vld [vmem:[%s2536_s0 + $0x42] sm:$0x2]   ;;  %v837_v0 = vsel %vm5_vm0, %v1514_v60, %v1513_v59  ;;  %v1518_v2 = vld [vmem:[%s2536_s0 + $0x59] sm:$0x2]   ;;  %v1520_v5 = vld [vmem:[%s2536_s0 + $0x30] sm:$0x2]  }
  0x41   :  { %s1701_s30 = smov 22   ;;  %v1522_v8 = vld [vmem:[%s2536_s0 + $0x7] sm:$0x2]   ;;  %s1702_s6 = smov 20   ;;  %v1524_v11 = vld [vmem:[%s2536_s0 + $0x5e] sm:$0x2]  }
  0x42   :  { %s1703_s11 = smov 18   ;;  %v1526_v14 = vld [vmem:[%s2536_s0 + $0x75] sm:$0x2]   ;;  %s1704_s16 = smov 16   ;;  %v1528_v17 = vld [vmem:[%s2536_s0 + $0x4c] sm:$0x2]  }
  0x43   :  { %608 = vrot.lane.b32.xlu0 %v607_v62, %s1679_s3  ;;  %619 = vrot.lane.b32.xlu1 %v618_v1, %s1680_s8  ;;  %s1685_s8 = smov 54   ;;  %v1515_v62 = vld [vmem:[%s2536_s0 + $0x3] sm:$0x1]   ;;  %v1517_v1 = vld [vmem:[%s2536_s0 + $0x1a] sm:$0x1]   ;;  %s1705_s21 = smov 14  }
  0x44   :  { %v848_v3 = vsel %vm5_vm0, %v1516_v63, %v1515_v62  ;;  %v859_v6 = vsel %vm5_vm0, %v1518_v2, %v1517_v1  ;;  %vm28_vm10 = vcmask 1048560   ;;  %v1529_v19 = vld [vmem:[%s2536_s0 + $0x24] sm:$0x1]   ;;  %s1706_s26 = smov 12   ;;  %vm72_vm11 = vcmask 1048528   ;;  %s1707_s2 = smov 10  }
  0x45   :  { %v1531_v23 = vld [vmem:[%s2536_s0 + $0x7b] sm:$0x1]   ;;  %v1533_v27 = vld [vmem:[%s2536_s0 + $0x52] sm:$0x1]   ;;  %s1708_s7 = smov 8   ;;  %s1710_s12 = smov 4  }
  0x46   :  { %v1532_v24 = vld [vmem:[%s2536_s0 + $0x3a] sm:$0x2]   ;;  %v1536_v32 = vld [vmem:[%s2536_s0 + $0x68] sm:$0x2]  }
  0x47   :  { %630 = vrot.lane.b32.xlu0 %v629_v4, %s1681_s13  ;;  %641 = vrot.lane.b32.xlu1 %v640_v7, %s1682_s18  ;;  %s1686_s13 = smov 52   ;;  %s1687_s18 = smov 50   ;;  %v1519_v4 = vld [vmem:[%s2536_s0 + $0x71] sm:$0x1]   ;;  %v1521_v7 = vld [vmem:[%s2536_s0 + $0x48] sm:$0x1]   ;;  %v936_v29 = vsel %vm5_vm0, %v1532_v24, %v1531_v23 }
  0x48   :  { %v870_v9 = vsel %vm5_vm0, %v1520_v5, %v1519_v4  ;;  %v881_v12 = vsel %vm5_vm0, %v1522_v8, %v1521_v7 }
  0x4b   :  { %652 = vrot.lane.b32.xlu0 %v651_v10, %s1683_s23  ;;  %663 = vrot.lane.b32.xlu1 %v662_v13, %s1684_s28  ;;  %s1688_s23 = smov 48   ;;  %s1689_s28 = smov 46   ;;  %v1523_v10 = vld [vmem:[%s2536_s0 + $0x1f] sm:$0x1]   ;;  %v1525_v13 = vld [vmem:[%s2536_s0 + $0x36] sm:$0x1]  }
  0x4c   :  { %v892_v15 = vsel %vm5_vm0, %v1524_v11, %v1523_v10  ;;  %v903_v18 = vsel %vm5_vm0, %v1526_v14, %v1525_v13 }
  0x4f   :  { %674 = vrot.lane.b32.xlu0 %v673_v16, %s1685_s8  ;;  %685 = vrot.lane.b32.xlu1 %v684_v20, %s1686_s13  ;;  %v1527_v16 = vld [vmem:[%s2536_s0 + $0xd] sm:$0x1]   ;;  %v1530_v20 = vld [vmem:[%s2536_s0 + $0x63] sm:$0x2]   ;;  %s1711_s13 = smov 2  }
  0x50   :  { %v914_v21 = vsel %vm5_vm0, %v1528_v17, %v1527_v16 }
  0x53   :  { %696 = vrot.lane.b32.xlu0 %v695_v25, %s1687_s18  ;;  %706 = vrot.lane.b32.xlu1 %v705_v28, %s1688_s23  ;;  %v925_v25 = vsel %vm5_vm0, %v1530_v20, %v1529_v19  ;;  %v1534_v28 = vld [vmem:[%s2536_s0 + $0x11] sm:$0x2]  }
  0x54   :  { %v947_v33 = vsel %vm5_vm0, %v1534_v28, %v1533_v27 }
  0x57   :  { %717 = vrot.lane.b32.xlu0 %v716_v31, %s1689_s28  ;;  %728 = vrot.lane.b32.xlu1 %v727_v34, %s1690_s4  ;;  %v1535_v31 = vld [vmem:[%s2536_s0 + $0x29] sm:$0x1]   ;;  %s1709_s0 = smov 6  }
  0x58   :  { %v958_v35 = vsel %vm5_vm0, %v1536_v32, %v1535_v31  ;;  %vm138_vm0 = vcmask 1048480  }
  0x5b   :  { %739 = vrot.lane.b32.xlu0 %v738_v37, %s1691_s9  ;;  %750 = vrot.lane.b32.xlu1 %v749_v40, %s1692_s14 }
  0x5f   :  { %761 = vrot.lane.b32.xlu0 %v760_v43, %s1693_s19  ;;  %772 = vrot.lane.b32.xlu1 %v771_v46, %s1694_s24 }
  0x63   :  { %783 = vrot.lane.b32.xlu0 %v782_v49, %s1695_s29  ;;  %794 = vrot.lane.b32.xlu1 %v793_v52, %s1696_s5 }
  0x67   :  { %805 = vrot.lane.b32.xlu0 %v804_v55, %s1697_s10  ;;  %816 = vrot.lane.b32.xlu1 %v815_v58, %s1698_s15 }
  0x6b   :  { %827 = vrot.lane.b32.xlu0 %v826_v61, %s1699_s20  ;;  %838 = vrot.lane.b32.xlu1 %v837_v0, %s1700_s25 }
  0x6f   :  { %849 = vrot.lane.b32.xlu0 %v848_v3, %s1701_s30  ;;  %860 = vrot.lane.b32.xlu1 %v859_v6, %s1702_s6 }
  0x73   :  { %871 = vrot.lane.b32.xlu0 %v870_v9, %s1703_s11  ;;  %882 = vrot.lane.b32.xlu1 %v881_v12, %s1704_s16 }
  0x77   :  { %893 = vrot.lane.b32.xlu0 %v892_v15, %s1705_s21  ;;  %904 = vrot.lane.b32.xlu1 %v903_v18, %s1706_s26 }
  0x79   :  { %v24_v22 = vpop.permute.xlu0 %23   ;;  %v68_v26 = vpop.permute.xlu1 %67  }
  0x7a   :  { %27 = vst.msk [vmem:[#allocation0 + $0x48] ss:$200 sm:$0x3] %vm25_vm9, %v24_v22   ;;  %vm50_vm9 = vcmask 1048544  }
  0x7b   :  { %30 = vst.msk [vmem:[#allocation0 + $0x40] ss:$200 sm:$0x3] %vm28_vm10, %v24_v22   ;;  %915 = vrot.lane.b32.xlu0 %v914_v21, %s1707_s2  ;;  %926 = vrot.lane.b32.xlu1 %v925_v25, %s1708_s7  ;;  %vm2550_vm10 = vcmask 162816  }
  0x7c   :  { %71 = vst.msk [vmem:[#allocation0 + $0x10] ss:$200 sm:$0x3] %vm69_vm7, %v68_v26   ;;  %vm94_vm7 = vcmask 1048512  }
  0x7d   :  { %74 = vst.msk [vmem:[#allocation0 + $0x8] ss:$200 sm:$0x3] %vm72_vm11, %v68_v26   ;;  %v46_v30 = vpop.permute.xlu0 %45   ;;  %v90_v34 = vpop.permute.xlu1 %89   ;;  %vm292_vm11 = vcmask 1048368  }
  0x7e   :  { %49 = vst.msk [vmem:[#allocation0 + $0x90] ss:$200 sm:$0x3] %vm47_vm8, %v46_v30   ;;  %vm116_vm8 = vcmask 1048496  }
  0x7f   :  { %52 = vst.msk [vmem:[#allocation0 + $0x88] ss:$200 sm:$0x3] %vm50_vm9, %v46_v30   ;;  %937 = vrot.lane.b32.xlu0 %v936_v29, %s1709_s0  ;;  %948 = vrot.lane.b32.xlu1 %v947_v33, %s1710_s12  ;;  %vm379_vm9 = vcmask 1048304  }
  0x80   :  { %93 = vst.msk [vmem:[#allocation0 + $0x120] ss:$-200 sm:$0x3] %vm91_vm6, %v90_v34   ;;  %vm270_vm6 = vcmask 1048384  }
  0x81   :  { %96 = vst.msk [vmem:[#allocation0 + $0x50] ss:$200 sm:$0x3] %vm94_vm7, %v90_v34   ;;  %v112_v36 = vpop.permute.xlu0 %111   ;;  %v134_v37 = vpop.permute.xlu1 %133   ;;  %vm2551_vm7 = vcmask 146432  }
  0x82   :  { %115 = vst.msk [vmem:[#allocation0 + $0xa0] ss:$200 sm:$0x3] %vm113_vm5, %v112_v36   ;;  %vm160_vm5 = vcmask 1048464  }
  0x83   :  { %118 = vst.msk [vmem:[#allocation0 + $0x160] ss:$-200 sm:$0x3] %vm116_vm8, %v112_v36   ;;  %959 = vrot.lane.b32.xlu0 %v958_v35, %s1711_s13  ;;  %vm401_vm8 = vcmask 1048288  }
  0x84   :  { %137 = vst.msk [vmem:[#allocation0 + $0x20] ss:$200 sm:$0x3] %vm135_vm4, %v134_v37   ;;  %vm182_vm4 = vcmask 1048448  }
  0x85   :  { %140 = vst.msk [vmem:[#allocation0 + $0xe0] ss:$-200 sm:$0x3] %vm138_vm0, %v134_v37   ;;  %v156_v38 = vpop.permute.xlu0 %155   ;;  %v178_v39 = vpop.permute.xlu1 %177   ;;  %vm2552_vm0 = vcmask 130048  }
  0x86   :  { %159 = vst.msk [vmem:[#allocation0 + $0x68] ss:$200 sm:$0x3] %vm157_vm2, %v156_v38   ;;  %vm204_vm2 = vcmask 1048432  }
  0x87   :  { %162 = vst.msk [vmem:[#allocation0 + $0x60] ss:$200 sm:$0x3] %vm160_vm5, %v156_v38   ;;  %vm423_vm5 = vcmask 1048272  }
  0x88   :  { %181 = vst.msk [vmem:[#allocation0 + $0xb0] ss:$200 sm:$0x3] %vm179_vm3, %v178_v39   ;;  %vm226_vm3 = vcmask 1048416  }
  0x89   :  { %184 = vst.msk [vmem:[#allocation0 + $0xa8] ss:$200 sm:$0x3] %vm182_vm4, %v178_v39   ;;  %v200_v40 = vpop.permute.xlu0 %199   ;;  %v222_v41 = vpop.permute.xlu1 %221   ;;  %vm2553_vm4 = vcmask 113664  }
  0x8a   :  { %203 = vst.msk [vmem:[#allocation0 + $0x30] ss:$200 sm:$0x3] %vm201_vm1, %v200_v40   ;;  %vm248_vm1 = vcmask 1048400  }
  0x8b   :  { %206 = vst.msk [vmem:[#allocation0 + $0x28] ss:$200 sm:$0x3] %vm204_vm2, %v200_v40   ;;  %vm445_vm2 = vcmask 1048256  }
  0x8c   :  { %225 = vst.msk [vmem:[#allocation0 + $0x140] ss:$-200 sm:$0x3] %vm223_vm15, %v222_v41   ;;  %vm357_vm15 = vcmask 1048320  }
  0x8d   :  { %228 = vst.msk [vmem:[#allocation0 + $0x70] ss:$200 sm:$0x3] %vm226_vm3, %v222_v41   ;;  %v244_v42 = vpop.permute.xlu0 %243   ;;  %v266_v43 = vpop.permute.xlu1 %265   ;;  %vm2554_vm3 = vcmask 97280  }
  0x8e   :  { %247 = vst.msk [vmem:[#allocation0 + $0xc0] ss:$200 sm:$0x3] %vm245_vm14, %v244_v42   ;;  %vm2549_vm14 = vcmask 179200  }
  0x8f   :  { %250 = vst.msk [vmem:[#allocation0 + $0x180] ss:$-200 sm:$0x3] %vm248_vm1, %v244_v42   ;;  %vm467_vm1 = vcmask 1048240  }
  0x90   :  { %269 = vst.msk [vmem:[#allocation0 + $0x40] ss:$200 sm:$0x3] %vm267_vm13, %v266_v43   ;;  %vm314_vm13 = vcmask 1048352  }
  0x91   :  { %272 = vst.msk [vmem:[#allocation0 + $0x100] ss:$-200 sm:$0x3] %vm270_vm6, %v266_v43   ;;  %v288_v44 = vpop.permute.xlu0 %287   ;;  %v310_v45 = vpop.permute.xlu1 %309   ;;  %vm2555_vm6 = vcmask 80896  }
  0x92   :  { %291 = vst.msk [vmem:[#allocation0 + $0x88] ss:$200 sm:$0x3] %vm263_vm12, %v288_v44   ;;  %vm335_vm12 = vcmask 1048336  }
  0x93   :  { %294 = vst.msk [vmem:[#allocation0 + $0x80] ss:$200 sm:$0x3] %vm292_vm11, %v288_v44   ;;  %vm489_vm11 = vcmask 1048224  }
  0x94   :  { %313 = vst.msk [vmem:[#allocation0 + $0x8] ss:$200 sm:$0x3] %vm2549_vm14, %v310_v45   ;;  %vm2557_vm14 = vcmask 48128  }
  0x95   :  { %315 = vst.msk [vmem:[#allocation0] ss:$200 sm:$0x3] %vm314_vm13, %v310_v45   ;;  %v331_v46 = vpop.permute.xlu0 %330   ;;  %v353_v47 = vpop.permute.xlu1 %352   ;;  %vm2556_vm13 = vcmask 64512  }
  0x96   :  { %334 = vst.msk [vmem:[#allocation0 + $0x50] ss:$200 sm:$0x3] %vm2550_vm10, %v331_v46   ;;  %vm2558_vm10 = vcmask 31744  }
  0x97   :  { %337 = vst.msk [vmem:[#allocation0 + $0x48] ss:$200 sm:$0x3] %vm335_vm12, %v331_v46   ;;  %vm511_vm12 = vcmask 1048208  }
  0x98   :  { %356 = vst.msk [vmem:[#allocation0 + $0x160] ss:$-200 sm:$0x3] %vm2551_vm7, %v353_v47   ;;  %vm2559_vm7 = vcmask 15360  }
  0x99   :  { %359 = vst.msk [vmem:[#allocation0 + $0x90] ss:$200 sm:$0x3] %vm357_vm15, %v353_v47   ;;  %v375_v48 = vpop.permute.xlu0 %374   ;;  %v397_v49 = vpop.permute.xlu1 %396   ;;  %vm533_vm15 = vcmask 1048192  }
  0x9a   :  { %378 = vst.msk [vmem:[#allocation0 + $0xe0] ss:$-200 sm:$0x3] %vm2552_vm0, %v375_v48   ;;  %vm566_vm0 = vcmask 1015376  }
  0x9b   :  { %381 = vst.msk [vmem:[#allocation0 + $0x10] ss:$200 sm:$0x3] %vm379_vm9, %v375_v48   ;;  %vm544_vm9 = vcmask 1048176  }
  0x9c   :  { %400 = vst.msk [vmem:[#allocation0 + $0x60] ss:$200 sm:$0x3] %vm2553_vm4, %v397_v49   ;;  %vm588_vm4 = vcmask 982576  }
  0x9d   :  { %403 = vst.msk [vmem:[#allocation0 + $0x120] ss:$-200 sm:$0x3] %vm401_vm8, %v397_v49   ;;  %v419_v50 = vpop.permute.xlu0 %418   ;;  %v441_v51 = vpop.permute.xlu1 %440   ;;  %vm555_vm8 = vcmask 1031776  }
  0x9e   :  { %422 = vst.msk [vmem:[#allocation0 + $0xa8] ss:$200 sm:$0x3] %vm2554_vm3, %v419_v50   ;;  %vm610_vm3 = vcmask 949776  }
  0x9f   :  { %425 = vst.msk [vmem:[#allocation0 + $0xa0] ss:$200 sm:$0x3] %vm423_vm5, %v419_v50   ;;  %vm577_vm5 = vcmask 998976  }
  0xa0   :  { %444 = vst.msk [vmem:[#allocation0 + $0x28] ss:$200 sm:$0x3] %vm2555_vm6, %v441_v51   ;;  %vm632_vm6 = vcmask 916976  }
  0xa1   :  { %447 = vst.msk [vmem:[#allocation0 + $0x20] ss:$200 sm:$0x3] %vm445_vm2, %v441_v51   ;;  %v463_v52 = vpop.permute.xlu0 %462   ;;  %v485_v53 = vpop.permute.xlu1 %484   ;;  %vm599_vm2 = vcmask 966176  }
  0xa2   :  { %466 = vst.msk [vmem:[#allocation0 + $0x70] ss:$200 sm:$0x3] %vm2556_vm13, %v463_v52   ;;  %vm654_vm13 = vcmask 884176  }
  0xa3   :  { %469 = vst.msk [vmem:[#allocation0 + $0x68] ss:$200 sm:$0x3] %vm467_vm1, %v463_v52   ;;  %vm621_vm1 = vcmask 933376  }
  0xa4   :  { %488 = vst.msk [vmem:[#allocation0 + $0x180] ss:$-200 sm:$0x3] %vm2557_vm14, %v485_v53   ;;  %vm676_vm14 = vcmask 851376  }
  0xa5   :  { %491 = vst.msk [vmem:[#allocation0 + $0xb0] ss:$200 sm:$0x3] %vm489_vm11, %v485_v53   ;;  %v507_v54 = vpop.permute.xlu0 %506   ;;  %v529_v55 = vpop.permute.xlu1 %528   ;;  %vm643_vm11 = vcmask 900576  }
  0xa6   :  { %510 = vst.msk [vmem:[#allocation0 + $0x100] ss:$-200 sm:$0x3] %vm2558_vm10, %v507_v54   ;;  %vm698_vm10 = vcmask 818576  }
  0xa7   :  { %513 = vst.msk [vmem:[#allocation0 + $0x30] ss:$200 sm:$0x3] %vm511_vm12, %v507_v54   ;;  %vm665_vm12 = vcmask 867776  }
  0xa8   :  { %532 = vst.msk [vmem:[#allocation0 + $0x80] ss:$200 sm:$0x3] %vm2559_vm7, %v529_v55   ;;  %vm719_vm7 = vcmask 785776  }
  0xa9   :  { %535 = vst.msk [vmem:[#allocation0 + $0x140] ss:$-200 sm:$0x3] %vm533_vm15, %v529_v55   ;;  %v543_v56 = vpop.permute.xlu0 %542   ;;  %v554_v57 = vpop.permute.xlu1 %553   ;;  %vm687_vm15 = vcmask 834976  }
  0xaa   :  { %546 = vst.msk [vmem:[#allocation0 + $0xc0] ss:$200 sm:$0x3] %vm544_vm9, %v543_v56   ;;  %vm708_vm9 = vcmask 802176  }
  0xab   :  { %557 = vst.msk [vmem:[#allocation0 + $0x40] ss:$200 sm:$0x3] %vm555_vm8, %v554_v57   ;;  %vm730_vm8 = vcmask 769376  }
  0xad   :  { %v565_v58 = vpop.permute.xlu0 %564   ;;  %v576_v59 = vpop.permute.xlu1 %575  }
  0xae   :  { %568 = vst.msk [vmem:[#allocation0 + $0x88] ss:$200 sm:$0x3] %vm566_vm0, %v565_v58   ;;  %vm741_vm0 = vcmask 752976  }
  0xaf   :  { %579 = vst.msk [vmem:[#allocation0 + $0x8] ss:$200 sm:$0x3] %vm577_vm5, %v576_v59   ;;  %vm752_vm5 = vcmask 736576  }
  0xb1   :  { %v587_v60 = vpop.permute.xlu0 %586   ;;  %v598_v61 = vpop.permute.xlu1 %597  }
  0xb2   :  { %590 = vst.msk [vmem:[#allocation0 + $0x50] ss:$200 sm:$0x3] %vm588_vm4, %v587_v60   ;;  %vm763_vm4 = vcmask 720176  }
  0xb3   :  { %601 = vst.msk [vmem:[#allocation0 + $0x160] ss:$-200 sm:$0x3] %vm599_vm2, %v598_v61   ;;  %vm774_vm2 = vcmask 703776  }
  0xb5   :  { %v609_v62 = vpop.permute.xlu0 %608   ;;  %v620_v63 = vpop.permute.xlu1 %619  }
  0xb6   :  { %612 = vst.msk [vmem:[#allocation0 + $0xe0] ss:$-200 sm:$0x3] %vm610_vm3, %v609_v62   ;;  %vm785_vm3 = vcmask 687376  }
  0xb7   :  { %623 = vst.msk [vmem:[#allocation0 + $0x60] ss:$200 sm:$0x3] %vm621_vm1, %v620_v63   ;;  %vm796_vm1 = vcmask 670976  }
  0xb9   :  { %v631_v0 = vpop.permute.xlu0 %630   ;;  %v642_v1 = vpop.permute.xlu1 %641  }
  0xba   :  { %634 = vst.msk [vmem:[#allocation0 + $0xa8] ss:$200 sm:$0x3] %vm632_vm6, %v631_v0   ;;  %vm807_vm6 = vcmask 654576  }
  0xbb   :  { %645 = vst.msk [vmem:[#allocation0 + $0x28] ss:$200 sm:$0x3] %vm643_vm11, %v642_v1   ;;  %vm818_vm11 = vcmask 638176  }
  0xbd   :  { %v653_v2 = vpop.permute.xlu0 %652   ;;  %v664_v3 = vpop.permute.xlu1 %663  }
  0xbe   :  { %656 = vst.msk [vmem:[#allocation0 + $0x70] ss:$200 sm:$0x3] %vm654_vm13, %v653_v2   ;;  %vm829_vm13 = vcmask 621776  }
  0xbf   :  { %667 = vst.msk [vmem:[#allocation0 + $0x180] ss:$-200 sm:$0x3] %vm665_vm12, %v664_v3   ;;  %vm840_vm12 = vcmask 605376  }
  0xc1   :  { %v675_v4 = vpop.permute.xlu0 %674   ;;  %v686_v5 = vpop.permute.xlu1 %685  }
  0xc2   :  { %678 = vst.msk [vmem:[#allocation0 + $0x100] ss:$-200 sm:$0x3] %vm676_vm14, %v675_v4   ;;  %vm851_vm14 = vcmask 588976  }
  0xc3   :  { %689 = vst.msk [vmem:[#allocation0 + $0x80] ss:$200 sm:$0x3] %vm687_vm15, %v686_v5   ;;  %vm862_vm15 = vcmask 572576  }
  0xc5   :  { %v697_v6 = vpop.permute.xlu0 %696   ;;  %v707_v7 = vpop.permute.xlu1 %706  }
  0xc6   :  { %699 = vst.msk [vmem:[#allocation0] ss:$200 sm:$0x3] %vm698_vm10, %v697_v6   ;;  %vm873_vm10 = vcmask 556176  }
  0xc7   :  { %710 = vst.msk [vmem:[#allocation0 + $0x48] ss:$200 sm:$0x3] %vm708_vm9, %v707_v7   ;;  %vm884_vm9 = vcmask 539776  }
  0xc9   :  { %v718_v8 = vpop.permute.xlu0 %717   ;;  %v729_v9 = vpop.permute.xlu1 %728  }
  0xca   :  { %721 = vst.msk [vmem:[#allocation0 + $0x90] ss:$200 sm:$0x3] %vm719_vm7, %v718_v8   ;;  %vm895_vm7 = vcmask 523376  }
  0xcb   :  { %732 = vst.msk [vmem:[#allocation0 + $0x10] ss:$200 sm:$0x3] %vm730_vm8, %v729_v9   ;;  %vm906_vm8 = vcmask 506976  }
  0xcd   :  { %v968_v10 = vld [vmem:[#allocation0] sm:$0x1]  ;;  %v1140_v11 = vld [vmem:[#allocation0 + $0xc8] sm:$0x1]  ;;  %v740_v12 = vpop.permute.xlu0 %739   ;;  %v751_v15 = vpop.permute.xlu1 %750  }
  0xce   :  { %971 = vst [vmem:[%s2537_s1] sm:$0x1] %v968_v10  ;;  %1561 = vst [vmem:[%s2537_s1 + $0x19] sm:$0x1] %v1140_v11  ;;  %v1028_v13 = vld [vmem:[#allocation0 + $0x48] sm:$0x1] }
  0xcf   :  { %743 = vst.msk [vmem:[#allocation0 + $0x120] ss:$-200 sm:$0x3] %vm741_vm0, %v740_v12   ;;  %v1203_v14 = vld [vmem:[#allocation0 + $0x110] sm:$0x1]  ;;  %vm917_vm0 = vcmask 490576  }
  0xd0   :  { %1545 = vst [vmem:[%s2537_s1 + $0x9] sm:$0x1] %v1028_v13  ;;  %1570 = vst [vmem:[%s2537_s1 + $0x22] sm:$0x1] %v1203_v14 }
  0xd1   :  { %754 = vst.msk [vmem:[#allocation0 + $0xa0] ss:$200 sm:$0x3] %vm752_vm5, %v751_v15   ;;  %v1091_v16 = vld [vmem:[#allocation0 + $0x90] sm:$0x1]  ;;  %v762_v18 = vpop.permute.xlu0 %761   ;;  %v773_v21 = vpop.permute.xlu1 %772   ;;  %vm928_vm5 = vcmask 474176  }
  0xd2   :  { %v1266_v17 = vld [vmem:[#allocation0 + $0x158] sm:$0x1]  ;;  %1554 = vst [vmem:[%s2537_s1 + $0x12] sm:$0x1] %v1091_v16  ;;  %v979_v19 = vld [vmem:[#allocation0 + $0x10] sm:$0x1] }
  0xd3   :  { %1579 = vst [vmem:[%s2537_s1 + $0x2b] sm:$0x1] %v1266_v17  ;;  %765 = vst.msk [vmem:[#allocation0 + $0x20] ss:$200 sm:$0x3] %vm763_vm4, %v762_v18   ;;  %vm939_vm4 = vcmask 457776  }
  0xd4   :  { %v1154_v20 = vld [vmem:[#allocation0 + $0xd8] sm:$0x1]  ;;  %1538 = vst [vmem:[%s2537_s1 + $0x2] sm:$0x1] %v979_v19 }
  0xd5   :  { %1563 = vst [vmem:[%s2537_s1 + $0x1b] sm:$0x1] %v1154_v20  ;;  %776 = vst.msk [vmem:[#allocation0 + $0x68] ss:$200 sm:$0x3] %vm774_vm2, %v773_v21   ;;  %v784_v24 = vpop.permute.xlu0 %783   ;;  %v795_v27 = vpop.permute.xlu1 %794   ;;  %vm950_vm2 = vcmask 441376  }
  0xd6   :  { %v1042_v22 = vld [vmem:[#allocation0 + $0x58] sm:$0x1]  ;;  %v1217_v23 = vld [vmem:[#allocation0 + $0x120] sm:$0x1] }
  0xd7   :  { %1547 = vst [vmem:[%s2537_s1 + $0xb] sm:$0x1] %v1042_v22  ;;  %1572 = vst [vmem:[%s2537_s1 + $0x24] sm:$0x1] %v1217_v23 }
  0xd8   :  { %787 = vst.msk [vmem:[#allocation0 + $0xb0] ss:$200 sm:$0x3] %vm785_vm3, %v784_v24   ;;  %v1105_v25 = vld [vmem:[#allocation0 + $0xa0] sm:$0x1]  ;;  %vm961_vm3 = vcmask 424976  }
  0xd9   :  { %v1280_v26 = vld [vmem:[#allocation0 + $0x168] sm:$0x1]  ;;  %1556 = vst [vmem:[%s2537_s1 + $0x14] sm:$0x1] %v1105_v25  ;;  %v806_v30 = vpop.permute.xlu0 %805   ;;  %v817_v33 = vpop.permute.xlu1 %816  }
  0xda   :  { %1581 = vst [vmem:[%s2537_s1 + $0x2d] sm:$0x1] %v1280_v26  ;;  %798 = vst.msk [vmem:[#allocation0 + $0x30] ss:$200 sm:$0x3] %vm796_vm1, %v795_v27  }
  0xdb   :  { %v993_v28 = vld [vmem:[#allocation0 + $0x20] sm:$0x1]  ;;  %v1168_v29 = vld [vmem:[#allocation0 + $0xe8] sm:$0x1] }
  0xdc   :  { %1540 = vst [vmem:[%s2537_s1 + $0x4] sm:$0x1] %v993_v28  ;;  %1565 = vst [vmem:[%s2537_s1 + $0x1d] sm:$0x1] %v1168_v29  ;;  %v1056_v31 = vld [vmem:[#allocation0 + $0x68] sm:$0x1] }
  0xdd   :  { %809 = vst.msk [vmem:[#allocation0 + $0x140] ss:$-200 sm:$0x3] %vm807_vm6, %v806_v30   ;;  %v1231_v32 = vld [vmem:[#allocation0 + $0x130] sm:$0x1]  ;;  %v828_v36 = vpop.permute.xlu0 %827   ;;  %v839_v39 = vpop.permute.xlu1 %838  }
  0xde   :  { %1549 = vst [vmem:[%s2537_s1 + $0xd] sm:$0x1] %v1056_v31  ;;  %1574 = vst [vmem:[%s2537_s1 + $0x26] sm:$0x1] %v1231_v32 }
  0xdf   :  { %820 = vst.msk [vmem:[#allocation0 + $0xc0] ss:$200 sm:$0x3] %vm818_vm11, %v817_v33   ;;  %v1119_v34 = vld [vmem:[#allocation0 + $0xb0] sm:$0x1] }
  0xe0   :  { %v1294_v35 = vld [vmem:[#allocation0 + $0x178] sm:$0x1]  ;;  %1558 = vst [vmem:[%s2537_s1 + $0x16] sm:$0x1] %v1119_v34 }
  0xe1   :  { %1583 = vst [vmem:[%s2537_s1 + $0x2f] sm:$0x1] %v1294_v35  ;;  %831 = vst.msk [vmem:[#allocation0 + $0x40] ss:$200 sm:$0x3] %vm829_vm13, %v828_v36   ;;  %v850_v42 = vpop.permute.xlu0 %849   ;;  %v861_v45 = vpop.permute.xlu1 %860  }
  0xe2   :  { %v1007_v37 = vld [vmem:[#allocation0 + $0x30] sm:$0x1]  ;;  %v1182_v38 = vld [vmem:[#allocation0 + $0xf8] sm:$0x1] }
  0xe3   :  { %1542 = vst [vmem:[%s2537_s1 + $0x6] sm:$0x1] %v1007_v37  ;;  %1567 = vst [vmem:[%s2537_s1 + $0x1f] sm:$0x1] %v1182_v38 }
  0xe4   :  { %842 = vst.msk [vmem:[#allocation0 + $0x88] ss:$200 sm:$0x3] %vm840_vm12, %v839_v39   ;;  %v1070_v40 = vld [vmem:[#allocation0 + $0x78] sm:$0x1] }
  0xe5   :  { %v1245_v41 = vld [vmem:[#allocation0 + $0x140] sm:$0x1]  ;;  %1551 = vst [vmem:[%s2537_s1 + $0xf] sm:$0x1] %v1070_v40  ;;  %v872_v48 = vpop.permute.xlu0 %871   ;;  %v883_v51 = vpop.permute.xlu1 %882  }
  0xe6   :  { %1576 = vst [vmem:[%s2537_s1 + $0x28] sm:$0x1] %v1245_v41  ;;  %853 = vst.msk [vmem:[#allocation0 + $0x8] ss:$200 sm:$0x3] %vm851_vm14, %v850_v42  }
  0xe7   :  { %v1133_v43 = vld [vmem:[#allocation0 + $0xc0] sm:$0x1]  ;;  %v1308_v44 = vld [vmem:[#allocation0 + $0x188] sm:$0x1] }
  0xe8   :  { %1560 = vst [vmem:[%s2537_s1 + $0x18] sm:$0x1] %v1133_v43  ;;  %1585 = vst [vmem:[%s2537_s1 + $0x31] sm:$0x1] %v1308_v44  ;;  %v1021_v46 = vld [vmem:[#allocation0 + $0x40] sm:$0x1] }
  0xe9   :  { %864 = vst.msk [vmem:[#allocation0 + $0x50] ss:$200 sm:$0x3] %vm862_vm15, %v861_v45   ;;  %v1196_v47 = vld [vmem:[#allocation0 + $0x108] sm:$0x1]  ;;  %v894_v54 = vpop.permute.xlu0 %893   ;;  %v905_v57 = vpop.permute.xlu1 %904  }
  0xea   :  { %1544 = vst [vmem:[%s2537_s1 + $0x8] sm:$0x1] %v1021_v46  ;;  %1569 = vst [vmem:[%s2537_s1 + $0x21] sm:$0x1] %v1196_v47 }
  0xeb   :  { %875 = vst.msk [vmem:[#allocation0 + $0x160] ss:$-200 sm:$0x3] %vm873_vm10, %v872_v48   ;;  %v1084_v49 = vld [vmem:[#allocation0 + $0x88] sm:$0x1] }
  0xec   :  { %v1259_v50 = vld [vmem:[#allocation0 + $0x150] sm:$0x1]  ;;  %1553 = vst [vmem:[%s2537_s1 + $0x11] sm:$0x1] %v1084_v49 }
  0xed   :  { %1578 = vst [vmem:[%s2537_s1 + $0x2a] sm:$0x1] %v1259_v50  ;;  %886 = vst.msk [vmem:[#allocation0 + $0xe0] ss:$-200 sm:$0x3] %vm884_vm9, %v883_v51   ;;  %v916_v60 = vpop.permute.xlu0 %915   ;;  %v927_v63 = vpop.permute.xlu1 %926  }
  0xee   :  { %v973_v52 = vld [vmem:[#allocation0 + $0x8] sm:$0x1]  ;;  %v1147_v53 = vld [vmem:[#allocation0 + $0xd0] sm:$0x1] }
  0xef   :  { %1537 = vst [vmem:[%s2537_s1 + $0x1] sm:$0x1] %v973_v52  ;;  %1562 = vst [vmem:[%s2537_s1 + $0x1a] sm:$0x1] %v1147_v53 }
  0xf0   :  { %897 = vst.msk [vmem:[#allocation0 + $0x60] ss:$200 sm:$0x3] %vm895_vm7, %v894_v54   ;;  %v1035_v55 = vld [vmem:[#allocation0 + $0x50] sm:$0x1] }
  0xf1   :  { %v1210_v56 = vld [vmem:[#allocation0 + $0x118] sm:$0x1]  ;;  %1546 = vst [vmem:[%s2537_s1 + $0xa] sm:$0x1] %v1035_v55  ;;  %v938_v2 = vpop.permute.xlu0 %937   ;;  %v949_v5 = vpop.permute.xlu1 %948  }
  0xf2   :  { %1571 = vst [vmem:[%s2537_s1 + $0x23] sm:$0x1] %v1210_v56  ;;  %908 = vst.msk [vmem:[#allocation0 + $0xa8] ss:$200 sm:$0x3] %vm906_vm8, %v905_v57  }
  0xf3   :  { %v1098_v58 = vld [vmem:[#allocation0 + $0x98] sm:$0x1]  ;;  %v1273_v59 = vld [vmem:[#allocation0 + $0x160] sm:$0x1] }
  0xf4   :  { %1555 = vst [vmem:[%s2537_s1 + $0x13] sm:$0x1] %v1098_v58  ;;  %1580 = vst [vmem:[%s2537_s1 + $0x2c] sm:$0x1] %v1273_v59  ;;  %v986_v61 = vld [vmem:[#allocation0 + $0x18] sm:$0x1] }
  0xf5   :  { %919 = vst.msk [vmem:[#allocation0 + $0x28] ss:$200 sm:$0x3] %vm917_vm0, %v916_v60   ;;  %v1161_v62 = vld [vmem:[#allocation0 + $0xe0] sm:$0x1]  ;;  %v960_v8 = vpop.permute.xlu0 %959  }
  0xf6   :  { %1539 = vst [vmem:[%s2537_s1 + $0x3] sm:$0x1] %v986_v61  ;;  %1564 = vst [vmem:[%s2537_s1 + $0x1c] sm:$0x1] %v1161_v62 }
  0xf7   :  { %930 = vst.msk [vmem:[#allocation0 + $0x70] ss:$200 sm:$0x3] %vm928_vm5, %v927_v63   ;;  %v1049_v0 = vld [vmem:[#allocation0 + $0x60] sm:$0x1] }
  0xf8   :  { %v1224_v1 = vld [vmem:[#allocation0 + $0x128] sm:$0x1]  ;;  %1548 = vst [vmem:[%s2537_s1 + $0xc] sm:$0x1] %v1049_v0 }
  0xf9   :  { %1573 = vst [vmem:[%s2537_s1 + $0x25] sm:$0x1] %v1224_v1  ;;  %941 = vst.msk [vmem:[#allocation0 + $0x180] ss:$-200 sm:$0x3] %vm939_vm4, %v938_v2  }
  0xfa   :  { %v1112_v3 = vld [vmem:[#allocation0 + $0xa8] sm:$0x1]  ;;  %v1287_v4 = vld [vmem:[#allocation0 + $0x170] sm:$0x1] }
  0xfb   :  { %1557 = vst [vmem:[%s2537_s1 + $0x15] sm:$0x1] %v1112_v3  ;;  %1582 = vst [vmem:[%s2537_s1 + $0x2e] sm:$0x1] %v1287_v4 }
  0xfc   :  { %952 = vst.msk [vmem:[#allocation0 + $0x100] ss:$-200 sm:$0x3] %vm950_vm2, %v949_v5   ;;  %v1000_v6 = vld [vmem:[#allocation0 + $0x28] sm:$0x1] }
  0xfd   :  { %v1175_v7 = vld [vmem:[#allocation0 + $0xf0] sm:$0x1]  ;;  %1541 = vst [vmem:[%s2537_s1 + $0x5] sm:$0x1] %v1000_v6 }
  0xfe   :  { %1566 = vst [vmem:[%s2537_s1 + $0x1e] sm:$0x1] %v1175_v7  ;;  %963 = vst.msk [vmem:[#allocation0 + $0x80] ss:$200 sm:$0x3] %vm961_vm3, %v960_v8  }
  0xff   :  { %v1063_v9 = vld [vmem:[#allocation0 + $0x70] sm:$0x1]  ;;  %v1238_v10 = vld [vmem:[#allocation0 + $0x138] sm:$0x1] }
 0x100   :  { %1550 = vst [vmem:[%s2537_s1 + $0xe] sm:$0x1] %v1063_v9  ;;  %1575 = vst [vmem:[%s2537_s1 + $0x27] sm:$0x1] %v1238_v10  ;;  %v1126_v11 = vld [vmem:[#allocation0 + $0xb8] sm:$0x1] }
 0x101   :  { %v1301_v12 = vld [vmem:[#allocation0 + $0x180] sm:$0x1]  ;;  %1559 = vst [vmem:[%s2537_s1 + $0x17] sm:$0x1] %v1126_v11 }
 0x102   :  { %1584 = vst [vmem:[%s2537_s1 + $0x30] sm:$0x1] %v1301_v12 }
 0x103   :  { %v1014_v13 = vld [vmem:[#allocation0 + $0x38] sm:$0x1]  ;;  %v1189_v14 = vld [vmem:[#allocation0 + $0x100] sm:$0x1] }
 0x104   :  { %1543 = vst [vmem:[%s2537_s1 + $0x7] sm:$0x1] %v1014_v13  ;;  %1568 = vst [vmem:[%s2537_s1 + $0x20] sm:$0x1] %v1189_v14 }
 0x105   :  { %v1077_v15 = vld [vmem:[#allocation0 + $0x80] sm:$0x1]  ;;  %v1252_v16 = vld [vmem:[#allocation0 + $0x148] sm:$0x1] }
 0x106   :  { %1552 = vst [vmem:[%s2537_s1 + $0x10] sm:$0x1] %v1077_v15  ;;  %1577 = vst [vmem:[%s2537_s1 + $0x29] sm:$0x1] %v1252_v16 }

// kernel: gaussian_smearing_pallas.1
= control target key start
LH: loop header
LB: loop body
LE: loop exit
PB: predicated region body
PF: predicated region fallthrough
CT: control target
= control target key end

     0   :  { %s15401_s15 = smov 0   ;;  %s15403_s16 = smov 0   ;;  %s20647_s0 = inlined_call_operand.vmem [shape: f32[25,128], index: 0, kind: input, shape index: {}]   ;;  %s20648_s1 = inlined_call_operand.vmem [shape: bf16[384,6400], index: 1, kind: input, shape index: {}]   ;;  %s20649_s2 = inlined_call_operand.vmem [shape: f32[1,6400], index: 2, kind: input, shape index: {}]   ;;  %s20650_s3 = inlined_call_operand.vmem [shape: f32[1,6400], index: 3, kind: input, shape index: {}]   ;;  %s20651_s4 = inlined_call_operand.vmem [shape: f32[25,6400], index: 4, kind: output, shape index: {}]  }
   0x1   :  { %s15405_s17 = smov 0  }
   0x2 LB: > { %s15414_s18 = sadd.s32 4294967295, %s15341_s17   ;;  %s15416_s19 = sadd.s32 1, %s15341_s17   ;;  %s15341_s17 = sphi %s15405_s17, %s20665_s17   ;;  %s15337_s16 = sphi %s15403_s16, %s20664_s16   ;;  %s15333_s15 = sphi %s15401_s15, %s20663_s15  }
   0x3   : > { %s107_s20 = ssub.s32 %s15341_s17, %s15416_s19  ;;  %s110_s21 = sadd.s32 1, %s15337_s16 }
   0x4   : > { %p108_p0 = scmp.eq.s32.totalorder %s107_s20, 0  ;;  %p120_p1 = scmp.ne.s32.totalorder %s15337_s16, %s15333_s15 }
   0x5   : > { %p121_p2 = scmp.eq.s32.totalorder %s15414_s18, 1  ;;  %p11875_p3 = scmp.ge.s32.totalorder %s15341_s17, 1 }
   0x6   : > { %s15424_s22 = scalar_select %p108_p0, %s15337_s16, %s110_s21  }
   0x7   : > { %p15426_p4 = por %p121_p2, %p120_p1  ;;  %p171_p5 = scmp.lt.s32.totalorder %s15341_s17, 3 }
   0x9   : > { %p172_p6 = pnand %p11875_p3, %p171_p5 }
   0xa   : > { %s15459_s20 = smul.u32 (!%p172_p6), 3, %s15414_s18  ;;  %s197_s30 = sand.u32 (!%p172_p6), 1, %s15333_s15  }
   0xb   : > { %175 = sbr.rel (%p172_p6) target bundleno = 1562 (0x61a), region = 36 }
   0xc   : > { %p205_p7 = scmp.lt.s32.totalorder (!%p172_p6), %s15459_s20, 3  ;;  %s13089_s12 = smul.u32 (!%p172_p6), 1200, %s197_s30 }
   0xe   : > { %s16416_s10 = scalar_lea.vmem (!%p172_p6), [#allocation2], %s13089_s12  }
  0x10   : > { %v13181_v0 = vld [vmem:[%s20648_s1 + $0xaf4] ss:$200 sps:$4 sm:$0xff]   ;;  %v15375_v2 = vmov 0   ;;  %v13185_v3 = vld [vmem:[%s20648_s1 + $0xaf0] ss:$200 sps:$4 sm:$0xff]   ;;  %s206_s17 = scalar_select %p205_p7, %s15459_s20, 3 }
  0x11   : > { %v13183_v1 = vld [vmem:[%s20648_s1 + $0x23f4] ss:$200 sps:$4 sm:$0xff]   ;;  %7525 = vmatprep.mubr.bf16.mxu1 %v15375_v2  ;;  %7442 = vmatprep.subr.bf16.mxu0 %v13181_v0  ;;  %v13186_v4 = vld [vmem:[%s20648_s1 + $0x23f0] ss:$200 sps:$4 sm:$0xff]   ;;  %v13187_v5 = vld [vmem:[%s20648_s1 + $0x964] ss:$200 sps:$4 sm:$0xff]  }
  0x12   : > { %7493 = vmatprep.subr.bf16.mxu1 %v13183_v1  ;;  %7443 = vmatpush1.bf16.msra.mxu0 %v13185_v3  ;;  %v13189_v6 = vld [vmem:[%s20648_s1 + $0x2264] ss:$200 sps:$4 sm:$0xff]   ;;  %v13191_v7 = vld [vmem:[%s20648_s1 + $0x960] ss:$200 sps:$4 sm:$0xff]   ;;  %v13193_v9 = vld [vmem:[%s20648_s1 + $0x7d4] ss:$200 sps:$4 sm:$0xff]  }
  0x13   : > { %7494 = vmatpush1.bf16.msra.mxu1 %v13186_v4  ;;  %7444 = vmatprep.subr.bf16.mxu0 %v13187_v5  ;;  %v13192_v8 = vld [vmem:[%s20648_s1 + $0x2260] ss:$200 sps:$4 sm:$0xff]   ;;  %v13195_v10 = vld [vmem:[%s20648_s1 + $0x20d4] ss:$200 sps:$4 sm:$0xff]   ;;  %v13197_v11 = vld [vmem:[%s20648_s1 + $0x7d0] ss:$200 sps:$4 sm:$0xff]  }
  0x14   : > { %7495 = vmatprep.subr.bf16.mxu1 %v13189_v6  ;;  %v13198_v12 = vld [vmem:[%s20648_s1 + $0x20d0] ss:$200 sps:$4 sm:$0xff]   ;;  %v13199_v13 = vld [vmem:[%s20648_s1 + $0x644] ss:$200 sps:$4 sm:$0xff]   ;;  %v13203_v15 = vld [vmem:[%s20648_s1 + $0x640] ss:$200 sps:$4 sm:$0xff]  }
  0x15   : > { %v13201_v14 = vld [vmem:[%s20648_s1 + $0x1f44] ss:$200 sps:$4 sm:$0xff]   ;;  %v13204_v16 = vld [vmem:[%s20648_s1 + $0x1f40] ss:$200 sps:$4 sm:$0xff]   ;;  %v13205_v17 = vld [vmem:[%s20648_s1 + $0x4b4] ss:$200 sps:$4 sm:$0xff]  }
  0x16   : > { %7445 = vmatpush1.bf16.msra.mxu0 %v13191_v7  ;;  %v13207_v18 = vld [vmem:[%s20648_s1 + $0x1db4] ss:$200 sps:$4 sm:$0xff]   ;;  %v13209_v19 = vld [vmem:[%s20648_s1 + $0x4b0] ss:$200 sps:$4 sm:$0xff]   ;;  %v13211_v21 = vld [vmem:[%s20648_s1 + $0x324] ss:$200 sps:$4 sm:$0xff]  }
  0x17   : > { %7496 = vmatpush1.bf16.msra.mxu1 %v13192_v8  ;;  %7446 = vmatprep.subr.bf16.mxu0 %v13193_v9  ;;  %v13210_v20 = vld [vmem:[%s20648_s1 + $0x1db0] ss:$200 sps:$4 sm:$0xff]   ;;  %v13213_v22 = vld [vmem:[%s20648_s1 + $0x1c24] ss:$200 sps:$4 sm:$0xff]   ;;  %s11876_s5 = sshll.u32 %s206_s17, 3  ;;  %s11428_s13 = ssub.s32 (%p15426_p4), 4, %s15459_s20 }
  0x18   : > { %7497 = vmatprep.subr.bf16.mxu1 %v13195_v10  ;;  %v13215_v23 = vld [vmem:[%s20648_s1 + $0x320] ss:$200 sps:$4 sm:$0xff]   ;;  %v13217_v25 = vld [vmem:[%s20648_s1 + $0x194] ss:$200 sps:$4 sm:$0xff]   ;;  %s208_s21 = scalar_lea.vmem %s20647_s0, %s11876_s5  ;;  %v13221_v27 = vld [vmem:[%s20648_s1 + $0x190] ss:$200 sps:$4 sm:$0xff]  }
  0x19   : > { %v13216_v24 = vld [vmem:[%s20648_s1 + $0x1c20] ss:$200 sps:$4 sm:$0xff]   ;;  %v13219_v26 = vld [vmem:[%s20648_s1 + $0x1a94] ss:$200 sps:$4 sm:$0xff]   ;;  %v13222_v28 = vld [vmem:[%s20648_s1 + $0x1a90] ss:$200 sps:$4 sm:$0xff]  }
  0x1a   : > { %7447 = vmatpush1.bf16.msra.mxu0 %v13197_v11  ;;  %v13223_v29 = vld [vmem:[%s20648_s1 + $0x4] ss:$200 sps:$4 sm:$0xff]   ;;  %v223_v32 = vld [vmem:[%s208_s21 + $0x10] sm:$0xff]  ;;  %v13227_v36 = vld [vmem:[%s20648_s1] ss:$200 sps:$4 sm:$0xff]   ;;  %s13091_s14 = smul.u32 (%p15426_p4), 1200, %s15414_s18 }
  0x1b   : > { %7498 = vmatpush1.bf16.msra.mxu1 %v13198_v12  ;;  %7448 = vmatprep.subr.bf16.mxu0 %v13199_v13  ;;  %v221_v30 = vld [vmem:[%s208_s21] sm:$0xff]  ;;  %v222_v31 = vld [vmem:[%s208_s21 + $0x8] sm:$0xff]  ;;  %v15531_v35 = vpack.c.bf16 %v223_v32, %v223_v32  ;;  %v13229_v41 = vld [vmem:[%s20648_s1 + $0x1774] ss:$200 sps:$4 sm:$0xff]   ;;  %p11429_p8 = scmp.lt.s32.totalorder (%p15426_p4), %s11428_s13, 3 }
  0x1c   : > { %7499 = vmatprep.subr.bf16.mxu1 %v13201_v14  ;;  %v13225_v33 = vld [vmem:[%s20648_s1 + $0x1904] ss:$200 sps:$4 sm:$0xff]   ;;  %v15529_v34 = vpack.c.bf16 %v222_v31, %v221_v30  ;;  %v13228_v40 = vld [vmem:[%s20648_s1 + $0x1900] ss:$200 sps:$4 sm:$0xff]   ;;  %v13234_v48 = vld [vmem:[%s20648_s1 + $0x1770] ss:$200 sps:$4 sm:$0xff]   ;;  %s20231_s21 = scalar_lea.vmem (%p15426_p4), %s20651_s4, %s13091_s14  }
  0x1d   : > { %v228_v39 = vunpack.c.l.bf16 %v15531_v35  ;;  %v13233_v42 = vld [vmem:[%s20648_s1 + $0xafc] ss:$200 sps:$4 sm:$0xff]   ;;  %v13231_v52 = vld [vmem:[%s20648_s1 + $0xaf8] ss:$200 sps:$4 sm:$0xff]   ;;  %v13239_v58 = vld [vmem:[%s20648_s1 + $0x96c] ss:$200 sps:$4 sm:$0xff]  }
  0x1e   : > { %7449 = vmatpush1.bf16.msra.mxu0 %v13203_v15  ;;  %v226_v37 = vunpack.c.l.bf16 %v15529_v34  ;;  %v227_v38 = vunpack.c.h.bf16 %v15529_v34  ;;  %v13235_v51 = vld [vmem:[%s20648_s1 + $0x15e4] ss:$200 sps:$4 sm:$0xff]   ;;  %v13240_v56 = vld [vmem:[%s20648_s1 + $0x15e0] ss:$200 sps:$4 sm:$0xff]   ;;  %v13241_v59 = vld [vmem:[%s20648_s1 + $0x1454] ss:$200 sps:$4 sm:$0xff]  }
  0x1f   : > { %7500 = vmatpush1.bf16.msra.mxu1 %v13204_v16  ;;  %7450 = vmatprep.subr.bf16.mxu0 %v13205_v17  ;;  %v231_v45 = vsub.f32 %v223_v32, %v228_v39  ;;  %v13237_v61 = vld [vmem:[%s20648_s1 + $0x968] ss:$200 sps:$4 sm:$0xff]   ;;  %v13245_v62 = vld [vmem:[%s20648_s1 + $0x7dc] ss:$200 sps:$4 sm:$0xff]   ;;  %v13243_v1 = vld [vmem:[%s20648_s1 + $0x7d8] ss:$200 sps:$4 sm:$0xff]  }
  0x20   : > { %7501 = vmatprep.subr.bf16.mxu1 %v13207_v18  ;;  %v229_v43 = vsub.f32 %v221_v30, %v226_v37  ;;  %v230_v44 = vsub.f32 %v222_v31, %v227_v38  ;;  %v13246_v63 = vld [vmem:[%s20648_s1 + $0x1450] ss:$200 sps:$4 sm:$0xff]   ;;  %v13247_v0 = vld [vmem:[%s20648_s1 + $0x12c4] ss:$200 sps:$4 sm:$0xff]   ;;  %v13252_v5 = vld [vmem:[%s20648_s1 + $0x12c0] ss:$200 sps:$4 sm:$0xff]  }
  0x21   : > { %v15550_v47 = vpack.c.bf16 %v231_v45, %v231_v45  ;;  %v13251_v4 = vld [vmem:[%s20648_s1 + $0x64c] ss:$200 sps:$4 sm:$0xff]   ;;  %v13249_v7 = vld [vmem:[%s20648_s1 + $0x648] ss:$200 sps:$4 sm:$0xff]   ;;  %v13257_v8 = vld [vmem:[%s20648_s1 + $0x4bc] ss:$200 sps:$4 sm:$0xff]  }
  0x22   : > { %7451 = vmatpush1.bf16.msra.mxu0 %v13209_v19  ;;  %v15548_v46 = vpack.c.bf16 %v230_v44, %v229_v43  ;;  %v13253_v6 = vld [vmem:[%s20648_s1 + $0x1134] ss:$200 sps:$4 sm:$0xff]   ;;  %v13258_v9 = vld [vmem:[%s20648_s1 + $0x1130] ss:$200 sps:$4 sm:$0xff]   ;;  %v13259_v10 = vld [vmem:[%s20648_s1 + $0xfa4] ss:$200 sps:$4 sm:$0xff]  }
  0x23   : > { %7502 = vmatpush1.bf16.msra.mxu1 %v13210_v20  ;;  %7452 = vmatprep.subr.bf16.mxu0 %v13211_v21  ;;  %v236_v55 = vunpack.c.l.bf16 %v15550_v47  ;;  %v13255_v11 = vld [vmem:[%s20648_s1 + $0x4b8] ss:$200 sps:$4 sm:$0xff]   ;;  %v13263_v12 = vld [vmem:[%s20648_s1 + $0x32c] ss:$200 sps:$4 sm:$0xff]   ;;  %v13261_v15 = vld [vmem:[%s20648_s1 + $0x328] ss:$200 sps:$4 sm:$0xff]  }
  0x24   : > { %7503 = vmatprep.subr.bf16.mxu1 %v13213_v22  ;;  %v234_v49 = vunpack.c.l.bf16 %v15548_v46  ;;  %v235_v50 = vunpack.c.h.bf16 %v15548_v46  ;;  %7474 = vmatprep.mubr.bf16.mxu0 %v15548_v46  ;;  %v13264_v13 = vld [vmem:[%s20648_s1 + $0xfa0] ss:$200 sps:$4 sm:$0xff]   ;;  %v13265_v14 = vld [vmem:[%s20648_s1 + $0xe14] ss:$200 sps:$4 sm:$0xff]   ;;  %v13270_v17 = vld [vmem:[%s20648_s1 + $0xe10] ss:$200 sps:$4 sm:$0xff]  }
  0x25   : > { %v239_v60 = vsub.f32 %v231_v45, %v236_v55  ;;  %v13269_v16 = vld [vmem:[%s20648_s1 + $0x19c] ss:$200 sps:$4 sm:$0xff]   ;;  %v13267_v19 = vld [vmem:[%s20648_s1 + $0x198] ss:$200 sps:$4 sm:$0xff]   ;;  %v13275_v20 = vld [vmem:[%s20648_s1 + $0xc] ss:$200 sps:$4 sm:$0xff]  }
  0x26   : > { %7453 = vmatpush1.bf16.msra.mxu0 %v13215_v23  ;;  %v237_v53 = vsub.f32 %v229_v43, %v234_v49  ;;  %v238_v54 = vsub.f32 %v230_v44, %v235_v50  ;;  %v13271_v18 = vld [vmem:[%s20648_s1 + $0xc84] ss:$200 sps:$4 sm:$0xff]   ;;  %v13276_v21 = vld [vmem:[%s20648_s1 + $0xc80] ss:$200 sps:$4 sm:$0xff]  }
  0x27   : > { %7504 = vmatpush1.bf16.msra.mxu1 %v13216_v24  ;;  %7454 = vmatprep.subr.bf16.mxu0 %v13217_v25  ;;  %v15593_v3 = vpack.c.bf16 %v239_v60, %v239_v60  ;;  %v13282_v22 = vld [vmem:[%s20648_s1 + $0x23fc] ss:$200 sps:$4 sm:$0xff]   ;;  %v13273_v23 = vld [vmem:[%s20648_s1 + $0x8] ss:$200 sps:$4 sm:$0xff]   ;;  %v13280_v25 = vld [vmem:[%s20648_s1 + $0x23f8] ss:$200 sps:$4 sm:$0xff]  }
  0x28   : > { %7505 = vmatprep.subr.bf16.mxu1 %v13219_v26  ;;  %v15568_v57 = vpack.c.bf16 %v238_v54, %v237_v53  ;;  %v13279_v24 = vld [vmem:[%s20648_s1 + $0x177c] ss:$200 sps:$4 sm:$0xff]   ;;  %v13288_v26 = vld [vmem:[%s20648_s1 + $0x226c] ss:$200 sps:$4 sm:$0xff]   ;;  %v13283_v31 = vld [vmem:[%s20648_s1 + $0x15e8] ss:$200 sps:$4 sm:$0xff]  }
  0x29   : > { %v13294_v30 = vld [vmem:[%s20648_s1 + $0x20dc] ss:$200 sps:$4 sm:$0xff]   ;;  %v13289_v37 = vld [vmem:[%s20648_s1 + $0x1458] ss:$200 sps:$4 sm:$0xff]   ;;  %v13297_v38 = vld [vmem:[%s20648_s1 + $0x12cc] ss:$200 sps:$4 sm:$0xff]  }
  0x2a   : > { %7455 = vmatpush1.bf16.msra.mxu0 %v13221_v27  ;;  %v13277_v27 = vld [vmem:[%s20648_s1 + $0x1778] ss:$200 sps:$4 sm:$0xff]   ;;  %v13291_v32 = vld [vmem:[%s20648_s1 + $0x145c] ss:$200 sps:$4 sm:$0xff]   ;;  %v13298_v39 = vld [vmem:[%s20648_s1 + $0x1f48] ss:$200 sps:$4 sm:$0xff]  }
  0x2b   : > { %7506 = vmatpush1.bf16.msra.mxu1 %v13222_v28  ;;  %7456 = vmatprep.subr.bf16.mxu0 %v13223_v29  ;;  %v13285_v28 = vld [vmem:[%s20648_s1 + $0x15ec] ss:$200 sps:$4 sm:$0xff]   ;;  %v13286_v29 = vld [vmem:[%s20648_s1 + $0x2268] ss:$200 sps:$4 sm:$0xff]   ;;  %v13304_v43 = vld [vmem:[%s20648_s1 + $0x1db8] ss:$200 sps:$4 sm:$0xff]  }
  0x2c   : > { %7507 = vmatprep.subr.bf16.mxu1 %v13225_v33  ;;  %v13292_v33 = vld [vmem:[%s20648_s1 + $0x20d8] ss:$200 sps:$4 sm:$0xff]   ;;  %v13312_v44 = vld [vmem:[%s20648_s1 + $0x1c2c] ss:$200 sps:$4 sm:$0xff]   ;;  %v13310_v49 = vld [vmem:[%s20648_s1 + $0x1c28] ss:$200 sps:$4 sm:$0xff]  }
  0x2d   : > { %v13301_v45 = vld [vmem:[%s20648_s1 + $0x1138] ss:$200 sps:$4 sm:$0xff]   ;;  %v13318_v50 = vld [vmem:[%s20648_s1 + $0x1a9c] ss:$200 sps:$4 sm:$0xff]   ;;  %v13324_v54 = vld [vmem:[%s20648_s1 + $0x190c] ss:$200 sps:$4 sm:$0xff]  }
  0x2e   : > { %7457 = vmatpush1.bf16.msra.mxu0 %v13227_v36  ;;  %v13300_v36 = vld [vmem:[%s20648_s1 + $0x1f4c] ss:$200 sps:$4 sm:$0xff]   ;;  %v13316_v53 = vld [vmem:[%s20648_s1 + $0x1a98] ss:$200 sps:$4 sm:$0xff]   ;;  %v13319_v60 = vld [vmem:[%s20648_s1 + $0xc88] ss:$200 sps:$4 sm:$0xff]  }
  0x2f   : > { %7508 = vmatpush1.bf16.msra.mxu1 %v13228_v40  ;;  %7458 = vmatprep.subr.bf16.mxu0 %v13229_v41  ;;  %v13306_v40 = vld [vmem:[%s20648_s1 + $0x1dbc] ss:$200 sps:$4 sm:$0xff]   ;;  %v13295_v41 = vld [vmem:[%s20648_s1 + $0x12c8] ss:$200 sps:$4 sm:$0xff]   ;;  %v13313_v55 = vld [vmem:[%s20648_s1 + $0xe18] ss:$200 sps:$4 sm:$0xff]  }
  0x30   : > { %7544 = vmatprep.subr.bf16.mxu1 %v13233_v42  ;;  %v13303_v42 = vld [vmem:[%s20648_s1 + $0x113c] ss:$200 sps:$4 sm:$0xff]  }
  0x32   : > { %7459 = vmatpush2.bf16.msra.mxu0 %v13234_v48  ;;  %7526 = vmatmul.mubr.bf16.vlgmr.msra.gmra.mxu1 %v15568_v57  ;;  %v13309_v48 = vld [vmem:[%s20648_s1 + $0xfac] ss:$200 sps:$4 sm:$0xff]  }
  0x33   : > { %7460 = vmatprep.subr.bf16.mxu0 %v13235_v51  ;;  %7545 = vmatpush1.bf16.msra.mxu1 %v13231_v52  ;;  %v13307_v51 = vld [vmem:[%s20648_s1 + $0xfa8] ss:$200 sps:$4 sm:$0xff]   ;;  %v13315_v52 = vld [vmem:[%s20648_s1 + $0xe1c] ss:$200 sps:$4 sm:$0xff]  }
  0x34   : > { %7546 = vmatprep.subr.bf16.mxu1 %v13239_v58  ;;  %7535 = vmatprep.mubr.bf16.mxu1 %v15375_v2  ;;  %v13322_v58 = vld [vmem:[%s20648_s1 + $0x1908] ss:$200 sps:$4 sm:$0xff]  }
  0x36   : > { %7461 = vmatpush2.bf16.msra.mxu0 %v13240_v56  ;;  %v13321_v56 = vld [vmem:[%s20648_s1 + $0xc8c] ss:$200 sps:$4 sm:$0xff]  }
  0x37   : > { %7462 = vmatprep.subr.bf16.mxu0 %v13241_v59  ;;  %7547 = vmatpush1.bf16.msra.mxu1 %v13237_v61  ;;  %v13327_v59 = vld [vmem:[%s20648_s1 + $0xb04] ss:$200 sps:$4 sm:$0xff]   ;;  %v13325_v61 = vld [vmem:[%s20648_s1 + $0xb00] ss:$200 sps:$4 sm:$0xff]  }
  0x38   : > { %7548 = vmatprep.subr.bf16.mxu1 %v13245_v62  ;;  %v13330_v62 = vld [vmem:[%s20648_s1 + $0x2404] ss:$200 sps:$4 sm:$0xff]  }
  0x3a   : > { %7463 = vmatpush2.bf16.msra.mxu0 %v13246_v63  ;;  %7536 = vmatmul.mubr.bf16.gmra.mxu1 %v15593_v3  ;;  %v13333_v63 = vld [vmem:[%s20648_s1 + $0x974] ss:$200 sps:$4 sm:$0xff]  }
  0x3b   : > { %7464 = vmatprep.subr.bf16.mxu0 %v13247_v0  ;;  %7549 = vmatpush1.bf16.msra.mxu1 %v13243_v1  ;;  %v13328_v0 = vld [vmem:[%s20648_s1 + $0x2400] ss:$200 sps:$4 sm:$0xff]   ;;  %v13331_v1 = vld [vmem:[%s20648_s1 + $0x970] ss:$200 sps:$4 sm:$0xff]  }
  0x3c   : > { %7550 = vmatprep.subr.bf16.mxu1 %v13251_v4  ;;  %7576 = vmatprep.mubr.bf16.mxu1 %v15548_v46  ;;  %v13336_v4 = vld [vmem:[%s20648_s1 + $0x2274] ss:$200 sps:$4 sm:$0xff]  }
  0x3e   : > { %7465 = vmatpush2.bf16.msra.mxu0 %v13252_v5  ;;  %v13339_v5 = vld [vmem:[%s20648_s1 + $0x7e4] ss:$200 sps:$4 sm:$0xff]  }
  0x3f   : > { %7466 = vmatprep.subr.bf16.mxu0 %v13253_v6  ;;  %7551 = vmatpush1.bf16.msra.mxu1 %v13249_v7  ;;  %v13334_v6 = vld [vmem:[%s20648_s1 + $0x2270] ss:$200 sps:$4 sm:$0xff]   ;;  %v13337_v7 = vld [vmem:[%s20648_s1 + $0x7e0] ss:$200 sps:$4 sm:$0xff]  }
  0x40   : > { %7552 = vmatprep.subr.bf16.mxu1 %v13257_v8  ;;  %v13342_v8 = vld [vmem:[%s20648_s1 + $0x20e4] ss:$200 sps:$4 sm:$0xff]  }
  0x42   : > { %7467 = vmatpush2.bf16.msra.mxu0 %v13258_v9  ;;  %v13345_v9 = vld [vmem:[%s20648_s1 + $0x654] ss:$200 sps:$4 sm:$0xff]  }
  0x43   : > { %7468 = vmatprep.subr.bf16.mxu0 %v13259_v10  ;;  %7553 = vmatpush1.bf16.msra.mxu1 %v13255_v11  ;;  %v13340_v10 = vld [vmem:[%s20648_s1 + $0x20e0] ss:$200 sps:$4 sm:$0xff]   ;;  %v13343_v11 = vld [vmem:[%s20648_s1 + $0x650] ss:$200 sps:$4 sm:$0xff]  }
  0x44   : > { %7554 = vmatprep.subr.bf16.mxu1 %v13263_v12  ;;  %v13348_v12 = vld [vmem:[%s20648_s1 + $0x1f54] ss:$200 sps:$4 sm:$0xff]  }
  0x46   : > { %7469 = vmatpush2.bf16.msra.mxu0 %v13264_v13  ;;  %v13351_v13 = vld [vmem:[%s20648_s1 + $0x4c4] ss:$200 sps:$4 sm:$0xff]  }
  0x47   : > { %7470 = vmatprep.subr.bf16.mxu0 %v13265_v14  ;;  %7555 = vmatpush1.bf16.msra.mxu1 %v13261_v15  ;;  %v13346_v14 = vld [vmem:[%s20648_s1 + $0x1f50] ss:$200 sps:$4 sm:$0xff]   ;;  %v13349_v15 = vld [vmem:[%s20648_s1 + $0x4c0] ss:$200 sps:$4 sm:$0xff]  }
  0x48   : > { %7556 = vmatprep.subr.bf16.mxu1 %v13269_v16  ;;  %v13354_v16 = vld [vmem:[%s20648_s1 + $0x1dc4] ss:$200 sps:$4 sm:$0xff]  }
  0x4a   : > { %7471 = vmatpush2.bf16.msra.mxu0 %v13270_v17  ;;  %v13357_v17 = vld [vmem:[%s20648_s1 + $0x334] ss:$200 sps:$4 sm:$0xff]  }
  0x4b   : > { %7472 = vmatprep.subr.bf16.mxu0 %v13271_v18  ;;  %7557 = vmatpush1.bf16.msra.mxu1 %v13267_v19  ;;  %v13352_v18 = vld [vmem:[%s20648_s1 + $0x1dc0] ss:$200 sps:$4 sm:$0xff]   ;;  %v13355_v19 = vld [vmem:[%s20648_s1 + $0x330] ss:$200 sps:$4 sm:$0xff]  }
  0x4c   : > { %7558 = vmatprep.subr.bf16.mxu1 %v13275_v20  ;;  %v13360_v20 = vld [vmem:[%s20648_s1 + $0x1c34] ss:$200 sps:$4 sm:$0xff]  }
  0x4e   : > { %7473 = vmatpush2.bf16.msra.mxu0 %v13276_v21  ;;  %v13363_v21 = vld [vmem:[%s20648_s1 + $0x1a4] ss:$200 sps:$4 sm:$0xff]  }
  0x4f   : > { %7595 = vmatprep.subr.bf16.mxu0 %v13282_v22  ;;  %7559 = vmatpush1.bf16.msra.mxu1 %v13273_v23  ;;  %v13358_v22 = vld [vmem:[%s20648_s1 + $0x1c30] ss:$200 sps:$4 sm:$0xff]   ;;  %v13361_v23 = vld [vmem:[%s20648_s1 + $0x1a0] ss:$200 sps:$4 sm:$0xff]  }
  0x50   : > { %7560 = vmatprep.subr.bf16.mxu1 %v13279_v24  ;;  %v13366_v24 = vld [vmem:[%s20648_s1 + $0x1aa4] ss:$200 sps:$4 sm:$0xff]  }
  0x51   : > { %7475 = vmatmul.mubr.bf16.vlgmr.msra.gmra.mxu0 %v15529_v34 }
  0x52   : > { %7596 = vmatpush1.bf16.msra.mxu0 %v13280_v25  ;;  %7484 = vmatprep.mubr.bf16.mxu0 %v15550_v47  ;;  %v13369_v25 = vld [vmem:[%s20648_s1 + $0x14] ss:$200 sps:$4 sm:$0xff]  }
  0x53   : > { %7597 = vmatprep.subr.bf16.mxu0 %v13288_v26  ;;  %7561 = vmatpush2.bf16.msra.mxu1 %v13277_v27  ;;  %v13364_v26 = vld [vmem:[%s20648_s1 + $0x1aa0] ss:$200 sps:$4 sm:$0xff]   ;;  %v13367_v27 = vld [vmem:[%s20648_s1 + $0x10] ss:$200 sps:$4 sm:$0xff]  }
  0x54   : > { %7562 = vmatprep.subr.bf16.mxu1 %v13285_v28  ;;  %v13372_v28 = vld [vmem:[%s20648_s1 + $0x1914] ss:$200 sps:$4 sm:$0xff]  }
  0x56   : > { %7598 = vmatpush1.bf16.msra.mxu0 %v13286_v29  ;;  %v13375_v29 = vld [vmem:[%s20648_s1 + $0x1784] ss:$200 sps:$4 sm:$0xff]  }
  0x57   : > { %7599 = vmatprep.subr.bf16.mxu0 %v13294_v30  ;;  %7563 = vmatpush2.bf16.msra.mxu1 %v13283_v31  ;;  %v13370_v30 = vld [vmem:[%s20648_s1 + $0x1910] ss:$200 sps:$4 sm:$0xff]   ;;  %v13373_v31 = vld [vmem:[%s20648_s1 + $0x1780] ss:$200 sps:$4 sm:$0xff]  }
  0x58   : > { %7564 = vmatprep.subr.bf16.mxu1 %v13291_v32  ;;  %v13378_v32 = vld [vmem:[%s20648_s1 + $0xb0c] ss:$200 sps:$4 sm:$0xff]  }
  0x59   : > { %7485 = vmatmul.mubr.bf16.gmra.mxu0 %v15531_v35 }
  0x5a   : > { %7600 = vmatpush1.bf16.msra.mxu0 %v13292_v33  ;;  %7627 = vmatprep.mubr.bf16.mxu0 %v15375_v2  ;;  %v13381_v33 = vld [vmem:[%s20648_s1 + $0x15f4] ss:$200 sps:$4 sm:$0xff]  }
  0x5b   : > { %7601 = vmatprep.subr.bf16.mxu0 %v13300_v36  ;;  %7565 = vmatpush2.bf16.msra.mxu1 %v13289_v37  ;;  %v13376_v36 = vld [vmem:[%s20648_s1 + $0xb08] ss:$200 sps:$4 sm:$0xff]  }
  0x5c   : > { %7566 = vmatprep.subr.bf16.mxu1 %v13297_v38  ;;  %v13379_v37 = vld [vmem:[%s20648_s1 + $0x15f0] ss:$200 sps:$4 sm:$0xff]   ;;  %v13384_v38 = vld [vmem:[%s20648_s1 + $0x97c] ss:$200 sps:$4 sm:$0xff]  }
  0x5e   : > { %7602 = vmatpush1.bf16.msra.mxu0 %v13298_v39  ;;  %v13387_v39 = vld [vmem:[%s20648_s1 + $0x1464] ss:$200 sps:$4 sm:$0xff]  }
  0x5f   : > { %7603 = vmatprep.subr.bf16.mxu0 %v13306_v40  ;;  %7567 = vmatpush2.bf16.msra.mxu1 %v13295_v41  ;;  %v13382_v40 = vld [vmem:[%s20648_s1 + $0x978] ss:$200 sps:$4 sm:$0xff]  }
  0x60   : > { %7568 = vmatprep.subr.bf16.mxu1 %v13303_v42  ;;  %v13385_v41 = vld [vmem:[%s20648_s1 + $0x1460] ss:$200 sps:$4 sm:$0xff]   ;;  %v13390_v42 = vld [vmem:[%s20648_s1 + $0x7ec] ss:$200 sps:$4 sm:$0xff]  }
  0x62   : > { %7604 = vmatpush1.bf16.msra.mxu0 %v13304_v43  ;;  %v13393_v43 = vld [vmem:[%s20648_s1 + $0x12d4] ss:$200 sps:$4 sm:$0xff]  }
  0x63   : > { %7605 = vmatprep.subr.bf16.mxu0 %v13312_v44  ;;  %7569 = vmatpush2.bf16.msra.mxu1 %v13301_v45  ;;  %v13388_v44 = vld [vmem:[%s20648_s1 + $0x7e8] ss:$200 sps:$4 sm:$0xff]  }
  0x64   : > { %7570 = vmatprep.subr.bf16.mxu1 %v13309_v48  ;;  %v13391_v45 = vld [vmem:[%s20648_s1 + $0x12d0] ss:$200 sps:$4 sm:$0xff]   ;;  %v13396_v48 = vld [vmem:[%s20648_s1 + $0x65c] ss:$200 sps:$4 sm:$0xff]  }
  0x66   : > { %7606 = vmatpush1.bf16.msra.mxu0 %v13310_v49  ;;  %v13399_v49 = vld [vmem:[%s20648_s1 + $0x1144] ss:$200 sps:$4 sm:$0xff]  }
  0x67   : > { %7607 = vmatprep.subr.bf16.mxu0 %v13318_v50  ;;  %7571 = vmatpush2.bf16.msra.mxu1 %v13307_v51  ;;  %v13394_v50 = vld [vmem:[%s20648_s1 + $0x658] ss:$200 sps:$4 sm:$0xff]  }
  0x68   : > { %7572 = vmatprep.subr.bf16.mxu1 %v13315_v52  ;;  %v13397_v51 = vld [vmem:[%s20648_s1 + $0x1140] ss:$200 sps:$4 sm:$0xff]   ;;  %v13402_v52 = vld [vmem:[%s20648_s1 + $0x4cc] ss:$200 sps:$4 sm:$0xff]  }
  0x6a   : > { %7608 = vmatpush1.bf16.msra.mxu0 %v13316_v53  ;;  %v13405_v53 = vld [vmem:[%s20648_s1 + $0xfb4] ss:$200 sps:$4 sm:$0xff]  }
  0x6b   : > { %7609 = vmatprep.subr.bf16.mxu0 %v13324_v54  ;;  %7573 = vmatpush2.bf16.msra.mxu1 %v13313_v55  ;;  %v13400_v54 = vld [vmem:[%s20648_s1 + $0x4c8] ss:$200 sps:$4 sm:$0xff]  }
  0x6c   : > { %7574 = vmatprep.subr.bf16.mxu1 %v13321_v56  ;;  %v13403_v55 = vld [vmem:[%s20648_s1 + $0xfb0] ss:$200 sps:$4 sm:$0xff]   ;;  %v13408_v56 = vld [vmem:[%s20648_s1 + $0x33c] ss:$200 sps:$4 sm:$0xff]  }
  0x6e   : > { %7610 = vmatpush1.bf16.msra.mxu0 %v13322_v58  ;;  %v13411_v58 = vld [vmem:[%s20648_s1 + $0xe24] ss:$200 sps:$4 sm:$0xff]  }
  0x6f   : > { %7646 = vmatprep.subr.bf16.mxu0 %v13327_v59  ;;  %7575 = vmatpush2.bf16.msra.mxu1 %v13319_v60  ;;  %v13406_v59 = vld [vmem:[%s20648_s1 + $0x338] ss:$200 sps:$4 sm:$0xff]  }
  0x70   : > { %7697 = vmatprep.subr.bf16.mxu1 %v13330_v62  ;;  %v13409_v60 = vld [vmem:[%s20648_s1 + $0xe20] ss:$200 sps:$4 sm:$0xff]   ;;  %v13417_v62 = vld [vmem:[%s20648_s1 + $0xc94] ss:$200 sps:$4 sm:$0xff]  }
  0x71   : > { %7628 = vmatmul.mubr.bf16.vlgmr.msra.gmra.mxu0 %v15568_v57 }
  0x72   : > { %7647 = vmatpush1.bf16.msra.mxu0 %v13325_v61  ;;  %7637 = vmatprep.mubr.bf16.mxu0 %v15375_v2  ;;  %v13414_v61 = vld [vmem:[%s20648_s1 + $0x1ac] ss:$200 sps:$4 sm:$0xff]  }
  0x73   : > { %7648 = vmatprep.subr.bf16.mxu0 %v13333_v63  ;;  %7577 = vmatmul.mubr.bf16.vlgmr.msra.gmra.mxu1 %v15529_v34  ;;  %v13412_v63 = vld [vmem:[%s20648_s1 + $0x1a8] ss:$200 sps:$4 sm:$0xff]  }
  0x74   : > { %7698 = vmatpush1.bf16.msra.mxu1 %v13328_v0  ;;  %7586 = vmatprep.mubr.bf16.mxu1 %v15550_v47  ;;  %v13415_v0 = vld [vmem:[%s20648_s1 + $0xc90] ss:$200 sps:$4 sm:$0xff]  }
  0x75   : > { %7699 = vmatprep.subr.bf16.mxu1 %v13336_v4  ;;  %v13426_v4 = vld [vmem:[%s20648_s1 + $0x240c] ss:$200 sps:$4 sm:$0xff]  }
  0x76   : > { %7649 = vmatpush1.bf16.msra.mxu0 %v13331_v1  ;;  %v13420_v1 = vld [vmem:[%s20648_s1 + $0x1c] ss:$200 sps:$4 sm:$0xff]  }
  0x77   : > { %7650 = vmatprep.subr.bf16.mxu0 %v13339_v5  ;;  %v13418_v5 = vld [vmem:[%s20648_s1 + $0x18] ss:$200 sps:$4 sm:$0xff]  }
  0x78   : > { %7700 = vmatpush1.bf16.msra.mxu1 %v13334_v6  ;;  %v13423_v6 = vld [vmem:[%s20648_s1 + $0x178c] ss:$200 sps:$4 sm:$0xff]  }
  0x79   : > { %7638 = vmatmul.mubr.bf16.gmra.mxu0 %v15593_v3  ;;  %7701 = vmatprep.subr.bf16.mxu1 %v13342_v8  ;;  %v13432_v8 = vld [vmem:[%s20648_s1 + $0x227c] ss:$200 sps:$4 sm:$0xff]  }
  0x7a   : > { %7651 = vmatpush1.bf16.msra.mxu0 %v13337_v7  ;;  %7678 = vmatprep.mubr.bf16.mxu0 %v15548_v46  ;;  %v13424_v7 = vld [vmem:[%s20648_s1 + $0x2408] ss:$200 sps:$4 sm:$0xff]  }
  0x7b   : > { %7652 = vmatprep.subr.bf16.mxu0 %v13345_v9  ;;  %7587 = vmatmul.mubr.bf16.gmra.mxu1 %v15531_v35  ;;  %v13421_v9 = vld [vmem:[%s20648_s1 + $0x1788] ss:$200 sps:$4 sm:$0xff]  }
  0x7c   : > { %7702 = vmatpush1.bf16.msra.mxu1 %v13340_v10  ;;  %7729 = vmatprep.mubr.bf16.mxu1 %v15375_v2  ;;  %v13429_v10 = vld [vmem:[%s20648_s1 + $0x15fc] ss:$200 sps:$4 sm:$0xff]  }
  0x7d   : > { %7703 = vmatprep.subr.bf16.mxu1 %v13348_v12  ;;  %v13438_v12 = vld [vmem:[%s20648_s1 + $0x20ec] ss:$200 sps:$4 sm:$0xff]  }
  0x7e   : > { %7653 = vmatpush1.bf16.msra.mxu0 %v13343_v11  ;;  %v13430_v11 = vld [vmem:[%s20648_s1 + $0x2278] ss:$200 sps:$4 sm:$0xff]  }
  0x7f   : > { %7654 = vmatprep.subr.bf16.mxu0 %v13351_v13  ;;  %v13427_v13 = vld [vmem:[%s20648_s1 + $0x15f8] ss:$200 sps:$4 sm:$0xff]  }
  0x80   : > { %7704 = vmatpush1.bf16.msra.mxu1 %v13346_v14  ;;  %v13435_v14 = vld [vmem:[%s20648_s1 + $0x146c] ss:$200 sps:$4 sm:$0xff]  }
  0x81   : > { %7705 = vmatprep.subr.bf16.mxu1 %v13354_v16  ;;  %v13444_v16 = vld [vmem:[%s20648_s1 + $0x1f5c] ss:$200 sps:$4 sm:$0xff]  }
  0x82   : > { %7655 = vmatpush1.bf16.msra.mxu0 %v13349_v15  ;;  %v13436_v15 = vld [vmem:[%s20648_s1 + $0x20e8] ss:$200 sps:$4 sm:$0xff]  }
  0x83   : > { %7656 = vmatprep.subr.bf16.mxu0 %v13357_v17  ;;  %v13433_v17 = vld [vmem:[%s20648_s1 + $0x1468] ss:$200 sps:$4 sm:$0xff]  }
  0x84   : > { %7706 = vmatpush1.bf16.msra.mxu1 %v13352_v18  ;;  %v13442_v18 = vld [vmem:[%s20648_s1 + $0x1f58] ss:$200 sps:$4 sm:$0xff]  }
  0x85   : > { %7707 = vmatprep.subr.bf16.mxu1 %v13360_v20  ;;  %v13450_v20 = vld [vmem:[%s20648_s1 + $0x1dcc] ss:$200 sps:$4 sm:$0xff]  }
  0x86   : > { %7657 = vmatpush1.bf16.msra.mxu0 %v13355_v19  ;;  %v13441_v19 = vld [vmem:[%s20648_s1 + $0x12dc] ss:$200 sps:$4 sm:$0xff]  }
  0x87   : > { %7658 = vmatprep.subr.bf16.mxu0 %v13363_v21  ;;  %v13439_v21 = vld [vmem:[%s20648_s1 + $0x12d8] ss:$200 sps:$4 sm:$0xff]  }
  0x88   : > { %7708 = vmatpush1.bf16.msra.mxu1 %v13358_v22  ;;  %v13448_v22 = vld [vmem:[%s20648_s1 + $0x1dc8] ss:$200 sps:$4 sm:$0xff]  }
  0x89   : > { %7709 = vmatprep.subr.bf16.mxu1 %v13366_v24  ;;  %v13456_v24 = vld [vmem:[%s20648_s1 + $0x1c3c] ss:$200 sps:$4 sm:$0xff]  }
  0x8a   : > { %7659 = vmatpush1.bf16.msra.mxu0 %v13361_v23  ;;  %v13447_v23 = vld [vmem:[%s20648_s1 + $0x114c] ss:$200 sps:$4 sm:$0xff]  }
  0x8b   : > { %7660 = vmatprep.subr.bf16.mxu0 %v13369_v25  ;;  %v13445_v25 = vld [vmem:[%s20648_s1 + $0x1148] ss:$200 sps:$4 sm:$0xff]  }
  0x8c   : > { %7710 = vmatpush1.bf16.msra.mxu1 %v13364_v26  ;;  %v13454_v26 = vld [vmem:[%s20648_s1 + $0x1c38] ss:$200 sps:$4 sm:$0xff]  }
  0x8d   : > { %7711 = vmatprep.subr.bf16.mxu1 %v13372_v28  ;;  %v13462_v28 = vld [vmem:[%s20648_s1 + $0x1aac] ss:$200 sps:$4 sm:$0xff]  }
  0x8e   : > { %7661 = vmatpush1.bf16.msra.mxu0 %v13367_v27  ;;  %v13453_v27 = vld [vmem:[%s20648_s1 + $0xfbc] ss:$200 sps:$4 sm:$0xff]  }
  0x8f   : > { %7662 = vmatprep.subr.bf16.mxu0 %v13375_v29  ;;  %v13451_v29 = vld [vmem:[%s20648_s1 + $0xfb8] ss:$200 sps:$4 sm:$0xff]  }
  0x90   : > { %7712 = vmatpush1.bf16.msra.mxu1 %v13370_v30  ;;  %v13460_v30 = vld [vmem:[%s20648_s1 + $0x1aa8] ss:$200 sps:$4 sm:$0xff]  }
  0x91   : > { %7748 = vmatprep.subr.bf16.mxu1 %v13378_v32  ;;  %v13468_v32 = vld [vmem:[%s20648_s1 + $0x191c] ss:$200 sps:$4 sm:$0xff]  }
  0x92   : > { %7663 = vmatpush2.bf16.msra.mxu0 %v13373_v31  ;;  %v13459_v31 = vld [vmem:[%s20648_s1 + $0xe2c] ss:$200 sps:$4 sm:$0xff]  }
  0x93   : > { %7664 = vmatprep.subr.bf16.mxu0 %v13381_v33  ;;  %7730 = vmatmul.mubr.bf16.vlgmr.msra.gmra.mxu1 %v15568_v57  ;;  %v13457_v33 = vld [vmem:[%s20648_s1 + $0xe28] ss:$200 sps:$4 sm:$0xff]  }
  0x94   : > { %7749 = vmatpush1.bf16.msra.mxu1 %v13376_v36  ;;  %7739 = vmatprep.mubr.bf16.mxu1 %v15375_v2  ;;  %v13466_v36 = vld [vmem:[%s20648_s1 + $0x1918] ss:$200 sps:$4 sm:$0xff]  }
  0x95   : > { %7750 = vmatprep.subr.bf16.mxu1 %v13384_v38  ;;  %v13471_v38 = vld [vmem:[%s20648_s1 + $0xb14] ss:$200 sps:$4 sm:$0xff]  }
  0x96   : > { %7665 = vmatpush2.bf16.msra.mxu0 %v13379_v37  ;;  %v13465_v37 = vld [vmem:[%s20648_s1 + $0xc9c] ss:$200 sps:$4 sm:$0xff]  }
  0x97   : > { %7666 = vmatprep.subr.bf16.mxu0 %v13387_v39  ;;  %v13463_v39 = vld [vmem:[%s20648_s1 + $0xc98] ss:$200 sps:$4 sm:$0xff]  }
  0x98   : > { %7751 = vmatpush1.bf16.msra.mxu1 %v13382_v40  ;;  %v13469_v40 = vld [vmem:[%s20648_s1 + $0xb10] ss:$200 sps:$4 sm:$0xff]  }
  0x99   : > { %7752 = vmatprep.subr.bf16.mxu1 %v13390_v42  ;;  %v13477_v42 = vld [vmem:[%s20648_s1 + $0x984] ss:$200 sps:$4 sm:$0xff]  }
  0x9a   : > { %7667 = vmatpush2.bf16.msra.mxu0 %v13385_v41  ;;  %v13474_v41 = vld [vmem:[%s20648_s1 + $0x2414] ss:$200 sps:$4 sm:$0xff]  }
  0x9b   : > { %7668 = vmatprep.subr.bf16.mxu0 %v13393_v43  ;;  %7740 = vmatmul.mubr.bf16.gmra.mxu1 %v15593_v3  ;;  %v13472_v43 = vld [vmem:[%s20648_s1 + $0x2410] ss:$200 sps:$4 sm:$0xff]  }
  0x9c   : > { %7753 = vmatpush1.bf16.msra.mxu1 %v13388_v44  ;;  %7780 = vmatprep.mubr.bf16.mxu1 %v15548_v46  ;;  %v13475_v44 = vld [vmem:[%s20648_s1 + $0x980] ss:$200 sps:$4 sm:$0xff]  }
  0x9d   : > { %7754 = vmatprep.subr.bf16.mxu1 %v13396_v48  ;;  %v13483_v48 = vld [vmem:[%s20648_s1 + $0x7f4] ss:$200 sps:$4 sm:$0xff]  }
  0x9e   : > { %7669 = vmatpush2.bf16.msra.mxu0 %v13391_v45  ;;  %v13480_v45 = vld [vmem:[%s20648_s1 + $0x2284] ss:$200 sps:$4 sm:$0xff]  }
  0x9f   : > { %7670 = vmatprep.subr.bf16.mxu0 %v13399_v49  ;;  %v13478_v49 = vld [vmem:[%s20648_s1 + $0x2280] ss:$200 sps:$4 sm:$0xff]  }
  0xa0   : > { %7755 = vmatpush1.bf16.msra.mxu1 %v13394_v50  ;;  %v13481_v50 = vld [vmem:[%s20648_s1 + $0x7f0] ss:$200 sps:$4 sm:$0xff]  }
  0xa1   : > { %7756 = vmatprep.subr.bf16.mxu1 %v13402_v52  ;;  %v13489_v52 = vld [vmem:[%s20648_s1 + $0x664] ss:$200 sps:$4 sm:$0xff]  }
  0xa2   : > { %7671 = vmatpush2.bf16.msra.mxu0 %v13397_v51  ;;  %v13486_v51 = vld [vmem:[%s20648_s1 + $0x20f4] ss:$200 sps:$4 sm:$0xff]  }
  0xa3   : > { %7672 = vmatprep.subr.bf16.mxu0 %v13405_v53  ;;  %v13484_v53 = vld [vmem:[%s20648_s1 + $0x20f0] ss:$200 sps:$4 sm:$0xff]  }
  0xa4   : > { %7757 = vmatpush1.bf16.msra.mxu1 %v13400_v54  ;;  %v13487_v54 = vld [vmem:[%s20648_s1 + $0x660] ss:$200 sps:$4 sm:$0xff]  }
  0xa5   : > { %7758 = vmatprep.subr.bf16.mxu1 %v13408_v56  ;;  %v13495_v56 = vld [vmem:[%s20648_s1 + $0x4d4] ss:$200 sps:$4 sm:$0xff]  }
  0xa6   : > { %7673 = vmatpush2.bf16.msra.mxu0 %v13403_v55  ;;  %v13492_v55 = vld [vmem:[%s20648_s1 + $0x1f64] ss:$200 sps:$4 sm:$0xff]  }
  0xa7   : > { %7674 = vmatprep.subr.bf16.mxu0 %v13411_v58  ;;  %v13490_v58 = vld [vmem:[%s20648_s1 + $0x1f60] ss:$200 sps:$4 sm:$0xff]  }
  0xa8   : > { %7759 = vmatpush1.bf16.msra.mxu1 %v13406_v59  ;;  %v13493_v59 = vld [vmem:[%s20648_s1 + $0x4d0] ss:$200 sps:$4 sm:$0xff]  }
  0xa9   : > { %7760 = vmatprep.subr.bf16.mxu1 %v13414_v61  ;;  %v13501_v61 = vld [vmem:[%s20648_s1 + $0x344] ss:$200 sps:$4 sm:$0xff]  }
  0xaa   : > { %7675 = vmatpush2.bf16.msra.mxu0 %v13409_v60  ;;  %v13498_v60 = vld [vmem:[%s20648_s1 + $0x1dd4] ss:$200 sps:$4 sm:$0xff]  }
  0xab   : > { %7676 = vmatprep.subr.bf16.mxu0 %v13417_v62  ;;  %v13496_v62 = vld [vmem:[%s20648_s1 + $0x1dd0] ss:$200 sps:$4 sm:$0xff]  }
  0xac   : > { %7761 = vmatpush1.bf16.msra.mxu1 %v13412_v63  ;;  %v13499_v63 = vld [vmem:[%s20648_s1 + $0x340] ss:$200 sps:$4 sm:$0xff]  }
  0xad   : > { %7762 = vmatprep.subr.bf16.mxu1 %v13420_v1  ;;  %v13507_v1 = vld [vmem:[%s20648_s1 + $0x1b4] ss:$200 sps:$4 sm:$0xff]  }
  0xae   : > { %7677 = vmatpush2.bf16.msra.mxu0 %v13415_v0  ;;  %v13504_v0 = vld [vmem:[%s20648_s1 + $0x1c44] ss:$200 sps:$4 sm:$0xff]  }
  0xaf   : > { %7799 = vmatprep.subr.bf16.mxu0 %v13426_v4  ;;  %v13502_v4 = vld [vmem:[%s20648_s1 + $0x1c40] ss:$200 sps:$4 sm:$0xff]  }
  0xb0   : > { %7763 = vmatpush1.bf16.msra.mxu1 %v13418_v5  ;;  %v13505_v5 = vld [vmem:[%s20648_s1 + $0x1b0] ss:$200 sps:$4 sm:$0xff]  }
  0xb1   : > { %7679 = vmatmul.mubr.bf16.vlgmr.msra.gmra.mxu0 %v15529_v34  ;;  %7764 = vmatprep.subr.bf16.mxu1 %v13423_v6  ;;  %v13510_v6 = vld [vmem:[%s20648_s1 + $0x1ab4] ss:$200 sps:$4 sm:$0xff]  }
  0xb2   : > { %7800 = vmatpush1.bf16.msra.mxu0 %v13424_v7  ;;  %7688 = vmatprep.mubr.bf16.mxu0 %v15550_v47  ;;  %v13513_v7 = vld [vmem:[%s20648_s1 + $0x24] ss:$200 sps:$4 sm:$0xff]  }
  0xb3   : > { %7801 = vmatprep.subr.bf16.mxu0 %v13432_v8  ;;  %v13508_v8 = vld [vmem:[%s20648_s1 + $0x1ab0] ss:$200 sps:$4 sm:$0xff]  }
  0xb4   : > { %7765 = vmatpush2.bf16.msra.mxu1 %v13421_v9  ;;  %v13511_v9 = vld [vmem:[%s20648_s1 + $0x20] ss:$200 sps:$4 sm:$0xff]  }
  0xb5   : > { %7766 = vmatprep.subr.bf16.mxu1 %v13429_v10  ;;  %v13516_v10 = vld [vmem:[%s20648_s1 + $0x1924] ss:$200 sps:$4 sm:$0xff]  }
  0xb6   : > { %7802 = vmatpush1.bf16.msra.mxu0 %v13430_v11  ;;  %v13519_v11 = vld [vmem:[%s20648_s1 + $0x1794] ss:$200 sps:$4 sm:$0xff]  }
  0xb7   : > { %7803 = vmatprep.subr.bf16.mxu0 %v13438_v12  ;;  %v13514_v12 = vld [vmem:[%s20648_s1 + $0x1920] ss:$200 sps:$4 sm:$0xff]  }
  0xb8   : > { %7767 = vmatpush2.bf16.msra.mxu1 %v13427_v13  ;;  %v13517_v13 = vld [vmem:[%s20648_s1 + $0x1790] ss:$200 sps:$4 sm:$0xff]  }
  0xb9   : > { %7689 = vmatmul.mubr.bf16.gmra.mxu0 %v15531_v35  ;;  %7768 = vmatprep.subr.bf16.mxu1 %v13435_v14  ;;  %v13522_v14 = vld [vmem:[%s20648_s1 + $0xb1c] ss:$200 sps:$4 sm:$0xff]  }
  0xba   : > { %7804 = vmatpush1.bf16.msra.mxu0 %v13436_v15  ;;  %7831 = vmatprep.mubr.bf16.mxu0 %v15375_v2  ;;  %v13525_v15 = vld [vmem:[%s20648_s1 + $0x1604] ss:$200 sps:$4 sm:$0xff]  }
  0xbb   : > { %7805 = vmatprep.subr.bf16.mxu0 %v13444_v16  ;;  %v13520_v16 = vld [vmem:[%s20648_s1 + $0xb18] ss:$200 sps:$4 sm:$0xff]  }
  0xbc   : > { %7769 = vmatpush2.bf16.msra.mxu1 %v13433_v17  ;;  %v13523_v17 = vld [vmem:[%s20648_s1 + $0x1600] ss:$200 sps:$4 sm:$0xff]  }
  0xbd   : > { %7770 = vmatprep.subr.bf16.mxu1 %v13441_v19  ;;  %v13531_v19 = vld [vmem:[%s20648_s1 + $0x1474] ss:$200 sps:$4 sm:$0xff]  }
  0xbe   : > { %7806 = vmatpush1.bf16.msra.mxu0 %v13442_v18  ;;  %v13528_v18 = vld [vmem:[%s20648_s1 + $0x98c] ss:$200 sps:$4 sm:$0xff]  }
  0xbf   : > { %7807 = vmatprep.subr.bf16.mxu0 %v13450_v20  ;;  %v13526_v20 = vld [vmem:[%s20648_s1 + $0x988] ss:$200 sps:$4 sm:$0xff]  }
  0xc0   : > { %7771 = vmatpush2.bf16.msra.mxu1 %v13439_v21 }
  0xc1   : > { %7772 = vmatprep.subr.bf16.mxu1 %v13447_v23  ;;  %v13534_v23 = vld [vmem:[%s20648_s1 + $0x7fc] ss:$200 sps:$4 sm:$0xff]  }
  0xc2   : > { %7808 = vmatpush1.bf16.msra.mxu0 %v13448_v22  ;;  %v13529_v22 = vld [vmem:[%s20648_s1 + $0x1470] ss:$200 sps:$4 sm:$0xff]  }
  0xc3   : > { %7809 = vmatprep.subr.bf16.mxu0 %v13456_v24  ;;  %v13537_v24 = vld [vmem:[%s20648_s1 + $0x12e4] ss:$200 sps:$4 sm:$0xff]  }
  0xc4   : > { %7773 = vmatpush2.bf16.msra.mxu1 %v13445_v25 }
  0xc5   : > { %7774 = vmatprep.subr.bf16.mxu1 %v13453_v27 }
  0xc6   : > { %7810 = vmatpush1.bf16.msra.mxu0 %v13454_v26  ;;  %v13532_v26 = vld [vmem:[%s20648_s1 + $0x7f8] ss:$200 sps:$4 sm:$0xff]  }
  0xc7   : > { %7811 = vmatprep.subr.bf16.mxu0 %v13462_v28  ;;  %v13535_v28 = vld [vmem:[%s20648_s1 + $0x12e0] ss:$200 sps:$4 sm:$0xff]  }
  0xc8   : > { %7775 = vmatpush2.bf16.msra.mxu1 %v13451_v29  ;;  %v13540_v29 = vld [vmem:[%s20648_s1 + $0x66c] ss:$200 sps:$4 sm:$0xff]  }
  0xc9   : > { %7776 = vmatprep.subr.bf16.mxu1 %v13459_v31 }
  0xca   : > { %7812 = vmatpush1.bf16.msra.mxu0 %v13460_v30  ;;  %v13543_v30 = vld [vmem:[%s20648_s1 + $0x1154] ss:$200 sps:$4 sm:$0xff]  }
  0xcb   : > { %7813 = vmatprep.subr.bf16.mxu0 %v13468_v32  ;;  %v13538_v32 = vld [vmem:[%s20648_s1 + $0x668] ss:$200 sps:$4 sm:$0xff]  }
  0xcc   : > { %7777 = vmatpush2.bf16.msra.mxu1 %v13457_v33 }
  0xcd   : > { %7778 = vmatprep.subr.bf16.mxu1 %v13465_v37  ;;  %v13546_v37 = vld [vmem:[%s20648_s1 + $0x4dc] ss:$200 sps:$4 sm:$0xff]  }
  0xce   : > { %7814 = vmatpush1.bf16.msra.mxu0 %v13466_v36  ;;  %v13541_v36 = vld [vmem:[%s20648_s1 + $0x1150] ss:$200 sps:$4 sm:$0xff]  }
  0xcf   : > { %7850 = vmatprep.subr.bf16.mxu0 %v13471_v38  ;;  %v13549_v38 = vld [vmem:[%s20648_s1 + $0xfc4] ss:$200 sps:$4 sm:$0xff]  }
  0xd0   : > { %7779 = vmatpush2.bf16.msra.mxu1 %v13463_v39 }
  0xd1   : > { %7832 = vmatmul.mubr.bf16.vlgmr.msra.gmra.mxu0 %v15568_v57  ;;  %7901 = vmatprep.subr.bf16.mxu1 %v13474_v41 }
  0xd2   : > { %7851 = vmatpush1.bf16.msra.mxu0 %v13469_v40  ;;  %7841 = vmatprep.mubr.bf16.mxu0 %v15375_v2  ;;  %v13544_v40 = vld [vmem:[%s20648_s1 + $0x4d8] ss:$200 sps:$4 sm:$0xff]  }
  0xd3   : > { %7852 = vmatprep.subr.bf16.mxu0 %v13477_v42  ;;  %7781 = vmatmul.mubr.bf16.vlgmr.msra.gmra.mxu1 %v15529_v34  ;;  %v13547_v42 = vld [vmem:[%s20648_s1 + $0xfc0] ss:$200 sps:$4 sm:$0xff]  }
  0xd4   : > { %7902 = vmatpush1.bf16.msra.mxu1 %v13472_v43  ;;  %7790 = vmatprep.mubr.bf16.mxu1 %v15550_v47  ;;  %v13552_v43 = vld [vmem:[%s20648_s1 + $0x34c] ss:$200 sps:$4 sm:$0xff]  }
  0xd5   : > { %7903 = vmatprep.subr.bf16.mxu1 %v13480_v45 }
  0xd6   : > { %7853 = vmatpush1.bf16.msra.mxu0 %v13475_v44  ;;  %v13555_v44 = vld [vmem:[%s20648_s1 + $0xe34] ss:$200 sps:$4 sm:$0xff]  }
  0xd7   : > { %7854 = vmatprep.subr.bf16.mxu0 %v13483_v48  ;;  %v10006_v48 = vlaneseq }
  0xd8   : > { %7904 = vmatpush1.bf16.msra.mxu1 %v13478_v49  ;;  %v13550_v49 = vld [vmem:[%s20648_s1 + $0x348] ss:$200 sps:$4 sm:$0xff]  }
  0xd9   : > { %7842 = vmatmul.mubr.bf16.gmra.mxu0 %v15593_v3  ;;  %7905 = vmatprep.subr.bf16.mxu1 %v13486_v51  ;;  %v13558_v51 = vld [vmem:[%s20648_s1 + $0x1bc] ss:$200 sps:$4 sm:$0xff]  }
  0xda   : > { %7855 = vmatpush1.bf16.msra.mxu0 %v13481_v50  ;;  %7882 = vmatprep.mubr.bf16.mxu0 %v15548_v46  ;;  %v13553_v50 = vld [vmem:[%s20648_s1 + $0xe30] ss:$200 sps:$4 sm:$0xff]  }
  0xdb   : > { %7856 = vmatprep.subr.bf16.mxu0 %v13489_v52  ;;  %7791 = vmatmul.mubr.bf16.gmra.mxu1 %v15531_v35  ;;  %v13561_v52 = vld [vmem:[%s20648_s1 + $0xca4] ss:$200 sps:$4 sm:$0xff]  }
  0xdc   : > { %7906 = vmatpush1.bf16.msra.mxu1 %v13484_v53  ;;  %7933 = vmatprep.mubr.bf16.mxu1 %v15375_v2  ;;  %v13556_v53 = vld [vmem:[%s20648_s1 + $0x1b8] ss:$200 sps:$4 sm:$0xff]  }
  0xdd   : > { %7907 = vmatprep.subr.bf16.mxu1 %v13492_v55  ;;  %v13559_v55 = vld [vmem:[%s20648_s1 + $0xca0] ss:$200 sps:$4 sm:$0xff]  }
  0xde   : > { %7857 = vmatpush1.bf16.msra.mxu0 %v13487_v54  ;;  %v16265_v54 = vshrl.u32 %v10006_v48, 7 }
  0xdf   : > { %7858 = vmatprep.subr.bf16.mxu0 %v13495_v56  ;;  %v13564_v56 = vld [vmem:[%s20648_s1 + $0x2c] ss:$200 sps:$4 sm:$0xff]  }
  0xe0   : > { %7908 = vmatpush1.bf16.msra.mxu1 %v13490_v58  ;;  %v13570_v58 = vld [vmem:[%s20648_s1 + $0x241c] ss:$200 sps:$4 sm:$0xff]  }
  0xe1   : > { %7909 = vmatprep.subr.bf16.mxu1 %v13498_v60  ;;  %v16282_v60 = vld [vmem:[%s20649_s2] sm:$0xff] }
  0xe2   : > { %7859 = vmatpush1.bf16.msra.mxu0 %v13493_v59  ;;  %v13562_v59 = vld [vmem:[%s20648_s1 + $0x28] ss:$200 sps:$4 sm:$0xff]  }
  0xe3   : > { %7860 = vmatprep.subr.bf16.mxu0 %v13501_v61  ;;  %v16285_v61 = vsub.s32 0, %v16265_v54 }
  0xe4   : > { %7910 = vmatpush1.bf16.msra.mxu1 %v13496_v62  ;;  %v13568_v62 = vld [vmem:[%s20648_s1 + $0x2418] ss:$200 sps:$4 sm:$0xff]  }
  0xe5   : > { %7911 = vmatprep.subr.bf16.mxu1 %v13504_v0  ;;  %v16296_v0 = vld [vmem:[%s20650_s3] sm:$0xff] }
  0xe6   : > { %7861 = vmatpush1.bf16.msra.mxu0 %v13499_v63  ;;  %v16291_v63 = vsub.s32 1, %v16265_v54 }
  0xe7   : > { %7862 = vmatprep.subr.bf16.mxu0 %v13507_v1  ;;  %v13567_v1 = vld [vmem:[%s20648_s1 + $0x179c] ss:$200 sps:$4 sm:$0xff]  }
  0xe8   : > { %7912 = vmatpush1.bf16.msra.mxu1 %v13502_v4  ;;  %v13576_v4 = vld [vmem:[%s20648_s1 + $0x228c] ss:$200 sps:$4 sm:$0xff]  }
  0xe9   : > { %7913 = vmatprep.subr.bf16.mxu1 %v13510_v6  ;;  %v13565_v6 = vld [vmem:[%s20648_s1 + $0x1798] ss:$200 sps:$4 sm:$0xff]  }
  0xea   : > { %7863 = vmatpush1.bf16.msra.mxu0 %v13505_v5  ;;  %v10009_v5 = vrot.slane %v16282_v60, %v16285_v61 }
  0xeb   : > { %7864 = vmatprep.subr.bf16.mxu0 %v13513_v7  ;;  %v13574_v7 = vld [vmem:[%s20648_s1 + $0x2288] ss:$200 sps:$4 sm:$0xff]  }
  0xec   : > { %7914 = vmatpush1.bf16.msra.mxu1 %v13508_v8 }
  0xed   : > { %7915 = vmatprep.subr.bf16.mxu1 %v13516_v10  ;;  %v16316_v10 = vrot.slane %v16282_v60, %v16291_v63 }
  0xee   : > { %7865 = vmatpush1.bf16.msra.mxu0 %v13511_v9 }
  0xef   : > { %7866 = vmatprep.subr.bf16.mxu0 %v13519_v11 }
  0xf0   : > { %7916 = vmatpush1.bf16.msra.mxu1 %v13514_v12  ;;  %v13573_v12 = vld [vmem:[%s20648_s1 + $0x160c] ss:$200 sps:$4 sm:$0xff]  }
  0xf1   : > { %7952 = vmatprep.subr.bf16.mxu1 %v13522_v14 }
  0xf2   : > { %7867 = vmatpush2.bf16.msra.mxu0 %v13517_v13  ;;  %v16190_v21 = vpop.f32.mrf.mxu1  ;;  %v13582_v13 = vld [vmem:[%s20648_s1 + $0x20fc] ss:$200 sps:$4 sm:$0xff]  }
  0xf3   : > { %7868 = vmatprep.subr.bf16.mxu0 %v13525_v15  ;;  %7934 = vmatmul.mubr.bf16.vlgmr.msra.gmra.mxu1 %v15568_v57  ;;  %v16326_v15 = vrot.slane %v16296_v0, %v16285_v61 }
  0xf4   : > { %7953 = vmatpush1.bf16.msra.mxu1 %v13520_v16  ;;  %v16201_v25 = vpop.f32.mrf.mxu1  ;;  %7943 = vmatprep.mubr.bf16.mxu1 %v15375_v2 }
  0xf5   : > { %7954 = vmatprep.subr.bf16.mxu1 %v13528_v18  ;;  %v13580_v18 = vld [vmem:[%s20648_s1 + $0x20f8] ss:$200 sps:$4 sm:$0xff]  }
  0xf6   : > { %7869 = vmatpush2.bf16.msra.mxu0 %v13523_v17  ;;  %v16207_v27 = vpop.f32.mrf.mxu1  ;;  %v13571_v17 = vld [vmem:[%s20648_s1 + $0x1608] ss:$200 sps:$4 sm:$0xff]  }
  0xf7   : > { %7870 = vmatprep.subr.bf16.mxu0 %v13531_v19  ;;  %v16338_v19 = vrot.slane %v16296_v0, %v16291_v63 }
  0xf8   : > { %7955 = vmatpush1.bf16.msra.mxu1 %v13526_v20  ;;  %v16218_v31 = vpop.f32.mrf.mxu1 }
  0xf9   : > { %7956 = vmatprep.subr.bf16.mxu1 %v13534_v23 }
  0xfa   : > { %7871 = vmatpush2.bf16.msra.mxu0 %v13529_v22  ;;  %v16223_v33 = vpop.f32.mrf.mxu1 }
  0xfb   : > { %7872 = vmatprep.subr.bf16.mxu0 %v13537_v24  ;;  %7944 = vmatmul.mubr.bf16.gmra.mxu1 %v15593_v3 }
  0xfc   : > { %7957 = vmatpush1.bf16.msra.mxu1 %v13532_v26  ;;  %v16235_v39 = vpop.f32.mrf.mxu1  ;;  %7984 = vmatprep.mubr.bf16.mxu1 %v15548_v46  ;;  %v13588_v26 = vld [vmem:[%s20648_s1 + $0x1f6c] ss:$200 sps:$4 sm:$0xff]  }
  0xfd   : > { %7958 = vmatprep.subr.bf16.mxu1 %v13540_v29 }
  0xfe   : > { %7873 = vmatpush2.bf16.msra.mxu0 %v13535_v28  ;;  %v7541_v41 = vpop.f32.mrf.mxu1 }
  0xff   : > { %7874 = vmatprep.subr.bf16.mxu0 %v13543_v30 }
 0x100   : > { %7959 = vmatpush1.bf16.msra.mxu1 %v13538_v32  ;;  %v7542_v45 = vpop.f32.mrf.mxu1 }
 0x101   : > { %7960 = vmatprep.subr.bf16.mxu1 %v13546_v37 }
 0x102   : > { %7875 = vmatpush2.bf16.msra.mxu0 %v13541_v36  ;;  %v13586_v36 = vld [vmem:[%s20648_s1 + $0x1f68] ss:$200 sps:$4 sm:$0xff]  }
 0x103   : > { %7876 = vmatprep.subr.bf16.mxu0 %v13549_v38 }
 0x104   : > { %7961 = vmatpush1.bf16.msra.mxu1 %v13544_v40 }
 0x105   : > { %7962 = vmatprep.subr.bf16.mxu1 %v13552_v43  ;;  %v13594_v43 = vld [vmem:[%s20648_s1 + $0x1ddc] ss:$200 sps:$4 sm:$0xff]  }
 0x106   : > { %7877 = vmatpush2.bf16.msra.mxu0 %v13547_v42 }
 0x107   : > { %7878 = vmatprep.subr.bf16.mxu0 %v13555_v44 }
 0x108   : > { %7963 = vmatpush1.bf16.msra.mxu1 %v13550_v49 }
 0x109   : > { %7964 = vmatprep.subr.bf16.mxu1 %v13558_v51  ;;  %v13583_v51 = vld [vmem:[%s20648_s1 + $0x12e8] ss:$200 sps:$4 sm:$0xff]  }
 0x10a   : > { %7879 = vmatpush2.bf16.msra.mxu0 %v13553_v50 }
 0x10b   : > { %7880 = vmatprep.subr.bf16.mxu0 %v13561_v52  ;;  %v13592_v52 = vld [vmem:[%s20648_s1 + $0x1dd8] ss:$200 sps:$4 sm:$0xff]  }
 0x10c   : > { %7965 = vmatpush1.bf16.msra.mxu1 %v13556_v53 }
 0x10d   : > { %7966 = vmatprep.subr.bf16.mxu1 %v13564_v56 }
 0x10e   : > { %7881 = vmatpush2.bf16.msra.mxu0 %v13559_v55 }
 0x10f   : > { %8003 = vmatprep.subr.bf16.mxu0 %v13570_v58 }
 0x110   : > { %7967 = vmatpush1.bf16.msra.mxu1 %v13562_v59  ;;  %v13591_v59 = vld [vmem:[%s20648_s1 + $0x115c] ss:$200 sps:$4 sm:$0xff]  }
 0x111   : > { %v7476_v8 = vpop.f32.mrf.mxu0  ;;  %7883 = vmatmul.mubr.bf16.vlgmr.msra.gmra.mxu0 %v15529_v34  ;;  %7968 = vmatprep.subr.bf16.mxu1 %v13567_v1 }
 0x112   : > { %v7528_v9 = vadd.f32 %v16190_v21, %v7476_v8  ;;  %8004 = vmatpush1.bf16.msra.mxu0 %v13568_v62  ;;  %7892 = vmatprep.mubr.bf16.mxu0 %v15550_v47  ;;  %v13600_v62 = vld [vmem:[%s20648_s1 + $0x1c4c] ss:$200 sps:$4 sm:$0xff]  }
 0x113   : > { %v7478_v11 = vpop.f32.mrf.mxu0  ;;  %8005 = vmatprep.subr.bf16.mxu0 %v13576_v4 }
 0x114   : > { %v10256_v14 = vsub.f32 %v7528_v9, %v10009_v5  ;;  %v7530_v16 = vadd.f32 %v16201_v25, %v7478_v11  ;;  %7969 = vmatpush2.bf16.msra.mxu1 %v13565_v6  ;;  %v13579_v25 = vld [vmem:[%s20648_s1 + $0x147c] ss:$200 sps:$4 sm:$0xff]   ;;  %v13589_v6 = vld [vmem:[%s20648_s1 + $0x1158] ss:$200 sps:$4 sm:$0xff]  }
 0x115   : > { %v7480_v20 = vpop.f32.mrf.mxu0  ;;  %7970 = vmatprep.subr.bf16.mxu1 %v13573_v12  ;;  %v13606_v12 = vld [vmem:[%s20648_s1 + $0x1abc] ss:$200 sps:$4 sm:$0xff]  }
 0x116   : > { %v10413_v21 = vmul.f32 %v10256_v14, %v10256_v14  ;;  %v10257_v22 = vsub.f32 %v7530_v16, %v16316_v10  ;;  %v7532_v23 = vadd.f32 %v16207_v27, %v7480_v20  ;;  %8006 = vmatpush1.bf16.msra.mxu0 %v13574_v7  ;;  %v13577_v27 = vld [vmem:[%s20648_s1 + $0x1478] ss:$200 sps:$4 sm:$0xff]   ;;  %v13598_v7 = vld [vmem:[%s20648_s1 + $0x1c48] ss:$200 sps:$4 sm:$0xff]  }
 0x117   : > { %v7482_v24 = vpop.f32.mrf.mxu0  ;;  %8007 = vmatprep.subr.bf16.mxu0 %v13582_v13  ;;  %v13595_v14 = vld [vmem:[%s20648_s1 + $0xfc8] ss:$200 sps:$4 sm:$0xff]  }
 0x118   : > { %v10820_v28 = vmul.f32 %v16326_v15, %v10413_v21  ;;  %v10414_v29 = vmul.f32 %v10257_v22, %v10257_v22  ;;  %v10306_v30 = vsub.f32 %v7532_v23, %v10009_v5  ;;  %v7534_v32 = vadd.f32 %v16218_v31, %v7482_v24  ;;  %7971 = vmatpush2.bf16.msra.mxu1 %v13571_v17  ;;  %v13585_v31 = vld [vmem:[%s20648_s1 + $0x12ec] ss:$200 sps:$4 sm:$0xff]   ;;  %v13603_v17 = vld [vmem:[%s20648_s1 + $0xe3c] ss:$200 sps:$4 sm:$0xff]   ;;  %v13610_v20 = vld [vmem:[%s20648_s1 + $0x1928] ss:$200 sps:$4 sm:$0xff]  }
 0x119   : > { %v7486_v37 = vpop.f32.mrf.mxu0  ;;  %7893 = vmatmul.mubr.bf16.gmra.mxu0 %v15531_v35  ;;  %7972 = vmatprep.subr.bf16.mxu1 %v13579_v25  ;;  %v13609_v23 = vld [vmem:[%s20648_s1 + $0xcac] ss:$200 sps:$4 sm:$0xff]   ;;  %v13607_v25 = vld [vmem:[%s20648_s1 + $0xca8] ss:$200 sps:$4 sm:$0xff]  }
 0x11a   : > { %v10970_v38 = vmul.f32 1.442695, %v10820_v28  ;;  %v10821_v40 = vmul.f32 %v16338_v19, %v10414_v29  ;;  %v10463_v41 = vmul.f32 %v10306_v30, %v10306_v30  ;;  %v10307_v42 = vsub.f32 %v7534_v32, %v16316_v10  ;;  %8008 = vmatpush1.bf16.msra.mxu0 %v13580_v18  ;;  %8035 = vmatprep.mubr.bf16.mxu0 %v15375_v2  ;;  %v13612_v18 = vld [vmem:[%s20648_s1 + $0x192c] ss:$200 sps:$4 sm:$0xff]  }
 0x11b   : > { %8009 = vmatprep.subr.bf16.mxu0 %v13588_v26  ;;  %v7488_v44 = vpop.f32.mrf.mxu0  ;;  %v7538_v45 = vadd.f32 %v16223_v33, %v7486_v37  ;;  %v13615_v24 = vld [vmem:[%s20648_s1 + $0xb24] ss:$200 sps:$4 sm:$0xff]   ;;  %v13613_v26 = vld [vmem:[%s20648_s1 + $0xb20] ss:$200 sps:$4 sm:$0xff]   ;;  %v13621_v32 = vld [vmem:[%s20648_s1 + $0x994] ss:$200 sps:$4 sm:$0xff]  }
 0x11c   : > { %14981 = vpow2.f32 %v10970_v38  ;;  %v10972_v48 = vmul.f32 1.442695, %v10821_v40  ;;  %v10870_v49 = vmul.f32 %v16326_v15, %v10463_v41  ;;  %v10464_v50 = vmul.f32 %v10307_v42, %v10307_v42  ;;  %7973 = vmatpush2.bf16.msra.mxu1 %v13577_v27  ;;  %v13618_v30 = vld [vmem:[%s20648_s1 + $0x2424] ss:$200 sps:$4 sm:$0xff]   ;;  %v13619_v37 = vld [vmem:[%s20648_s1 + $0x990] ss:$200 sps:$4 sm:$0xff]  }
 0x11d   : > { %v7490_v53 = vpop.f32.mrf.mxu0  ;;  %v10356_v55 = vsub.f32 %v7538_v45, %v10009_v5  ;;  %v7540_v33 = vadd.f32 %v16235_v39, %v7488_v44  ;;  %7974 = vmatprep.subr.bf16.mxu1 %v13585_v31  ;;  %v16441_v27 = vsub.s32 2, %v16265_v54  ;;  %v16451_v41 = vsub.s32 3, %v16265_v54  ;;  %v13624_v31 = vld [vmem:[%s20648_s1 + $0x2294] ss:$200 sps:$4 sm:$0xff]  }
 0x11e   : > { %14983 = vpow2.f32 %v10972_v48  ;;  %v11070_v56 = vmul.f32 1.442695, %v10870_v49  ;;  %v10871_v58 = vmul.f32 %v16338_v19, %v10464_v50  ;;  %8010 = vmatpush1.bf16.msra.mxu0 %v13586_v36  ;;  %v13616_v36 = vld [vmem:[%s20648_s1 + $0x2420] ss:$200 sps:$4 sm:$0xff]  }
 0x11f   : > { %8011 = vmatprep.subr.bf16.mxu0 %v13594_v43  ;;  %v10513_v1 = vmul.f32 %v10356_v55, %v10356_v55  ;;  %v7491_v4 = vpop.f32.mrf.mxu0  ;;  %v10357_v39 = vsub.f32 %v7540_v33, %v16316_v10  ;;  %v13597_v10 = vld [vmem:[%s20648_s1 + $0xfcc] ss:$200 sps:$4 sm:$0xff]   ;;  %v16462_v45 = vrot.slane %v16282_v60, %v16441_v27  ;;  %v13625_v53 = vld [vmem:[%s20648_s1 + $0x800] ss:$200 sps:$4 sm:$0xff]  }
 0x120   : > { %14985 = vpow2.f32 %v11070_v56  ;;  %v11072_v5 = vmul.f32 1.442695, %v10871_v58  ;;  %7975 = vmatpush2.bf16.msra.mxu1 %v13583_v51  ;;  %v13627_v43 = vld [vmem:[%s20648_s1 + $0x804] ss:$200 sps:$4 sm:$0xff]   ;;  %v16469_v51 = vrot.slane %v16282_v60, %v16451_v41  ;;  %v13633_v60 = vld [vmem:[%s20648_s1 + $0x674] ss:$200 sps:$4 sm:$0xff]  }
 0x121   : > { %v10920_v8 = vmul.f32 %v16326_v15, %v10513_v1  ;;  %v10514_v9 = vmul.f32 %v10357_v39, %v10357_v39  ;;  %7976 = vmatprep.subr.bf16.mxu1 %v13591_v59  ;;  %v13604_v15 = vld [vmem:[%s20648_s1 + $0x1ab8] ss:$200 sps:$4 sm:$0xff]   ;;  %v13630_v55 = vld [vmem:[%s20648_s1 + $0x2104] ss:$200 sps:$4 sm:$0xff]   ;;  %v16486_v59 = vrot.slane %v16296_v0, %v16441_v27  ;;  %v16491_v1 = vrot.slane %v16296_v0, %v16451_v41  ;;  %v13636_v0 = vld [vmem:[%s20648_s1 + $0x1f74] ss:$200 sps:$4 sm:$0xff]  }
 0x122   : > { %14987 = vpow2.f32 %v11072_v5  ;;  %8012 = vmatpush1.bf16.msra.mxu0 %v13592_v52  ;;  %v13622_v52 = vld [vmem:[%s20648_s1 + $0x2290] ss:$200 sps:$4 sm:$0xff]  }
 0x123   : > { %8013 = vmatprep.subr.bf16.mxu0 %v13600_v62  ;;  %v11170_v11 = vmul.f32 1.442695, %v10920_v8  ;;  %v10921_v13 = vmul.f32 %v16338_v19, %v10514_v9  ;;  %v13601_v19 = vld [vmem:[%s20648_s1 + $0xe38] ss:$200 sps:$4 sm:$0xff]  }
 0x124   : > { %7977 = vmatpush2.bf16.msra.mxu1 %v13589_v6  ;;  %v13628_v8 = vld [vmem:[%s20648_s1 + $0x2100] ss:$200 sps:$4 sm:$0xff]   ;;  %v13631_v9 = vld [vmem:[%s20648_s1 + $0x670] ss:$200 sps:$4 sm:$0xff]  }
 0x125   : > { %14989 = vpow2.f32 %v11170_v11  ;;  %v11172_v16 = vmul.f32 1.442695, %v10921_v13  ;;  %7978 = vmatprep.subr.bf16.mxu1 %v13597_v10  ;;  %v13639_v11 = vld [vmem:[%s20648_s1 + $0x4e4] ss:$200 sps:$4 sm:$0xff]  }
 0x126   : > { %8014 = vmatpush1.bf16.msra.mxu0 %v13598_v7 }
 0x127   : > { %8015 = vmatprep.subr.bf16.mxu0 %v13606_v12  ;;  %14991 = vpow2.f32 %v11172_v16 }
 0x128   : > { %7979 = vmatpush2.bf16.msra.mxu1 %v13595_v14 }
 0x129   : > { %v14982_v21 = vpop.eup %14981  ;;  %7980 = vmatprep.subr.bf16.mxu1 %v13603_v17 }
 0x12a   : > { %11270 = vst [vmem:[%s16416_s10] sm:$0xff] %v14982_v21  ;;  %8016 = vmatpush1.bf16.msra.mxu0 %v13604_v15 }
 0x12b   : > { %v14984_v22 = vpop.eup %14983  ;;  %8017 = vmatprep.subr.bf16.mxu0 %v13612_v18 }
 0x12c   : > { %11271 = vst [vmem:[%s16416_s10 + $0x8] sm:$0xff] %v14984_v22  ;;  %7981 = vmatpush2.bf16.msra.mxu1 %v13601_v19 }
 0x12d   : > { %v14986_v28 = vpop.eup %14985  ;;  %7982 = vmatprep.subr.bf16.mxu1 %v13609_v23  ;;  %v13634_v23 = vld [vmem:[%s20648_s1 + $0x1f70] ss:$200 sps:$4 sm:$0xff]  }
 0x12e   : > { %11320 = vst [vmem:[%s16416_s10 + $0x190] sm:$0xff] %v14986_v28  ;;  %8018 = vmatpush1.bf16.msra.mxu0 %v13610_v20 }
 0x12f   : > { %v14988_v29 = vpop.eup %14987  ;;  %8054 = vmatprep.subr.bf16.mxu0 %v13615_v24  ;;  %v13637_v24 = vld [vmem:[%s20648_s1 + $0x4e0] ss:$200 sps:$4 sm:$0xff]  }
 0x130   : > { %11321 = vst [vmem:[%s16416_s10 + $0x198] sm:$0xff] %v14988_v29  ;;  %7983 = vmatpush2.bf16.msra.mxu1 %v13607_v25  ;;  %v13642_v25 = vld [vmem:[%s20648_s1 + $0x1de4] ss:$200 sps:$4 sm:$0xff]  }
 0x131   : > { %v7629_v38 = vpop.f32.mrf.mxu0  ;;  %8036 = vmatmul.mubr.bf16.vlgmr.msra.gmra.mxu0 %v15568_v57  ;;  %8105 = vmatprep.subr.bf16.mxu1 %v13618_v30 }
 0x132   : > { %v14990_v40 = vpop.eup %14989  ;;  %8055 = vmatpush1.bf16.msra.mxu0 %v13613_v26  ;;  %8045 = vmatprep.mubr.bf16.mxu0 %v15375_v2  ;;  %v13645_v26 = vld [vmem:[%s20648_s1 + $0x354] ss:$200 sps:$4 sm:$0xff]  }
 0x133   : > { %11370 = vst [vmem:[%s16416_s10 + $0x320] sm:$0xff] %v14990_v40  ;;  %v7631_v42 = vpop.f32.mrf.mxu0  ;;  %8056 = vmatprep.subr.bf16.mxu0 %v13621_v32  ;;  %v7578_v48 = vpop.f32.mrf.mxu1  ;;  %7985 = vmatmul.mubr.bf16.vlgmr.msra.gmra.mxu1 %v15529_v34 }
 0x134   : > { %v14992_v44 = vpop.eup %14991  ;;  %v7630_v50 = vadd.f32 %v7629_v38, %v7578_v48  ;;  %8106 = vmatpush1.bf16.msra.mxu1 %v13616_v36  ;;  %7994 = vmatprep.mubr.bf16.mxu1 %v15550_v47  ;;  %v13643_v48 = vld [vmem:[%s20648_s1 + $0x350] ss:$200 sps:$4 sm:$0xff]  }
 0x135   : > { %11371 = vst [vmem:[%s16416_s10 + $0x328] sm:$0xff] %v14992_v44  ;;  %v7633_v49 = vpop.f32.mrf.mxu0  ;;  %v7580_v33 = vpop.f32.mrf.mxu1  ;;  %8107 = vmatprep.subr.bf16.mxu1 %v13624_v31  ;;  %v13640_v44 = vld [vmem:[%s20648_s1 + $0x1de0] ss:$200 sps:$4 sm:$0xff]  }
 0x136   : > { %8057 = vmatpush1.bf16.msra.mxu0 %v13619_v37  ;;  %v10258_v58 = vsub.f32 %v7630_v50, %v16462_v45  ;;  %v7632_v62 = vadd.f32 %v7631_v42, %v7580_v33 }
 0x137   : > { %v7635_v56 = vpop.f32.mrf.mxu0  ;;  %8058 = vmatprep.subr.bf16.mxu0 %v13627_v43  ;;  %v7582_v4 = vpop.f32.mrf.mxu1 }
 0x138   : > { %v10415_v5 = vmul.f32 %v10258_v58, %v10258_v58  ;;  %v10259_v6 = vsub.f32 %v7632_v62, %v16469_v51  ;;  %v7634_v7 = vadd.f32 %v7633_v49, %v7582_v4  ;;  %8108 = vmatpush1.bf16.msra.mxu1 %v13622_v52  ;;  %v13651_v49 = vld [vmem:[%s20648_s1 + $0x1c4] ss:$200 sps:$4 sm:$0xff]   ;;  %v13649_v58 = vld [vmem:[%s20648_s1 + $0x1c0] ss:$200 sps:$4 sm:$0xff]  }
 0x139   : > { %v7639_v39 = vpop.f32.mrf.mxu0  ;;  %8046 = vmatmul.mubr.bf16.gmra.mxu0 %v15593_v3  ;;  %v7584_v10 = vpop.f32.mrf.mxu1  ;;  %8109 = vmatprep.subr.bf16.mxu1 %v13630_v55 }
 0x13a   : > { %8059 = vmatpush1.bf16.msra.mxu0 %v13625_v53  ;;  %v10822_v13 = vmul.f32 %v16486_v59, %v10415_v5  ;;  %v10416_v14 = vmul.f32 %v10259_v6, %v10259_v6  ;;  %v10308_v15 = vsub.f32 %v7634_v7, %v16462_v45  ;;  %v7636_v16 = vadd.f32 %v7635_v56, %v7584_v10  ;;  %v13652_v5 = vld [vmem:[%s20648_s1 + $0x1ac0] ss:$200 sps:$4 sm:$0xff]   ;;  %v13655_v6 = vld [vmem:[%s20648_s1 + $0x30] ss:$200 sps:$4 sm:$0xff]   ;;  %v13660_v7 = vld [vmem:[%s20648_s1 + $0x1934] ss:$200 sps:$4 sm:$0xff]  }
 0x13b   : > { %8060 = vmatprep.subr.bf16.mxu0 %v13633_v60  ;;  %v7641_v12 = vpop.f32.mrf.mxu0  ;;  %8086 = vmatprep.mubr.bf16.mxu0 %v15548_v46  ;;  %v7588_v17 = vpop.f32.mrf.mxu1  ;;  %v13646_v60 = vld [vmem:[%s20648_s1 + $0x1c50] ss:$200 sps:$4 sm:$0xff]   ;;  %v13666_v10 = vld [vmem:[%s20648_s1 + $0xb2c] ss:$200 sps:$4 sm:$0xff]  }
 0x13c   : > { %7995 = vmatmul.mubr.bf16.gmra.mxu1 %v15531_v35  ;;  %v10974_v19 = vmul.f32 1.442695, %v10822_v13  ;;  %v10823_v20 = vmul.f32 %v16491_v1, %v10416_v14  ;;  %v10465_v21 = vmul.f32 %v10308_v15, %v10308_v15  ;;  %v10309_v22 = vsub.f32 %v7636_v16, %v16469_v51  ;;  %v13664_v13 = vld [vmem:[%s20648_s1 + $0xb28] ss:$200 sps:$4 sm:$0xff]  }
 0x13d   : > { %v7643_v18 = vpop.f32.mrf.mxu0  ;;  %8110 = vmatpush1.bf16.msra.mxu1 %v13628_v8  ;;  %v7640_v28 = vadd.f32 %v7639_v39, %v7588_v17  ;;  %v7590_v29 = vpop.f32.mrf.mxu1  ;;  %8137 = vmatprep.mubr.bf16.mxu1 %v15375_v2  ;;  %v13667_v15 = vld [vmem:[%s20648_s1 + $0x1610] ss:$200 sps:$4 sm:$0xff]   ;;  %v13672_v17 = vld [vmem:[%s20648_s1 + $0x99c] ss:$200 sps:$4 sm:$0xff]  }
 0x13e   : > { %8061 = vmatpush1.bf16.msra.mxu0 %v13631_v9  ;;  %8111 = vmatprep.subr.bf16.mxu1 %v13636_v0  ;;  %14993 = vpow2.f32 %v10974_v19  ;;  %v10976_v32 = vmul.f32 1.442695, %v10823_v20  ;;  %v10872_v36 = vmul.f32 %v16486_v59, %v10465_v21  ;;  %v10466_v37 = vmul.f32 %v10309_v22, %v10309_v22  ;;  %v13658_v9 = vld [vmem:[%s20648_s1 + $0x1930] ss:$200 sps:$4 sm:$0xff]   ;;  %v13661_v0 = vld [vmem:[%s20648_s1 + $0x17a0] ss:$200 sps:$4 sm:$0xff]  }
 0x13f   : > { %8062 = vmatprep.subr.bf16.mxu0 %v13639_v11  ;;  %v7644_v30 = vpop.f32.mrf.mxu0  ;;  %v10358_v38 = vsub.f32 %v7640_v28, %v16462_v45  ;;  %v7642_v40 = vadd.f32 %v7641_v12, %v7590_v29  ;;  %v7592_v42 = vpop.f32.mrf.mxu1  ;;  %v13648_v45 = vld [vmem:[%s20648_s1 + $0x1c54] ss:$200 sps:$4 sm:$0xff]   ;;  %v13675_v18 = vld [vmem:[%s20648_s1 + $0x1484] ss:$200 sps:$4 sm:$0xff]   ;;  %v13670_v19 = vld [vmem:[%s20648_s1 + $0x998] ss:$200 sps:$4 sm:$0xff]  }
 0x140   : > { %14995 = vpow2.f32 %v10976_v32  ;;  %v11074_v31 = vmul.f32 1.442695, %v10872_v36  ;;  %v10873_v43 = vmul.f32 %v16491_v1, %v10466_v37  ;;  %v13669_v12 = vld [vmem:[%s20648_s1 + $0x1614] ss:$200 sps:$4 sm:$0xff]   ;;  %v13673_v20 = vld [vmem:[%s20648_s1 + $0x1480] ss:$200 sps:$4 sm:$0xff]  }
 0x141   : > { %8112 = vmatpush1.bf16.msra.mxu1 %v13634_v23  ;;  %v10515_v50 = vmul.f32 %v10358_v38, %v10358_v38  ;;  %v10359_v52 = vsub.f32 %v7642_v40, %v16469_v51  ;;  %v7593_v53 = vpop.f32.mrf.mxu1  ;;  %v13654_v51 = vld [vmem:[%s20648_s1 + $0x1ac4] ss:$200 sps:$4 sm:$0xff]   ;;  %v13676_v28 = vld [vmem:[%s20648_s1 + $0x808] ss:$200 sps:$4 sm:$0xff]   ;;  %v13682_v38 = vld [vmem:[%s20648_s1 + $0x678] ss:$200 sps:$4 sm:$0xff]  }
 0x142   : > { %8063 = vmatpush1.bf16.msra.mxu0 %v13637_v24  ;;  %8113 = vmatprep.subr.bf16.mxu1 %v13642_v25  ;;  %14997 = vpow2.f32 %v11074_v31  ;;  %v11076_v55 = vmul.f32 1.442695, %v10873_v43  ;;  %v13678_v23 = vld [vmem:[%s20648_s1 + $0x80c] ss:$200 sps:$4 sm:$0xff]   ;;  %v13679_v29 = vld [vmem:[%s20648_s1 + $0x12f0] ss:$200 sps:$4 sm:$0xff]  }
 0x143   : > { %8064 = vmatprep.subr.bf16.mxu0 %v13645_v26  ;;  %v10922_v33 = vmul.f32 %v16486_v59, %v10515_v50  ;;  %v10516_v56 = vmul.f32 %v10359_v52, %v10359_v52  ;;  %v13657_v59 = vld [vmem:[%s20648_s1 + $0x34] ss:$200 sps:$4 sm:$0xff]   ;;  %v13687_v36 = vld [vmem:[%s20648_s1 + $0x1164] ss:$200 sps:$4 sm:$0xff]   ;;  %v13685_v40 = vld [vmem:[%s20648_s1 + $0x1160] ss:$200 sps:$4 sm:$0xff]  }
 0x144   : > { %14999 = vpow2.f32 %v11076_v55  ;;  %v13681_v24 = vld [vmem:[%s20648_s1 + $0x12f4] ss:$200 sps:$4 sm:$0xff]   ;;  %v13699_v52 = vld [vmem:[%s20648_s1 + $0xe44] ss:$200 sps:$4 sm:$0xff]   ;;  %v13694_v55 = vld [vmem:[%s20648_s1 + $0x358] ss:$200 sps:$4 sm:$0xff]  }
 0x145   : > { %8114 = vmatpush1.bf16.msra.mxu1 %v13640_v44  ;;  %v11174_v62 = vmul.f32 1.442695, %v10922_v33  ;;  %v10923_v4 = vmul.f32 %v16491_v1, %v10516_v56  ;;  %v13663_v1 = vld [vmem:[%s20648_s1 + $0x17a4] ss:$200 sps:$4 sm:$0xff]   ;;  %v13693_v43 = vld [vmem:[%s20648_s1 + $0xfd4] ss:$200 sps:$4 sm:$0xff]  }
 0x146   : > { %8065 = vmatpush1.bf16.msra.mxu0 %v13643_v48  ;;  %8115 = vmatprep.subr.bf16.mxu1 %v13648_v45  ;;  %v13684_v32 = vld [vmem:[%s20648_s1 + $0x67c] ss:$200 sps:$4 sm:$0xff]   ;;  %v13690_v31 = vld [vmem:[%s20648_s1 + $0x4ec] ss:$200 sps:$4 sm:$0xff]   ;;  %v13688_v48 = vld [vmem:[%s20648_s1 + $0x4e8] ss:$200 sps:$4 sm:$0xff]  }
 0x147   : > { %8066 = vmatprep.subr.bf16.mxu0 %v13651_v49  ;;  %15001 = vpow2.f32 %v11174_v62  ;;  %v11176_v39 = vmul.f32 1.442695, %v10923_v4  ;;  %v13691_v45 = vld [vmem:[%s20648_s1 + $0xfd0] ss:$200 sps:$4 sm:$0xff]   ;;  %v13696_v50 = vld [vmem:[%s20648_s1 + $0x35c] ss:$200 sps:$4 sm:$0xff]  }
 0x148   : > { %v13697_v33 = vld [vmem:[%s20648_s1 + $0xe40] ss:$200 sps:$4 sm:$0xff]   ;;  %v13702_v56 = vld [vmem:[%s20648_s1 + $0x1cc] ss:$200 sps:$4 sm:$0xff]  }
 0x149   : > { %8116 = vmatpush1.bf16.msra.mxu1 %v13646_v60  ;;  %15003 = vpow2.f32 %v11176_v39  ;;  %v13705_v60 = vld [vmem:[%s20648_s1 + $0xcb4] ss:$200 sps:$4 sm:$0xff]   ;;  %v13706_v4 = vld [vmem:[%s20648_s1 + $0x38] ss:$200 sps:$4 sm:$0xff]   ;;  %v16690_v39 = vsub.s32 4, %v16265_v54 }
 0x14a   : > { %8067 = vmatpush1.bf16.msra.mxu0 %v13649_v58  ;;  %8117 = vmatprep.subr.bf16.mxu1 %v13654_v51  ;;  %v13700_v58 = vld [vmem:[%s20648_s1 + $0x1c8] ss:$200 sps:$4 sm:$0xff]   ;;  %v13714_v62 = vld [vmem:[%s20648_s1 + $0x242c] ss:$200 sps:$4 sm:$0xff]  }
 0x14b   : > { %8068 = vmatprep.subr.bf16.mxu0 %v13657_v59  ;;  %v14994_v8 = vpop.eup %14993  ;;  %v13703_v51 = vld [vmem:[%s20648_s1 + $0xcb0] ss:$200 sps:$4 sm:$0xff]   ;;  %v13708_v59 = vld [vmem:[%s20648_s1 + $0x3c] ss:$200 sps:$4 sm:$0xff]  }
 0x14c   : > { %11272 = vst [vmem:[%s16416_s10 + $0x10] sm:$0xff] %v14994_v8  ;;  %v16707_v8 = vld [vmem:[%s20649_s2] sm:$0xff] }
 0x14d   : > { %8118 = vmatpush1.bf16.msra.mxu1 %v13652_v5  ;;  %v14996_v11 = vpop.eup %14995  ;;  %v13712_v5 = vld [vmem:[%s20648_s1 + $0x2428] ss:$200 sps:$4 sm:$0xff]  }
 0x14e   : > { %8069 = vmatpush1.bf16.msra.mxu0 %v13655_v6  ;;  %8119 = vmatprep.subr.bf16.mxu1 %v13660_v7  ;;  %11273 = vst [vmem:[%s16416_s10 + $0x18] sm:$0xff] %v14996_v11  ;;  %v16696_v6 = vsub.s32 5, %v16265_v54  ;;  %v13711_v7 = vld [vmem:[%s20648_s1 + $0x17ac] ss:$200 sps:$4 sm:$0xff]  }
 0x14f   : > { %8070 = vmatprep.subr.bf16.mxu0 %v13663_v1  ;;  %v14998_v14 = vpop.eup %14997  ;;  %v13720_v1 = vld [vmem:[%s20648_s1 + $0x229c] ss:$200 sps:$4 sm:$0xff]  }
 0x150   : > { %11322 = vst [vmem:[%s16416_s10 + $0x1a0] sm:$0xff] %v14998_v14 }
 0x151   : > { %8120 = vmatpush1.bf16.msra.mxu1 %v13658_v9  ;;  %v15000_v16 = vpop.eup %14999  ;;  %v10025_v9 = vrot.slane %v16707_v8, %v16690_v39 }
 0x152   : > { %8071 = vmatpush2.bf16.msra.mxu0 %v13661_v0  ;;  %8156 = vmatprep.subr.bf16.mxu1 %v13666_v10  ;;  %11323 = vst [vmem:[%s16416_s10 + $0x1a8] sm:$0xff] %v15000_v16  ;;  %v13709_v0 = vld [vmem:[%s20648_s1 + $0x17a8] ss:$200 sps:$4 sm:$0xff]   ;;  %v13718_v10 = vld [vmem:[%s20648_s1 + $0x2298] ss:$200 sps:$4 sm:$0xff]  }
 0x153   : > { %8072 = vmatprep.subr.bf16.mxu0 %v13669_v12  ;;  %v16603_v21 = vpop.f32.mrf.mxu1  ;;  %v13726_v16 = vld [vmem:[%s20648_s1 + $0x210c] ss:$200 sps:$4 sm:$0xff]  }
 0x154   : > { %8138 = vmatmul.mubr.bf16.vlgmr.msra.gmra.mxu1 %v15568_v57  ;;  %v15002_v22 = vpop.eup %15001 }
 0x155   : > { %8157 = vmatpush1.bf16.msra.mxu1 %v13664_v13  ;;  %11372 = vst [vmem:[%s16416_s10 + $0x330] sm:$0xff] %v15002_v22  ;;  %v16612_v25 = vpop.f32.mrf.mxu1  ;;  %8147 = vmatprep.mubr.bf16.mxu1 %v15375_v2  ;;  %v16721_v13 = vrot.slane %v16707_v8, %v16696_v6  ;;  %v13724_v22 = vld [vmem:[%s20648_s1 + $0x2108] ss:$200 sps:$4 sm:$0xff]  }
 0x156   : > { %8073 = vmatpush2.bf16.msra.mxu0 %v13667_v15  ;;  %8158 = vmatprep.subr.bf16.mxu1 %v13672_v17  ;;  %v15004_v26 = vpop.eup %15003  ;;  %v13717_v15 = vld [vmem:[%s20648_s1 + $0x161c] ss:$200 sps:$4 sm:$0xff]  }
 0x157   : > { %8074 = vmatprep.subr.bf16.mxu0 %v13675_v18  ;;  %11373 = vst [vmem:[%s16416_s10 + $0x338] sm:$0xff] %v15004_v26  ;;  %v16622_v30 = vpop.f32.mrf.mxu1  ;;  %v16732_v18 = vld [vmem:[%s20650_s3] sm:$0xff] }
 0x159   : > { %8159 = vmatpush1.bf16.msra.mxu1 %v13670_v19  ;;  %v16630_v37 = vpop.f32.mrf.mxu1  ;;  %v16736_v19 = vrot.slane %v16732_v18, %v16690_v39 }
 0x15a   : > { %8075 = vmatpush2.bf16.msra.mxu0 %v13673_v20  ;;  %8160 = vmatprep.subr.bf16.mxu1 %v13678_v23  ;;  %v16748_v23 = vrot.slane %v16732_v18, %v16696_v6 }
 0x15b   : > { %8076 = vmatprep.subr.bf16.mxu0 %v13681_v24  ;;  %v16638_v42 = vpop.f32.mrf.mxu1 }
 0x15c   : > { %8148 = vmatmul.mubr.bf16.gmra.mxu1 %v15593_v3 }
 0x15d   : > { %8161 = vmatpush1.bf16.msra.mxu1 %v13676_v28  ;;  %v16647_v44 = vpop.f32.mrf.mxu1  ;;  %8188 = vmatprep.mubr.bf16.mxu1 %v15548_v46 }
 0x15e   : > { %8077 = vmatpush2.bf16.msra.mxu0 %v13679_v29  ;;  %8162 = vmatprep.subr.bf16.mxu1 %v13684_v32  ;;  %v13723_v32 = vld [vmem:[%s20648_s1 + $0x148c] ss:$200 sps:$4 sm:$0xff]  }
 0x15f   : > { %8078 = vmatprep.subr.bf16.mxu0 %v13687_v36  ;;  %v7745_v49 = vpop.f32.mrf.mxu1  ;;  %v13732_v36 = vld [vmem:[%s20648_s1 + $0x1f7c] ss:$200 sps:$4 sm:$0xff]  }
 0x161   : > { %8163 = vmatpush1.bf16.msra.mxu1 %v13682_v38  ;;  %v7746_v53 = vpop.f32.mrf.mxu1 }
 0x162   : > { %8079 = vmatpush2.bf16.msra.mxu0 %v13685_v40  ;;  %8164 = vmatprep.subr.bf16.mxu1 %v13690_v31 }
 0x163   : > { %8080 = vmatprep.subr.bf16.mxu0 %v13693_v43 }
 0x165   : > { %8165 = vmatpush1.bf16.msra.mxu1 %v13688_v48  ;;  %v13730_v48 = vld [vmem:[%s20648_s1 + $0x1f78] ss:$200 sps:$4 sm:$0xff]  }
 0x166   : > { %8081 = vmatpush2.bf16.msra.mxu0 %v13691_v45  ;;  %8166 = vmatprep.subr.bf16.mxu1 %v13696_v50 }
 0x167   : > { %8082 = vmatprep.subr.bf16.mxu0 %v13699_v52 }
 0x169   : > { %8167 = vmatpush1.bf16.msra.mxu1 %v13694_v55  ;;  %v13738_v55 = vld [vmem:[%s20648_s1 + $0x1dec] ss:$200 sps:$4 sm:$0xff]  }
 0x16a   : > { %8083 = vmatpush2.bf16.msra.mxu0 %v13697_v33  ;;  %8168 = vmatprep.subr.bf16.mxu1 %v13702_v56 }
 0x16b   : > { %8084 = vmatprep.subr.bf16.mxu0 %v13705_v60 }
 0x16d   : > { %8169 = vmatpush1.bf16.msra.mxu1 %v13700_v58 }
 0x16e   : > { %8085 = vmatpush2.bf16.msra.mxu0 %v13703_v51  ;;  %8170 = vmatprep.subr.bf16.mxu1 %v13708_v59  ;;  %v13727_v59 = vld [vmem:[%s20648_s1 + $0x12f8] ss:$200 sps:$4 sm:$0xff]  }
 0x16f   : > { %8207 = vmatprep.subr.bf16.mxu0 %v13714_v62  ;;  %v13736_v62 = vld [vmem:[%s20648_s1 + $0x1de8] ss:$200 sps:$4 sm:$0xff]  }
 0x171   : > { %v7680_v11 = vpop.f32.mrf.mxu0  ;;  %8087 = vmatmul.mubr.bf16.vlgmr.msra.gmra.mxu0 %v15529_v34  ;;  %8171 = vmatpush1.bf16.msra.mxu1 %v13706_v4 }
 0x172   : > { %v7732_v12 = vadd.f32 %v16603_v21, %v7680_v11  ;;  %8208 = vmatpush1.bf16.msra.mxu0 %v13712_v5  ;;  %8172 = vmatprep.subr.bf16.mxu1 %v13711_v7  ;;  %v13715_v21 = vld [vmem:[%s20648_s1 + $0x1618] ss:$200 sps:$4 sm:$0xff]  }
 0x173   : > { %v7682_v14 = vpop.f32.mrf.mxu0  ;;  %8209 = vmatprep.subr.bf16.mxu0 %v13720_v1  ;;  %8096 = vmatprep.mubr.bf16.mxu0 %v15550_v47 }
 0x174   : > { %v10260_v17 = vsub.f32 %v7732_v12, %v10025_v9  ;;  %v7734_v20 = vadd.f32 %v16612_v25, %v7682_v14  ;;  %v13733_v14 = vld [vmem:[%s20648_s1 + $0x1168] ss:$200 sps:$4 sm:$0xff]  }
 0x175   : > { %v7684_v24 = vpop.f32.mrf.mxu0  ;;  %8173 = vmatpush2.bf16.msra.mxu1 %v13709_v0  ;;  %v13735_v0 = vld [vmem:[%s20648_s1 + $0x116c] ss:$200 sps:$4 sm:$0xff]  }
 0x176   : > { %v10417_v26 = vmul.f32 %v10260_v17, %v10260_v17  ;;  %v10261_v28 = vsub.f32 %v7734_v20, %v16721_v13  ;;  %v7736_v25 = vadd.f32 %v16622_v30, %v7684_v24  ;;  %8210 = vmatpush1.bf16.msra.mxu0 %v13718_v10  ;;  %8174 = vmatprep.subr.bf16.mxu1 %v13717_v15  ;;  %v13721_v30 = vld [vmem:[%s20648_s1 + $0x1488] ss:$200 sps:$4 sm:$0xff]   ;;  %v13744_v10 = vld [vmem:[%s20648_s1 + $0x1c5c] ss:$200 sps:$4 sm:$0xff]   ;;  %v13742_v15 = vld [vmem:[%s20648_s1 + $0x1c58] ss:$200 sps:$4 sm:$0xff]  }
 0x177   : > { %v7686_v29 = vpop.f32.mrf.mxu0  ;;  %8211 = vmatprep.subr.bf16.mxu0 %v13726_v16  ;;  %v13748_v24 = vld [vmem:[%s20648_s1 + $0x1ac8] ss:$200 sps:$4 sm:$0xff]  }
 0x178   : > { %v10824_v38 = vmul.f32 %v16736_v19, %v10417_v26  ;;  %v10418_v40 = vmul.f32 %v10261_v28, %v10261_v28  ;;  %v10310_v31 = vsub.f32 %v7736_v25, %v10025_v9  ;;  %v7738_v43 = vadd.f32 %v16630_v37, %v7686_v29  ;;  %v13729_v37 = vld [vmem:[%s20648_s1 + $0x12fc] ss:$200 sps:$4 sm:$0xff]   ;;  %v13747_v28 = vld [vmem:[%s20648_s1 + $0xe4c] ss:$200 sps:$4 sm:$0xff]   ;;  %v13745_v25 = vld [vmem:[%s20648_s1 + $0xe48] ss:$200 sps:$4 sm:$0xff]  }
 0x179   : > { %v7690_v45 = vpop.f32.mrf.mxu0  ;;  %8097 = vmatmul.mubr.bf16.gmra.mxu0 %v15531_v35  ;;  %8175 = vmatpush2.bf16.msra.mxu1 %v13715_v21  ;;  %v13750_v21 = vld [vmem:[%s20648_s1 + $0x1acc] ss:$200 sps:$4 sm:$0xff]   ;;  %v13754_v29 = vld [vmem:[%s20648_s1 + $0x1938] ss:$200 sps:$4 sm:$0xff]  }
 0x17a   : > { %v10978_v49 = vmul.f32 1.442695, %v10824_v38  ;;  %v10825_v50 = vmul.f32 %v16748_v23, %v10418_v40  ;;  %v10467_v52 = vmul.f32 %v10310_v31, %v10310_v31  ;;  %v10311_v53 = vsub.f32 %v7738_v43, %v16721_v13  ;;  %8212 = vmatpush1.bf16.msra.mxu0 %v13724_v22  ;;  %8176 = vmatprep.subr.bf16.mxu1 %v13723_v32  ;;  %v13753_v38 = vld [vmem:[%s20648_s1 + $0xcbc] ss:$200 sps:$4 sm:$0xff]   ;;  %v13751_v31 = vld [vmem:[%s20648_s1 + $0xcb8] ss:$200 sps:$4 sm:$0xff]  }
 0x17b   : > { %8213 = vmatprep.subr.bf16.mxu0 %v13732_v36  ;;  %v7692_v33 = vpop.f32.mrf.mxu0  ;;  %v7742_v56 = vadd.f32 %v16638_v42, %v7690_v45  ;;  %8239 = vmatprep.mubr.bf16.mxu0 %v15375_v2  ;;  %v13759_v40 = vld [vmem:[%s20648_s1 + $0xb34] ss:$200 sps:$4 sm:$0xff]   ;;  %v13757_v43 = vld [vmem:[%s20648_s1 + $0xb30] ss:$200 sps:$4 sm:$0xff]  }
 0x17c   : > { %15005 = vpow2.f32 %v10978_v49  ;;  %v10980_v60 = vmul.f32 1.442695, %v10825_v50  ;;  %v10874_v58 = vmul.f32 %v16736_v19, %v10467_v52  ;;  %v10468_v51 = vmul.f32 %v10311_v53, %v10311_v53  ;;  %v13762_v45 = vld [vmem:[%s20648_s1 + $0x2434] ss:$200 sps:$4 sm:$0xff]   ;;  %v13765_v49 = vld [vmem:[%s20648_s1 + $0x9a4] ss:$200 sps:$4 sm:$0xff]  }
 0x17d   : > { %v7694_v4 = vpop.f32.mrf.mxu0  ;;  %v10360_v5 = vsub.f32 %v7742_v56, %v10025_v9  ;;  %v7744_v7 = vadd.f32 %v16647_v44, %v7692_v33  ;;  %8177 = vmatpush2.bf16.msra.mxu1 %v13721_v30  ;;  %v16848_v50 = vsub.s32 6, %v16265_v54  ;;  %v13760_v52 = vld [vmem:[%s20648_s1 + $0x2430] ss:$200 sps:$4 sm:$0xff]   ;;  %v13763_v53 = vld [vmem:[%s20648_s1 + $0x9a0] ss:$200 sps:$4 sm:$0xff]   ;;  %v16858_v33 = vsub.s32 7, %v16265_v54 }
 0x17e   : > { %15007 = vpow2.f32 %v10980_v60  ;;  %v11078_v42 = vmul.f32 1.442695, %v10874_v58  ;;  %v10875_v1 = vmul.f32 %v16748_v23, %v10468_v51  ;;  %8214 = vmatpush1.bf16.msra.mxu0 %v13730_v48  ;;  %8178 = vmatprep.subr.bf16.mxu1 %v13729_v37  ;;  %v13768_v60 = vld [vmem:[%s20648_s1 + $0x22a4] ss:$200 sps:$4 sm:$0xff]   ;;  %v13771_v58 = vld [vmem:[%s20648_s1 + $0x814] ss:$200 sps:$4 sm:$0xff]  }
 0x17f   : > { %8215 = vmatprep.subr.bf16.mxu0 %v13738_v55  ;;  %v10517_v11 = vmul.f32 %v10360_v5, %v10360_v5  ;;  %v7695_v9 = vpop.f32.mrf.mxu0  ;;  %v10361_v44 = vsub.f32 %v7744_v7, %v16721_v13  ;;  %v13741_v13 = vld [vmem:[%s20648_s1 + $0xfdc] ss:$200 sps:$4 sm:$0xff]   ;;  %v16876_v5 = vrot.slane %v16707_v8, %v16858_v33  ;;  %v13766_v7 = vld [vmem:[%s20648_s1 + $0x22a0] ss:$200 sps:$4 sm:$0xff]  }
 0x180   : > { %15009 = vpow2.f32 %v11078_v42  ;;  %v11080_v12 = vmul.f32 1.442695, %v10875_v1  ;;  %v13769_v42 = vld [vmem:[%s20648_s1 + $0x810] ss:$200 sps:$4 sm:$0xff]   ;;  %v13774_v1 = vld [vmem:[%s20648_s1 + $0x2114] ss:$200 sps:$4 sm:$0xff]   ;;  %v16893_v9 = vrot.slane %v16732_v18, %v16848_v50 }
 0x181   : > { %v10924_v16 = vmul.f32 %v16736_v19, %v10517_v11  ;;  %v10518_v17 = vmul.f32 %v10361_v44, %v10361_v44  ;;  %8179 = vmatpush2.bf16.msra.mxu1 %v13727_v59  ;;  %v13739_v19 = vld [vmem:[%s20648_s1 + $0xfd8] ss:$200 sps:$4 sm:$0xff]   ;;  %v16869_v59 = vrot.slane %v16707_v8, %v16848_v50  ;;  %v13777_v8 = vld [vmem:[%s20648_s1 + $0x684] ss:$200 sps:$4 sm:$0xff]  }
 0x182   : > { %15011 = vpow2.f32 %v11080_v12  ;;  %8216 = vmatpush1.bf16.msra.mxu0 %v13736_v62  ;;  %8180 = vmatprep.subr.bf16.mxu1 %v13735_v0  ;;  %v16898_v12 = vrot.slane %v16732_v18, %v16858_v33  ;;  %v13780_v18 = vld [vmem:[%s20648_s1 + $0x1f84] ss:$200 sps:$4 sm:$0xff]  }
 0x183   : > { %8217 = vmatprep.subr.bf16.mxu0 %v13744_v10  ;;  %v11178_v20 = vmul.f32 1.442695, %v10924_v16  ;;  %v10925_v22 = vmul.f32 %v16748_v23, %v10518_v17  ;;  %v13756_v23 = vld [vmem:[%s20648_s1 + $0x193c] ss:$200 sps:$4 sm:$0xff]  }
 0x185   : > { %15013 = vpow2.f32 %v11178_v20  ;;  %v11180_v26 = vmul.f32 1.442695, %v10925_v22  ;;  %8181 = vmatpush2.bf16.msra.mxu1 %v13733_v14  ;;  %v13772_v20 = vld [vmem:[%s20648_s1 + $0x2110] ss:$200 sps:$4 sm:$0xff]  }
 0x186   : > { %8218 = vmatpush1.bf16.msra.mxu0 %v13742_v15  ;;  %8182 = vmatprep.subr.bf16.mxu1 %v13741_v13 }
 0x187   : > { %8219 = vmatprep.subr.bf16.mxu0 %v13750_v21  ;;  %15015 = vpow2.f32 %v11180_v26  ;;  %v13775_v21 = vld [vmem:[%s20648_s1 + $0x680] ss:$200 sps:$4 sm:$0xff]  }
 0x189   : > { %v15006_v32 = vpop.eup %15005  ;;  %8183 = vmatpush2.bf16.msra.mxu1 %v13739_v19  ;;  %v13783_v19 = vld [vmem:[%s20648_s1 + $0x4f4] ss:$200 sps:$4 sm:$0xff]  }
 0x18a   : > { %11274 = vst [vmem:[%s16416_s10 + $0x20] sm:$0xff] %v15006_v32  ;;  %8220 = vmatpush1.bf16.msra.mxu0 %v13748_v24  ;;  %8184 = vmatprep.subr.bf16.mxu1 %v13747_v28 }
 0x18b   : > { %v15008_v36 = vpop.eup %15007  ;;  %8221 = vmatprep.subr.bf16.mxu0 %v13756_v23 }
 0x18c   : > { %11275 = vst [vmem:[%s16416_s10 + $0x28] sm:$0xff] %v15008_v36 }
 0x18d   : > { %v15010_v30 = vpop.eup %15009  ;;  %8185 = vmatpush2.bf16.msra.mxu1 %v13745_v25 }
 0x18e   : > { %11324 = vst [vmem:[%s16416_s10 + $0x1b0] sm:$0xff] %v15010_v30  ;;  %8222 = vmatpush1.bf16.msra.mxu0 %v13754_v29  ;;  %8186 = vmatprep.subr.bf16.mxu1 %v13753_v38  ;;  %v13781_v30 = vld [vmem:[%s20648_s1 + $0x4f0] ss:$200 sps:$4 sm:$0xff]  }
 0x18f   : > { %v15012_v48 = vpop.eup %15011  ;;  %8258 = vmatprep.subr.bf16.mxu0 %v13759_v40 }
 0x190   : > { %11325 = vst [vmem:[%s16416_s10 + $0x1b8] sm:$0xff] %v15012_v48  ;;  %v13786_v48 = vld [vmem:[%s20648_s1 + $0x1df4] ss:$200 sps:$4 sm:$0xff]  }
 0x191   : > { %v7833_v37 = vpop.f32.mrf.mxu0  ;;  %8240 = vmatmul.mubr.bf16.vlgmr.msra.gmra.mxu0 %v15568_v57  ;;  %8187 = vmatpush2.bf16.msra.mxu1 %v13751_v31 }
 0x192   : > { %v15014_v55 = vpop.eup %15013  ;;  %8259 = vmatpush1.bf16.msra.mxu0 %v13757_v43  ;;  %8309 = vmatprep.subr.bf16.mxu1 %v13762_v45  ;;  %v13778_v43 = vld [vmem:[%s20648_s1 + $0x1f80] ss:$200 sps:$4 sm:$0xff]   ;;  %v13789_v45 = vld [vmem:[%s20648_s1 + $0x364] ss:$200 sps:$4 sm:$0xff]  }
 0x193   : > { %11374 = vst [vmem:[%s16416_s10 + $0x340] sm:$0xff] %v15014_v55  ;;  %v7835_v56 = vpop.f32.mrf.mxu0  ;;  %8260 = vmatprep.subr.bf16.mxu0 %v13765_v49  ;;  %8249 = vmatprep.mubr.bf16.mxu0 %v15375_v2  ;;  %v7782_v54 = vpop.f32.mrf.mxu1 }
 0x194   : > { %v15016_v51 = vpop.eup %15015  ;;  %8189 = vmatmul.mubr.bf16.vlgmr.msra.gmra.mxu1 %v15529_v34  ;;  %v7834_v4 = vadd.f32 %v7833_v37, %v7782_v54 }
 0x195   : > { %11375 = vst [vmem:[%s16416_s10 + $0x348] sm:$0xff] %v15016_v51  ;;  %v7837_v62 = vpop.f32.mrf.mxu0  ;;  %8310 = vmatpush1.bf16.msra.mxu1 %v13760_v52  ;;  %v7784_v0 = vpop.f32.mrf.mxu1  ;;  %8198 = vmatprep.mubr.bf16.mxu1 %v15550_v47 }
 0x196   : > { %8261 = vmatpush1.bf16.msra.mxu0 %v13763_v53  ;;  %8311 = vmatprep.subr.bf16.mxu1 %v13768_v60  ;;  %v10262_v11 = vsub.f32 %v7834_v4, %v16869_v59  ;;  %v7836_v44 = vadd.f32 %v7835_v56, %v7784_v0  ;;  %v13784_v4 = vld [vmem:[%s20648_s1 + $0x1df0] ss:$200 sps:$4 sm:$0xff]  }
 0x197   : > { %v7839_v10 = vpop.f32.mrf.mxu0  ;;  %8262 = vmatprep.subr.bf16.mxu0 %v13771_v58  ;;  %v7786_v14 = vpop.f32.mrf.mxu1 }
 0x198   : > { %v10419_v16 = vmul.f32 %v10262_v11, %v10262_v11  ;;  %v10263_v17 = vsub.f32 %v7836_v44, %v16876_v5  ;;  %v7838_v13 = vadd.f32 %v7837_v62, %v7786_v14  ;;  %v13790_v14 = vld [vmem:[%s20648_s1 + $0x1c60] ss:$200 sps:$4 sm:$0xff]  }
 0x199   : > { %v7843_v15 = vpop.f32.mrf.mxu0  ;;  %8250 = vmatmul.mubr.bf16.gmra.mxu0 %v15593_v3  ;;  %8312 = vmatpush1.bf16.msra.mxu1 %v13766_v7  ;;  %v7788_v22 = vpop.f32.mrf.mxu1  ;;  %v13787_v7 = vld [vmem:[%s20648_s1 + $0x360] ss:$200 sps:$4 sm:$0xff]  }
 0x19a   : > { %8263 = vmatpush1.bf16.msra.mxu0 %v13769_v42  ;;  %8313 = vmatprep.subr.bf16.mxu1 %v13774_v1  ;;  %v10826_v26 = vmul.f32 %v16893_v9, %v10419_v16  ;;  %v10420_v28 = vmul.f32 %v10263_v17, %v10263_v17  ;;  %v10312_v23 = vsub.f32 %v7838_v13, %v16869_v59  ;;  %v13795_v42 = vld [vmem:[%s20648_s1 + $0x1d4] ss:$200 sps:$4 sm:$0xff]  }
 0x19b   : > { %8264 = vmatprep.subr.bf16.mxu0 %v13777_v8  ;;  %v7845_v24 = vpop.f32.mrf.mxu0  ;;  %v7840_v25 = vadd.f32 %v7839_v10, %v7788_v22  ;;  %8290 = vmatprep.mubr.bf16.mxu0 %v15548_v46  ;;  %v7792_v29 = vpop.f32.mrf.mxu1 }
 0x19c   : > { %8199 = vmatmul.mubr.bf16.gmra.mxu1 %v15531_v35  ;;  %v10982_v36 = vmul.f32 1.442695, %v10826_v26  ;;  %v10827_v38 = vmul.f32 %v16898_v12, %v10420_v28  ;;  %v10469_v40 = vmul.f32 %v10312_v23, %v10312_v23  ;;  %v7844_v49 = vadd.f32 %v7843_v15, %v7792_v29  ;;  %v13793_v15 = vld [vmem:[%s20648_s1 + $0x1d0] ss:$200 sps:$4 sm:$0xff]   ;;  %v13810_v26 = vld [vmem:[%s20648_s1 + $0xb3c] ss:$200 sps:$4 sm:$0xff]  }
 0x19d   : > { %v7847_v32 = vpop.f32.mrf.mxu0  ;;  %v10313_v31 = vsub.f32 %v7840_v25, %v16876_v5  ;;  %8314 = vmatpush1.bf16.msra.mxu1 %v13772_v20  ;;  %v7794_v52 = vpop.f32.mrf.mxu1  ;;  %8341 = vmatprep.mubr.bf16.mxu1 %v15375_v2  ;;  %v13796_v20 = vld [vmem:[%s20648_s1 + $0x1ad0] ss:$200 sps:$4 sm:$0xff]   ;;  %v13813_v23 = vld [vmem:[%s20648_s1 + $0x1624] ss:$200 sps:$4 sm:$0xff]   ;;  %v13811_v29 = vld [vmem:[%s20648_s1 + $0x1620] ss:$200 sps:$4 sm:$0xff]  }
 0x19e   : > { %8265 = vmatpush1.bf16.msra.mxu0 %v13775_v21  ;;  %8315 = vmatprep.subr.bf16.mxu1 %v13780_v18  ;;  %15017 = vpow2.f32 %v10982_v36  ;;  %v10984_v37 = vmul.f32 1.442695, %v10827_v38  ;;  %v10876_v55 = vmul.f32 %v16893_v9, %v10469_v40  ;;  %v10362_v60 = vsub.f32 %v7844_v49, %v16869_v59  ;;  %v13792_v59 = vld [vmem:[%s20648_s1 + $0x1c64] ss:$200 sps:$4 sm:$0xff]   ;;  %v13799_v21 = vld [vmem:[%s20648_s1 + $0x40] ss:$200 sps:$4 sm:$0xff]  }
 0x19f   : > { %8266 = vmatprep.subr.bf16.mxu0 %v13783_v19  ;;  %v7848_v53 = vpop.f32.mrf.mxu0  ;;  %v10470_v56 = vmul.f32 %v10313_v31, %v10313_v31  ;;  %v7846_v58 = vadd.f32 %v7845_v24, %v7794_v52  ;;  %v7796_v51 = vpop.f32.mrf.mxu1  ;;  %v13804_v18 = vld [vmem:[%s20648_s1 + $0x1944] ss:$200 sps:$4 sm:$0xff]   ;;  %v13802_v19 = vld [vmem:[%s20648_s1 + $0x1940] ss:$200 sps:$4 sm:$0xff]   ;;  %v13805_v24 = vld [vmem:[%s20648_s1 + $0x17b0] ss:$200 sps:$4 sm:$0xff]  }
 0x1a0   : > { %15019 = vpow2.f32 %v10984_v37  ;;  %v11082_v54 = vmul.f32 1.442695, %v10876_v55  ;;  %v10519_v1 = vmul.f32 %v10362_v60, %v10362_v60  ;;  %v13808_v25 = vld [vmem:[%s20648_s1 + $0xb38] ss:$200 sps:$4 sm:$0xff]   ;;  %v13816_v38 = vld [vmem:[%s20648_s1 + $0x9ac] ss:$200 sps:$4 sm:$0xff]  }
 0x1a1   : > { %v10877_v62 = vmul.f32 %v16898_v12, %v10470_v56  ;;  %8316 = vmatpush1.bf16.msra.mxu1 %v13778_v43  ;;  %v10363_v0 = vsub.f32 %v7846_v58, %v16876_v5  ;;  %v7797_v10 = vpop.f32.mrf.mxu1  ;;  %v13798_v5 = vld [vmem:[%s20648_s1 + $0x1ad4] ss:$200 sps:$4 sm:$0xff]   ;;  %v13814_v31 = vld [vmem:[%s20648_s1 + $0x9a8] ss:$200 sps:$4 sm:$0xff]   ;;  %v13825_v49 = vld [vmem:[%s20648_s1 + $0x1304] ss:$200 sps:$4 sm:$0xff]  }
 0x1a2   : > { %8267 = vmatpush1.bf16.msra.mxu0 %v13781_v30  ;;  %8317 = vmatprep.subr.bf16.mxu1 %v13786_v48  ;;  %15021 = vpow2.f32 %v11082_v54  ;;  %v10926_v11 = vmul.f32 %v16893_v9, %v10519_v1  ;;  %v13801_v9 = vld [vmem:[%s20648_s1 + $0x44] ss:$200 sps:$4 sm:$0xff]   ;;  %v13819_v40 = vld [vmem:[%s20648_s1 + $0x1494] ss:$200 sps:$4 sm:$0xff]   ;;  %v13817_v43 = vld [vmem:[%s20648_s1 + $0x1490] ss:$200 sps:$4 sm:$0xff]  }
 0x1a3   : > { %8268 = vmatprep.subr.bf16.mxu0 %v13789_v45  ;;  %v11084_v8 = vmul.f32 1.442695, %v10877_v62  ;;  %v10520_v44 = vmul.f32 %v10363_v0, %v10363_v0  ;;  %v13822_v45 = vld [vmem:[%s20648_s1 + $0x81c] ss:$200 sps:$4 sm:$0xff]   ;;  %v13820_v37 = vld [vmem:[%s20648_s1 + $0x818] ss:$200 sps:$4 sm:$0xff]  }
 0x1a4   : > { %v11182_v16 = vmul.f32 1.442695, %v10926_v11  ;;  %v13823_v55 = vld [vmem:[%s20648_s1 + $0x1300] ss:$200 sps:$4 sm:$0xff]   ;;  %v13828_v60 = vld [vmem:[%s20648_s1 + $0x68c] ss:$200 sps:$4 sm:$0xff]  }
 0x1a5   : > { %15023 = vpow2.f32 %v11084_v8  ;;  %8318 = vmatpush1.bf16.msra.mxu1 %v13784_v4  ;;  %v10927_v17 = vmul.f32 %v16898_v12, %v10520_v44  ;;  %v13807_v12 = vld [vmem:[%s20648_s1 + $0x17b4] ss:$200 sps:$4 sm:$0xff]   ;;  %v13826_v54 = vld [vmem:[%s20648_s1 + $0x688] ss:$200 sps:$4 sm:$0xff]   ;;  %v13832_v1 = vld [vmem:[%s20648_s1 + $0x4f8] ss:$200 sps:$4 sm:$0xff]  }
 0x1a6   : > { %8269 = vmatpush1.bf16.msra.mxu0 %v13787_v7  ;;  %8319 = vmatprep.subr.bf16.mxu1 %v13792_v59  ;;  %15025 = vpow2.f32 %v11182_v16  ;;  %v13831_v58 = vld [vmem:[%s20648_s1 + $0x1174] ss:$200 sps:$4 sm:$0xff]   ;;  %v13829_v62 = vld [vmem:[%s20648_s1 + $0x1170] ss:$200 sps:$4 sm:$0xff]   ;;  %v13837_v59 = vld [vmem:[%s20648_s1 + $0xfe4] ss:$200 sps:$4 sm:$0xff]  }
 0x1a7   : > { %8270 = vmatprep.subr.bf16.mxu0 %v13795_v42  ;;  %v11184_v13 = vmul.f32 1.442695, %v10927_v17  ;;  %v13834_v7 = vld [vmem:[%s20648_s1 + $0x4fc] ss:$200 sps:$4 sm:$0xff]   ;;  %v13835_v0 = vld [vmem:[%s20648_s1 + $0xfe0] ss:$200 sps:$4 sm:$0xff]  }
 0x1a8   : > { %v13840_v8 = vld [vmem:[%s20648_s1 + $0x36c] ss:$200 sps:$4 sm:$0xff]   ;;  %v13844_v16 = vld [vmem:[%s20648_s1 + $0x1d8] ss:$200 sps:$4 sm:$0xff]  }
 0x1a9   : > { %8320 = vmatpush1.bf16.msra.mxu1 %v13790_v14  ;;  %15027 = vpow2.f32 %v11184_v13  ;;  %v13843_v11 = vld [vmem:[%s20648_s1 + $0xe54] ss:$200 sps:$4 sm:$0xff]   ;;  %v13838_v14 = vld [vmem:[%s20648_s1 + $0x368] ss:$200 sps:$4 sm:$0xff]  }
 0x1aa   : > { %8271 = vmatpush1.bf16.msra.mxu0 %v13793_v15  ;;  %8321 = vmatprep.subr.bf16.mxu1 %v13798_v5  ;;  %v13841_v15 = vld [vmem:[%s20648_s1 + $0xe50] ss:$200 sps:$4 sm:$0xff]   ;;  %v13846_v5 = vld [vmem:[%s20648_s1 + $0x1dc] ss:$200 sps:$4 sm:$0xff]   ;;  %v13847_v17 = vld [vmem:[%s20648_s1 + $0xcc0] ss:$200 sps:$4 sm:$0xff]  }
 0x1ab   : > { %8272 = vmatprep.subr.bf16.mxu0 %v13801_v9  ;;  %v15018_v22 = vpop.eup %15017  ;;  %v13849_v9 = vld [vmem:[%s20648_s1 + $0xcc4] ss:$200 sps:$4 sm:$0xff]  }
 0x1ac   : > { %11276 = vst [vmem:[%s16416_s10 + $0x30] sm:$0xff] %v15018_v22  ;;  %v13852_v13 = vld [vmem:[%s20648_s1 + $0x4c] ss:$200 sps:$4 sm:$0xff]   ;;  %v13855_v22 = vld [vmem:[%s20648_s1 + $0x17bc] ss:$200 sps:$4 sm:$0xff]  }
 0x1ad   : > { %8322 = vmatpush1.bf16.msra.mxu1 %v13796_v20  ;;  %v15020_v28 = vpop.eup %15019  ;;  %v13858_v20 = vld [vmem:[%s20648_s1 + $0x243c] ss:$200 sps:$4 sm:$0xff]  }
 0x1ae   : > { %8273 = vmatpush1.bf16.msra.mxu0 %v13799_v21  ;;  %8323 = vmatprep.subr.bf16.mxu1 %v13804_v18  ;;  %11277 = vst [vmem:[%s16416_s10 + $0x38] sm:$0xff] %v15020_v28  ;;  %v13850_v21 = vld [vmem:[%s20648_s1 + $0x48] ss:$200 sps:$4 sm:$0xff]   ;;  %v13853_v28 = vld [vmem:[%s20648_s1 + $0x17b8] ss:$200 sps:$4 sm:$0xff]  }
 0x1af   : > { %8274 = vmatprep.subr.bf16.mxu0 %v13807_v12  ;;  %v15022_v32 = vpop.eup %15021  ;;  %v17099_v18 = vld [vmem:[%s20649_s2 + $0x8] sm:$0xff]  ;;  %v13856_v12 = vld [vmem:[%s20648_s1 + $0x2438] ss:$200 sps:$4 sm:$0xff]  }
 0x1b0   : > { %11326 = vst [vmem:[%s16416_s10 + $0x1c0] sm:$0xff] %v15022_v32  ;;  %v17127_v32 = vrot.slane %v17099_v18, %v16291_v63 }
 0x1b1   : > { %8324 = vmatpush1.bf16.msra.mxu1 %v13802_v19  ;;  %v17110_v19 = vld [vmem:[%s20650_s3 + $0x8] sm:$0xff] }
 0x1b2   : > { %8275 = vmatpush2.bf16.msra.mxu0 %v13805_v24  ;;  %v15024_v36 = vpop.eup %15023  ;;  %8360 = vmatprep.subr.bf16.mxu1 %v13810_v26  ;;  %v13864_v24 = vld [vmem:[%s20648_s1 + $0x22ac] ss:$200 sps:$4 sm:$0xff]   ;;  %v10041_v26 = vrot.slane %v17099_v18, %v16285_v61 }
 0x1b3   : > { %8276 = vmatprep.subr.bf16.mxu0 %v13813_v23  ;;  %11327 = vst [vmem:[%s16416_s10 + $0x1c8] sm:$0xff] %v15024_v36  ;;  %v17010_v30 = vpop.f32.mrf.mxu1  ;;  %v15026_v48 = vpop.eup %15025  ;;  %v13862_v23 = vld [vmem:[%s20648_s1 + $0x22a8] ss:$200 sps:$4 sm:$0xff]  }
 0x1b4   : > { %8342 = vmatmul.mubr.bf16.vlgmr.msra.gmra.mxu1 %v15568_v57  ;;  %11376 = vst [vmem:[%s16416_s10 + $0x350] sm:$0xff] %v15026_v48  ;;  %v13859_v48 = vld [vmem:[%s20648_s1 + $0x1628] ss:$200 sps:$4 sm:$0xff]  }
 0x1b5   : > { %8361 = vmatpush1.bf16.msra.mxu1 %v13808_v25  ;;  %v17019_v52 = vpop.f32.mrf.mxu1  ;;  %8351 = vmatprep.mubr.bf16.mxu1 %v15375_v2 }
 0x1b6   : > { %8277 = vmatpush2.bf16.msra.mxu0 %v13811_v29  ;;  %8362 = vmatprep.subr.bf16.mxu1 %v13816_v38  ;;  %v15028_v53 = vpop.eup %15027  ;;  %v13861_v38 = vld [vmem:[%s20648_s1 + $0x162c] ss:$200 sps:$4 sm:$0xff]  }
 0x1b7   : > { %8278 = vmatprep.subr.bf16.mxu0 %v13819_v40  ;;  %11377 = vst [vmem:[%s16416_s10 + $0x358] sm:$0xff] %v15028_v53  ;;  %v17029_v56 = vpop.f32.mrf.mxu1  ;;  %v13870_v40 = vld [vmem:[%s20648_s1 + $0x211c] ss:$200 sps:$4 sm:$0xff]  }
 0x1b9   : > { %8363 = vmatpush1.bf16.msra.mxu1 %v13814_v31  ;;  %v17037_v51 = vpop.f32.mrf.mxu1 }
 0x1ba   : > { %8279 = vmatpush2.bf16.msra.mxu0 %v13817_v43  ;;  %8364 = vmatprep.subr.bf16.mxu1 %v13822_v45  ;;  %v17137_v43 = vrot.slane %v17110_v19, %v16285_v61  ;;  %v13868_v45 = vld [vmem:[%s20648_s1 + $0x2118] ss:$200 sps:$4 sm:$0xff]  }
 0x1bb   : > { %8280 = vmatprep.subr.bf16.mxu0 %v13825_v49  ;;  %v17045_v4 = vpop.f32.mrf.mxu1  ;;  %v17149_v49 = vrot.slane %v17110_v19, %v16291_v63 }
 0x1bc   : > { %8352 = vmatmul.mubr.bf16.gmra.mxu1 %v15593_v3 }
 0x1bd   : > { %8365 = vmatpush1.bf16.msra.mxu1 %v13820_v37  ;;  %v17054_v42 = vpop.f32.mrf.mxu1  ;;  %8392 = vmatprep.mubr.bf16.mxu1 %v15548_v46 }
 0x1be   : > { %8281 = vmatpush2.bf16.msra.mxu0 %v13823_v55  ;;  %8366 = vmatprep.subr.bf16.mxu1 %v13828_v60 }
 0x1bf   : > { %8282 = vmatprep.subr.bf16.mxu0 %v13831_v58  ;;  %v7949_v10 = vpop.f32.mrf.mxu1  ;;  %v13867_v58 = vld [vmem:[%s20648_s1 + $0x149c] ss:$200 sps:$4 sm:$0xff]  }
 0x1c1   : > { %8367 = vmatpush1.bf16.msra.mxu1 %v13826_v54  ;;  %v7950_v44 = vpop.f32.mrf.mxu1  ;;  %v13876_v54 = vld [vmem:[%s20648_s1 + $0x1f8c] ss:$200 sps:$4 sm:$0xff]  }
 0x1c2   : > { %8283 = vmatpush2.bf16.msra.mxu0 %v13829_v62  ;;  %8368 = vmatprep.subr.bf16.mxu1 %v13834_v7 }
 0x1c3   : > { %8284 = vmatprep.subr.bf16.mxu0 %v13837_v59 }
 0x1c5   : > { %8369 = vmatpush1.bf16.msra.mxu1 %v13832_v1 }
 0x1c6   : > { %8285 = vmatpush2.bf16.msra.mxu0 %v13835_v0  ;;  %8370 = vmatprep.subr.bf16.mxu1 %v13840_v8  ;;  %v13874_v0 = vld [vmem:[%s20648_s1 + $0x1f88] ss:$200 sps:$4 sm:$0xff]  }
 0x1c7   : > { %8286 = vmatprep.subr.bf16.mxu0 %v13843_v11 }
 0x1c9   : > { %8371 = vmatpush1.bf16.msra.mxu1 %v13838_v14 }
 0x1ca   : > { %8287 = vmatpush2.bf16.msra.mxu0 %v13841_v15  ;;  %8372 = vmatprep.subr.bf16.mxu1 %v13846_v5  ;;  %v13882_v15 = vld [vmem:[%s20648_s1 + $0x1dfc] ss:$200 sps:$4 sm:$0xff]  }
 0x1cb   : > { %8288 = vmatprep.subr.bf16.mxu0 %v13849_v9 }
 0x1cd   : > { %8373 = vmatpush1.bf16.msra.mxu1 %v13844_v16 }
 0x1ce   : > { %8289 = vmatpush2.bf16.msra.mxu0 %v13847_v17  ;;  %8374 = vmatprep.subr.bf16.mxu1 %v13852_v13 }
 0x1cf   : > { %8411 = vmatprep.subr.bf16.mxu0 %v13858_v20  ;;  %v13871_v20 = vld [vmem:[%s20648_s1 + $0x1308] ss:$200 sps:$4 sm:$0xff]  }
 0x1d1   : > { %v7884_v25 = vpop.f32.mrf.mxu0  ;;  %8291 = vmatmul.mubr.bf16.vlgmr.msra.gmra.mxu0 %v15529_v34  ;;  %8375 = vmatpush1.bf16.msra.mxu1 %v13850_v21  ;;  %v13880_v21 = vld [vmem:[%s20648_s1 + $0x1df8] ss:$200 sps:$4 sm:$0xff]  }
 0x1d2   : > { %v7936_v29 = vadd.f32 %v17010_v30, %v7884_v25  ;;  %8412 = vmatpush1.bf16.msra.mxu0 %v13856_v12  ;;  %8376 = vmatprep.subr.bf16.mxu1 %v13855_v22  ;;  %v13888_v25 = vld [vmem:[%s20648_s1 + $0x1c6c] ss:$200 sps:$4 sm:$0xff]  }
 0x1d3   : > { %v7886_v36 = vpop.f32.mrf.mxu0  ;;  %8413 = vmatprep.subr.bf16.mxu0 %v13864_v24  ;;  %8300 = vmatprep.mubr.bf16.mxu0 %v15550_v47 }
 0x1d4   : > { %v10264_v31 = vsub.f32 %v7936_v29, %v10041_v26  ;;  %v7938_v30 = vadd.f32 %v17019_v52, %v7886_v36 }
 0x1d5   : > { %v7888_v53 = vpop.f32.mrf.mxu0  ;;  %8377 = vmatpush2.bf16.msra.mxu1 %v13853_v28 }
 0x1d6   : > { %v10421_v37 = vmul.f32 %v10264_v31, %v10264_v31  ;;  %v10265_v55 = vsub.f32 %v7938_v30, %v17127_v32  ;;  %v7940_v52 = vadd.f32 %v17029_v56, %v7888_v53  ;;  %8414 = vmatpush1.bf16.msra.mxu0 %v13862_v23  ;;  %8378 = vmatprep.subr.bf16.mxu1 %v13861_v38  ;;  %v13865_v56 = vld [vmem:[%s20648_s1 + $0x1498] ss:$200 sps:$4 sm:$0xff]   ;;  %v13879_v23 = vld [vmem:[%s20648_s1 + $0x117c] ss:$200 sps:$4 sm:$0xff]  }
 0x1d7   : > { %v7890_v60 = vpop.f32.mrf.mxu0  ;;  %8415 = vmatprep.subr.bf16.mxu0 %v13870_v40  ;;  %v13877_v38 = vld [vmem:[%s20648_s1 + $0x1178] ss:$200 sps:$4 sm:$0xff]   ;;  %v13886_v40 = vld [vmem:[%s20648_s1 + $0x1c68] ss:$200 sps:$4 sm:$0xff]  }
 0x1d8   : > { %v10828_v62 = vmul.f32 %v17137_v43, %v10421_v37  ;;  %v10422_v7 = vmul.f32 %v10265_v55, %v10265_v55  ;;  %v10314_v59 = vsub.f32 %v7940_v52, %v10041_v26  ;;  %v7942_v1 = vadd.f32 %v17037_v51, %v7890_v60  ;;  %v13873_v51 = vld [vmem:[%s20648_s1 + $0x130c] ss:$200 sps:$4 sm:$0xff]   ;;  %v13892_v37 = vld [vmem:[%s20648_s1 + $0x1ad8] ss:$200 sps:$4 sm:$0xff]   ;;  %v13891_v52 = vld [vmem:[%s20648_s1 + $0xe5c] ss:$200 sps:$4 sm:$0xff]  }
 0x1d9   : > { %v7894_v10 = vpop.f32.mrf.mxu0  ;;  %8301 = vmatmul.mubr.bf16.gmra.mxu0 %v15531_v35  ;;  %8379 = vmatpush2.bf16.msra.mxu1 %v13859_v48  ;;  %v13889_v60 = vld [vmem:[%s20648_s1 + $0xe58] ss:$200 sps:$4 sm:$0xff]  }
 0x1da   : > { %v10986_v8 = vmul.f32 1.442695, %v10828_v62  ;;  %v10829_v11 = vmul.f32 %v17149_v49, %v10422_v7  ;;  %v10471_v44 = vmul.f32 %v10314_v59, %v10314_v59  ;;  %v10315_v14 = vsub.f32 %v7942_v1, %v17127_v32  ;;  %8416 = vmatpush1.bf16.msra.mxu0 %v13868_v45  ;;  %8380 = vmatprep.subr.bf16.mxu1 %v13867_v58  ;;  %v13894_v45 = vld [vmem:[%s20648_s1 + $0x1adc] ss:$200 sps:$4 sm:$0xff]   ;;  %v13898_v58 = vld [vmem:[%s20648_s1 + $0x1948] ss:$200 sps:$4 sm:$0xff]  }
 0x1db   : > { %8417 = vmatprep.subr.bf16.mxu0 %v13876_v54  ;;  %v7896_v5 = vpop.f32.mrf.mxu0  ;;  %v7946_v9 = vadd.f32 %v17045_v4, %v7894_v10  ;;  %8443 = vmatprep.mubr.bf16.mxu0 %v15375_v2  ;;  %v13897_v7 = vld [vmem:[%s20648_s1 + $0xccc] ss:$200 sps:$4 sm:$0xff]   ;;  %v13895_v1 = vld [vmem:[%s20648_s1 + $0xcc8] ss:$200 sps:$4 sm:$0xff]  }
 0x1dc   : > { %15029 = vpow2.f32 %v10986_v8  ;;  %v10988_v16 = vmul.f32 1.442695, %v10829_v11  ;;  %v10878_v17 = vmul.f32 %v17137_v43, %v10471_v44  ;;  %v10472_v13 = vmul.f32 %v10315_v14, %v10315_v14  ;;  %v13903_v59 = vld [vmem:[%s20648_s1 + $0xb44] ss:$200 sps:$4 sm:$0xff]   ;;  %v13909_v11 = vld [vmem:[%s20648_s1 + $0x9b4] ss:$200 sps:$4 sm:$0xff]  }
 0x1dd   : > { %v7898_v12 = vpop.f32.mrf.mxu0  ;;  %v10364_v22 = vsub.f32 %v7946_v9, %v10041_v26  ;;  %v7948_v24 = vadd.f32 %v17054_v42, %v7896_v5  ;;  %8381 = vmatpush2.bf16.msra.mxu1 %v13865_v56  ;;  %v13901_v56 = vld [vmem:[%s20648_s1 + $0xb40] ss:$200 sps:$4 sm:$0xff]   ;;  %v13906_v8 = vld [vmem:[%s20648_s1 + $0x2444] ss:$200 sps:$4 sm:$0xff]   ;;  %v13907_v14 = vld [vmem:[%s20648_s1 + $0x9b0] ss:$200 sps:$4 sm:$0xff]  }
 0x1de   : > { %15031 = vpow2.f32 %v10988_v16  ;;  %v11086_v4 = vmul.f32 1.442695, %v10878_v17  ;;  %v10879_v28 = vmul.f32 %v17149_v49, %v10472_v13  ;;  %8418 = vmatpush1.bf16.msra.mxu0 %v13874_v0  ;;  %8382 = vmatprep.subr.bf16.mxu1 %v13873_v51  ;;  %v13904_v44 = vld [vmem:[%s20648_s1 + $0x2440] ss:$200 sps:$4 sm:$0xff]   ;;  %v13912_v9 = vld [vmem:[%s20648_s1 + $0x22b4] ss:$200 sps:$4 sm:$0xff]   ;;  %v17264_v13 = vrot.slane %v17099_v18, %v16441_v27 }
 0x1df   : > { %8419 = vmatprep.subr.bf16.mxu0 %v13882_v15  ;;  %v10521_v29 = vmul.f32 %v10364_v22, %v10364_v22  ;;  %v7899_v26 = vpop.f32.mrf.mxu0  ;;  %v10365_v42 = vsub.f32 %v7948_v24, %v17127_v32  ;;  %v13885_v32 = vld [vmem:[%s20648_s1 + $0xfec] ss:$200 sps:$4 sm:$0xff]   ;;  %v17271_v22 = vrot.slane %v17099_v18, %v16451_v41  ;;  %v13910_v24 = vld [vmem:[%s20648_s1 + $0x22b0] ss:$200 sps:$4 sm:$0xff]  }
 0x1e0   : > { %15033 = vpow2.f32 %v11086_v4  ;;  %v11088_v36 = vmul.f32 1.442695, %v10879_v28  ;;  %v13915_v16 = vld [vmem:[%s20648_s1 + $0x824] ss:$200 sps:$4 sm:$0xff]   ;;  %v13913_v4 = vld [vmem:[%s20648_s1 + $0x820] ss:$200 sps:$4 sm:$0xff]   ;;  %v17288_v26 = vrot.slane %v17110_v19, %v16441_v27 }
 0x1e1   : > { %v10928_v31 = vmul.f32 %v17137_v43, %v10521_v29  ;;  %v10522_v30 = vmul.f32 %v10365_v42, %v10365_v42  ;;  %8383 = vmatpush2.bf16.msra.mxu1 %v13871_v20  ;;  %v13883_v43 = vld [vmem:[%s20648_s1 + $0xfe8] ss:$200 sps:$4 sm:$0xff]   ;;  %v13918_v28 = vld [vmem:[%s20648_s1 + $0x2124] ss:$200 sps:$4 sm:$0xff]   ;;  %v13921_v18 = vld [vmem:[%s20648_s1 + $0x694] ss:$200 sps:$4 sm:$0xff]  }
 0x1e2   : > { %15035 = vpow2.f32 %v11088_v36  ;;  %8420 = vmatpush1.bf16.msra.mxu0 %v13880_v21  ;;  %8384 = vmatprep.subr.bf16.mxu1 %v13879_v23  ;;  %v17293_v36 = vrot.slane %v17110_v19, %v16451_v41  ;;  %v13924_v19 = vld [vmem:[%s20648_s1 + $0x1f94] ss:$200 sps:$4 sm:$0xff]  }
 0x1e3   : > { %8421 = vmatprep.subr.bf16.mxu0 %v13888_v25  ;;  %v11186_v48 = vmul.f32 1.442695, %v10928_v31  ;;  %v10929_v53 = vmul.f32 %v17149_v49, %v10522_v30  ;;  %v13900_v49 = vld [vmem:[%s20648_s1 + $0x194c] ss:$200 sps:$4 sm:$0xff]  }
 0x1e5   : > { %15037 = vpow2.f32 %v11186_v48  ;;  %v11188_v55 = vmul.f32 1.442695, %v10929_v53  ;;  %8385 = vmatpush2.bf16.msra.mxu1 %v13877_v38  ;;  %v13916_v48 = vld [vmem:[%s20648_s1 + $0x2120] ss:$200 sps:$4 sm:$0xff]  }
 0x1e6   : > { %8422 = vmatpush1.bf16.msra.mxu0 %v13886_v40  ;;  %8386 = vmatprep.subr.bf16.mxu1 %v13885_v32 }
 0x1e7   : > { %8423 = vmatprep.subr.bf16.mxu0 %v13894_v45  ;;  %15039 = vpow2.f32 %v11188_v55  ;;  %v13919_v45 = vld [vmem:[%s20648_s1 + $0x690] ss:$200 sps:$4 sm:$0xff]  }
 0x1e9   : > { %v15030_v54 = vpop.eup %15029  ;;  %8387 = vmatpush2.bf16.msra.mxu1 %v13883_v43  ;;  %v13927_v43 = vld [vmem:[%s20648_s1 + $0x504] ss:$200 sps:$4 sm:$0xff]  }
 0x1ea   : > { %11278 = vst [vmem:[%s16416_s10 + $0x40] sm:$0xff] %v15030_v54  ;;  %8424 = vmatpush1.bf16.msra.mxu0 %v13892_v37  ;;  %8388 = vmatprep.subr.bf16.mxu1 %v13891_v52 }
 0x1eb   : > { %v15032_v62 = vpop.eup %15031  ;;  %8425 = vmatprep.subr.bf16.mxu0 %v13900_v49 }
 0x1ec   : > { %11279 = vst [vmem:[%s16416_s10 + $0x48] sm:$0xff] %v15032_v62 }
 0x1ed   : > { %v15034_v0 = vpop.eup %15033  ;;  %8389 = vmatpush2.bf16.msra.mxu1 %v13889_v60 }
 0x1ee   : > { %11328 = vst [vmem:[%s16416_s10 + $0x1d0] sm:$0xff] %v15034_v0  ;;  %8426 = vmatpush1.bf16.msra.mxu0 %v13898_v58  ;;  %8390 = vmatprep.subr.bf16.mxu1 %v13897_v7  ;;  %v13925_v0 = vld [vmem:[%s20648_s1 + $0x500] ss:$200 sps:$4 sm:$0xff]  }
 0x1ef   : > { %v15036_v10 = vpop.eup %15035  ;;  %8462 = vmatprep.subr.bf16.mxu0 %v13903_v59 }
 0x1f0   : > { %11329 = vst [vmem:[%s16416_s10 + $0x1d8] sm:$0xff] %v15036_v10  ;;  %v13930_v10 = vld [vmem:[%s20648_s1 + $0x1e04] ss:$200 sps:$4 sm:$0xff]  }
 0x1f1   : > { %v8037_v51 = vpop.f32.mrf.mxu0  ;;  %8444 = vmatmul.mubr.bf16.vlgmr.msra.gmra.mxu0 %v15568_v57  ;;  %8391 = vmatpush2.bf16.msra.mxu1 %v13895_v1 }
 0x1f2   : > { %v15038_v15 = vpop.eup %15037  ;;  %8463 = vmatpush1.bf16.msra.mxu0 %v13901_v56  ;;  %8513 = vmatprep.subr.bf16.mxu1 %v13906_v8  ;;  %v13922_v56 = vld [vmem:[%s20648_s1 + $0x1f90] ss:$200 sps:$4 sm:$0xff]   ;;  %v13933_v8 = vld [vmem:[%s20648_s1 + $0x374] ss:$200 sps:$4 sm:$0xff]  }
 0x1f3   : > { %11378 = vst [vmem:[%s16416_s10 + $0x360] sm:$0xff] %v15038_v15  ;;  %v8039_v5 = vpop.f32.mrf.mxu0  ;;  %8464 = vmatprep.subr.bf16.mxu0 %v13909_v11  ;;  %8453 = vmatprep.mubr.bf16.mxu0 %v15375_v2  ;;  %v7986_v20 = vpop.f32.mrf.mxu1 }
 0x1f4   : > { %v15040_v17 = vpop.eup %15039  ;;  %8393 = vmatmul.mubr.bf16.vlgmr.msra.gmra.mxu1 %v15529_v34  ;;  %v8038_v12 = vadd.f32 %v8037_v51, %v7986_v20 }
 0x1f5   : > { %11379 = vst [vmem:[%s16416_s10 + $0x368] sm:$0xff] %v15040_v17  ;;  %v8041_v21 = vpop.f32.mrf.mxu0  ;;  %8514 = vmatpush1.bf16.msra.mxu1 %v13904_v44  ;;  %v7988_v23 = vpop.f32.mrf.mxu1  ;;  %8402 = vmatprep.mubr.bf16.mxu1 %v15550_v47 }
 0x1f6   : > { %8465 = vmatpush1.bf16.msra.mxu0 %v13907_v14  ;;  %8515 = vmatprep.subr.bf16.mxu1 %v13912_v9  ;;  %v10266_v29 = vsub.f32 %v8038_v12, %v17264_v13  ;;  %v8040_v42 = vadd.f32 %v8039_v5, %v7988_v23  ;;  %v13928_v12 = vld [vmem:[%s20648_s1 + $0x1e00] ss:$200 sps:$4 sm:$0xff]  }
 0x1f7   : > { %v8043_v25 = vpop.f32.mrf.mxu0  ;;  %8466 = vmatprep.subr.bf16.mxu0 %v13915_v16  ;;  %v7990_v38 = vpop.f32.mrf.mxu1 }
 0x1f8   : > { %v10423_v31 = vmul.f32 %v10266_v29, %v10266_v29  ;;  %v10267_v30 = vsub.f32 %v8040_v42, %v17271_v22  ;;  %v8042_v32 = vadd.f32 %v8041_v21, %v7990_v38  ;;  %v13934_v38 = vld [vmem:[%s20648_s1 + $0x1c70] ss:$200 sps:$4 sm:$0xff]  }
 0x1f9   : > { %v8047_v40 = vpop.f32.mrf.mxu0  ;;  %8454 = vmatmul.mubr.bf16.gmra.mxu0 %v15593_v3  ;;  %8516 = vmatpush1.bf16.msra.mxu1 %v13910_v24  ;;  %v7992_v53 = vpop.f32.mrf.mxu1  ;;  %v13931_v24 = vld [vmem:[%s20648_s1 + $0x370] ss:$200 sps:$4 sm:$0xff]  }
 0x1fa   : > { %8467 = vmatpush1.bf16.msra.mxu0 %v13913_v4  ;;  %8517 = vmatprep.subr.bf16.mxu1 %v13918_v28  ;;  %v10830_v55 = vmul.f32 %v17288_v26, %v10423_v31  ;;  %v10424_v52 = vmul.f32 %v10267_v30, %v10267_v30  ;;  %v10316_v49 = vsub.f32 %v8042_v32, %v17264_v13  ;;  %v13939_v4 = vld [vmem:[%s20648_s1 + $0x1e4] ss:$200 sps:$4 sm:$0xff]  }
 0x1fb   : > { %8468 = vmatprep.subr.bf16.mxu0 %v13921_v18  ;;  %v8049_v37 = vpop.f32.mrf.mxu0  ;;  %v8044_v60 = vadd.f32 %v8043_v25, %v7992_v53  ;;  %8494 = vmatprep.mubr.bf16.mxu0 %v15548_v46 }
 0x1fc   : > { %8403 = vmatmul.mubr.bf16.gmra.mxu1 %v15531_v35  ;;  %v7996_v58 = vpop.f32.mrf.mxu1  ;;  %v10990_v62 = vmul.f32 1.442695, %v10830_v55  ;;  %v10831_v7 = vmul.f32 %v17293_v36, %v10424_v52  ;;  %v10473_v59 = vmul.f32 %v10316_v49, %v10316_v49  ;;  %v13954_v55 = vld [vmem:[%s20648_s1 + $0xb4c] ss:$200 sps:$4 sm:$0xff]  }
 0x1fd   : > { %v8051_v54 = vpop.f32.mrf.mxu0  ;;  %v10317_v1 = vsub.f32 %v8044_v60, %v17271_v22  ;;  %8518 = vmatpush1.bf16.msra.mxu1 %v13916_v48  ;;  %v8048_v11 = vadd.f32 %v8047_v40, %v7996_v58  ;;  %8545 = vmatprep.mubr.bf16.mxu1 %v15375_v2  ;;  %v13937_v40 = vld [vmem:[%s20648_s1 + $0x1e0] ss:$200 sps:$4 sm:$0xff]   ;;  %v13957_v49 = vld [vmem:[%s20648_s1 + $0x1634] ss:$200 sps:$4 sm:$0xff]  }
 0x1fe   : > { %8469 = vmatpush1.bf16.msra.mxu0 %v13919_v45  ;;  %8519 = vmatprep.subr.bf16.mxu1 %v13924_v19  ;;  %v7998_v44 = vpop.f32.mrf.mxu1  ;;  %15041 = vpow2.f32 %v10990_v62  ;;  %v10992_v51 = vmul.f32 1.442695, %v10831_v7  ;;  %v10880_v15 = vmul.f32 %v17288_v26, %v10473_v59  ;;  %v13940_v48 = vld [vmem:[%s20648_s1 + $0x1ae0] ss:$200 sps:$4 sm:$0xff]   ;;  %v13943_v45 = vld [vmem:[%s20648_s1 + $0x50] ss:$200 sps:$4 sm:$0xff]  }
 0x1ff   : > { %8470 = vmatprep.subr.bf16.mxu0 %v13927_v43  ;;  %v8052_v14 = vpop.f32.mrf.mxu0  ;;  %v10474_v5 = vmul.f32 %v10317_v1, %v10317_v1  ;;  %v10366_v9 = vsub.f32 %v8048_v11, %v17264_v13  ;;  %v8050_v16 = vadd.f32 %v8049_v37, %v7998_v44  ;;  %v13936_v13 = vld [vmem:[%s20648_s1 + $0x1c74] ss:$200 sps:$4 sm:$0xff]   ;;  %v13946_v43 = vld [vmem:[%s20648_s1 + $0x1950] ss:$200 sps:$4 sm:$0xff]   ;;  %v13949_v37 = vld [vmem:[%s20648_s1 + $0x17c0] ss:$200 sps:$4 sm:$0xff]  }
 0x200   : > { %v8000_v17 = vpop.f32.mrf.mxu1  ;;  %15043 = vpow2.f32 %v10992_v51  ;;  %v11090_v20 = vmul.f32 1.442695, %v10880_v15  ;;  %v13948_v19 = vld [vmem:[%s20648_s1 + $0x1954] ss:$200 sps:$4 sm:$0xff]   ;;  %v13952_v60 = vld [vmem:[%s20648_s1 + $0xb48] ss:$200 sps:$4 sm:$0xff]  }
 0x201   : > { %v10881_v21 = vmul.f32 %v17293_v36, %v10474_v5  ;;  %8520 = vmatpush1.bf16.msra.mxu1 %v13922_v56  ;;  %v10523_v28 = vmul.f32 %v10366_v9, %v10366_v9  ;;  %v10367_v23 = vsub.f32 %v8050_v16, %v17271_v22  ;;  %v13942_v22 = vld [vmem:[%s20648_s1 + $0x1ae4] ss:$200 sps:$4 sm:$0xff]   ;;  %v13955_v54 = vld [vmem:[%s20648_s1 + $0x1630] ss:$200 sps:$4 sm:$0xff]   ;;  %v13961_v56 = vld [vmem:[%s20648_s1 + $0x14a0] ss:$200 sps:$4 sm:$0xff]  }
 0x202   : > { %8471 = vmatpush1.bf16.msra.mxu0 %v13925_v0  ;;  %8521 = vmatprep.subr.bf16.mxu1 %v13930_v10  ;;  %v8001_v25 = vpop.f32.mrf.mxu1  ;;  %15045 = vpow2.f32 %v11090_v20  ;;  %v13960_v7 = vld [vmem:[%s20648_s1 + $0x9bc] ss:$200 sps:$4 sm:$0xff]   ;;  %v13958_v1 = vld [vmem:[%s20648_s1 + $0x9b8] ss:$200 sps:$4 sm:$0xff]   ;;  %v13964_v51 = vld [vmem:[%s20648_s1 + $0x828] ss:$200 sps:$4 sm:$0xff]  }
 0x203   : > { %8472 = vmatprep.subr.bf16.mxu0 %v13933_v8  ;;  %v11092_v18 = vmul.f32 1.442695, %v10881_v21  ;;  %v10930_v29 = vmul.f32 %v17288_v26, %v10523_v28  ;;  %v10524_v42 = vmul.f32 %v10367_v23, %v10367_v23  ;;  %v13945_v26 = vld [vmem:[%s20648_s1 + $0x54] ss:$200 sps:$4 sm:$0xff]   ;;  %v13963_v59 = vld [vmem:[%s20648_s1 + $0x14a4] ss:$200 sps:$4 sm:$0xff]  }
 0x204   : > { %v13966_v8 = vld [vmem:[%s20648_s1 + $0x82c] ss:$200 sps:$4 sm:$0xff]   ;;  %v13967_v15 = vld [vmem:[%s20648_s1 + $0x1310] ss:$200 sps:$4 sm:$0xff]   ;;  %v13972_v9 = vld [vmem:[%s20648_s1 + $0x69c] ss:$200 sps:$4 sm:$0xff]  }
 0x205   : > { %15047 = vpow2.f32 %v11092_v18  ;;  %8522 = vmatpush1.bf16.msra.mxu1 %v13928_v12  ;;  %v11190_v31 = vmul.f32 1.442695, %v10930_v29  ;;  %v10931_v30 = vmul.f32 %v17293_v36, %v10524_v42  ;;  %v13951_v36 = vld [vmem:[%s20648_s1 + $0x17c4] ss:$200 sps:$4 sm:$0xff]   ;;  %v13969_v11 = vld [vmem:[%s20648_s1 + $0x1314] ss:$200 sps:$4 sm:$0xff]  }
 0x206   : > { %8473 = vmatpush1.bf16.msra.mxu0 %v13931_v24  ;;  %8523 = vmatprep.subr.bf16.mxu1 %v13936_v13  ;;  %v13975_v16 = vld [vmem:[%s20648_s1 + $0x1184] ss:$200 sps:$4 sm:$0xff]   ;;  %v13970_v20 = vld [vmem:[%s20648_s1 + $0x698] ss:$200 sps:$4 sm:$0xff]   ;;  %v13981_v13 = vld [vmem:[%s20648_s1 + $0xff4] ss:$200 sps:$4 sm:$0xff]  }
 0x207   : > { %8474 = vmatprep.subr.bf16.mxu0 %v13939_v4  ;;  %15049 = vpow2.f32 %v11190_v31  ;;  %v11192_v32 = vmul.f32 1.442695, %v10931_v30  ;;  %v13973_v21 = vld [vmem:[%s20648_s1 + $0x1180] ss:$200 sps:$4 sm:$0xff]   ;;  %v13978_v24 = vld [vmem:[%s20648_s1 + $0x50c] ss:$200 sps:$4 sm:$0xff]  }
 0x208   : > { %v13976_v28 = vld [vmem:[%s20648_s1 + $0x508] ss:$200 sps:$4 sm:$0xff]   ;;  %v13984_v18 = vld [vmem:[%s20648_s1 + $0x37c] ss:$200 sps:$4 sm:$0xff]  }
 0x209   : > { %8524 = vmatpush1.bf16.msra.mxu1 %v13934_v38  ;;  %15051 = vpow2.f32 %v11192_v32  ;;  %v13979_v23 = vld [vmem:[%s20648_s1 + $0xff0] ss:$200 sps:$4 sm:$0xff]   ;;  %v13987_v29 = vld [vmem:[%s20648_s1 + $0xe64] ss:$200 sps:$4 sm:$0xff]  }
 0x20a   : > { %8475 = vmatpush1.bf16.msra.mxu0 %v13937_v40  ;;  %8525 = vmatprep.subr.bf16.mxu1 %v13942_v22  ;;  %v13982_v38 = vld [vmem:[%s20648_s1 + $0x378] ss:$200 sps:$4 sm:$0xff]   ;;  %v13990_v22 = vld [vmem:[%s20648_s1 + $0x1ec] ss:$200 sps:$4 sm:$0xff]   ;;  %v13988_v31 = vld [vmem:[%s20648_s1 + $0x1e8] ss:$200 sps:$4 sm:$0xff]  }
 0x20b   : > { %8476 = vmatprep.subr.bf16.mxu0 %v13945_v26  ;;  %v15042_v53 = vpop.eup %15041  ;;  %v13985_v40 = vld [vmem:[%s20648_s1 + $0xe60] ss:$200 sps:$4 sm:$0xff]   ;;  %v13993_v26 = vld [vmem:[%s20648_s1 + $0xcd4] ss:$200 sps:$4 sm:$0xff]   ;;  %v13991_v30 = vld [vmem:[%s20648_s1 + $0xcd0] ss:$200 sps:$4 sm:$0xff]  }
 0x20c   : > { %11280 = vst [vmem:[%s16416_s10 + $0x50] sm:$0xff] %v15042_v53  ;;  %v13996_v32 = vld [vmem:[%s20648_s1 + $0x5c] ss:$200 sps:$4 sm:$0xff]  }
 0x20d   : > { %8526 = vmatpush1.bf16.msra.mxu1 %v13940_v48  ;;  %v15044_v52 = vpop.eup %15043  ;;  %v14002_v48 = vld [vmem:[%s20648_s1 + $0x244c] ss:$200 sps:$4 sm:$0xff]   ;;  %v14008_v53 = vld [vmem:[%s20648_s1 + $0x22bc] ss:$200 sps:$4 sm:$0xff]  }
 0x20e   : > { %8477 = vmatpush1.bf16.msra.mxu0 %v13943_v45  ;;  %8527 = vmatprep.subr.bf16.mxu1 %v13948_v19  ;;  %11281 = vst [vmem:[%s16416_s10 + $0x58] sm:$0xff] %v15044_v52  ;;  %v13994_v45 = vld [vmem:[%s20648_s1 + $0x58] ss:$200 sps:$4 sm:$0xff]   ;;  %v14000_v19 = vld [vmem:[%s20648_s1 + $0x2448] ss:$200 sps:$4 sm:$0xff]  }
 0x20f   : > { %8478 = vmatprep.subr.bf16.mxu0 %v13951_v36  ;;  %v15046_v58 = vpop.eup %15045  ;;  %v13999_v36 = vld [vmem:[%s20648_s1 + $0x17cc] ss:$200 sps:$4 sm:$0xff]   ;;  %v14006_v52 = vld [vmem:[%s20648_s1 + $0x22b8] ss:$200 sps:$4 sm:$0xff]  }
 0x210   : > { %11330 = vst [vmem:[%s16416_s10 + $0x1e0] sm:$0xff] %v15046_v58 }
 0x211   : > { %8528 = vmatpush1.bf16.msra.mxu1 %v13946_v43  ;;  %v17503_v43 = vld [vmem:[%s20649_s2 + $0x8] sm:$0xff] }
 0x212   : > { %8479 = vmatpush2.bf16.msra.mxu0 %v13949_v37  ;;  %v15048_v62 = vpop.eup %15047  ;;  %8564 = vmatprep.subr.bf16.mxu1 %v13954_v55  ;;  %v10057_v37 = vrot.slane %v17503_v43, %v16690_v39  ;;  %v13997_v55 = vld [vmem:[%s20648_s1 + $0x17c8] ss:$200 sps:$4 sm:$0xff]   ;;  %v17517_v58 = vrot.slane %v17503_v43, %v16696_v6 }
 0x213   : > { %8480 = vmatprep.subr.bf16.mxu0 %v13957_v49  ;;  %11331 = vst [vmem:[%s16416_s10 + $0x1e8] sm:$0xff] %v15048_v62  ;;  %v14005_v62 = vld [vmem:[%s20648_s1 + $0x163c] ss:$200 sps:$4 sm:$0xff]  }
 0x214   : > { %8546 = vmatmul.mubr.bf16.vlgmr.msra.gmra.mxu1 %v15568_v57  ;;  %v17405_v0 = vpop.f32.mrf.mxu1  ;;  %v15050_v10 = vpop.eup %15049 }
 0x215   : > { %8565 = vmatpush1.bf16.msra.mxu1 %v13952_v60  ;;  %11380 = vst [vmem:[%s16416_s10 + $0x370] sm:$0xff] %v15050_v10  ;;  %8555 = vmatprep.mubr.bf16.mxu1 %v15375_v2  ;;  %v14003_v10 = vld [vmem:[%s20648_s1 + $0x1638] ss:$200 sps:$4 sm:$0xff]  }
 0x216   : > { %8481 = vmatpush2.bf16.msra.mxu0 %v13955_v54  ;;  %8566 = vmatprep.subr.bf16.mxu1 %v13960_v7  ;;  %v17414_v44 = vpop.f32.mrf.mxu1  ;;  %v15052_v14 = vpop.eup %15051  ;;  %v14014_v7 = vld [vmem:[%s20648_s1 + $0x212c] ss:$200 sps:$4 sm:$0xff]  }
 0x217   : > { %8482 = vmatprep.subr.bf16.mxu0 %v13963_v59  ;;  %11381 = vst [vmem:[%s16416_s10 + $0x378] sm:$0xff] %v15052_v14 }
 0x218   : > { %v17424_v5 = vpop.f32.mrf.mxu1 }
 0x219   : > { %8567 = vmatpush1.bf16.msra.mxu1 %v13958_v1  ;;  %v17528_v1 = vld [vmem:[%s20650_s3 + $0x8] sm:$0xff] }
 0x21a   : > { %8483 = vmatpush2.bf16.msra.mxu0 %v13961_v56  ;;  %8568 = vmatprep.subr.bf16.mxu1 %v13966_v8  ;;  %v17432_v17 = vpop.f32.mrf.mxu1  ;;  %v17532_v56 = vrot.slane %v17528_v1, %v16690_v39  ;;  %v14012_v8 = vld [vmem:[%s20648_s1 + $0x2128] ss:$200 sps:$4 sm:$0xff]  }
 0x21b   : > { %8484 = vmatprep.subr.bf16.mxu0 %v13969_v11  ;;  %v17544_v11 = vrot.slane %v17528_v1, %v16696_v6 }
 0x21c   : > { %v17440_v12 = vpop.f32.mrf.mxu1  ;;  %8556 = vmatmul.mubr.bf16.gmra.mxu1 %v15593_v3 }
 0x21d   : > { %8569 = vmatpush1.bf16.msra.mxu1 %v13964_v51  ;;  %8596 = vmatprep.mubr.bf16.mxu1 %v15548_v46 }
 0x21e   : > { %8485 = vmatpush2.bf16.msra.mxu0 %v13967_v15  ;;  %8570 = vmatprep.subr.bf16.mxu1 %v13972_v9  ;;  %v17449_v4 = vpop.f32.mrf.mxu1 }
 0x21f   : > { %8486 = vmatprep.subr.bf16.mxu0 %v13975_v16  ;;  %v14011_v16 = vld [vmem:[%s20648_s1 + $0x14ac] ss:$200 sps:$4 sm:$0xff]  }
 0x220   : > { %v8153_v25 = vpop.f32.mrf.mxu1 }
 0x221   : > { %8571 = vmatpush1.bf16.msra.mxu1 %v13970_v20  ;;  %v14020_v20 = vld [vmem:[%s20648_s1 + $0x1f9c] ss:$200 sps:$4 sm:$0xff]  }
 0x222   : > { %8487 = vmatpush2.bf16.msra.mxu0 %v13973_v21  ;;  %8572 = vmatprep.subr.bf16.mxu1 %v13978_v24  ;;  %v8154_v42 = vpop.f32.mrf.mxu1 }
 0x223   : > { %8488 = vmatprep.subr.bf16.mxu0 %v13981_v13 }
 0x225   : > { %8573 = vmatpush1.bf16.msra.mxu1 %v13976_v28 }
 0x226   : > { %8489 = vmatpush2.bf16.msra.mxu0 %v13979_v23  ;;  %8574 = vmatprep.subr.bf16.mxu1 %v13984_v18  ;;  %v14018_v23 = vld [vmem:[%s20648_s1 + $0x1f98] ss:$200 sps:$4 sm:$0xff]  }
 0x227   : > { %8490 = vmatprep.subr.bf16.mxu0 %v13987_v29 }
 0x229   : > { %8575 = vmatpush1.bf16.msra.mxu1 %v13982_v38 }
 0x22a   : > { %8491 = vmatpush2.bf16.msra.mxu0 %v13985_v40  ;;  %8576 = vmatprep.subr.bf16.mxu1 %v13990_v22  ;;  %v14026_v40 = vld [vmem:[%s20648_s1 + $0x1e0c] ss:$200 sps:$4 sm:$0xff]  }
 0x22b   : > { %8492 = vmatprep.subr.bf16.mxu0 %v13993_v26 }
 0x22d   : > { %8577 = vmatpush1.bf16.msra.mxu1 %v13988_v31 }
 0x22e   : > { %8493 = vmatpush2.bf16.msra.mxu0 %v13991_v30  ;;  %8578 = vmatprep.subr.bf16.mxu1 %v13996_v32 }
 0x22f   : > { %8615 = vmatprep.subr.bf16.mxu0 %v14002_v48  ;;  %v14015_v48 = vld [vmem:[%s20648_s1 + $0x1318] ss:$200 sps:$4 sm:$0xff]  }
 0x231   : > { %v8088_v49 = vpop.f32.mrf.mxu0  ;;  %8495 = vmatmul.mubr.bf16.vlgmr.msra.gmra.mxu0 %v15529_v34  ;;  %8579 = vmatpush1.bf16.msra.mxu1 %v13994_v45  ;;  %v14024_v45 = vld [vmem:[%s20648_s1 + $0x1e08] ss:$200 sps:$4 sm:$0xff]  }
 0x232   : > { %v8140_v60 = vadd.f32 %v17405_v0, %v8088_v49  ;;  %8616 = vmatpush1.bf16.msra.mxu0 %v14000_v19  ;;  %8580 = vmatprep.subr.bf16.mxu1 %v13999_v36  ;;  %v14032_v49 = vld [vmem:[%s20648_s1 + $0x1c7c] ss:$200 sps:$4 sm:$0xff]  }
 0x233   : > { %v8090_v54 = vpop.f32.mrf.mxu0  ;;  %8617 = vmatprep.subr.bf16.mxu0 %v14008_v53  ;;  %8504 = vmatprep.mubr.bf16.mxu0 %v15550_v47 }
 0x234   : > { %v10268_v59 = vsub.f32 %v8140_v60, %v10057_v37  ;;  %v8142_v0 = vadd.f32 %v17414_v44, %v8090_v54 }
 0x235   : > { %v8092_v14 = vpop.f32.mrf.mxu0  ;;  %8581 = vmatpush2.bf16.msra.mxu1 %v13997_v55 }
 0x236   : > { %v10425_v51 = vmul.f32 %v10268_v59, %v10268_v59  ;;  %v10269_v15 = vsub.f32 %v8142_v0, %v17517_v58  ;;  %v8144_v44 = vadd.f32 %v17424_v5, %v8092_v14  ;;  %8618 = vmatpush1.bf16.msra.mxu0 %v14006_v52  ;;  %8582 = vmatprep.subr.bf16.mxu1 %v14005_v62  ;;  %v14009_v5 = vld [vmem:[%s20648_s1 + $0x14a8] ss:$200 sps:$4 sm:$0xff]   ;;  %v14023_v52 = vld [vmem:[%s20648_s1 + $0x118c] ss:$200 sps:$4 sm:$0xff]  }
 0x237   : > { %v8094_v9 = vpop.f32.mrf.mxu0  ;;  %8619 = vmatprep.subr.bf16.mxu0 %v14014_v7  ;;  %v14021_v62 = vld [vmem:[%s20648_s1 + $0x1188] ss:$200 sps:$4 sm:$0xff]   ;;  %v14030_v7 = vld [vmem:[%s20648_s1 + $0x1c78] ss:$200 sps:$4 sm:$0xff]  }
 0x238   : > { %v10832_v21 = vmul.f32 %v17532_v56, %v10425_v51  ;;  %v10426_v24 = vmul.f32 %v10269_v15, %v10269_v15  ;;  %v10318_v13 = vsub.f32 %v8144_v44, %v10057_v37  ;;  %v8146_v28 = vadd.f32 %v17432_v17, %v8094_v9  ;;  %v14017_v17 = vld [vmem:[%s20648_s1 + $0x131c] ss:$200 sps:$4 sm:$0xff]   ;;  %v14036_v51 = vld [vmem:[%s20648_s1 + $0x1ae8] ss:$200 sps:$4 sm:$0xff]   ;;  %v14035_v44 = vld [vmem:[%s20648_s1 + $0xe6c] ss:$200 sps:$4 sm:$0xff]  }
 0x239   : > { %v8098_v25 = vpop.f32.mrf.mxu0  ;;  %8505 = vmatmul.mubr.bf16.gmra.mxu0 %v15531_v35  ;;  %8583 = vmatpush2.bf16.msra.mxu1 %v14003_v10  ;;  %v14033_v9 = vld [vmem:[%s20648_s1 + $0xe68] ss:$200 sps:$4 sm:$0xff]  }
 0x23a   : > { %v10994_v18 = vmul.f32 1.442695, %v10832_v21  ;;  %v10833_v29 = vmul.f32 %v17544_v11, %v10426_v24  ;;  %v10475_v42 = vmul.f32 %v10318_v13, %v10318_v13  ;;  %v10319_v38 = vsub.f32 %v8146_v28, %v17517_v58  ;;  %8620 = vmatpush1.bf16.msra.mxu0 %v14012_v8  ;;  %8584 = vmatprep.subr.bf16.mxu1 %v14011_v16  ;;  %v14038_v8 = vld [vmem:[%s20648_s1 + $0x1aec] ss:$200 sps:$4 sm:$0xff]   ;;  %v14042_v16 = vld [vmem:[%s20648_s1 + $0x1958] ss:$200 sps:$4 sm:$0xff]  }
 0x23b   : > { %8621 = vmatprep.subr.bf16.mxu0 %v14020_v20  ;;  %v8100_v22 = vpop.f32.mrf.mxu0  ;;  %v8150_v26 = vadd.f32 %v17440_v12, %v8098_v25  ;;  %8647 = vmatprep.mubr.bf16.mxu0 %v15375_v2  ;;  %v14041_v24 = vld [vmem:[%s20648_s1 + $0xcdc] ss:$200 sps:$4 sm:$0xff]   ;;  %v14039_v28 = vld [vmem:[%s20648_s1 + $0xcd8] ss:$200 sps:$4 sm:$0xff]  }
 0x23c   : > { %15053 = vpow2.f32 %v10994_v18  ;;  %v10996_v31 = vmul.f32 1.442695, %v10833_v29  ;;  %v10882_v30 = vmul.f32 %v17532_v56, %v10475_v42  ;;  %v10476_v32 = vmul.f32 %v10319_v38, %v10319_v38  ;;  %v14047_v13 = vld [vmem:[%s20648_s1 + $0xb54] ss:$200 sps:$4 sm:$0xff]   ;;  %v14053_v29 = vld [vmem:[%s20648_s1 + $0x9c4] ss:$200 sps:$4 sm:$0xff]  }
 0x23d   : > { %v8102_v19 = vpop.f32.mrf.mxu0  ;;  %v10368_v36 = vsub.f32 %v8150_v26, %v10057_v37  ;;  %v8152_v53 = vadd.f32 %v17449_v4, %v8100_v22  ;;  %8585 = vmatpush2.bf16.msra.mxu1 %v14009_v5  ;;  %v14045_v5 = vld [vmem:[%s20648_s1 + $0xb50] ss:$200 sps:$4 sm:$0xff]   ;;  %v14050_v18 = vld [vmem:[%s20648_s1 + $0x2454] ss:$200 sps:$4 sm:$0xff]   ;;  %v14051_v38 = vld [vmem:[%s20648_s1 + $0x9c0] ss:$200 sps:$4 sm:$0xff]  }
 0x23e   : > { %15055 = vpow2.f32 %v10996_v31  ;;  %v11094_v12 = vmul.f32 1.442695, %v10882_v30  ;;  %v10883_v55 = vmul.f32 %v17544_v11, %v10476_v32  ;;  %8622 = vmatpush1.bf16.msra.mxu0 %v14018_v23  ;;  %8586 = vmatprep.subr.bf16.mxu1 %v14017_v17  ;;  %v14048_v42 = vld [vmem:[%s20648_s1 + $0x2450] ss:$200 sps:$4 sm:$0xff]   ;;  %v14056_v26 = vld [vmem:[%s20648_s1 + $0x22c4] ss:$200 sps:$4 sm:$0xff]   ;;  %v17659_v32 = vrot.slane %v17503_v43, %v16848_v50 }
 0x23f   : > { %8623 = vmatprep.subr.bf16.mxu0 %v14026_v40  ;;  %v10525_v60 = vmul.f32 %v10368_v36, %v10368_v36  ;;  %v8103_v37 = vpop.f32.mrf.mxu0  ;;  %v10369_v4 = vsub.f32 %v8152_v53, %v17517_v58  ;;  %v14029_v58 = vld [vmem:[%s20648_s1 + $0xffc] ss:$200 sps:$4 sm:$0xff]   ;;  %v17666_v36 = vrot.slane %v17503_v43, %v16858_v33  ;;  %v14054_v53 = vld [vmem:[%s20648_s1 + $0x22c0] ss:$200 sps:$4 sm:$0xff]  }
 0x240   : > { %15057 = vpow2.f32 %v11094_v12  ;;  %v11096_v54 = vmul.f32 1.442695, %v10883_v55  ;;  %v14059_v31 = vld [vmem:[%s20648_s1 + $0x834] ss:$200 sps:$4 sm:$0xff]   ;;  %v14057_v12 = vld [vmem:[%s20648_s1 + $0x830] ss:$200 sps:$4 sm:$0xff]   ;;  %v17683_v37 = vrot.slane %v17528_v1, %v16848_v50 }
 0x241   : > { %v10932_v59 = vmul.f32 %v17532_v56, %v10525_v60  ;;  %v10526_v0 = vmul.f32 %v10369_v4, %v10369_v4  ;;  %8587 = vmatpush2.bf16.msra.mxu1 %v14015_v48  ;;  %v14027_v56 = vld [vmem:[%s20648_s1 + $0xff8] ss:$200 sps:$4 sm:$0xff]   ;;  %v14062_v55 = vld [vmem:[%s20648_s1 + $0x2134] ss:$200 sps:$4 sm:$0xff]   ;;  %v14065_v43 = vld [vmem:[%s20648_s1 + $0x6a4] ss:$200 sps:$4 sm:$0xff]  }
 0x242   : > { %15059 = vpow2.f32 %v11096_v54  ;;  %8624 = vmatpush1.bf16.msra.mxu0 %v14024_v45  ;;  %8588 = vmatprep.subr.bf16.mxu1 %v14023_v52  ;;  %v17688_v54 = vrot.slane %v17528_v1, %v16858_v33  ;;  %v14068_v1 = vld [vmem:[%s20648_s1 + $0x1fa4] ss:$200 sps:$4 sm:$0xff]  }
 0x243   : > { %8625 = vmatprep.subr.bf16.mxu0 %v14032_v49  ;;  %v11194_v10 = vmul.f32 1.442695, %v10932_v59  ;;  %v10933_v14 = vmul.f32 %v17544_v11, %v10526_v0  ;;  %v14044_v11 = vld [vmem:[%s20648_s1 + $0x195c] ss:$200 sps:$4 sm:$0xff]  }
 0x245   : > { %15061 = vpow2.f32 %v11194_v10  ;;  %v11196_v15 = vmul.f32 1.442695, %v10933_v14  ;;  %8589 = vmatpush2.bf16.msra.mxu1 %v14021_v62  ;;  %v14060_v10 = vld [vmem:[%s20648_s1 + $0x2130] ss:$200 sps:$4 sm:$0xff]  }
 0x246   : > { %8626 = vmatpush1.bf16.msra.mxu0 %v14030_v7  ;;  %8590 = vmatprep.subr.bf16.mxu1 %v14029_v58 }
 0x247   : > { %8627 = vmatprep.subr.bf16.mxu0 %v14038_v8  ;;  %15063 = vpow2.f32 %v11196_v15  ;;  %v14063_v8 = vld [vmem:[%s20648_s1 + $0x6a0] ss:$200 sps:$4 sm:$0xff]  }
 0x249   : > { %v15054_v20 = vpop.eup %15053  ;;  %8591 = vmatpush2.bf16.msra.mxu1 %v14027_v56  ;;  %v14071_v56 = vld [vmem:[%s20648_s1 + $0x514] ss:$200 sps:$4 sm:$0xff]  }
 0x24a   : > { %11282 = vst [vmem:[%s16416_s10 + $0x60] sm:$0xff] %v15054_v20  ;;  %8628 = vmatpush1.bf16.msra.mxu0 %v14036_v51  ;;  %8592 = vmatprep.subr.bf16.mxu1 %v14035_v44 }
 0x24b   : > { %v15056_v21 = vpop.eup %15055  ;;  %8629 = vmatprep.subr.bf16.mxu0 %v14044_v11 }
 0x24c   : > { %11283 = vst [vmem:[%s16416_s10 + $0x68] sm:$0xff] %v15056_v21 }
 0x24d   : > { %v15058_v23 = vpop.eup %15057  ;;  %8593 = vmatpush2.bf16.msra.mxu1 %v14033_v9 }
 0x24e   : > { %11332 = vst [vmem:[%s16416_s10 + $0x1f0] sm:$0xff] %v15058_v23  ;;  %8630 = vmatpush1.bf16.msra.mxu0 %v14042_v16  ;;  %8594 = vmatprep.subr.bf16.mxu1 %v14041_v24  ;;  %v14069_v23 = vld [vmem:[%s20648_s1 + $0x510] ss:$200 sps:$4 sm:$0xff]  }
 0x24f   : > { %v15060_v25 = vpop.eup %15059  ;;  %8666 = vmatprep.subr.bf16.mxu0 %v14047_v13 }
 0x250   : > { %11333 = vst [vmem:[%s16416_s10 + $0x1f8] sm:$0xff] %v15060_v25  ;;  %v14074_v25 = vld [vmem:[%s20648_s1 + $0x1e14] ss:$200 sps:$4 sm:$0xff]  }
 0x251   : > { %v8241_v17 = vpop.f32.mrf.mxu0  ;;  %8648 = vmatmul.mubr.bf16.vlgmr.msra.gmra.mxu0 %v15568_v57  ;;  %8595 = vmatpush2.bf16.msra.mxu1 %v14039_v28 }
 0x252   : > { %v15062_v40 = vpop.eup %15061  ;;  %8667 = vmatpush1.bf16.msra.mxu0 %v14045_v5  ;;  %8717 = vmatprep.subr.bf16.mxu1 %v14050_v18  ;;  %v14066_v5 = vld [vmem:[%s20648_s1 + $0x1fa0] ss:$200 sps:$4 sm:$0xff]   ;;  %v14077_v18 = vld [vmem:[%s20648_s1 + $0x384] ss:$200 sps:$4 sm:$0xff]  }
 0x253   : > { %11382 = vst [vmem:[%s16416_s10 + $0x380] sm:$0xff] %v15062_v40  ;;  %v8243_v22 = vpop.f32.mrf.mxu0  ;;  %8668 = vmatprep.subr.bf16.mxu0 %v14053_v29  ;;  %8657 = vmatprep.mubr.bf16.mxu0 %v15375_v2 }
 0x254   : > { %v15064_v30 = vpop.eup %15063  ;;  %v8190_v48 = vpop.f32.mrf.mxu1  ;;  %8597 = vmatmul.mubr.bf16.vlgmr.msra.gmra.mxu1 %v15529_v34 }
 0x255   : > { %11383 = vst [vmem:[%s16416_s10 + $0x388] sm:$0xff] %v15064_v30  ;;  %v8245_v45 = vpop.f32.mrf.mxu0  ;;  %v8242_v19 = vadd.f32 %v8241_v17, %v8190_v48  ;;  %8718 = vmatpush1.bf16.msra.mxu1 %v14048_v42  ;;  %8606 = vmatprep.mubr.bf16.mxu1 %v15550_v47 }
 0x256   : > { %8669 = vmatpush1.bf16.msra.mxu0 %v14051_v38  ;;  %v8192_v52 = vpop.f32.mrf.mxu1  ;;  %8719 = vmatprep.subr.bf16.mxu1 %v14056_v26 }
 0x257   : > { %v8247_v49 = vpop.f32.mrf.mxu0  ;;  %8670 = vmatprep.subr.bf16.mxu0 %v14059_v31  ;;  %v10270_v60 = vsub.f32 %v8242_v19, %v17659_v32  ;;  %v8244_v4 = vadd.f32 %v8243_v22, %v8192_v52  ;;  %v14072_v19 = vld [vmem:[%s20648_s1 + $0x1e10] ss:$200 sps:$4 sm:$0xff]  }
 0x258   : > { %v8194_v62 = vpop.f32.mrf.mxu1 }
 0x259   : > { %v8251_v7 = vpop.f32.mrf.mxu0  ;;  %8658 = vmatmul.mubr.bf16.gmra.mxu0 %v15593_v3  ;;  %v10427_v59 = vmul.f32 %v10270_v60, %v10270_v60  ;;  %v10271_v0 = vsub.f32 %v8244_v4, %v17666_v36  ;;  %v8246_v58 = vadd.f32 %v8245_v45, %v8194_v62  ;;  %8720 = vmatpush1.bf16.msra.mxu1 %v14054_v53  ;;  %v14075_v53 = vld [vmem:[%s20648_s1 + $0x380] ss:$200 sps:$4 sm:$0xff]  }
 0x25a   : > { %8671 = vmatpush1.bf16.msra.mxu0 %v14057_v12  ;;  %v8196_v14 = vpop.f32.mrf.mxu1  ;;  %8721 = vmatprep.subr.bf16.mxu1 %v14062_v55  ;;  %v14083_v12 = vld [vmem:[%s20648_s1 + $0x1f4] ss:$200 sps:$4 sm:$0xff]   ;;  %v14078_v62 = vld [vmem:[%s20648_s1 + $0x1c80] ss:$200 sps:$4 sm:$0xff]  }
 0x25b   : > { %8672 = vmatprep.subr.bf16.mxu0 %v14065_v43  ;;  %v8253_v51 = vpop.f32.mrf.mxu0  ;;  %v10834_v15 = vmul.f32 %v17683_v37, %v10427_v59  ;;  %v10428_v44 = vmul.f32 %v10271_v0, %v10271_v0  ;;  %v10320_v11 = vsub.f32 %v8246_v58, %v17659_v32  ;;  %v8248_v9 = vadd.f32 %v8247_v49, %v8196_v14 }
 0x25c   : > { %8698 = vmatprep.mubr.bf16.mxu0 %v15548_v46  ;;  %8607 = vmatmul.mubr.bf16.gmra.mxu1 %v15531_v35  ;;  %v8200_v16 = vpop.f32.mrf.mxu1 }
 0x25d   : > { %v8255_v20 = vpop.f32.mrf.mxu0  ;;  %v10998_v21 = vmul.f32 1.442695, %v10834_v15  ;;  %v10835_v24 = vmul.f32 %v17688_v54, %v10428_v44  ;;  %v10477_v13 = vmul.f32 %v10320_v11, %v10320_v11  ;;  %v10321_v28 = vsub.f32 %v8248_v9, %v17666_v36  ;;  %8722 = vmatpush1.bf16.msra.mxu1 %v14060_v10  ;;  %8749 = vmatprep.mubr.bf16.mxu1 %v15375_v2  ;;  %v14084_v10 = vld [vmem:[%s20648_s1 + $0x1af0] ss:$200 sps:$4 sm:$0xff]   ;;  %v14098_v15 = vld [vmem:[%s20648_s1 + $0xb5c] ss:$200 sps:$4 sm:$0xff]  }
 0x25e   : > { %8673 = vmatpush1.bf16.msra.mxu0 %v14063_v8  ;;  %8723 = vmatprep.subr.bf16.mxu1 %v14068_v1  ;;  %v8252_v29 = vadd.f32 %v8251_v7, %v8200_v16  ;;  %v8202_v42 = vpop.f32.mrf.mxu1  ;;  %v14081_v7 = vld [vmem:[%s20648_s1 + $0x1f0] ss:$200 sps:$4 sm:$0xff]   ;;  %v14087_v8 = vld [vmem:[%s20648_s1 + $0x60] ss:$200 sps:$4 sm:$0xff]   ;;  %v14092_v1 = vld [vmem:[%s20648_s1 + $0x1964] ss:$200 sps:$4 sm:$0xff]  }
 0x25f   : > { %8674 = vmatprep.subr.bf16.mxu0 %v14071_v56  ;;  %v8256_v38 = vpop.f32.mrf.mxu0  ;;  %15065 = vpow2.f32 %v10998_v21  ;;  %v11000_v17 = vmul.f32 1.442695, %v10835_v24  ;;  %v10884_v40 = vmul.f32 %v17683_v37, %v10477_v13  ;;  %v10478_v22 = vmul.f32 %v10321_v28, %v10321_v28  ;;  %v14090_v56 = vld [vmem:[%s20648_s1 + $0x1960] ss:$200 sps:$4 sm:$0xff]   ;;  %v14101_v11 = vld [vmem:[%s20648_s1 + $0x1644] ss:$200 sps:$4 sm:$0xff]  }
 0x260   : > { %v10370_v26 = vsub.f32 %v8252_v29, %v17659_v32  ;;  %v8254_v31 = vadd.f32 %v8253_v51, %v8202_v42  ;;  %v8204_v30 = vpop.f32.mrf.mxu1  ;;  %v14080_v32 = vld [vmem:[%s20648_s1 + $0x1c84] ss:$200 sps:$4 sm:$0xff]   ;;  %v14093_v51 = vld [vmem:[%s20648_s1 + $0x17d0] ss:$200 sps:$4 sm:$0xff]   ;;  %v14099_v16 = vld [vmem:[%s20648_s1 + $0x1640] ss:$200 sps:$4 sm:$0xff]  }
 0x261   : > { %15067 = vpow2.f32 %v11000_v17  ;;  %v11098_v48 = vmul.f32 1.442695, %v10884_v40  ;;  %v10885_v45 = vmul.f32 %v17688_v54, %v10478_v22  ;;  %8724 = vmatpush1.bf16.msra.mxu1 %v14066_v5  ;;  %v14096_v9 = vld [vmem:[%s20648_s1 + $0xb58] ss:$200 sps:$4 sm:$0xff]   ;;  %v14104_v24 = vld [vmem:[%s20648_s1 + $0x9cc] ss:$200 sps:$4 sm:$0xff]  }
 0x262   : > { %8675 = vmatpush1.bf16.msra.mxu0 %v14069_v23  ;;  %8725 = vmatprep.subr.bf16.mxu1 %v14074_v25  ;;  %v10527_v55 = vmul.f32 %v10370_v26, %v10370_v26  ;;  %v10371_v52 = vsub.f32 %v8254_v31, %v17666_v36  ;;  %v8205_v49 = vpop.f32.mrf.mxu1  ;;  %v14086_v36 = vld [vmem:[%s20648_s1 + $0x1af4] ss:$200 sps:$4 sm:$0xff]   ;;  %v14102_v28 = vld [vmem:[%s20648_s1 + $0x9c8] ss:$200 sps:$4 sm:$0xff]   ;;  %v14113_v29 = vld [vmem:[%s20648_s1 + $0x1324] ss:$200 sps:$4 sm:$0xff]  }
 0x263   : > { %8676 = vmatprep.subr.bf16.mxu0 %v14077_v18  ;;  %15069 = vpow2.f32 %v11098_v48  ;;  %v11100_v43 = vmul.f32 1.442695, %v10885_v45  ;;  %v14107_v13 = vld [vmem:[%s20648_s1 + $0x14b4] ss:$200 sps:$4 sm:$0xff]   ;;  %v14105_v5 = vld [vmem:[%s20648_s1 + $0x14b0] ss:$200 sps:$4 sm:$0xff]  }
 0x264   : > { %v10934_v60 = vmul.f32 %v17683_v37, %v10527_v55  ;;  %v10528_v4 = vmul.f32 %v10371_v52, %v10371_v52  ;;  %v14089_v37 = vld [vmem:[%s20648_s1 + $0x64] ss:$200 sps:$4 sm:$0xff]   ;;  %v14108_v17 = vld [vmem:[%s20648_s1 + $0x838] ss:$200 sps:$4 sm:$0xff]   ;;  %v14119_v31 = vld [vmem:[%s20648_s1 + $0x1194] ss:$200 sps:$4 sm:$0xff]  }
 0x265   : > { %15071 = vpow2.f32 %v11100_v43  ;;  %8726 = vmatpush1.bf16.msra.mxu1 %v14072_v19  ;;  %v14110_v18 = vld [vmem:[%s20648_s1 + $0x83c] ss:$200 sps:$4 sm:$0xff]   ;;  %v14111_v40 = vld [vmem:[%s20648_s1 + $0x1320] ss:$200 sps:$4 sm:$0xff]   ;;  %v14116_v26 = vld [vmem:[%s20648_s1 + $0x6ac] ss:$200 sps:$4 sm:$0xff]  }
 0x266   : > { %8677 = vmatpush1.bf16.msra.mxu0 %v14075_v53  ;;  %8727 = vmatprep.subr.bf16.mxu1 %v14080_v32  ;;  %v11198_v59 = vmul.f32 1.442695, %v10934_v60  ;;  %v10935_v0 = vmul.f32 %v17688_v54, %v10528_v4  ;;  %v14095_v54 = vld [vmem:[%s20648_s1 + $0x17d4] ss:$200 sps:$4 sm:$0xff]   ;;  %v14114_v48 = vld [vmem:[%s20648_s1 + $0x6a8] ss:$200 sps:$4 sm:$0xff]  }
 0x267   : > { %8678 = vmatprep.subr.bf16.mxu0 %v14083_v12  ;;  %v14117_v45 = vld [vmem:[%s20648_s1 + $0x1190] ss:$200 sps:$4 sm:$0xff]   ;;  %v14122_v53 = vld [vmem:[%s20648_s1 + $0x51c] ss:$200 sps:$4 sm:$0xff]   ;;  %v14123_v52 = vld [vmem:[%s20648_s1 + $0x1000] ss:$200 sps:$4 sm:$0xff]  }
 0x268   : > { %15073 = vpow2.f32 %v11198_v59  ;;  %v11200_v58 = vmul.f32 1.442695, %v10935_v0  ;;  %v14125_v32 = vld [vmem:[%s20648_s1 + $0x1004] ss:$200 sps:$4 sm:$0xff]   ;;  %v14120_v55 = vld [vmem:[%s20648_s1 + $0x518] ss:$200 sps:$4 sm:$0xff]  }
 0x269   : > { %8728 = vmatpush1.bf16.msra.mxu1 %v14078_v62  ;;  %v14128_v43 = vld [vmem:[%s20648_s1 + $0x38c] ss:$200 sps:$4 sm:$0xff]   ;;  %v14126_v62 = vld [vmem:[%s20648_s1 + $0x388] ss:$200 sps:$4 sm:$0xff]   ;;  %v14132_v59 = vld [vmem:[%s20648_s1 + $0x1f8] ss:$200 sps:$4 sm:$0xff]  }
 0x26a   : > { %8679 = vmatpush1.bf16.msra.mxu0 %v14081_v7  ;;  %8729 = vmatprep.subr.bf16.mxu1 %v14086_v36  ;;  %15075 = vpow2.f32 %v11200_v58  ;;  %v14131_v60 = vld [vmem:[%s20648_s1 + $0xe74] ss:$200 sps:$4 sm:$0xff]   ;;  %v14129_v7 = vld [vmem:[%s20648_s1 + $0xe70] ss:$200 sps:$4 sm:$0xff]   ;;  %v14135_v0 = vld [vmem:[%s20648_s1 + $0xce0] ss:$200 sps:$4 sm:$0xff]  }
 0x26b   : > { %8680 = vmatprep.subr.bf16.mxu0 %v14089_v37  ;;  %v14134_v36 = vld [vmem:[%s20648_s1 + $0x1fc] ss:$200 sps:$4 sm:$0xff]   ;;  %v14140_v58 = vld [vmem:[%s20648_s1 + $0x6c] ss:$200 sps:$4 sm:$0xff]  }
 0x26c   : > { %v15066_v14 = vpop.eup %15065  ;;  %v14137_v37 = vld [vmem:[%s20648_s1 + $0xce4] ss:$200 sps:$4 sm:$0xff]  }
 0x26d   : > { %11284 = vst [vmem:[%s16416_s10 + $0x70] sm:$0xff] %v15066_v14  ;;  %8730 = vmatpush1.bf16.msra.mxu1 %v14084_v10  ;;  %v14146_v10 = vld [vmem:[%s20648_s1 + $0x245c] ss:$200 sps:$4 sm:$0xff]  }
 0x26e   : > { %8681 = vmatpush1.bf16.msra.mxu0 %v14087_v8  ;;  %v15068_v44 = vpop.eup %15067  ;;  %8731 = vmatprep.subr.bf16.mxu1 %v14092_v1  ;;  %v14138_v8 = vld [vmem:[%s20648_s1 + $0x68] ss:$200 sps:$4 sm:$0xff]   ;;  %v14143_v14 = vld [vmem:[%s20648_s1 + $0x17dc] ss:$200 sps:$4 sm:$0xff]  }
 0x26f   : > { %8682 = vmatprep.subr.bf16.mxu0 %v14095_v54  ;;  %11285 = vst [vmem:[%s16416_s10 + $0x78] sm:$0xff] %v15068_v44  ;;  %v17889_v1 = vld [vmem:[%s20649_s2 + $0x10] sm:$0xff]  ;;  %v14144_v54 = vld [vmem:[%s20648_s1 + $0x2458] ss:$200 sps:$4 sm:$0xff]  }
 0x270   : > { %v15070_v20 = vpop.eup %15069  ;;  %v14141_v44 = vld [vmem:[%s20648_s1 + $0x17d8] ss:$200 sps:$4 sm:$0xff]  }
 0x271   : > { %11334 = vst [vmem:[%s16416_s10 + $0x200] sm:$0xff] %v15070_v20  ;;  %8732 = vmatpush1.bf16.msra.mxu1 %v14090_v56  ;;  %v17900_v56 = vld [vmem:[%s20650_s3 + $0x10] sm:$0xff]  ;;  %v17917_v20 = vrot.slane %v17889_v1, %v16291_v63 }
 0x272   : > { %8683 = vmatpush2.bf16.msra.mxu0 %v14093_v51  ;;  %v15072_v21 = vpop.eup %15071  ;;  %8768 = vmatprep.subr.bf16.mxu1 %v14098_v15  ;;  %v14152_v51 = vld [vmem:[%s20648_s1 + $0x22cc] ss:$200 sps:$4 sm:$0xff]   ;;  %v10073_v15 = vrot.slane %v17889_v1, %v16285_v61 }
 0x273   : > { %8684 = vmatprep.subr.bf16.mxu0 %v14101_v11  ;;  %11335 = vst [vmem:[%s16416_s10 + $0x208] sm:$0xff] %v15072_v21  ;;  %v14150_v11 = vld [vmem:[%s20648_s1 + $0x22c8] ss:$200 sps:$4 sm:$0xff]  }
 0x274   : > { %8750 = vmatmul.mubr.bf16.vlgmr.msra.gmra.mxu1 %v15568_v57  ;;  %v17800_v23 = vpop.f32.mrf.mxu1 }
 0x275   : > { %v15074_v25 = vpop.eup %15073  ;;  %8769 = vmatpush1.bf16.msra.mxu1 %v14096_v9  ;;  %8759 = vmatprep.mubr.bf16.mxu1 %v15375_v2 }
 0x276   : > { %8685 = vmatpush2.bf16.msra.mxu0 %v14099_v16  ;;  %8770 = vmatprep.subr.bf16.mxu1 %v14104_v24  ;;  %11384 = vst [vmem:[%s16416_s10 + $0x390] sm:$0xff] %v15074_v25  ;;  %v17809_v42 = vpop.f32.mrf.mxu1  ;;  %v14149_v24 = vld [vmem:[%s20648_s1 + $0x164c] ss:$200 sps:$4 sm:$0xff]   ;;  %v14147_v25 = vld [vmem:[%s20648_s1 + $0x1648] ss:$200 sps:$4 sm:$0xff]  }
 0x277   : > { %8686 = vmatprep.subr.bf16.mxu0 %v14107_v13  ;;  %v15076_v38 = vpop.eup %15075  ;;  %v14158_v13 = vld [vmem:[%s20648_s1 + $0x213c] ss:$200 sps:$4 sm:$0xff]  }
 0x278   : > { %11385 = vst [vmem:[%s16416_s10 + $0x398] sm:$0xff] %v15076_v38  ;;  %v17819_v22 = vpop.f32.mrf.mxu1 }
 0x279   : > { %8771 = vmatpush1.bf16.msra.mxu1 %v14102_v28 }
 0x27a   : > { %8687 = vmatpush2.bf16.msra.mxu0 %v14105_v5  ;;  %8772 = vmatprep.subr.bf16.mxu1 %v14110_v18  ;;  %v17827_v30 = vpop.f32.mrf.mxu1  ;;  %v17927_v5 = vrot.slane %v17900_v56, %v16285_v61  ;;  %v14156_v18 = vld [vmem:[%s20648_s1 + $0x2138] ss:$200 sps:$4 sm:$0xff]  }
 0x27b   : > { %8688 = vmatprep.subr.bf16.mxu0 %v14113_v29  ;;  %v17939_v29 = vrot.slane %v17900_v56, %v16291_v63 }
 0x27c   : > { %v17835_v19 = vpop.f32.mrf.mxu1  ;;  %8760 = vmatmul.mubr.bf16.gmra.mxu1 %v15593_v3 }
 0x27d   : > { %8773 = vmatpush1.bf16.msra.mxu1 %v14108_v17  ;;  %8800 = vmatprep.mubr.bf16.mxu1 %v15548_v46 }
 0x27e   : > { %8689 = vmatpush2.bf16.msra.mxu0 %v14111_v40  ;;  %8774 = vmatprep.subr.bf16.mxu1 %v14116_v26  ;;  %v17844_v12 = vpop.f32.mrf.mxu1 }
 0x27f   : > { %8690 = vmatprep.subr.bf16.mxu0 %v14119_v31  ;;  %v14155_v31 = vld [vmem:[%s20648_s1 + $0x14bc] ss:$200 sps:$4 sm:$0xff]  }
 0x280   : > { %v8357_v49 = vpop.f32.mrf.mxu1 }
 0x281   : > { %8775 = vmatpush1.bf16.msra.mxu1 %v14114_v48  ;;  %v14164_v48 = vld [vmem:[%s20648_s1 + $0x1fac] ss:$200 sps:$4 sm:$0xff]  }
 0x282   : > { %8691 = vmatpush2.bf16.msra.mxu0 %v14117_v45  ;;  %8776 = vmatprep.subr.bf16.mxu1 %v14122_v53  ;;  %v8358_v4 = vpop.f32.mrf.mxu1 }
 0x283   : > { %8692 = vmatprep.subr.bf16.mxu0 %v14125_v32 }
 0x285   : > { %8777 = vmatpush1.bf16.msra.mxu1 %v14120_v55 }
 0x286   : > { %8693 = vmatpush2.bf16.msra.mxu0 %v14123_v52  ;;  %8778 = vmatprep.subr.bf16.mxu1 %v14128_v43  ;;  %v14162_v52 = vld [vmem:[%s20648_s1 + $0x1fa8] ss:$200 sps:$4 sm:$0xff]  }
 0x287   : > { %8694 = vmatprep.subr.bf16.mxu0 %v14131_v60 }
 0x289   : > { %8779 = vmatpush1.bf16.msra.mxu1 %v14126_v62 }
 0x28a   : > { %8695 = vmatpush2.bf16.msra.mxu0 %v14129_v7  ;;  %8780 = vmatprep.subr.bf16.mxu1 %v14134_v36  ;;  %v14170_v7 = vld [vmem:[%s20648_s1 + $0x1e1c] ss:$200 sps:$4 sm:$0xff]  }
 0x28b   : > { %8696 = vmatprep.subr.bf16.mxu0 %v14137_v37 }
 0x28d   : > { %8781 = vmatpush1.bf16.msra.mxu1 %v14132_v59 }
 0x28e   : > { %8697 = vmatpush2.bf16.msra.mxu0 %v14135_v0  ;;  %8782 = vmatprep.subr.bf16.mxu1 %v14140_v58 }
 0x28f   : > { %8819 = vmatprep.subr.bf16.mxu0 %v14146_v10  ;;  %v14159_v10 = vld [vmem:[%s20648_s1 + $0x1328] ss:$200 sps:$4 sm:$0xff]  }
 0x291   : > { %v8292_v9 = vpop.f32.mrf.mxu0  ;;  %8699 = vmatmul.mubr.bf16.vlgmr.msra.gmra.mxu0 %v15529_v34  ;;  %8783 = vmatpush1.bf16.msra.mxu1 %v14138_v8  ;;  %v14168_v8 = vld [vmem:[%s20648_s1 + $0x1e18] ss:$200 sps:$4 sm:$0xff]  }
 0x292   : > { %v8344_v16 = vadd.f32 %v17800_v23, %v8292_v9  ;;  %8820 = vmatpush1.bf16.msra.mxu0 %v14144_v54  ;;  %8784 = vmatprep.subr.bf16.mxu1 %v14143_v14  ;;  %v14176_v9 = vld [vmem:[%s20648_s1 + $0x1c8c] ss:$200 sps:$4 sm:$0xff]  }
 0x293   : > { %v8294_v21 = vpop.f32.mrf.mxu0  ;;  %8821 = vmatprep.subr.bf16.mxu0 %v14152_v51  ;;  %8708 = vmatprep.mubr.bf16.mxu0 %v15550_v47 }
 0x294   : > { %v10272_v28 = vsub.f32 %v8344_v16, %v10073_v15  ;;  %v8346_v23 = vadd.f32 %v17809_v42, %v8294_v21 }
 0x295   : > { %v8296_v38 = vpop.f32.mrf.mxu0  ;;  %8785 = vmatpush2.bf16.msra.mxu1 %v14141_v44 }
 0x296   : > { %v10429_v17 = vmul.f32 %v10272_v28, %v10272_v28  ;;  %v10273_v40 = vsub.f32 %v8346_v23, %v17917_v20  ;;  %v8348_v42 = vadd.f32 %v17819_v22, %v8296_v38  ;;  %8822 = vmatpush1.bf16.msra.mxu0 %v14150_v11  ;;  %8786 = vmatprep.subr.bf16.mxu1 %v14149_v24  ;;  %v14153_v22 = vld [vmem:[%s20648_s1 + $0x14b8] ss:$200 sps:$4 sm:$0xff]   ;;  %v14167_v11 = vld [vmem:[%s20648_s1 + $0x119c] ss:$200 sps:$4 sm:$0xff]  }
 0x297   : > { %v8298_v26 = vpop.f32.mrf.mxu0  ;;  %8823 = vmatprep.subr.bf16.mxu0 %v14158_v13  ;;  %v14165_v24 = vld [vmem:[%s20648_s1 + $0x1198] ss:$200 sps:$4 sm:$0xff]   ;;  %v14174_v13 = vld [vmem:[%s20648_s1 + $0x1c88] ss:$200 sps:$4 sm:$0xff]  }
 0x298   : > { %v10836_v45 = vmul.f32 %v17927_v5, %v10429_v17  ;;  %v10430_v53 = vmul.f32 %v10273_v40, %v10273_v40  ;;  %v10322_v32 = vsub.f32 %v8348_v42, %v10073_v15  ;;  %v8350_v55 = vadd.f32 %v17827_v30, %v8298_v26  ;;  %v14161_v30 = vld [vmem:[%s20648_s1 + $0x132c] ss:$200 sps:$4 sm:$0xff]   ;;  %v14180_v17 = vld [vmem:[%s20648_s1 + $0x1af8] ss:$200 sps:$4 sm:$0xff]   ;;  %v14179_v42 = vld [vmem:[%s20648_s1 + $0xe7c] ss:$200 sps:$4 sm:$0xff]  }
 0x299   : > { %v8302_v49 = vpop.f32.mrf.mxu0  ;;  %8709 = vmatmul.mubr.bf16.gmra.mxu0 %v15531_v35  ;;  %8787 = vmatpush2.bf16.msra.mxu1 %v14147_v25  ;;  %v14177_v26 = vld [vmem:[%s20648_s1 + $0xe78] ss:$200 sps:$4 sm:$0xff]  }
 0x29a   : > { %v11002_v43 = vmul.f32 1.442695, %v10836_v45  ;;  %v10837_v60 = vmul.f32 %v17939_v29, %v10430_v53  ;;  %v10479_v4 = vmul.f32 %v10322_v32, %v10322_v32  ;;  %v10323_v62 = vsub.f32 %v8350_v55, %v17917_v20  ;;  %8824 = vmatpush1.bf16.msra.mxu0 %v14156_v18  ;;  %8788 = vmatprep.subr.bf16.mxu1 %v14155_v31  ;;  %v14182_v18 = vld [vmem:[%s20648_s1 + $0x1afc] ss:$200 sps:$4 sm:$0xff]   ;;  %v14186_v31 = vld [vmem:[%s20648_s1 + $0x1968] ss:$200 sps:$4 sm:$0xff]  }
 0x29b   : > { %8825 = vmatprep.subr.bf16.mxu0 %v14164_v48  ;;  %v8304_v36 = vpop.f32.mrf.mxu0  ;;  %v8354_v37 = vadd.f32 %v17835_v19, %v8302_v49  ;;  %8851 = vmatprep.mubr.bf16.mxu0 %v15375_v2  ;;  %v14185_v53 = vld [vmem:[%s20648_s1 + $0xcec] ss:$200 sps:$4 sm:$0xff]   ;;  %v14183_v55 = vld [vmem:[%s20648_s1 + $0xce8] ss:$200 sps:$4 sm:$0xff]  }
 0x29c   : > { %15077 = vpow2.f32 %v11002_v43  ;;  %v11004_v59 = vmul.f32 1.442695, %v10837_v60  ;;  %v10886_v0 = vmul.f32 %v17927_v5, %v10479_v4  ;;  %v10480_v58 = vmul.f32 %v10323_v62, %v10323_v62  ;;  %v14191_v32 = vld [vmem:[%s20648_s1 + $0xb64] ss:$200 sps:$4 sm:$0xff]   ;;  %v14197_v60 = vld [vmem:[%s20648_s1 + $0x9d4] ss:$200 sps:$4 sm:$0xff]  }
 0x29d   : > { %v8306_v54 = vpop.f32.mrf.mxu0  ;;  %v10372_v14 = vsub.f32 %v8354_v37, %v10073_v15  ;;  %v8356_v51 = vadd.f32 %v17844_v12, %v8304_v36  ;;  %8789 = vmatpush2.bf16.msra.mxu1 %v14153_v22  ;;  %v14189_v22 = vld [vmem:[%s20648_s1 + $0xb60] ss:$200 sps:$4 sm:$0xff]   ;;  %v14194_v43 = vld [vmem:[%s20648_s1 + $0x2464] ss:$200 sps:$4 sm:$0xff]   ;;  %v14195_v62 = vld [vmem:[%s20648_s1 + $0x9d0] ss:$200 sps:$4 sm:$0xff]  }
 0x29e   : > { %15079 = vpow2.f32 %v11004_v59  ;;  %v11102_v19 = vmul.f32 1.442695, %v10886_v0  ;;  %v10887_v44 = vmul.f32 %v17939_v29, %v10480_v58  ;;  %8826 = vmatpush1.bf16.msra.mxu0 %v14162_v52  ;;  %8790 = vmatprep.subr.bf16.mxu1 %v14161_v30  ;;  %v14192_v4 = vld [vmem:[%s20648_s1 + $0x2460] ss:$200 sps:$4 sm:$0xff]   ;;  %v14200_v37 = vld [vmem:[%s20648_s1 + $0x22d4] ss:$200 sps:$4 sm:$0xff]   ;;  %v18054_v58 = vrot.slane %v17889_v1, %v16441_v27 }
 0x29f   : > { %8827 = vmatprep.subr.bf16.mxu0 %v14170_v7  ;;  %v10529_v16 = vmul.f32 %v10372_v14, %v10372_v14  ;;  %v8307_v15 = vpop.f32.mrf.mxu0  ;;  %v10373_v12 = vsub.f32 %v8356_v51, %v17917_v20  ;;  %v14173_v20 = vld [vmem:[%s20648_s1 + $0x100c] ss:$200 sps:$4 sm:$0xff]   ;;  %v18061_v14 = vrot.slane %v17889_v1, %v16451_v41  ;;  %v14198_v51 = vld [vmem:[%s20648_s1 + $0x22d0] ss:$200 sps:$4 sm:$0xff]  }
 0x2a0   : > { %15081 = vpow2.f32 %v11102_v19  ;;  %v11104_v21 = vmul.f32 1.442695, %v10887_v44  ;;  %v14203_v59 = vld [vmem:[%s20648_s1 + $0x844] ss:$200 sps:$4 sm:$0xff]   ;;  %v14201_v19 = vld [vmem:[%s20648_s1 + $0x840] ss:$200 sps:$4 sm:$0xff]  }
 0x2a1   : > { %v10936_v28 = vmul.f32 %v17927_v5, %v10529_v16  ;;  %v10530_v23 = vmul.f32 %v10373_v12, %v10373_v12  ;;  %8791 = vmatpush2.bf16.msra.mxu1 %v14159_v10  ;;  %v14171_v5 = vld [vmem:[%s20648_s1 + $0x1008] ss:$200 sps:$4 sm:$0xff]   ;;  %v14209_v16 = vld [vmem:[%s20648_s1 + $0x6b4] ss:$200 sps:$4 sm:$0xff]   ;;  %v18078_v12 = vrot.slane %v17900_v56, %v16441_v27 }
 0x2a2   : > { %15083 = vpow2.f32 %v11104_v21  ;;  %8828 = vmatpush1.bf16.msra.mxu0 %v14168_v8  ;;  %8792 = vmatprep.subr.bf16.mxu1 %v14167_v11 }
 0x2a3   : > { %8829 = vmatprep.subr.bf16.mxu0 %v14176_v9  ;;  %v11202_v25 = vmul.f32 1.442695, %v10936_v28  ;;  %v10937_v38 = vmul.f32 %v17939_v29, %v10530_v23  ;;  %v14188_v29 = vld [vmem:[%s20648_s1 + $0x196c] ss:$200 sps:$4 sm:$0xff]  }
 0x2a4   : > { %v14206_v9 = vld [vmem:[%s20648_s1 + $0x2144] ss:$200 sps:$4 sm:$0xff]  }
 0x2a5   : > { %15085 = vpow2.f32 %v11202_v25  ;;  %v11204_v40 = vmul.f32 1.442695, %v10937_v38  ;;  %8793 = vmatpush2.bf16.msra.mxu1 %v14165_v24  ;;  %v18083_v24 = vrot.slane %v17900_v56, %v16451_v41  ;;  %v14207_v38 = vld [vmem:[%s20648_s1 + $0x6b0] ss:$200 sps:$4 sm:$0xff]  }
 0x2a6   : > { %8830 = vmatpush1.bf16.msra.mxu0 %v14174_v13  ;;  %8794 = vmatprep.subr.bf16.mxu1 %v14173_v20 }
 0x2a7   : > { %8831 = vmatprep.subr.bf16.mxu0 %v14182_v18  ;;  %15087 = vpow2.f32 %v11204_v40  ;;  %v14204_v18 = vld [vmem:[%s20648_s1 + $0x2140] ss:$200 sps:$4 sm:$0xff]   ;;  %v14215_v40 = vld [vmem:[%s20648_s1 + $0x524] ss:$200 sps:$4 sm:$0xff]  }
 0x2a9   : > { %v15078_v48 = vpop.eup %15077  ;;  %8795 = vmatpush2.bf16.msra.mxu1 %v14171_v5 }
 0x2aa   : > { %11286 = vst [vmem:[%s16416_s10 + $0x80] sm:$0xff] %v15078_v48  ;;  %8832 = vmatpush1.bf16.msra.mxu0 %v14180_v17  ;;  %8796 = vmatprep.subr.bf16.mxu1 %v14179_v42  ;;  %v14212_v17 = vld [vmem:[%s20648_s1 + $0x1fb4] ss:$200 sps:$4 sm:$0xff]  }
 0x2ab   : > { %v15080_v45 = vpop.eup %15079  ;;  %8833 = vmatprep.subr.bf16.mxu0 %v14188_v29 }
 0x2ac   : > { %11287 = vst [vmem:[%s16416_s10 + $0x88] sm:$0xff] %v15080_v45 }
 0x2ad   : > { %v15082_v52 = vpop.eup %15081  ;;  %8797 = vmatpush2.bf16.msra.mxu1 %v14177_v26 }
 0x2ae   : > { %11336 = vst [vmem:[%s16416_s10 + $0x210] sm:$0xff] %v15082_v52  ;;  %8834 = vmatpush1.bf16.msra.mxu0 %v14186_v31  ;;  %8798 = vmatprep.subr.bf16.mxu1 %v14185_v53 }
 0x2af   : > { %v15084_v49 = vpop.eup %15083  ;;  %8870 = vmatprep.subr.bf16.mxu0 %v14191_v32 }
 0x2b0   : > { %11337 = vst [vmem:[%s16416_s10 + $0x218] sm:$0xff] %v15084_v49  ;;  %v14210_v49 = vld [vmem:[%s20648_s1 + $0x1fb0] ss:$200 sps:$4 sm:$0xff]  }
 0x2b1   : > { %v8445_v30 = vpop.f32.mrf.mxu0  ;;  %8852 = vmatmul.mubr.bf16.vlgmr.msra.gmra.mxu0 %v15568_v57  ;;  %8799 = vmatpush2.bf16.msra.mxu1 %v14183_v55 }
 0x2b2   : > { %v15086_v7 = vpop.eup %15085  ;;  %8871 = vmatpush1.bf16.msra.mxu0 %v14189_v22  ;;  %8921 = vmatprep.subr.bf16.mxu1 %v14194_v43  ;;  %v14213_v43 = vld [vmem:[%s20648_s1 + $0x520] ss:$200 sps:$4 sm:$0xff]  }
 0x2b3   : > { %11386 = vst [vmem:[%s16416_s10 + $0x3a0] sm:$0xff] %v15086_v7  ;;  %v8447_v36 = vpop.f32.mrf.mxu0  ;;  %8872 = vmatprep.subr.bf16.mxu0 %v14197_v60  ;;  %8861 = vmatprep.mubr.bf16.mxu0 %v15375_v2  ;;  %v14218_v60 = vld [vmem:[%s20648_s1 + $0x1e24] ss:$200 sps:$4 sm:$0xff]  }
 0x2b4   : > { %v15088_v0 = vpop.eup %15087  ;;  %v8394_v10 = vpop.f32.mrf.mxu1  ;;  %8801 = vmatmul.mubr.bf16.vlgmr.msra.gmra.mxu1 %v15529_v34 }
 0x2b5   : > { %11387 = vst [vmem:[%s16416_s10 + $0x3a8] sm:$0xff] %v15088_v0  ;;  %v8449_v8 = vpop.f32.mrf.mxu0  ;;  %v8446_v54 = vadd.f32 %v8445_v30, %v8394_v10  ;;  %8922 = vmatpush1.bf16.msra.mxu1 %v14192_v4  ;;  %8810 = vmatprep.mubr.bf16.mxu1 %v15550_v47  ;;  %v14221_v4 = vld [vmem:[%s20648_s1 + $0x394] ss:$200 sps:$4 sm:$0xff]  }
 0x2b6   : > { %8873 = vmatpush1.bf16.msra.mxu0 %v14195_v62  ;;  %v8396_v44 = vpop.f32.mrf.mxu1  ;;  %8923 = vmatprep.subr.bf16.mxu1 %v14200_v37 }
 0x2b7   : > { %v8451_v11 = vpop.f32.mrf.mxu0  ;;  %8874 = vmatprep.subr.bf16.mxu0 %v14203_v59  ;;  %v10274_v15 = vsub.f32 %v8446_v54, %v18054_v58  ;;  %v8448_v21 = vadd.f32 %v8447_v36, %v8396_v44  ;;  %v14219_v44 = vld [vmem:[%s20648_s1 + $0x390] ss:$200 sps:$4 sm:$0xff]  }
 0x2b8   : > { %v8398_v13 = vpop.f32.mrf.mxu1 }
 0x2b9   : > { %v8455_v28 = vpop.f32.mrf.mxu0  ;;  %8862 = vmatmul.mubr.bf16.gmra.mxu0 %v15593_v3  ;;  %v10431_v23 = vmul.f32 %v10274_v15, %v10274_v15  ;;  %v10275_v20 = vsub.f32 %v8448_v21, %v18061_v14  ;;  %v8450_v25 = vadd.f32 %v8449_v8, %v8398_v13  ;;  %8924 = vmatpush1.bf16.msra.mxu1 %v14198_v51 }
 0x2ba   : > { %8875 = vmatpush1.bf16.msra.mxu0 %v14201_v19  ;;  %v8400_v5 = vpop.f32.mrf.mxu1  ;;  %8925 = vmatprep.subr.bf16.mxu1 %v14206_v9  ;;  %v14216_v19 = vld [vmem:[%s20648_s1 + $0x1e20] ss:$200 sps:$4 sm:$0xff]  }
 0x2bb   : > { %8876 = vmatprep.subr.bf16.mxu0 %v14209_v16  ;;  %v8457_v42 = vpop.f32.mrf.mxu0  ;;  %v10838_v29 = vmul.f32 %v18078_v12, %v10431_v23  ;;  %v10432_v26 = vmul.f32 %v10275_v20, %v10275_v20  ;;  %v10324_v31 = vsub.f32 %v8450_v25, %v18054_v58  ;;  %v8452_v48 = vadd.f32 %v8451_v11, %v8400_v5  ;;  %v14227_v11 = vld [vmem:[%s20648_s1 + $0x204] ss:$200 sps:$4 sm:$0xff]   ;;  %v14222_v23 = vld [vmem:[%s20648_s1 + $0x1c90] ss:$200 sps:$4 sm:$0xff]   ;;  %v14225_v20 = vld [vmem:[%s20648_s1 + $0x200] ss:$200 sps:$4 sm:$0xff]  }
 0x2bc   : > { %8902 = vmatprep.mubr.bf16.mxu0 %v15548_v46  ;;  %8811 = vmatmul.mubr.bf16.gmra.mxu1 %v15531_v35  ;;  %v8404_v45 = vpop.f32.mrf.mxu1  ;;  %v14228_v5 = vld [vmem:[%s20648_s1 + $0x1b00] ss:$200 sps:$4 sm:$0xff]  }
 0x2bd   : > { %v8459_v53 = vpop.f32.mrf.mxu0  ;;  %v11006_v32 = vmul.f32 1.442695, %v10838_v29  ;;  %v10839_v55 = vmul.f32 %v18083_v24, %v10432_v26  ;;  %v10481_v22 = vmul.f32 %v10324_v31, %v10324_v31  ;;  %v10325_v52 = vsub.f32 %v8452_v48, %v18061_v14  ;;  %8926 = vmatpush1.bf16.msra.mxu1 %v14204_v18  ;;  %8953 = vmatprep.mubr.bf16.mxu1 %v15375_v2  ;;  %v14234_v29 = vld [vmem:[%s20648_s1 + $0x1970] ss:$200 sps:$4 sm:$0xff]   ;;  %v14237_v26 = vld [vmem:[%s20648_s1 + $0x17e0] ss:$200 sps:$4 sm:$0xff]  }
 0x2be   : > { %8877 = vmatpush1.bf16.msra.mxu0 %v14207_v38  ;;  %8927 = vmatprep.subr.bf16.mxu1 %v14212_v17  ;;  %v8456_v62 = vadd.f32 %v8455_v28, %v8404_v45  ;;  %v8406_v30 = vpop.f32.mrf.mxu1  ;;  %v14231_v17 = vld [vmem:[%s20648_s1 + $0x70] ss:$200 sps:$4 sm:$0xff]   ;;  %v14242_v48 = vld [vmem:[%s20648_s1 + $0xb6c] ss:$200 sps:$4 sm:$0xff]  }
 0x2bf   : > { %8878 = vmatprep.subr.bf16.mxu0 %v14215_v40  ;;  %v8460_v7 = vpop.f32.mrf.mxu0  ;;  %15089 = vpow2.f32 %v11006_v32  ;;  %v11008_v36 = vmul.f32 1.442695, %v10839_v55  ;;  %v10888_v37 = vmul.f32 %v18078_v12, %v10481_v22  ;;  %v10482_v59 = vmul.f32 %v10325_v52, %v10325_v52  ;;  %v14236_v40 = vld [vmem:[%s20648_s1 + $0x1974] ss:$200 sps:$4 sm:$0xff]   ;;  %v14240_v32 = vld [vmem:[%s20648_s1 + $0xb68] ss:$200 sps:$4 sm:$0xff]  }
 0x2c0   : > { %v10374_v0 = vsub.f32 %v8456_v62, %v18054_v58  ;;  %v8458_v10 = vadd.f32 %v8457_v42, %v8406_v30  ;;  %v8408_v8 = vpop.f32.mrf.mxu1  ;;  %v14224_v58 = vld [vmem:[%s20648_s1 + $0x1c94] ss:$200 sps:$4 sm:$0xff]   ;;  %v14243_v55 = vld [vmem:[%s20648_s1 + $0x1650] ss:$200 sps:$4 sm:$0xff]   ;;  %v14249_v62 = vld [vmem:[%s20648_s1 + $0x14c0] ss:$200 sps:$4 sm:$0xff]  }
 0x2c1   : > { %15091 = vpow2.f32 %v11008_v36  ;;  %v11106_v54 = vmul.f32 1.442695, %v10888_v37  ;;  %v10889_v51 = vmul.f32 %v18083_v24, %v10482_v59  ;;  %8928 = vmatpush1.bf16.msra.mxu1 %v14210_v49  ;;  %v14245_v45 = vld [vmem:[%s20648_s1 + $0x1654] ss:$200 sps:$4 sm:$0xff]   ;;  %v14251_v49 = vld [vmem:[%s20648_s1 + $0x14c4] ss:$200 sps:$4 sm:$0xff]  }
 0x2c2   : > { %8879 = vmatpush1.bf16.msra.mxu0 %v14213_v43  ;;  %8929 = vmatprep.subr.bf16.mxu1 %v14218_v60  ;;  %v10531_v9 = vmul.f32 %v10374_v0, %v10374_v0  ;;  %v10375_v16 = vsub.f32 %v8458_v10, %v18061_v14  ;;  %v8409_v15 = vpop.f32.mrf.mxu1  ;;  %v14230_v14 = vld [vmem:[%s20648_s1 + $0x1b04] ss:$200 sps:$4 sm:$0xff]   ;;  %v14257_v7 = vld [vmem:[%s20648_s1 + $0x1334] ss:$200 sps:$4 sm:$0xff]   ;;  %v14252_v0 = vld [vmem:[%s20648_s1 + $0x848] ss:$200 sps:$4 sm:$0xff]  }
 0x2c3   : > { %8880 = vmatprep.subr.bf16.mxu0 %v14221_v4  ;;  %15093 = vpow2.f32 %v11106_v54  ;;  %v11108_v21 = vmul.f32 1.442695, %v10889_v51  ;;  %v14248_v52 = vld [vmem:[%s20648_s1 + $0x9dc] ss:$200 sps:$4 sm:$0xff]   ;;  %v14246_v4 = vld [vmem:[%s20648_s1 + $0x9d8] ss:$200 sps:$4 sm:$0xff]  }
 0x2c4   : > { %v10938_v13 = vmul.f32 %v18078_v12, %v10531_v9  ;;  %v10532_v28 = vmul.f32 %v10375_v16, %v10375_v16  ;;  %v14233_v12 = vld [vmem:[%s20648_s1 + $0x74] ss:$200 sps:$4 sm:$0xff]   ;;  %v14255_v10 = vld [vmem:[%s20648_s1 + $0x1330] ss:$200 sps:$4 sm:$0xff]   ;;  %v14263_v54 = vld [vmem:[%s20648_s1 + $0x11a4] ss:$200 sps:$4 sm:$0xff]  }
 0x2c5   : > { %15095 = vpow2.f32 %v11108_v21  ;;  %8930 = vmatpush1.bf16.msra.mxu1 %v14216_v19  ;;  %v14254_v30 = vld [vmem:[%s20648_s1 + $0x84c] ss:$200 sps:$4 sm:$0xff]   ;;  %v14260_v8 = vld [vmem:[%s20648_s1 + $0x6bc] ss:$200 sps:$4 sm:$0xff]   ;;  %v14264_v21 = vld [vmem:[%s20648_s1 + $0x528] ss:$200 sps:$4 sm:$0xff]  }
 0x2c6   : > { %8881 = vmatpush1.bf16.msra.mxu0 %v14219_v44  ;;  %8931 = vmatprep.subr.bf16.mxu1 %v14224_v58  ;;  %v11206_v25 = vmul.f32 1.442695, %v10938_v13  ;;  %v10939_v18 = vmul.f32 %v18083_v24, %v10532_v28  ;;  %v14239_v24 = vld [vmem:[%s20648_s1 + $0x17e4] ss:$200 sps:$4 sm:$0xff]   ;;  %v14258_v44 = vld [vmem:[%s20648_s1 + $0x6b8] ss:$200 sps:$4 sm:$0xff]  }
 0x2c7   : > { %8882 = vmatprep.subr.bf16.mxu0 %v14227_v11  ;;  %v14261_v58 = vld [vmem:[%s20648_s1 + $0x11a0] ss:$200 sps:$4 sm:$0xff]   ;;  %v14266_v11 = vld [vmem:[%s20648_s1 + $0x52c] ss:$200 sps:$4 sm:$0xff]   ;;  %v14267_v13 = vld [vmem:[%s20648_s1 + $0x1010] ss:$200 sps:$4 sm:$0xff]  }
 0x2c8   : > { %15097 = vpow2.f32 %v11206_v25  ;;  %v11208_v38 = vmul.f32 1.442695, %v10939_v18  ;;  %v14269_v9 = vld [vmem:[%s20648_s1 + $0x1014] ss:$200 sps:$4 sm:$0xff]  }
 0x2c9   : > { %8932 = vmatpush1.bf16.msra.mxu1 %v14222_v23  ;;  %v14272_v28 = vld [vmem:[%s20648_s1 + $0x39c] ss:$200 sps:$4 sm:$0xff]   ;;  %v14278_v25 = vld [vmem:[%s20648_s1 + $0x20c] ss:$200 sps:$4 sm:$0xff]  }
 0x2ca   : > { %8883 = vmatpush1.bf16.msra.mxu0 %v14225_v20  ;;  %8933 = vmatprep.subr.bf16.mxu1 %v14230_v14  ;;  %15099 = vpow2.f32 %v11208_v38  ;;  %v14275_v23 = vld [vmem:[%s20648_s1 + $0xe84] ss:$200 sps:$4 sm:$0xff]   ;;  %v14270_v14 = vld [vmem:[%s20648_s1 + $0x398] ss:$200 sps:$4 sm:$0xff]   ;;  %v14281_v18 = vld [vmem:[%s20648_s1 + $0xcf4] ss:$200 sps:$4 sm:$0xff]  }
 0x2cb   : > { %8884 = vmatprep.subr.bf16.mxu0 %v14233_v12  ;;  %v14273_v12 = vld [vmem:[%s20648_s1 + $0xe80] ss:$200 sps:$4 sm:$0xff]  }
 0x2cc   : > { %v15090_v42 = vpop.eup %15089  ;;  %v14276_v38 = vld [vmem:[%s20648_s1 + $0x208] ss:$200 sps:$4 sm:$0xff]  }
 0x2cd   : > { %11288 = vst [vmem:[%s16416_s10 + $0x90] sm:$0xff] %v15090_v42  ;;  %8934 = vmatpush1.bf16.msra.mxu1 %v14228_v5  ;;  %v14279_v5 = vld [vmem:[%s20648_s1 + $0xcf0] ss:$200 sps:$4 sm:$0xff]  }
 0x2ce   : > { %8885 = vmatpush1.bf16.msra.mxu0 %v14231_v17  ;;  %v15092_v31 = vpop.eup %15091  ;;  %8935 = vmatprep.subr.bf16.mxu1 %v14236_v40  ;;  %v14284_v17 = vld [vmem:[%s20648_s1 + $0x7c] ss:$200 sps:$4 sm:$0xff]   ;;  %v14290_v40 = vld [vmem:[%s20648_s1 + $0x246c] ss:$200 sps:$4 sm:$0xff]   ;;  %v14288_v42 = vld [vmem:[%s20648_s1 + $0x2468] ss:$200 sps:$4 sm:$0xff]  }
 0x2cf   : > { %8886 = vmatprep.subr.bf16.mxu0 %v14239_v24  ;;  %11289 = vst [vmem:[%s16416_s10 + $0x98] sm:$0xff] %v15092_v31  ;;  %v14282_v24 = vld [vmem:[%s20648_s1 + $0x78] ss:$200 sps:$4 sm:$0xff]   ;;  %v10089_v31 = vrot.slane %v17889_v1, %v16690_v39 }
 0x2d0   : > { %v15094_v53 = vpop.eup %15093 }
 0x2d1   : > { %11338 = vst [vmem:[%s16416_s10 + $0x220] sm:$0xff] %v15094_v53  ;;  %8936 = vmatpush1.bf16.msra.mxu1 %v14234_v29  ;;  %v14287_v29 = vld [vmem:[%s20648_s1 + $0x17ec] ss:$200 sps:$4 sm:$0xff]   ;;  %v14285_v53 = vld [vmem:[%s20648_s1 + $0x17e8] ss:$200 sps:$4 sm:$0xff]  }
 0x2d2   : > { %8887 = vmatpush2.bf16.msra.mxu0 %v14237_v26  ;;  %v15096_v22 = vpop.eup %15095  ;;  %8972 = vmatprep.subr.bf16.mxu1 %v14242_v48  ;;  %v14296_v26 = vld [vmem:[%s20648_s1 + $0x22dc] ss:$200 sps:$4 sm:$0xff]  }
 0x2d3   : > { %8888 = vmatprep.subr.bf16.mxu0 %v14245_v45  ;;  %11339 = vst [vmem:[%s16416_s10 + $0x228] sm:$0xff] %v15096_v22 }
 0x2d4   : > { %8954 = vmatmul.mubr.bf16.vlgmr.msra.gmra.mxu1 %v15568_v57  ;;  %v18189_v43 = vpop.f32.mrf.mxu1 }
 0x2d5   : > { %v15098_v60 = vpop.eup %15097  ;;  %8973 = vmatpush1.bf16.msra.mxu1 %v14240_v32  ;;  %8963 = vmatprep.mubr.bf16.mxu1 %v15375_v2  ;;  %v18299_v32 = vrot.slane %v17889_v1, %v16696_v6  ;;  %v10653_v1 = vrot.slane %v17900_v56, %v16690_v39 }
 0x2d6   : > { %8889 = vmatpush2.bf16.msra.mxu0 %v14243_v55  ;;  %8974 = vmatprep.subr.bf16.mxu1 %v14248_v52  ;;  %11388 = vst [vmem:[%s16416_s10 + $0x3b0] sm:$0xff] %v15098_v60  ;;  %v18204_v36 = vpop.f32.mrf.mxu1  ;;  %v14294_v55 = vld [vmem:[%s20648_s1 + $0x22d8] ss:$200 sps:$4 sm:$0xff]   ;;  %v14293_v52 = vld [vmem:[%s20648_s1 + $0x165c] ss:$200 sps:$4 sm:$0xff]  }
 0x2d7   : > { %8890 = vmatprep.subr.bf16.mxu0 %v14251_v49  ;;  %v15100_v37 = vpop.eup %15099  ;;  %v14302_v49 = vld [vmem:[%s20648_s1 + $0x214c] ss:$200 sps:$4 sm:$0xff]  }
 0x2d8   : > { %11389 = vst [vmem:[%s16416_s10 + $0x3b8] sm:$0xff] %v15100_v37  ;;  %v18208_v59 = vpop.f32.mrf.mxu1 }
 0x2d9   : > { %8975 = vmatpush1.bf16.msra.mxu1 %v14246_v4  ;;  %v18316_v4 = vrot.slane %v17900_v56, %v16696_v6  ;;  %v14299_v56 = vld [vmem:[%s20648_s1 + $0x14cc] ss:$200 sps:$4 sm:$0xff]  }
 0x2da   : > { %8891 = vmatpush2.bf16.msra.mxu0 %v14249_v62  ;;  %8976 = vmatprep.subr.bf16.mxu1 %v14254_v30  ;;  %v18222_v51 = vpop.f32.mrf.mxu1 }
 0x2db   : > { %8892 = vmatprep.subr.bf16.mxu0 %v14257_v7 }
 0x2dc   : > { %v18224_v19 = vpop.f32.mrf.mxu1  ;;  %8964 = vmatmul.mubr.bf16.gmra.mxu1 %v15593_v3 }
 0x2dd   : > { %8977 = vmatpush1.bf16.msra.mxu1 %v14252_v0  ;;  %9004 = vmatprep.mubr.bf16.mxu1 %v15548_v46  ;;  %v14291_v0 = vld [vmem:[%s20648_s1 + $0x1658] ss:$200 sps:$4 sm:$0xff]  }
 0x2de   : > { %8893 = vmatpush2.bf16.msra.mxu0 %v14255_v10  ;;  %8978 = vmatprep.subr.bf16.mxu1 %v14260_v8  ;;  %v18239_v16 = vpop.f32.mrf.mxu1 }
 0x2df   : > { %8894 = vmatprep.subr.bf16.mxu0 %v14263_v54 }
 0x2e0   : > { %v8561_v15 = vpop.f32.mrf.mxu1 }
 0x2e1   : > { %8979 = vmatpush1.bf16.msra.mxu1 %v14258_v44 }
 0x2e2   : > { %8895 = vmatpush2.bf16.msra.mxu0 %v14261_v58  ;;  %8980 = vmatprep.subr.bf16.mxu1 %v14266_v11  ;;  %v8562_v20 = vpop.f32.mrf.mxu1 }
 0x2e3   : > { %8896 = vmatprep.subr.bf16.mxu0 %v14269_v9  ;;  %v14314_v20 = vld [vmem:[%s20648_s1 + $0x1e2c] ss:$200 sps:$4 sm:$0xff]  }
 0x2e5   : > { %8981 = vmatpush1.bf16.msra.mxu1 %v14264_v21 }
 0x2e6   : > { %8897 = vmatpush2.bf16.msra.mxu0 %v14267_v13  ;;  %8982 = vmatprep.subr.bf16.mxu1 %v14272_v28  ;;  %v14297_v28 = vld [vmem:[%s20648_s1 + $0x14c8] ss:$200 sps:$4 sm:$0xff]  }
 0x2e7   : > { %8898 = vmatprep.subr.bf16.mxu0 %v14275_v23  ;;  %v14306_v23 = vld [vmem:[%s20648_s1 + $0x1fb8] ss:$200 sps:$4 sm:$0xff]  }
 0x2e9   : > { %8983 = vmatpush1.bf16.msra.mxu1 %v14270_v14 }
 0x2ea   : > { %8899 = vmatpush2.bf16.msra.mxu0 %v14273_v12  ;;  %8984 = vmatprep.subr.bf16.mxu1 %v14278_v25 }
 0x2eb   : > { %8900 = vmatprep.subr.bf16.mxu0 %v14281_v18 }
 0x2ed   : > { %8985 = vmatpush1.bf16.msra.mxu1 %v14276_v38 }
 0x2ee   : > { %8901 = vmatpush2.bf16.msra.mxu0 %v14279_v5  ;;  %8986 = vmatprep.subr.bf16.mxu1 %v14284_v17 }
 0x2ef   : > { %9023 = vmatprep.subr.bf16.mxu0 %v14290_v40 }
 0x2f1   : > { %v8496_v48 = vpop.f32.mrf.mxu0  ;;  %8903 = vmatmul.mubr.bf16.vlgmr.msra.gmra.mxu0 %v15529_v34  ;;  %8987 = vmatpush1.bf16.msra.mxu1 %v14282_v24 }
 0x2f2   : > { %v8548_v45 = vadd.f32 %v18189_v43, %v8496_v48  ;;  %9024 = vmatpush1.bf16.msra.mxu0 %v14288_v42  ;;  %8988 = vmatprep.subr.bf16.mxu1 %v14287_v29  ;;  %v14303_v29 = vld [vmem:[%s20648_s1 + $0x1338] ss:$200 sps:$4 sm:$0xff]  }
 0x2f3   : > { %v8498_v22 = vpop.f32.mrf.mxu0  ;;  %9025 = vmatprep.subr.bf16.mxu0 %v14296_v26  ;;  %8912 = vmatprep.mubr.bf16.mxu0 %v15550_v47  ;;  %v14311_v26 = vld [vmem:[%s20648_s1 + $0x11ac] ss:$200 sps:$4 sm:$0xff]  }
 0x2f4   : > { %v10276_v43 = vsub.f32 %v8548_v45, %v10089_v31  ;;  %v8550_v60 = vadd.f32 %v18204_v36, %v8498_v22  ;;  %v14300_v36 = vld [vmem:[%s20648_s1 + $0x2148] ss:$200 sps:$4 sm:$0xff]  }
 0x2f5   : > { %v8500_v62 = vpop.f32.mrf.mxu0  ;;  %8989 = vmatpush2.bf16.msra.mxu1 %v14285_v53 }
 0x2f6   : > { %v10433_v30 = vmul.f32 %v10276_v43, %v10276_v43  ;;  %v10277_v7 = vsub.f32 %v8550_v60, %v18299_v32  ;;  %v8552_v37 = vadd.f32 %v18208_v59, %v8500_v62  ;;  %9026 = vmatpush1.bf16.msra.mxu0 %v14294_v55  ;;  %8990 = vmatprep.subr.bf16.mxu1 %v14293_v52  ;;  %v14308_v59 = vld [vmem:[%s20648_s1 + $0x1fbc] ss:$200 sps:$4 sm:$0xff]   ;;  %v14309_v52 = vld [vmem:[%s20648_s1 + $0x11a8] ss:$200 sps:$4 sm:$0xff]  }
 0x2f7   : > { %v8502_v10 = vpop.f32.mrf.mxu0  ;;  %9027 = vmatprep.subr.bf16.mxu0 %v14302_v49  ;;  %v14318_v49 = vld [vmem:[%s20648_s1 + $0x1c98] ss:$200 sps:$4 sm:$0xff]  }
 0x2f8   : > { %v10840_v8 = vmul.f32 %v10653_v1, %v10433_v30  ;;  %v10434_v54 = vmul.f32 %v10277_v7, %v10277_v7  ;;  %v10326_v44 = vsub.f32 %v8552_v37, %v10089_v31  ;;  %v8554_v58 = vadd.f32 %v18222_v51, %v8502_v10  ;;  %v14305_v51 = vld [vmem:[%s20648_s1 + $0x133c] ss:$200 sps:$4 sm:$0xff]   ;;  %v14315_v30 = vld [vmem:[%s20648_s1 + $0x1018] ss:$200 sps:$4 sm:$0xff]   ;;  %v14324_v7 = vld [vmem:[%s20648_s1 + $0x1b08] ss:$200 sps:$4 sm:$0xff]  }
 0x2f9   : > { %v8506_v11 = vpop.f32.mrf.mxu0  ;;  %8913 = vmatmul.mubr.bf16.gmra.mxu0 %v15531_v35  ;;  %8991 = vmatpush2.bf16.msra.mxu1 %v14291_v0  ;;  %v14323_v37 = vld [vmem:[%s20648_s1 + $0xe8c] ss:$200 sps:$4 sm:$0xff]   ;;  %v14330_v10 = vld [vmem:[%s20648_s1 + $0x1978] ss:$200 sps:$4 sm:$0xff]  }
 0x2fa   : > { %v11010_v9 = vmul.f32 1.442695, %v10840_v8  ;;  %v10841_v15 = vmul.f32 %v18316_v4, %v10434_v54  ;;  %v10483_v21 = vmul.f32 %v10326_v44, %v10326_v44  ;;  %v10327_v13 = vsub.f32 %v8554_v58, %v18299_v32  ;;  %9028 = vmatpush1.bf16.msra.mxu0 %v14300_v36  ;;  %8992 = vmatprep.subr.bf16.mxu1 %v14299_v56  ;;  %v14321_v36 = vld [vmem:[%s20648_s1 + $0xe88] ss:$200 sps:$4 sm:$0xff]   ;;  %v14335_v8 = vld [vmem:[%s20648_s1 + $0xb74] ss:$200 sps:$4 sm:$0xff]  }
 0x2fb   : > { %9029 = vmatprep.subr.bf16.mxu0 %v14308_v59  ;;  %v8508_v14 = vpop.f32.mrf.mxu0  ;;  %v8558_v12 = vadd.f32 %v18224_v19, %v8506_v11  ;;  %9055 = vmatprep.mubr.bf16.mxu0 %v15375_v2  ;;  %v14312_v19 = vld [vmem:[%s20648_s1 + $0x1e28] ss:$200 sps:$4 sm:$0xff]   ;;  %v14329_v59 = vld [vmem:[%s20648_s1 + $0xcfc] ss:$200 sps:$4 sm:$0xff]   ;;  %v14327_v44 = vld [vmem:[%s20648_s1 + $0xcf8] ss:$200 sps:$4 sm:$0xff]  }
 0x2fc   : > { %15101 = vpow2.f32 %v11010_v9  ;;  %v11012_v25 = vmul.f32 1.442695, %v10841_v15  ;;  %v10890_v18 = vmul.f32 %v10653_v1, %v10483_v21  ;;  %v10484_v38 = vmul.f32 %v10327_v13, %v10327_v13  ;;  %v14333_v58 = vld [vmem:[%s20648_s1 + $0xb70] ss:$200 sps:$4 sm:$0xff]   ;;  %v14338_v9 = vld [vmem:[%s20648_s1 + $0x2474] ss:$200 sps:$4 sm:$0xff]  }
 0x2fd   : > { %v8510_v5 = vpop.f32.mrf.mxu0  ;;  %v10376_v17 = vsub.f32 %v8558_v12, %v10089_v31  ;;  %v8560_v40 = vadd.f32 %v18239_v16, %v8508_v14  ;;  %8993 = vmatpush2.bf16.msra.mxu1 %v14297_v28  ;;  %v14320_v16 = vld [vmem:[%s20648_s1 + $0x1c9c] ss:$200 sps:$4 sm:$0xff]   ;;  %v14336_v28 = vld [vmem:[%s20648_s1 + $0x2470] ss:$200 sps:$4 sm:$0xff]  }
 0x2fe   : > { %15103 = vpow2.f32 %v11012_v25  ;;  %v11110_v24 = vmul.f32 1.442695, %v10890_v18  ;;  %v10891_v42 = vmul.f32 %v18316_v4, %v10484_v38  ;;  %9030 = vmatpush1.bf16.msra.mxu0 %v14306_v23  ;;  %8994 = vmatprep.subr.bf16.mxu1 %v14305_v51  ;;  %v14341_v15 = vld [vmem:[%s20648_s1 + $0x9e4] ss:$200 sps:$4 sm:$0xff]   ;;  %v14339_v23 = vld [vmem:[%s20648_s1 + $0x9e0] ss:$200 sps:$4 sm:$0xff]  }
 0x2ff   : > { %9031 = vmatprep.subr.bf16.mxu0 %v14314_v20  ;;  %v10533_v31 = vmul.f32 %v10376_v17, %v10376_v17  ;;  %v8511_v48 = vpop.f32.mrf.mxu0  ;;  %v10377_v45 = vsub.f32 %v8560_v40, %v18299_v32  ;;  %v14317_v32 = vld [vmem:[%s20648_s1 + $0x101c] ss:$200 sps:$4 sm:$0xff]   ;;  %v15285_v25 = vld [vmem:[%s20649_s2 + $0x10] sm:$0xff] }
 0x300   : > { %15105 = vpow2.f32 %v11110_v24  ;;  %v11112_v53 = vmul.f32 1.442695, %v10891_v42  ;;  %v14344_v20 = vld [vmem:[%s20648_s1 + $0x22e4] ss:$200 sps:$4 sm:$0xff]   ;;  %v14347_v14 = vld [vmem:[%s20648_s1 + $0x854] ss:$200 sps:$4 sm:$0xff]   ;;  %v18436_v18 = vrot.slane %v15285_v25, %v16848_v50  ;;  %v18442_v40 = vrot.slane %v15285_v25, %v16858_v33 }
 0x301   : > { %v10940_v55 = vmul.f32 %v10653_v1, %v10533_v31  ;;  %v10534_v22 = vmul.f32 %v10377_v45, %v10377_v45  ;;  %8995 = vmatpush2.bf16.msra.mxu1 %v14303_v29  ;;  %v14326_v1 = vld [vmem:[%s20648_s1 + $0x1b0c] ss:$200 sps:$4 sm:$0xff]   ;;  %v14342_v24 = vld [vmem:[%s20648_s1 + $0x22e0] ss:$200 sps:$4 sm:$0xff]   ;;  %v14345_v42 = vld [vmem:[%s20648_s1 + $0x850] ss:$200 sps:$4 sm:$0xff]  }
 0x302   : > { %15107 = vpow2.f32 %v11112_v53  ;;  %9032 = vmatpush1.bf16.msra.mxu0 %v14312_v19  ;;  %8996 = vmatprep.subr.bf16.mxu1 %v14311_v26  ;;  %v14350_v26 = vld [vmem:[%s20648_s1 + $0x2154] ss:$200 sps:$4 sm:$0xff]  }
 0x303   : > { %9033 = vmatprep.subr.bf16.mxu0 %v14320_v16  ;;  %v11210_v43 = vmul.f32 1.442695, %v10940_v55  ;;  %v10941_v60 = vmul.f32 %v18316_v4, %v10534_v22  ;;  %v14332_v4 = vld [vmem:[%s20648_s1 + $0x197c] ss:$200 sps:$4 sm:$0xff]   ;;  %v15286_v48 = vld [vmem:[%s20650_s3 + $0x10] sm:$0xff] }
 0x304   : > { %v14353_v16 = vld [vmem:[%s20648_s1 + $0x6c4] ss:$200 sps:$4 sm:$0xff]   ;;  %v18461_v45 = vrot.slane %v15286_v48, %v16848_v50  ;;  %v18465_v55 = vrot.slane %v15286_v48, %v16858_v33 }
 0x305   : > { %15109 = vpow2.f32 %v11210_v43  ;;  %v11212_v62 = vmul.f32 1.442695, %v10941_v60  ;;  %8997 = vmatpush2.bf16.msra.mxu1 %v14309_v52  ;;  %v14351_v60 = vld [vmem:[%s20648_s1 + $0x6c0] ss:$200 sps:$4 sm:$0xff]  }
 0x306   : > { %9034 = vmatpush1.bf16.msra.mxu0 %v14318_v49  ;;  %8998 = vmatprep.subr.bf16.mxu1 %v14317_v32 }
 0x307   : > { %9035 = vmatprep.subr.bf16.mxu0 %v14326_v1  ;;  %15111 = vpow2.f32 %v11212_v62  ;;  %v14348_v1 = vld [vmem:[%s20648_s1 + $0x2150] ss:$200 sps:$4 sm:$0xff]  }
 0x309   : > { %v15102_v0 = vpop.eup %15101  ;;  %8999 = vmatpush2.bf16.msra.mxu1 %v14315_v30  ;;  %v14356_v30 = vld [vmem:[%s20648_s1 + $0x1fc4] ss:$200 sps:$4 sm:$0xff]  }
 0x30a   : > { %11290 = vst [vmem:[%s16416_s10 + $0xa0] sm:$0xff] %v15102_v0  ;;  %9036 = vmatpush1.bf16.msra.mxu0 %v14324_v7  ;;  %9000 = vmatprep.subr.bf16.mxu1 %v14323_v37  ;;  %v14359_v7 = vld [vmem:[%s20648_s1 + $0x534] ss:$200 sps:$4 sm:$0xff]  }
 0x30b   : > { %v15104_v56 = vpop.eup %15103  ;;  %9037 = vmatprep.subr.bf16.mxu0 %v14332_v4 }
 0x30c   : > { %11291 = vst [vmem:[%s16416_s10 + $0xa8] sm:$0xff] %v15104_v56 }
 0x30d   : > { %v15106_v54 = vpop.eup %15105  ;;  %9001 = vmatpush2.bf16.msra.mxu1 %v14321_v36 }
 0x30e   : > { %11340 = vst [vmem:[%s16416_s10 + $0x230] sm:$0xff] %v15106_v54  ;;  %9038 = vmatpush1.bf16.msra.mxu0 %v14330_v10  ;;  %9002 = vmatprep.subr.bf16.mxu1 %v14329_v59 }
 0x30f   : > { %v15108_v11 = vpop.eup %15107  ;;  %9074 = vmatprep.subr.bf16.mxu0 %v14335_v8 }
 0x310   : > { %11341 = vst [vmem:[%s16416_s10 + $0x238] sm:$0xff] %v15108_v11  ;;  %v14354_v11 = vld [vmem:[%s20648_s1 + $0x1fc0] ss:$200 sps:$4 sm:$0xff]  }
 0x311   : > { %v8649_v21 = vpop.f32.mrf.mxu0  ;;  %9056 = vmatmul.mubr.bf16.vlgmr.msra.gmra.mxu0 %v15568_v57  ;;  %9003 = vmatpush2.bf16.msra.mxu1 %v14327_v44 }
 0x312   : > { %v15110_v13 = vpop.eup %15109  ;;  %9075 = vmatpush1.bf16.msra.mxu0 %v14333_v58  ;;  %9125 = vmatprep.subr.bf16.mxu1 %v14338_v9  ;;  %v14357_v9 = vld [vmem:[%s20648_s1 + $0x530] ss:$200 sps:$4 sm:$0xff]  }
 0x313   : > { %11390 = vst [vmem:[%s16416_s10 + $0x3c0] sm:$0xff] %v15110_v13  ;;  %v8651_v51 = vpop.f32.mrf.mxu0  ;;  %9076 = vmatprep.subr.bf16.mxu0 %v14341_v15  ;;  %9065 = vmatprep.mubr.bf16.mxu0 %v15375_v2  ;;  %v14362_v15 = vld [vmem:[%s20648_s1 + $0x1e34] ss:$200 sps:$4 sm:$0xff]  }
 0x314   : > { %v15112_v12 = vpop.eup %15111  ;;  %v8598_v38 = vpop.f32.mrf.mxu1  ;;  %9005 = vmatmul.mubr.bf16.vlgmr.msra.gmra.mxu1 %v15529_v34 }
 0x315   : > { %11391 = vst [vmem:[%s16416_s10 + $0x3c8] sm:$0xff] %v15112_v12  ;;  %v8653_v5 = vpop.f32.mrf.mxu0  ;;  %v8650_v17 = vadd.f32 %v8649_v21, %v8598_v38  ;;  %9126 = vmatpush1.bf16.msra.mxu1 %v14336_v28  ;;  %9014 = vmatprep.mubr.bf16.mxu1 %v15550_v47  ;;  %v14365_v21 = vld [vmem:[%s20648_s1 + $0x3a4] ss:$200 sps:$4 sm:$0xff]  }
 0x316   : > { %9077 = vmatpush1.bf16.msra.mxu0 %v14339_v23  ;;  %v8600_v29 = vpop.f32.mrf.mxu1  ;;  %9127 = vmatprep.subr.bf16.mxu1 %v14344_v20 }
 0x317   : > { %v8655_v19 = vpop.f32.mrf.mxu0  ;;  %9078 = vmatprep.subr.bf16.mxu0 %v14347_v14  ;;  %v10278_v31 = vsub.f32 %v8650_v17, %v18436_v18  ;;  %v8652_v53 = vadd.f32 %v8651_v51, %v8600_v29  ;;  %v14371_v29 = vld [vmem:[%s20648_s1 + $0x214] ss:$200 sps:$4 sm:$0xff]  }
 0x318   : > { %v8602_v22 = vpop.f32.mrf.mxu1 }
 0x319   : > { %v8659_v52 = vpop.f32.mrf.mxu0  ;;  %9066 = vmatmul.mubr.bf16.gmra.mxu0 %v15593_v3  ;;  %v10435_v49 = vmul.f32 %v10278_v31, %v10278_v31  ;;  %v10279_v32 = vsub.f32 %v8652_v53, %v18442_v40  ;;  %v8654_v43 = vadd.f32 %v8653_v5, %v8602_v22  ;;  %9128 = vmatpush1.bf16.msra.mxu1 %v14342_v24  ;;  %v14360_v24 = vld [vmem:[%s20648_s1 + $0x1e30] ss:$200 sps:$4 sm:$0xff]   ;;  %v14366_v22 = vld [vmem:[%s20648_s1 + $0x1ca0] ss:$200 sps:$4 sm:$0xff]  }
 0x31a   : > { %9079 = vmatpush1.bf16.msra.mxu0 %v14345_v42  ;;  %v8604_v62 = vpop.f32.mrf.mxu1  ;;  %9129 = vmatprep.subr.bf16.mxu1 %v14350_v26  ;;  %v14363_v42 = vld [vmem:[%s20648_s1 + $0x3a0] ss:$200 sps:$4 sm:$0xff]  }
 0x31b   : > { %9080 = vmatprep.subr.bf16.mxu0 %v14353_v16  ;;  %v8661_v37 = vpop.f32.mrf.mxu0  ;;  %v10842_v4 = vmul.f32 %v18461_v45, %v10435_v49  ;;  %v10436_v0 = vmul.f32 %v10279_v32, %v10279_v32  ;;  %v10328_v36 = vsub.f32 %v8654_v43, %v18436_v18  ;;  %v8656_v10 = vadd.f32 %v8655_v19, %v8604_v62  ;;  %v14380_v62 = vld [vmem:[%s20648_s1 + $0x1984] ss:$200 sps:$4 sm:$0xff]  }
 0x31c   : > { %9106 = vmatprep.mubr.bf16.mxu0 %v15548_v46  ;;  %9015 = vmatmul.mubr.bf16.gmra.mxu1 %v15531_v35  ;;  %v8608_v56 = vpop.f32.mrf.mxu1 }
 0x31d   : > { %v8663_v59 = vpop.f32.mrf.mxu0  ;;  %v11014_v8 = vmul.f32 1.442695, %v10842_v4  ;;  %v10843_v54 = vmul.f32 %v18465_v55, %v10436_v0  ;;  %v10485_v44 = vmul.f32 %v10328_v36, %v10328_v36  ;;  %v10329_v58 = vsub.f32 %v8656_v10, %v18442_v40  ;;  %9130 = vmatpush1.bf16.msra.mxu1 %v14348_v1  ;;  %9157 = vmatprep.mubr.bf16.mxu1 %v15375_v2  ;;  %v14372_v1 = vld [vmem:[%s20648_s1 + $0x1b10] ss:$200 sps:$4 sm:$0xff]   ;;  %v14386_v0 = vld [vmem:[%s20648_s1 + $0xb7c] ss:$200 sps:$4 sm:$0xff]  }
 0x31e   : > { %9081 = vmatpush1.bf16.msra.mxu0 %v14351_v60  ;;  %9131 = vmatprep.subr.bf16.mxu1 %v14356_v30  ;;  %v8660_v13 = vadd.f32 %v8659_v52, %v8608_v56  ;;  %v8610_v28 = vpop.f32.mrf.mxu1  ;;  %v14369_v52 = vld [vmem:[%s20648_s1 + $0x210] ss:$200 sps:$4 sm:$0xff]   ;;  %v14375_v60 = vld [vmem:[%s20648_s1 + $0x80] ss:$200 sps:$4 sm:$0xff]   ;;  %v14389_v36 = vld [vmem:[%s20648_s1 + $0x1664] ss:$200 sps:$4 sm:$0xff]  }
 0x31f   : > { %9082 = vmatprep.subr.bf16.mxu0 %v14359_v7  ;;  %v8664_v23 = vpop.f32.mrf.mxu0  ;;  %15113 = vpow2.f32 %v11014_v8  ;;  %v11016_v51 = vmul.f32 1.442695, %v10843_v54  ;;  %v10892_v20 = vmul.f32 %v18461_v45, %v10485_v44  ;;  %v10486_v14 = vmul.f32 %v10329_v58, %v10329_v58  ;;  %v14378_v7 = vld [vmem:[%s20648_s1 + $0x1980] ss:$200 sps:$4 sm:$0xff]   ;;  %v14392_v54 = vld [vmem:[%s20648_s1 + $0x9ec] ss:$200 sps:$4 sm:$0xff]  }
 0x320   : > { %v10378_v12 = vsub.f32 %v8660_v13, %v18436_v18  ;;  %v8662_v25 = vadd.f32 %v8661_v37, %v8610_v28  ;;  %v8612_v38 = vpop.f32.mrf.mxu1  ;;  %v14368_v18 = vld [vmem:[%s20648_s1 + $0x1ca4] ss:$200 sps:$4 sm:$0xff]   ;;  %v14381_v37 = vld [vmem:[%s20648_s1 + $0x17f0] ss:$200 sps:$4 sm:$0xff]   ;;  %v14387_v59 = vld [vmem:[%s20648_s1 + $0x1660] ss:$200 sps:$4 sm:$0xff]  }
 0x321   : > { %15115 = vpow2.f32 %v11016_v51  ;;  %v11114_v5 = vmul.f32 1.442695, %v10892_v20  ;;  %v10893_v17 = vmul.f32 %v18465_v55, %v10486_v14  ;;  %9132 = vmatpush1.bf16.msra.mxu1 %v14354_v11  ;;  %v14384_v56 = vld [vmem:[%s20648_s1 + $0xb78] ss:$200 sps:$4 sm:$0xff]   ;;  %v14395_v44 = vld [vmem:[%s20648_s1 + $0x14d4] ss:$200 sps:$4 sm:$0xff]  }
 0x322   : > { %9083 = vmatpush1.bf16.msra.mxu0 %v14357_v9  ;;  %9133 = vmatprep.subr.bf16.mxu1 %v14362_v15  ;;  %v10535_v19 = vmul.f32 %v10378_v12, %v10378_v12  ;;  %v10379_v26 = vsub.f32 %v8662_v25, %v18442_v40  ;;  %v8613_v16 = vpop.f32.mrf.mxu1  ;;  %v14374_v40 = vld [vmem:[%s20648_s1 + $0x1b14] ss:$200 sps:$4 sm:$0xff]   ;;  %v14390_v9 = vld [vmem:[%s20648_s1 + $0x9e8] ss:$200 sps:$4 sm:$0xff]   ;;  %v14401_v13 = vld [vmem:[%s20648_s1 + $0x1344] ss:$200 sps:$4 sm:$0xff]  }
 0x323   : > { %9084 = vmatprep.subr.bf16.mxu0 %v14365_v21  ;;  %15117 = vpow2.f32 %v11114_v5  ;;  %v11116_v31 = vmul.f32 1.442695, %v10893_v17  ;;  %v14393_v15 = vld [vmem:[%s20648_s1 + $0x14d0] ss:$200 sps:$4 sm:$0xff]   ;;  %v14398_v21 = vld [vmem:[%s20648_s1 + $0x85c] ss:$200 sps:$4 sm:$0xff]  }
 0x324   : > { %v10942_v48 = vmul.f32 %v18461_v45, %v10535_v19  ;;  %v10536_v53 = vmul.f32 %v10379_v26, %v10379_v26  ;;  %v14377_v45 = vld [vmem:[%s20648_s1 + $0x84] ss:$200 sps:$4 sm:$0xff]   ;;  %v14396_v20 = vld [vmem:[%s20648_s1 + $0x858] ss:$200 sps:$4 sm:$0xff]   ;;  %v14407_v25 = vld [vmem:[%s20648_s1 + $0x11b4] ss:$200 sps:$4 sm:$0xff]  }
 0x325   : > { %15119 = vpow2.f32 %v11116_v31  ;;  %9134 = vmatpush1.bf16.msra.mxu1 %v14360_v24  ;;  %v14399_v14 = vld [vmem:[%s20648_s1 + $0x1340] ss:$200 sps:$4 sm:$0xff]   ;;  %v14404_v12 = vld [vmem:[%s20648_s1 + $0x6cc] ss:$200 sps:$4 sm:$0xff]   ;;  %v14405_v24 = vld [vmem:[%s20648_s1 + $0x11b0] ss:$200 sps:$4 sm:$0xff]  }
 0x326   : > { %9085 = vmatpush1.bf16.msra.mxu0 %v14363_v42  ;;  %9135 = vmatprep.subr.bf16.mxu1 %v14368_v18  ;;  %v11214_v49 = vmul.f32 1.442695, %v10942_v48  ;;  %v10943_v32 = vmul.f32 %v18465_v55, %v10536_v53  ;;  %v14383_v55 = vld [vmem:[%s20648_s1 + $0x17f4] ss:$200 sps:$4 sm:$0xff]   ;;  %v14402_v17 = vld [vmem:[%s20648_s1 + $0x6c8] ss:$200 sps:$4 sm:$0xff]  }
 0x327   : > { %9086 = vmatprep.subr.bf16.mxu0 %v14371_v29  ;;  %v14410_v42 = vld [vmem:[%s20648_s1 + $0x53c] ss:$200 sps:$4 sm:$0xff]   ;;  %v14408_v26 = vld [vmem:[%s20648_s1 + $0x538] ss:$200 sps:$4 sm:$0xff]   ;;  %v14416_v31 = vld [vmem:[%s20648_s1 + $0x3ac] ss:$200 sps:$4 sm:$0xff]  }
 0x328   : > { %15121 = vpow2.f32 %v11214_v49  ;;  %v11216_v43 = vmul.f32 1.442695, %v10943_v32  ;;  %v14413_v18 = vld [vmem:[%s20648_s1 + $0x1024] ss:$200 sps:$4 sm:$0xff]   ;;  %v14411_v16 = vld [vmem:[%s20648_s1 + $0x1020] ss:$200 sps:$4 sm:$0xff]  }
 0x329   : > { %9136 = vmatpush1.bf16.msra.mxu1 %v14366_v22  ;;  %v14419_v48 = vld [vmem:[%s20648_s1 + $0xe94] ss:$200 sps:$4 sm:$0xff]   ;;  %v14414_v22 = vld [vmem:[%s20648_s1 + $0x3a8] ss:$200 sps:$4 sm:$0xff]   ;;  %v14420_v49 = vld [vmem:[%s20648_s1 + $0x218] ss:$200 sps:$4 sm:$0xff]  }
 0x32a   : > { %9087 = vmatpush1.bf16.msra.mxu0 %v14369_v52  ;;  %9137 = vmatprep.subr.bf16.mxu1 %v14374_v40  ;;  %15123 = vpow2.f32 %v11216_v43  ;;  %v14417_v52 = vld [vmem:[%s20648_s1 + $0xe90] ss:$200 sps:$4 sm:$0xff]   ;;  %v14422_v40 = vld [vmem:[%s20648_s1 + $0x21c] ss:$200 sps:$4 sm:$0xff]   ;;  %v14423_v32 = vld [vmem:[%s20648_s1 + $0xd00] ss:$200 sps:$4 sm:$0xff]  }
 0x32b   : > { %9088 = vmatprep.subr.bf16.mxu0 %v14377_v45  ;;  %v14425_v45 = vld [vmem:[%s20648_s1 + $0xd04] ss:$200 sps:$4 sm:$0xff]  }
 0x32c   : > { %v15114_v30 = vpop.eup %15113  ;;  %v14428_v43 = vld [vmem:[%s20648_s1 + $0x8c] ss:$200 sps:$4 sm:$0xff]  }
 0x32d   : > { %11292 = vst [vmem:[%s16416_s10 + $0xb0] sm:$0xff] %v15114_v30  ;;  %9138 = vmatpush1.bf16.msra.mxu1 %v14372_v1  ;;  %v14434_v1 = vld [vmem:[%s20648_s1 + $0x247c] ss:$200 sps:$4 sm:$0xff]  }
 0x32e   : > { %9089 = vmatpush1.bf16.msra.mxu0 %v14375_v60  ;;  %v15116_v4 = vpop.eup %15115  ;;  %9139 = vmatprep.subr.bf16.mxu1 %v14380_v62  ;;  %v18663_v60 = vld [vmem:[%s20649_s2 + $0x18] sm:$0xff]  ;;  %v14426_v62 = vld [vmem:[%s20648_s1 + $0x88] ss:$200 sps:$4 sm:$0xff]  }
 0x32f   : > { %9090 = vmatprep.subr.bf16.mxu0 %v14383_v55  ;;  %11293 = vst [vmem:[%s16416_s10 + $0xb8] sm:$0xff] %v15116_v4  ;;  %v14432_v55 = vld [vmem:[%s20648_s1 + $0x2478] ss:$200 sps:$4 sm:$0xff]   ;;  %v14431_v30 = vld [vmem:[%s20648_s1 + $0x17fc] ss:$200 sps:$4 sm:$0xff]  }
 0x330   : > { %v15118_v10 = vpop.eup %15117 }
 0x331   : > { %11342 = vst [vmem:[%s16416_s10 + $0x240] sm:$0xff] %v15118_v10  ;;  %9140 = vmatpush1.bf16.msra.mxu1 %v14378_v7  ;;  %v14440_v7 = vld [vmem:[%s20648_s1 + $0x22ec] ss:$200 sps:$4 sm:$0xff]   ;;  %v14429_v10 = vld [vmem:[%s20648_s1 + $0x17f8] ss:$200 sps:$4 sm:$0xff]  }
 0x332   : > { %9091 = vmatpush2.bf16.msra.mxu0 %v14381_v37  ;;  %v15120_v8 = vpop.eup %15119  ;;  %9176 = vmatprep.subr.bf16.mxu1 %v14386_v0  ;;  %v10105_v37 = vrot.slane %v18663_v60, %v16285_v61  ;;  %v18682_v0 = vld [vmem:[%s20650_s3 + $0x18] sm:$0xff] }
 0x333   : > { %9092 = vmatprep.subr.bf16.mxu0 %v14389_v36  ;;  %11343 = vst [vmem:[%s16416_s10 + $0x248] sm:$0xff] %v15120_v8 }
 0x334   : > { %9158 = vmatmul.mubr.bf16.vlgmr.msra.gmra.mxu1 %v15568_v57  ;;  %v18571_v58 = vpop.f32.mrf.mxu1 }
 0x335   : > { %v15122_v11 = vpop.eup %15121  ;;  %9177 = vmatpush1.bf16.msra.mxu1 %v14384_v56  ;;  %9167 = vmatprep.mubr.bf16.mxu1 %v15375_v2  ;;  %v18691_v56 = vrot.slane %v18663_v60, %v16291_v63 }
 0x336   : > { %9093 = vmatpush2.bf16.msra.mxu0 %v14387_v59  ;;  %9178 = vmatprep.subr.bf16.mxu1 %v14392_v54  ;;  %11392 = vst [vmem:[%s16416_s10 + $0x3d0] sm:$0xff] %v15122_v11  ;;  %v18586_v28 = vpop.f32.mrf.mxu1  ;;  %v14438_v59 = vld [vmem:[%s20648_s1 + $0x22e8] ss:$200 sps:$4 sm:$0xff]   ;;  %v14437_v54 = vld [vmem:[%s20648_s1 + $0x166c] ss:$200 sps:$4 sm:$0xff]   ;;  %v10669_v11 = vrot.slane %v18682_v0, %v16285_v61 }
 0x337   : > { %9094 = vmatprep.subr.bf16.mxu0 %v14395_v44  ;;  %v15124_v23 = vpop.eup %15123  ;;  %v14446_v44 = vld [vmem:[%s20648_s1 + $0x215c] ss:$200 sps:$4 sm:$0xff]  }
 0x338   : > { %11393 = vst [vmem:[%s16416_s10 + $0x3d8] sm:$0xff] %v15124_v23  ;;  %v18590_v51 = vpop.f32.mrf.mxu1 }
 0x339   : > { %9179 = vmatpush1.bf16.msra.mxu1 %v14390_v9 }
 0x33a   : > { %9095 = vmatpush2.bf16.msra.mxu0 %v14393_v15  ;;  %9180 = vmatprep.subr.bf16.mxu1 %v14398_v21  ;;  %v18604_v38 = vpop.f32.mrf.mxu1  ;;  %v18708_v15 = vrot.slane %v18682_v0, %v16291_v63 }
 0x33b   : > { %9096 = vmatprep.subr.bf16.mxu0 %v14401_v13 }
 0x33c   : > { %v18606_v5 = vpop.f32.mrf.mxu1  ;;  %9168 = vmatmul.mubr.bf16.gmra.mxu1 %v15593_v3 }
 0x33d   : > { %9181 = vmatpush1.bf16.msra.mxu1 %v14396_v20  ;;  %9208 = vmatprep.mubr.bf16.mxu1 %v15548_v46 }
 0x33e   : > { %9097 = vmatpush2.bf16.msra.mxu0 %v14399_v14  ;;  %9182 = vmatprep.subr.bf16.mxu1 %v14404_v12  ;;  %v18621_v29 = vpop.f32.mrf.mxu1  ;;  %v14435_v14 = vld [vmem:[%s20648_s1 + $0x1668] ss:$200 sps:$4 sm:$0xff]  }
 0x33f   : > { %9098 = vmatprep.subr.bf16.mxu0 %v14407_v25  ;;  %v14443_v25 = vld [vmem:[%s20648_s1 + $0x14dc] ss:$200 sps:$4 sm:$0xff]  }
 0x340   : > { %v8765_v19 = vpop.f32.mrf.mxu1 }
 0x341   : > { %9183 = vmatpush1.bf16.msra.mxu1 %v14402_v17 }
 0x342   : > { %9099 = vmatpush2.bf16.msra.mxu0 %v14405_v24  ;;  %9184 = vmatprep.subr.bf16.mxu1 %v14410_v42  ;;  %v8766_v53 = vpop.f32.mrf.mxu1 }
 0x343   : > { %9100 = vmatprep.subr.bf16.mxu0 %v14413_v18  ;;  %v14441_v53 = vld [vmem:[%s20648_s1 + $0x14d8] ss:$200 sps:$4 sm:$0xff]  }
 0x345   : > { %9185 = vmatpush1.bf16.msra.mxu1 %v14408_v26 }
 0x346   : > { %9101 = vmatpush2.bf16.msra.mxu0 %v14411_v16  ;;  %9186 = vmatprep.subr.bf16.mxu1 %v14416_v31 }
 0x347   : > { %9102 = vmatprep.subr.bf16.mxu0 %v14419_v48 }
 0x349   : > { %9187 = vmatpush1.bf16.msra.mxu1 %v14414_v22  ;;  %v14450_v22 = vld [vmem:[%s20648_s1 + $0x1fc8] ss:$200 sps:$4 sm:$0xff]  }
 0x34a   : > { %9103 = vmatpush2.bf16.msra.mxu0 %v14417_v52  ;;  %9188 = vmatprep.subr.bf16.mxu1 %v14422_v40  ;;  %v14458_v52 = vld [vmem:[%s20648_s1 + $0x1e3c] ss:$200 sps:$4 sm:$0xff]  }
 0x34b   : > { %9104 = vmatprep.subr.bf16.mxu0 %v14425_v45 }
 0x34d   : > { %9189 = vmatpush1.bf16.msra.mxu1 %v14420_v49 }
 0x34e   : > { %9105 = vmatpush2.bf16.msra.mxu0 %v14423_v32  ;;  %9190 = vmatprep.subr.bf16.mxu1 %v14428_v43 }
 0x34f   : > { %9227 = vmatprep.subr.bf16.mxu0 %v14434_v1 }
 0x351   : > { %v8700_v4 = vpop.f32.mrf.mxu0  ;;  %9107 = vmatmul.mubr.bf16.vlgmr.msra.gmra.mxu0 %v15529_v34  ;;  %9191 = vmatpush1.bf16.msra.mxu1 %v14426_v62 }
 0x352   : > { %v8752_v36 = vadd.f32 %v18571_v58, %v8700_v4  ;;  %9228 = vmatpush1.bf16.msra.mxu0 %v14432_v55  ;;  %9192 = vmatprep.subr.bf16.mxu1 %v14431_v30  ;;  %v14447_v4 = vld [vmem:[%s20648_s1 + $0x1348] ss:$200 sps:$4 sm:$0xff]  }
 0x353   : > { %v8702_v8 = vpop.f32.mrf.mxu0  ;;  %9229 = vmatprep.subr.bf16.mxu0 %v14440_v7  ;;  %9116 = vmatprep.mubr.bf16.mxu0 %v15550_v47 }
 0x354   : > { %v10280_v58 = vsub.f32 %v8752_v36, %v10105_v37  ;;  %v8754_v9 = vadd.f32 %v18586_v28, %v8702_v8  ;;  %v14444_v28 = vld [vmem:[%s20648_s1 + $0x2158] ss:$200 sps:$4 sm:$0xff]  }
 0x355   : > { %v8704_v21 = vpop.f32.mrf.mxu0  ;;  %9193 = vmatpush2.bf16.msra.mxu1 %v14429_v10 }
 0x356   : > { %v10437_v13 = vmul.f32 %v10280_v58, %v10280_v58  ;;  %v10281_v23 = vsub.f32 %v8754_v9, %v18691_v56  ;;  %v8756_v20 = vadd.f32 %v18590_v51, %v8704_v21  ;;  %9230 = vmatpush1.bf16.msra.mxu0 %v14438_v59  ;;  %9194 = vmatprep.subr.bf16.mxu1 %v14437_v54  ;;  %v14452_v51 = vld [vmem:[%s20648_s1 + $0x1fcc] ss:$200 sps:$4 sm:$0xff]   ;;  %v14453_v58 = vld [vmem:[%s20648_s1 + $0x11b8] ss:$200 sps:$4 sm:$0xff]   ;;  %v14462_v9 = vld [vmem:[%s20648_s1 + $0x1ca8] ss:$200 sps:$4 sm:$0xff]  }
 0x357   : > { %v8706_v12 = vpop.f32.mrf.mxu0  ;;  %9231 = vmatprep.subr.bf16.mxu0 %v14446_v44  ;;  %v14470_v21 = vld [vmem:[%s20648_s1 + $0x1b1c] ss:$200 sps:$4 sm:$0xff]  }
 0x358   : > { %v10844_v17 = vmul.f32 %v10669_v11, %v10437_v13  ;;  %v10438_v24 = vmul.f32 %v10281_v23, %v10281_v23  ;;  %v10330_v42 = vsub.f32 %v8756_v20, %v10105_v37  ;;  %v8758_v18 = vadd.f32 %v18604_v38, %v8706_v12  ;;  %v14449_v38 = vld [vmem:[%s20648_s1 + $0x134c] ss:$200 sps:$4 sm:$0xff]   ;;  %v14459_v20 = vld [vmem:[%s20648_s1 + $0x1028] ss:$200 sps:$4 sm:$0xff]  }
 0x359   : > { %v8710_v19 = vpop.f32.mrf.mxu0  ;;  %9117 = vmatmul.mubr.bf16.gmra.mxu0 %v15531_v35  ;;  %9195 = vmatpush2.bf16.msra.mxu1 %v14435_v14  ;;  %v14468_v14 = vld [vmem:[%s20648_s1 + $0x1b18] ss:$200 sps:$4 sm:$0xff]  }
 0x35a   : > { %v11018_v26 = vmul.f32 1.442695, %v10844_v17  ;;  %v10845_v16 = vmul.f32 %v18708_v15, %v10438_v24  ;;  %v10487_v31 = vmul.f32 %v10330_v42, %v10330_v42  ;;  %v10331_v48 = vsub.f32 %v8758_v18, %v18691_v56  ;;  %9232 = vmatpush1.bf16.msra.mxu0 %v14444_v28  ;;  %9196 = vmatprep.subr.bf16.mxu1 %v14443_v25  ;;  %v14467_v28 = vld [vmem:[%s20648_s1 + $0xe9c] ss:$200 sps:$4 sm:$0xff]   ;;  %v14465_v25 = vld [vmem:[%s20648_s1 + $0xe98] ss:$200 sps:$4 sm:$0xff]  }
 0x35b   : > { %9233 = vmatprep.subr.bf16.mxu0 %v14452_v51  ;;  %v8712_v40 = vpop.f32.mrf.mxu0  ;;  %v8762_v45 = vadd.f32 %v18606_v5, %v8710_v19  ;;  %9259 = vmatprep.mubr.bf16.mxu0 %v15375_v2  ;;  %v14456_v5 = vld [vmem:[%s20648_s1 + $0x1e38] ss:$200 sps:$4 sm:$0xff]   ;;  %v14474_v51 = vld [vmem:[%s20648_s1 + $0x1988] ss:$200 sps:$4 sm:$0xff]   ;;  %v14473_v24 = vld [vmem:[%s20648_s1 + $0xd0c] ss:$200 sps:$4 sm:$0xff]  }
 0x35c   : > { %15125 = vpow2.f32 %v11018_v26  ;;  %v11020_v49 = vmul.f32 1.442695, %v10845_v16  ;;  %v10894_v32 = vmul.f32 %v10669_v11, %v10487_v31  ;;  %v10488_v43 = vmul.f32 %v10331_v48, %v10331_v48  ;;  %v14479_v42 = vld [vmem:[%s20648_s1 + $0xb84] ss:$200 sps:$4 sm:$0xff]   ;;  %v14471_v19 = vld [vmem:[%s20648_s1 + $0xd08] ss:$200 sps:$4 sm:$0xff]  }
 0x35d   : > { %v8714_v1 = vpop.f32.mrf.mxu0  ;;  %v10380_v62 = vsub.f32 %v8762_v45, %v10105_v37  ;;  %v8764_v55 = vadd.f32 %v18621_v29, %v8712_v40  ;;  %9197 = vmatpush2.bf16.msra.mxu1 %v14441_v53  ;;  %v14455_v37 = vld [vmem:[%s20648_s1 + $0x11bc] ss:$200 sps:$4 sm:$0xff]   ;;  %v14464_v29 = vld [vmem:[%s20648_s1 + $0x1cac] ss:$200 sps:$4 sm:$0xff]   ;;  %v14477_v26 = vld [vmem:[%s20648_s1 + $0xb80] ss:$200 sps:$4 sm:$0xff]  }
 0x35e   : > { %15127 = vpow2.f32 %v11020_v49  ;;  %v11118_v30 = vmul.f32 1.442695, %v10894_v32  ;;  %v10895_v7 = vmul.f32 %v18708_v15, %v10488_v43  ;;  %9234 = vmatpush1.bf16.msra.mxu0 %v14450_v22  ;;  %9198 = vmatprep.subr.bf16.mxu1 %v14449_v38  ;;  %v14482_v31 = vld [vmem:[%s20648_s1 + $0x2484] ss:$200 sps:$4 sm:$0xff]   ;;  %v14485_v48 = vld [vmem:[%s20648_s1 + $0x9f4] ss:$200 sps:$4 sm:$0xff]   ;;  %v18826_v43 = vrot.slane %v18663_v60, %v16441_v27 }
 0x35f   : > { %9235 = vmatprep.subr.bf16.mxu0 %v14458_v52  ;;  %v10537_v36 = vmul.f32 %v10380_v62, %v10380_v62  ;;  %v8715_v10 = vpop.f32.mrf.mxu0  ;;  %v10381_v59 = vsub.f32 %v8764_v55, %v18691_v56  ;;  %v14461_v56 = vld [vmem:[%s20648_s1 + $0x102c] ss:$200 sps:$4 sm:$0xff]   ;;  %v14480_v38 = vld [vmem:[%s20648_s1 + $0x2480] ss:$200 sps:$4 sm:$0xff]   ;;  %v14483_v52 = vld [vmem:[%s20648_s1 + $0x9f0] ss:$200 sps:$4 sm:$0xff]  }
 0x360   : > { %15129 = vpow2.f32 %v11118_v30  ;;  %v11120_v8 = vmul.f32 1.442695, %v10895_v7  ;;  %v14488_v45 = vld [vmem:[%s20648_s1 + $0x22f4] ss:$200 sps:$4 sm:$0xff]   ;;  %v14491_v49 = vld [vmem:[%s20648_s1 + $0x864] ss:$200 sps:$4 sm:$0xff]   ;;  %v18833_v30 = vrot.slane %v18663_v60, %v16451_v41 }
 0x361   : > { %v10944_v54 = vmul.f32 %v10669_v11, %v10537_v36  ;;  %v10538_v44 = vmul.f32 %v10381_v59, %v10381_v59  ;;  %9199 = vmatpush2.bf16.msra.mxu1 %v14447_v4  ;;  %v14486_v7 = vld [vmem:[%s20648_s1 + $0x22f0] ss:$200 sps:$4 sm:$0xff]   ;;  %v14489_v4 = vld [vmem:[%s20648_s1 + $0x860] ss:$200 sps:$4 sm:$0xff]   ;;  %v14497_v36 = vld [vmem:[%s20648_s1 + $0x6d4] ss:$200 sps:$4 sm:$0xff]   ;;  %v18850_v59 = vrot.slane %v18682_v0, %v16441_v27 }
 0x362   : > { %15131 = vpow2.f32 %v11120_v8  ;;  %9236 = vmatpush1.bf16.msra.mxu0 %v14456_v5  ;;  %9200 = vmatprep.subr.bf16.mxu1 %v14455_v37 }
 0x363   : > { %9237 = vmatprep.subr.bf16.mxu0 %v14464_v29  ;;  %v11218_v11 = vmul.f32 1.442695, %v10944_v54  ;;  %v10945_v13 = vmul.f32 %v18708_v15, %v10538_v44  ;;  %v14476_v15 = vld [vmem:[%s20648_s1 + $0x198c] ss:$200 sps:$4 sm:$0xff]   ;;  %v18855_v54 = vrot.slane %v18682_v0, %v16451_v41 }
 0x364   : > { %v14494_v29 = vld [vmem:[%s20648_s1 + $0x2164] ss:$200 sps:$4 sm:$0xff]  }
 0x365   : > { %15133 = vpow2.f32 %v11218_v11  ;;  %v11220_v23 = vmul.f32 1.442695, %v10945_v13  ;;  %9201 = vmatpush2.bf16.msra.mxu1 %v14453_v58  ;;  %v14495_v13 = vld [vmem:[%s20648_s1 + $0x6d0] ss:$200 sps:$4 sm:$0xff]  }
 0x366   : > { %9238 = vmatpush1.bf16.msra.mxu0 %v14462_v9  ;;  %9202 = vmatprep.subr.bf16.mxu1 %v14461_v56 }
 0x367   : > { %9239 = vmatprep.subr.bf16.mxu0 %v14470_v21  ;;  %15135 = vpow2.f32 %v11220_v23  ;;  %v14492_v21 = vld [vmem:[%s20648_s1 + $0x2160] ss:$200 sps:$4 sm:$0xff]  }
 0x369   : > { %v15126_v12 = vpop.eup %15125  ;;  %9203 = vmatpush2.bf16.msra.mxu1 %v14459_v20  ;;  %v14500_v20 = vld [vmem:[%s20648_s1 + $0x1fd4] ss:$200 sps:$4 sm:$0xff]  }
 0x36a   : > { %11294 = vst [vmem:[%s16416_s10 + $0xc0] sm:$0xff] %v15126_v12  ;;  %9240 = vmatpush1.bf16.msra.mxu0 %v14468_v14  ;;  %9204 = vmatprep.subr.bf16.mxu1 %v14467_v28  ;;  %v14503_v14 = vld [vmem:[%s20648_s1 + $0x544] ss:$200 sps:$4 sm:$0xff]  }
 0x36b   : > { %v15128_v17 = vpop.eup %15127  ;;  %9241 = vmatprep.subr.bf16.mxu0 %v14476_v15 }
 0x36c   : > { %11295 = vst [vmem:[%s16416_s10 + $0xc8] sm:$0xff] %v15128_v17 }
 0x36d   : > { %v15130_v18 = vpop.eup %15129  ;;  %9205 = vmatpush2.bf16.msra.mxu1 %v14465_v25 }
 0x36e   : > { %11344 = vst [vmem:[%s16416_s10 + $0x250] sm:$0xff] %v15130_v18  ;;  %9242 = vmatpush1.bf16.msra.mxu0 %v14474_v51  ;;  %9206 = vmatprep.subr.bf16.mxu1 %v14473_v24 }
 0x36f   : > { %v15132_v16 = vpop.eup %15131  ;;  %9278 = vmatprep.subr.bf16.mxu0 %v14479_v42 }
 0x370   : > { %11345 = vst [vmem:[%s16416_s10 + $0x258] sm:$0xff] %v15132_v16  ;;  %v14498_v16 = vld [vmem:[%s20648_s1 + $0x1fd0] ss:$200 sps:$4 sm:$0xff]  }
 0x371   : > { %v8853_v53 = vpop.f32.mrf.mxu0  ;;  %9260 = vmatmul.mubr.bf16.vlgmr.msra.gmra.mxu0 %v15568_v57  ;;  %9207 = vmatpush2.bf16.msra.mxu1 %v14471_v19 }
 0x372   : > { %v15134_v22 = vpop.eup %15133  ;;  %9279 = vmatpush1.bf16.msra.mxu0 %v14477_v26  ;;  %9329 = vmatprep.subr.bf16.mxu1 %v14482_v31  ;;  %v14501_v31 = vld [vmem:[%s20648_s1 + $0x540] ss:$200 sps:$4 sm:$0xff]  }
 0x373   : > { %11394 = vst [vmem:[%s16416_s10 + $0x3e0] sm:$0xff] %v15134_v22  ;;  %v8855_v40 = vpop.f32.mrf.mxu0  ;;  %9280 = vmatprep.subr.bf16.mxu0 %v14485_v48  ;;  %9269 = vmatprep.mubr.bf16.mxu0 %v15375_v2  ;;  %v14506_v48 = vld [vmem:[%s20648_s1 + $0x1e44] ss:$200 sps:$4 sm:$0xff]  }
 0x374   : > { %v15136_v32 = vpop.eup %15135  ;;  %v8802_v1 = vpop.f32.mrf.mxu1  ;;  %9209 = vmatmul.mubr.bf16.vlgmr.msra.gmra.mxu1 %v15529_v34 }
 0x375   : > { %11395 = vst [vmem:[%s16416_s10 + $0x3e8] sm:$0xff] %v15136_v32  ;;  %v8857_v62 = vpop.f32.mrf.mxu0  ;;  %v8854_v55 = vadd.f32 %v8853_v53, %v8802_v1  ;;  %9330 = vmatpush1.bf16.msra.mxu1 %v14480_v38  ;;  %9218 = vmatprep.mubr.bf16.mxu1 %v15550_v47  ;;  %v14509_v53 = vld [vmem:[%s20648_s1 + $0x3b4] ss:$200 sps:$4 sm:$0xff]  }
 0x376   : > { %9281 = vmatpush1.bf16.msra.mxu0 %v14483_v52  ;;  %v8804_v5 = vpop.f32.mrf.mxu1  ;;  %9331 = vmatprep.subr.bf16.mxu1 %v14488_v45 }
 0x377   : > { %v8859_v37 = vpop.f32.mrf.mxu0  ;;  %9282 = vmatprep.subr.bf16.mxu0 %v14491_v49  ;;  %v10282_v10 = vsub.f32 %v8854_v55, %v18826_v43  ;;  %v8856_v8 = vadd.f32 %v8855_v40, %v8804_v5  ;;  %v14507_v5 = vld [vmem:[%s20648_s1 + $0x3b0] ss:$200 sps:$4 sm:$0xff]  }
 0x378   : > { %v8806_v44 = vpop.f32.mrf.mxu1 }
 0x379   : > { %v8863_v58 = vpop.f32.mrf.mxu0  ;;  %9270 = vmatmul.mubr.bf16.gmra.mxu0 %v15593_v3  ;;  %v10439_v9 = vmul.f32 %v10282_v10, %v10282_v10  ;;  %v10283_v56 = vsub.f32 %v8856_v8, %v18833_v30  ;;  %v8858_v11 = vadd.f32 %v8857_v62, %v8806_v44  ;;  %9332 = vmatpush1.bf16.msra.mxu1 %v14486_v7 }
 0x37a   : > { %9283 = vmatpush1.bf16.msra.mxu0 %v14489_v4  ;;  %v8808_v23 = vpop.f32.mrf.mxu1  ;;  %9333 = vmatprep.subr.bf16.mxu1 %v14494_v29  ;;  %v14504_v4 = vld [vmem:[%s20648_s1 + $0x1e40] ss:$200 sps:$4 sm:$0xff]  }
 0x37b   : > { %9284 = vmatprep.subr.bf16.mxu0 %v14497_v36  ;;  %v8865_v28 = vpop.f32.mrf.mxu0  ;;  %v10846_v15 = vmul.f32 %v18850_v59, %v10439_v9  ;;  %v10440_v12 = vmul.f32 %v10283_v56, %v10283_v56  ;;  %v10332_v25 = vsub.f32 %v8858_v11, %v18826_v43  ;;  %v8860_v51 = vadd.f32 %v8859_v37, %v8808_v23  ;;  %v14515_v37 = vld [vmem:[%s20648_s1 + $0x224] ss:$200 sps:$4 sm:$0xff]   ;;  %v14510_v9 = vld [vmem:[%s20648_s1 + $0x1cb0] ss:$200 sps:$4 sm:$0xff]   ;;  %v14513_v56 = vld [vmem:[%s20648_s1 + $0x220] ss:$200 sps:$4 sm:$0xff]  }
 0x37c   : > { %9310 = vmatprep.mubr.bf16.mxu0 %v15548_v46  ;;  %9219 = vmatmul.mubr.bf16.gmra.mxu1 %v15531_v35  ;;  %v8812_v17 = vpop.f32.mrf.mxu1  ;;  %v14516_v23 = vld [vmem:[%s20648_s1 + $0x1b20] ss:$200 sps:$4 sm:$0xff]  }
 0x37d   : > { %v8867_v24 = vpop.f32.mrf.mxu0  ;;  %v11022_v42 = vmul.f32 1.442695, %v10846_v15  ;;  %v10847_v18 = vmul.f32 %v18855_v54, %v10440_v12  ;;  %v10489_v19 = vmul.f32 %v10332_v25, %v10332_v25  ;;  %v10333_v26 = vsub.f32 %v8860_v51, %v18833_v30  ;;  %9334 = vmatpush1.bf16.msra.mxu1 %v14492_v21  ;;  %9361 = vmatprep.mubr.bf16.mxu1 %v15375_v2  ;;  %v14522_v15 = vld [vmem:[%s20648_s1 + $0x1990] ss:$200 sps:$4 sm:$0xff]   ;;  %v14525_v12 = vld [vmem:[%s20648_s1 + $0x1800] ss:$200 sps:$4 sm:$0xff]  }
 0x37e   : > { %9285 = vmatpush1.bf16.msra.mxu0 %v14495_v13  ;;  %9335 = vmatprep.subr.bf16.mxu1 %v14500_v20  ;;  %v8864_v22 = vadd.f32 %v8863_v58, %v8812_v17  ;;  %v8814_v38 = vpop.f32.mrf.mxu1  ;;  %v14519_v20 = vld [vmem:[%s20648_s1 + $0x90] ss:$200 sps:$4 sm:$0xff]   ;;  %v14530_v51 = vld [vmem:[%s20648_s1 + $0xb8c] ss:$200 sps:$4 sm:$0xff]  }
 0x37f   : > { %9286 = vmatprep.subr.bf16.mxu0 %v14503_v14  ;;  %v8868_v52 = vpop.f32.mrf.mxu0  ;;  %15137 = vpow2.f32 %v11022_v42  ;;  %v11024_v40 = vmul.f32 1.442695, %v10847_v18  ;;  %v10896_v45 = vmul.f32 %v18850_v59, %v10489_v19  ;;  %v10490_v49 = vmul.f32 %v10333_v26, %v10333_v26  ;;  %v14524_v14 = vld [vmem:[%s20648_s1 + $0x1994] ss:$200 sps:$4 sm:$0xff]   ;;  %v14528_v42 = vld [vmem:[%s20648_s1 + $0xb88] ss:$200 sps:$4 sm:$0xff]  }
 0x380   : > { %v10382_v32 = vsub.f32 %v8864_v22, %v18826_v43  ;;  %v8866_v1 = vadd.f32 %v8865_v28, %v8814_v38  ;;  %v8816_v62 = vpop.f32.mrf.mxu1  ;;  %v14512_v43 = vld [vmem:[%s20648_s1 + $0x1cb4] ss:$200 sps:$4 sm:$0xff]   ;;  %v14531_v18 = vld [vmem:[%s20648_s1 + $0x1670] ss:$200 sps:$4 sm:$0xff]   ;;  %v14537_v22 = vld [vmem:[%s20648_s1 + $0x14e0] ss:$200 sps:$4 sm:$0xff]  }
 0x381   : > { %15139 = vpow2.f32 %v11024_v40  ;;  %v11122_v55 = vmul.f32 1.442695, %v10896_v45  ;;  %v10897_v7 = vmul.f32 %v18855_v54, %v10490_v49  ;;  %9336 = vmatpush1.bf16.msra.mxu1 %v14498_v16  ;;  %v14533_v17 = vld [vmem:[%s20648_s1 + $0x1674] ss:$200 sps:$4 sm:$0xff]   ;;  %v14539_v16 = vld [vmem:[%s20648_s1 + $0x14e4] ss:$200 sps:$4 sm:$0xff]  }
 0x382   : > { %9287 = vmatpush1.bf16.msra.mxu0 %v14501_v31  ;;  %9337 = vmatprep.subr.bf16.mxu1 %v14506_v48  ;;  %v10539_v29 = vmul.f32 %v10382_v32, %v10382_v32  ;;  %v10383_v36 = vsub.f32 %v8866_v1, %v18833_v30  ;;  %v8817_v10 = vpop.f32.mrf.mxu1  ;;  %v14518_v30 = vld [vmem:[%s20648_s1 + $0x1b24] ss:$200 sps:$4 sm:$0xff]   ;;  %v14545_v52 = vld [vmem:[%s20648_s1 + $0x1354] ss:$200 sps:$4 sm:$0xff]   ;;  %v14540_v32 = vld [vmem:[%s20648_s1 + $0x868] ss:$200 sps:$4 sm:$0xff]  }
 0x383   : > { %9288 = vmatprep.subr.bf16.mxu0 %v14509_v53  ;;  %15141 = vpow2.f32 %v11122_v55  ;;  %v11124_v8 = vmul.f32 1.442695, %v10897_v7  ;;  %v14536_v26 = vld [vmem:[%s20648_s1 + $0x9fc] ss:$200 sps:$4 sm:$0xff]   ;;  %v14534_v53 = vld [vmem:[%s20648_s1 + $0x9f8] ss:$200 sps:$4 sm:$0xff]  }
 0x384   : > { %v10946_v44 = vmul.f32 %v18850_v59, %v10539_v29  ;;  %v10540_v58 = vmul.f32 %v10383_v36, %v10383_v36  ;;  %v14521_v59 = vld [vmem:[%s20648_s1 + $0x94] ss:$200 sps:$4 sm:$0xff]   ;;  %v14543_v1 = vld [vmem:[%s20648_s1 + $0x1350] ss:$200 sps:$4 sm:$0xff]   ;;  %v14551_v55 = vld [vmem:[%s20648_s1 + $0x11c4] ss:$200 sps:$4 sm:$0xff]  }
 0x385   : > { %15143 = vpow2.f32 %v11124_v8  ;;  %9338 = vmatpush1.bf16.msra.mxu1 %v14504_v4  ;;  %v14542_v38 = vld [vmem:[%s20648_s1 + $0x86c] ss:$200 sps:$4 sm:$0xff]   ;;  %v14548_v62 = vld [vmem:[%s20648_s1 + $0x6dc] ss:$200 sps:$4 sm:$0xff]   ;;  %v14552_v8 = vld [vmem:[%s20648_s1 + $0x548] ss:$200 sps:$4 sm:$0xff]  }
 0x386   : > { %9289 = vmatpush1.bf16.msra.mxu0 %v14507_v5  ;;  %9339 = vmatprep.subr.bf16.mxu1 %v14512_v43  ;;  %v11222_v11 = vmul.f32 1.442695, %v10946_v44  ;;  %v10947_v21 = vmul.f32 %v18855_v54, %v10540_v58  ;;  %v14527_v54 = vld [vmem:[%s20648_s1 + $0x1804] ss:$200 sps:$4 sm:$0xff]   ;;  %v14546_v5 = vld [vmem:[%s20648_s1 + $0x6d8] ss:$200 sps:$4 sm:$0xff]  }
 0x387   : > { %9290 = vmatprep.subr.bf16.mxu0 %v14515_v37  ;;  %v14549_v43 = vld [vmem:[%s20648_s1 + $0x11c0] ss:$200 sps:$4 sm:$0xff]   ;;  %v14554_v37 = vld [vmem:[%s20648_s1 + $0x54c] ss:$200 sps:$4 sm:$0xff]   ;;  %v14555_v44 = vld [vmem:[%s20648_s1 + $0x1030] ss:$200 sps:$4 sm:$0xff]  }
 0x388   : > { %15145 = vpow2.f32 %v11222_v11  ;;  %v11224_v13 = vmul.f32 1.442695, %v10947_v21  ;;  %v14557_v29 = vld [vmem:[%s20648_s1 + $0x1034] ss:$200 sps:$4 sm:$0xff]  }
 0x389   : > { %9340 = vmatpush1.bf16.msra.mxu1 %v14510_v9  ;;  %v14560_v58 = vld [vmem:[%s20648_s1 + $0x3bc] ss:$200 sps:$4 sm:$0xff]   ;;  %v14566_v11 = vld [vmem:[%s20648_s1 + $0x22c] ss:$200 sps:$4 sm:$0xff]  }
 0x38a   : > { %9291 = vmatpush1.bf16.msra.mxu0 %v14513_v56  ;;  %9341 = vmatprep.subr.bf16.mxu1 %v14518_v30  ;;  %15147 = vpow2.f32 %v11224_v13  ;;  %v14563_v9 = vld [vmem:[%s20648_s1 + $0xea4] ss:$200 sps:$4 sm:$0xff]   ;;  %v14558_v30 = vld [vmem:[%s20648_s1 + $0x3b8] ss:$200 sps:$4 sm:$0xff]   ;;  %v14569_v21 = vld [vmem:[%s20648_s1 + $0xd14] ss:$200 sps:$4 sm:$0xff]  }
 0x38b   : > { %9292 = vmatprep.subr.bf16.mxu0 %v14521_v59  ;;  %v14561_v59 = vld [vmem:[%s20648_s1 + $0xea0] ss:$200 sps:$4 sm:$0xff]  }
 0x38c   : > { %v15138_v28 = vpop.eup %15137  ;;  %v14564_v13 = vld [vmem:[%s20648_s1 + $0x228] ss:$200 sps:$4 sm:$0xff]  }
 0x38d   : > { %11296 = vst [vmem:[%s16416_s10 + $0xd0] sm:$0xff] %v15138_v28  ;;  %9342 = vmatpush1.bf16.msra.mxu1 %v14516_v23  ;;  %v14567_v23 = vld [vmem:[%s20648_s1 + $0xd10] ss:$200 sps:$4 sm:$0xff]  }
 0x38e   : > { %9293 = vmatpush1.bf16.msra.mxu0 %v14519_v20  ;;  %v15140_v25 = vpop.eup %15139  ;;  %9343 = vmatprep.subr.bf16.mxu1 %v14524_v14  ;;  %v14572_v20 = vld [vmem:[%s20648_s1 + $0x9c] ss:$200 sps:$4 sm:$0xff]   ;;  %v14578_v14 = vld [vmem:[%s20648_s1 + $0x248c] ss:$200 sps:$4 sm:$0xff]   ;;  %v14576_v28 = vld [vmem:[%s20648_s1 + $0x2488] ss:$200 sps:$4 sm:$0xff]  }
 0x38f   : > { %9294 = vmatprep.subr.bf16.mxu0 %v14527_v54  ;;  %11297 = vst [vmem:[%s16416_s10 + $0xd8] sm:$0xff] %v15140_v25  ;;  %v14570_v54 = vld [vmem:[%s20648_s1 + $0x98] ss:$200 sps:$4 sm:$0xff]   ;;  %v10121_v25 = vrot.slane %v18663_v60, %v16690_v39 }
 0x390   : > { %v15142_v24 = vpop.eup %15141 }
 0x391   : > { %11346 = vst [vmem:[%s16416_s10 + $0x260] sm:$0xff] %v15142_v24  ;;  %9344 = vmatpush1.bf16.msra.mxu1 %v14522_v15  ;;  %v14575_v15 = vld [vmem:[%s20648_s1 + $0x180c] ss:$200 sps:$4 sm:$0xff]   ;;  %v14573_v24 = vld [vmem:[%s20648_s1 + $0x1808] ss:$200 sps:$4 sm:$0xff]  }
 0x392   : > { %9295 = vmatpush2.bf16.msra.mxu0 %v14525_v12  ;;  %v15144_v19 = vpop.eup %15143  ;;  %9380 = vmatprep.subr.bf16.mxu1 %v14530_v51  ;;  %v14584_v12 = vld [vmem:[%s20648_s1 + $0x22fc] ss:$200 sps:$4 sm:$0xff]  }
 0x393   : > { %9296 = vmatprep.subr.bf16.mxu0 %v14533_v17  ;;  %11347 = vst [vmem:[%s16416_s10 + $0x268] sm:$0xff] %v15144_v19 }
 0x394   : > { %9362 = vmatmul.mubr.bf16.vlgmr.msra.gmra.mxu1 %v15568_v57  ;;  %v18961_v31 = vpop.f32.mrf.mxu1 }
 0x395   : > { %v15146_v48 = vpop.eup %15145  ;;  %9381 = vmatpush1.bf16.msra.mxu1 %v14528_v42  ;;  %9371 = vmatprep.mubr.bf16.mxu1 %v15375_v2  ;;  %v19071_v42 = vrot.slane %v18663_v60, %v16696_v6 }
 0x396   : > { %9297 = vmatpush2.bf16.msra.mxu0 %v14531_v18  ;;  %9382 = vmatprep.subr.bf16.mxu1 %v14536_v26  ;;  %11396 = vst [vmem:[%s16416_s10 + $0x3f0] sm:$0xff] %v15146_v48  ;;  %v18976_v40 = vpop.f32.mrf.mxu1  ;;  %v14582_v18 = vld [vmem:[%s20648_s1 + $0x22f8] ss:$200 sps:$4 sm:$0xff]   ;;  %v14581_v26 = vld [vmem:[%s20648_s1 + $0x167c] ss:$200 sps:$4 sm:$0xff]   ;;  %v10685_v48 = vrot.slane %v18682_v0, %v16690_v39 }
 0x397   : > { %9298 = vmatprep.subr.bf16.mxu0 %v14539_v16  ;;  %v15148_v45 = vpop.eup %15147  ;;  %v14590_v16 = vld [vmem:[%s20648_s1 + $0x216c] ss:$200 sps:$4 sm:$0xff]  }
 0x398   : > { %11397 = vst [vmem:[%s16416_s10 + $0x3f8] sm:$0xff] %v15148_v45  ;;  %v18980_v49 = vpop.f32.mrf.mxu1 }
 0x399   : > { %9383 = vmatpush1.bf16.msra.mxu1 %v14534_v53 }
 0x39a   : > { %9299 = vmatpush2.bf16.msra.mxu0 %v14537_v22  ;;  %9384 = vmatprep.subr.bf16.mxu1 %v14542_v38  ;;  %v18994_v7 = vpop.f32.mrf.mxu1  ;;  %v19088_v22 = vrot.slane %v18682_v0, %v16696_v6 }
 0x39b   : > { %9300 = vmatprep.subr.bf16.mxu0 %v14545_v52 }
 0x39c   : > { %v18996_v4 = vpop.f32.mrf.mxu1  ;;  %9372 = vmatmul.mubr.bf16.gmra.mxu1 %v15593_v3 }
 0x39d   : > { %9385 = vmatpush1.bf16.msra.mxu1 %v14540_v32  ;;  %9412 = vmatprep.mubr.bf16.mxu1 %v15548_v46 }
 0x39e   : > { %9301 = vmatpush2.bf16.msra.mxu0 %v14543_v1  ;;  %9386 = vmatprep.subr.bf16.mxu1 %v14548_v62  ;;  %v19011_v36 = vpop.f32.mrf.mxu1  ;;  %v14579_v1 = vld [vmem:[%s20648_s1 + $0x1678] ss:$200 sps:$4 sm:$0xff]  }
 0x39f   : > { %9302 = vmatprep.subr.bf16.mxu0 %v14551_v55  ;;  %v14587_v55 = vld [vmem:[%s20648_s1 + $0x14ec] ss:$200 sps:$4 sm:$0xff]  }
 0x3a0   : > { %v8969_v10 = vpop.f32.mrf.mxu1 }
 0x3a1   : > { %9387 = vmatpush1.bf16.msra.mxu1 %v14546_v5 }
 0x3a2   : > { %9303 = vmatpush2.bf16.msra.mxu0 %v14549_v43  ;;  %9388 = vmatprep.subr.bf16.mxu1 %v14554_v37  ;;  %v8970_v56 = vpop.f32.mrf.mxu1 }
 0x3a3   : > { %9304 = vmatprep.subr.bf16.mxu0 %v14557_v29  ;;  %v14585_v56 = vld [vmem:[%s20648_s1 + $0x14e8] ss:$200 sps:$4 sm:$0xff]  }
 0x3a5   : > { %9389 = vmatpush1.bf16.msra.mxu1 %v14552_v8 }
 0x3a6   : > { %9305 = vmatpush2.bf16.msra.mxu0 %v14555_v44  ;;  %9390 = vmatprep.subr.bf16.mxu1 %v14560_v58 }
 0x3a7   : > { %9306 = vmatprep.subr.bf16.mxu0 %v14563_v9 }
 0x3a9   : > { %9391 = vmatpush1.bf16.msra.mxu1 %v14558_v30  ;;  %v14594_v30 = vld [vmem:[%s20648_s1 + $0x1fd8] ss:$200 sps:$4 sm:$0xff]  }
 0x3aa   : > { %9307 = vmatpush2.bf16.msra.mxu0 %v14561_v59  ;;  %9392 = vmatprep.subr.bf16.mxu1 %v14566_v11  ;;  %v14602_v59 = vld [vmem:[%s20648_s1 + $0x1e4c] ss:$200 sps:$4 sm:$0xff]  }
 0x3ab   : > { %9308 = vmatprep.subr.bf16.mxu0 %v14569_v21 }
 0x3ad   : > { %9393 = vmatpush1.bf16.msra.mxu1 %v14564_v13 }
 0x3ae   : > { %9309 = vmatpush2.bf16.msra.mxu0 %v14567_v23  ;;  %9394 = vmatprep.subr.bf16.mxu1 %v14572_v20 }
 0x3af   : > { %9431 = vmatprep.subr.bf16.mxu0 %v14578_v14 }
 0x3b1   : > { %v8904_v51 = vpop.f32.mrf.mxu0  ;;  %9311 = vmatmul.mubr.bf16.vlgmr.msra.gmra.mxu0 %v15529_v34  ;;  %9395 = vmatpush1.bf16.msra.mxu1 %v14570_v54 }
 0x3b2   : > { %v8956_v17 = vadd.f32 %v18961_v31, %v8904_v51  ;;  %9432 = vmatpush1.bf16.msra.mxu0 %v14576_v28  ;;  %9396 = vmatprep.subr.bf16.mxu1 %v14575_v15  ;;  %v14591_v51 = vld [vmem:[%s20648_s1 + $0x1358] ss:$200 sps:$4 sm:$0xff]  }
 0x3b3   : > { %v8906_v19 = vpop.f32.mrf.mxu0  ;;  %9433 = vmatprep.subr.bf16.mxu0 %v14584_v12  ;;  %9320 = vmatprep.mubr.bf16.mxu0 %v15550_v47 }
 0x3b4   : > { %v10284_v31 = vsub.f32 %v8956_v17, %v10121_v25  ;;  %v8958_v53 = vadd.f32 %v18976_v40, %v8906_v19  ;;  %v14588_v40 = vld [vmem:[%s20648_s1 + $0x2168] ss:$200 sps:$4 sm:$0xff]  }
 0x3b5   : > { %v8908_v38 = vpop.f32.mrf.mxu0  ;;  %9397 = vmatpush2.bf16.msra.mxu1 %v14573_v24 }
 0x3b6   : > { %v10441_v52 = vmul.f32 %v10284_v31, %v10284_v31  ;;  %v10285_v45 = vsub.f32 %v8958_v53, %v19071_v42  ;;  %v8960_v32 = vadd.f32 %v18980_v49, %v8908_v38  ;;  %9434 = vmatpush1.bf16.msra.mxu0 %v14582_v18  ;;  %9398 = vmatprep.subr.bf16.mxu1 %v14581_v26  ;;  %v14596_v49 = vld [vmem:[%s20648_s1 + $0x1fdc] ss:$200 sps:$4 sm:$0xff]   ;;  %v14597_v31 = vld [vmem:[%s20648_s1 + $0x11c8] ss:$200 sps:$4 sm:$0xff]   ;;  %v14606_v53 = vld [vmem:[%s20648_s1 + $0x1cb8] ss:$200 sps:$4 sm:$0xff]  }
 0x3b7   : > { %v8910_v62 = vpop.f32.mrf.mxu0  ;;  %9435 = vmatprep.subr.bf16.mxu0 %v14590_v16  ;;  %v14614_v38 = vld [vmem:[%s20648_s1 + $0x1b2c] ss:$200 sps:$4 sm:$0xff]  }
 0x3b8   : > { %v10848_v5 = vmul.f32 %v10685_v48, %v10441_v52  ;;  %v10442_v43 = vmul.f32 %v10285_v45, %v10285_v45  ;;  %v10334_v37 = vsub.f32 %v8960_v32, %v10121_v25  ;;  %v8962_v29 = vadd.f32 %v18994_v7, %v8910_v62  ;;  %v14593_v7 = vld [vmem:[%s20648_s1 + $0x135c] ss:$200 sps:$4 sm:$0xff]   ;;  %v14603_v32 = vld [vmem:[%s20648_s1 + $0x1038] ss:$200 sps:$4 sm:$0xff]  }
 0x3b9   : > { %v8914_v10 = vpop.f32.mrf.mxu0  ;;  %9321 = vmatmul.mubr.bf16.gmra.mxu0 %v15531_v35  ;;  %9399 = vmatpush2.bf16.msra.mxu1 %v14579_v1  ;;  %v14612_v1 = vld [vmem:[%s20648_s1 + $0x1b28] ss:$200 sps:$4 sm:$0xff]  }
 0x3ba   : > { %v11026_v8 = vmul.f32 1.442695, %v10848_v5  ;;  %v10849_v44 = vmul.f32 %v19088_v22, %v10442_v43  ;;  %v10491_v58 = vmul.f32 %v10334_v37, %v10334_v37  ;;  %v10335_v9 = vsub.f32 %v8962_v29, %v19071_v42  ;;  %9436 = vmatpush1.bf16.msra.mxu0 %v14588_v40  ;;  %9400 = vmatprep.subr.bf16.mxu1 %v14587_v55  ;;  %v14611_v40 = vld [vmem:[%s20648_s1 + $0xeac] ss:$200 sps:$4 sm:$0xff]   ;;  %v14609_v55 = vld [vmem:[%s20648_s1 + $0xea8] ss:$200 sps:$4 sm:$0xff]  }
 0x3bb   : > { %9437 = vmatprep.subr.bf16.mxu0 %v14596_v49  ;;  %v8916_v11 = vpop.f32.mrf.mxu0  ;;  %v8966_v21 = vadd.f32 %v18996_v4, %v8914_v10  ;;  %9463 = vmatprep.mubr.bf16.mxu0 %v15375_v2  ;;  %v14600_v4 = vld [vmem:[%s20648_s1 + $0x1e48] ss:$200 sps:$4 sm:$0xff]   ;;  %v14618_v49 = vld [vmem:[%s20648_s1 + $0x1998] ss:$200 sps:$4 sm:$0xff]   ;;  %v14617_v43 = vld [vmem:[%s20648_s1 + $0xd1c] ss:$200 sps:$4 sm:$0xff]  }
 0x3bc   : > { %15149 = vpow2.f32 %v11026_v8  ;;  %v11028_v13 = vmul.f32 1.442695, %v10849_v44  ;;  %v10898_v23 = vmul.f32 %v10685_v48, %v10491_v58  ;;  %v10492_v20 = vmul.f32 %v10335_v9, %v10335_v9  ;;  %v14623_v37 = vld [vmem:[%s20648_s1 + $0xb94] ss:$200 sps:$4 sm:$0xff]   ;;  %v14615_v10 = vld [vmem:[%s20648_s1 + $0xd18] ss:$200 sps:$4 sm:$0xff]  }
 0x3bd   : > { %v8918_v14 = vpop.f32.mrf.mxu0  ;;  %v10384_v54 = vsub.f32 %v8966_v21, %v10121_v25  ;;  %v8968_v28 = vadd.f32 %v19011_v36, %v8916_v11  ;;  %9401 = vmatpush2.bf16.msra.mxu1 %v14585_v56  ;;  %v14599_v25 = vld [vmem:[%s20648_s1 + $0x11cc] ss:$200 sps:$4 sm:$0xff]   ;;  %v14608_v36 = vld [vmem:[%s20648_s1 + $0x1cbc] ss:$200 sps:$4 sm:$0xff]   ;;  %v14621_v8 = vld [vmem:[%s20648_s1 + $0xb90] ss:$200 sps:$4 sm:$0xff]  }
 0x3be   : > { %15151 = vpow2.f32 %v11028_v13  ;;  %v11126_v15 = vmul.f32 1.442695, %v10898_v23  ;;  %v10899_v12 = vmul.f32 %v19088_v22, %v10492_v20  ;;  %9438 = vmatpush1.bf16.msra.mxu0 %v14594_v30  ;;  %9402 = vmatprep.subr.bf16.mxu1 %v14593_v7  ;;  %v14626_v58 = vld [vmem:[%s20648_s1 + $0x2494] ss:$200 sps:$4 sm:$0xff]   ;;  %v14629_v9 = vld [vmem:[%s20648_s1 + $0xa04] ss:$200 sps:$4 sm:$0xff]   ;;  %v19206_v20 = vrot.slane %v18663_v60, %v16848_v50 }
 0x3bf   : > { %9439 = vmatprep.subr.bf16.mxu0 %v14602_v59  ;;  %v10541_v17 = vmul.f32 %v10384_v54, %v10384_v54  ;;  %v8919_v24 = vpop.f32.mrf.mxu0  ;;  %v10385_v18 = vsub.f32 %v8968_v28, %v19071_v42  ;;  %v14605_v42 = vld [vmem:[%s20648_s1 + $0x103c] ss:$200 sps:$4 sm:$0xff]   ;;  %v14624_v7 = vld [vmem:[%s20648_s1 + $0x2490] ss:$200 sps:$4 sm:$0xff]   ;;  %v14627_v59 = vld [vmem:[%s20648_s1 + $0xa00] ss:$200 sps:$4 sm:$0xff]  }
 0x3c0   : > { %15153 = vpow2.f32 %v11126_v15  ;;  %v11128_v19 = vmul.f32 1.442695, %v10899_v12  ;;  %v14632_v21 = vld [vmem:[%s20648_s1 + $0x2304] ss:$200 sps:$4 sm:$0xff]   ;;  %v14635_v13 = vld [vmem:[%s20648_s1 + $0x874] ss:$200 sps:$4 sm:$0xff]   ;;  %v19213_v15 = vrot.slane %v18663_v60, %v16858_v33  ;;  %v19230_v24 = vrot.slane %v18682_v0, %v16848_v50 }
 0x3c1   : > { %v10948_v26 = vmul.f32 %v10685_v48, %v10541_v17  ;;  %v10542_v16 = vmul.f32 %v10385_v18, %v10385_v18  ;;  %9403 = vmatpush2.bf16.msra.mxu1 %v14591_v51  ;;  %v14630_v12 = vld [vmem:[%s20648_s1 + $0x2300] ss:$200 sps:$4 sm:$0xff]   ;;  %v14633_v51 = vld [vmem:[%s20648_s1 + $0x870] ss:$200 sps:$4 sm:$0xff]   ;;  %v14641_v60 = vld [vmem:[%s20648_s1 + $0x6e4] ss:$200 sps:$4 sm:$0xff]  }
 0x3c2   : > { %15155 = vpow2.f32 %v11128_v19  ;;  %9440 = vmatpush1.bf16.msra.mxu0 %v14600_v4  ;;  %9404 = vmatprep.subr.bf16.mxu1 %v14599_v25  ;;  %v19235_v19 = vrot.slane %v18682_v0, %v16858_v33 }
 0x3c3   : > { %9441 = vmatprep.subr.bf16.mxu0 %v14608_v36  ;;  %v11226_v48 = vmul.f32 1.442695, %v10948_v26  ;;  %v10949_v52 = vmul.f32 %v19088_v22, %v10542_v16  ;;  %v14620_v22 = vld [vmem:[%s20648_s1 + $0x199c] ss:$200 sps:$4 sm:$0xff]  }
 0x3c4   : > { %v14638_v36 = vld [vmem:[%s20648_s1 + $0x2174] ss:$200 sps:$4 sm:$0xff]  }
 0x3c5   : > { %15157 = vpow2.f32 %v11226_v48  ;;  %v11228_v45 = vmul.f32 1.442695, %v10949_v52  ;;  %9405 = vmatpush2.bf16.msra.mxu1 %v14597_v31  ;;  %v14636_v48 = vld [vmem:[%s20648_s1 + $0x2170] ss:$200 sps:$4 sm:$0xff]   ;;  %v14644_v52 = vld [vmem:[%s20648_s1 + $0x1fe4] ss:$200 sps:$4 sm:$0xff]  }
 0x3c6   : > { %9442 = vmatpush1.bf16.msra.mxu0 %v14606_v53  ;;  %9406 = vmatprep.subr.bf16.mxu1 %v14605_v42 }
 0x3c7   : > { %9443 = vmatprep.subr.bf16.mxu0 %v14614_v38  ;;  %15159 = vpow2.f32 %v11228_v45  ;;  %v14639_v38 = vld [vmem:[%s20648_s1 + $0x6e0] ss:$200 sps:$4 sm:$0xff]   ;;  %v14647_v45 = vld [vmem:[%s20648_s1 + $0x554] ss:$200 sps:$4 sm:$0xff]  }
 0x3c9   : > { %v15150_v62 = vpop.eup %15149  ;;  %9407 = vmatpush2.bf16.msra.mxu1 %v14603_v32 }
 0x3ca   : > { %11298 = vst [vmem:[%s16416_s10 + $0xe0] sm:$0xff] %v15150_v62  ;;  %9444 = vmatpush1.bf16.msra.mxu0 %v14612_v1  ;;  %9408 = vmatprep.subr.bf16.mxu1 %v14611_v40 }
 0x3cb   : > { %v15152_v5 = vpop.eup %15151  ;;  %9445 = vmatprep.subr.bf16.mxu0 %v14620_v22 }
 0x3cc   : > { %11299 = vst [vmem:[%s16416_s10 + $0xe8] sm:$0xff] %v15152_v5 }
 0x3cd   : > { %v15154_v29 = vpop.eup %15153  ;;  %9409 = vmatpush2.bf16.msra.mxu1 %v14609_v55 }
 0x3ce   : > { %11348 = vst [vmem:[%s16416_s10 + $0x270] sm:$0xff] %v15154_v29  ;;  %9446 = vmatpush1.bf16.msra.mxu0 %v14618_v49  ;;  %9410 = vmatprep.subr.bf16.mxu1 %v14617_v43 }
 0x3cf   : > { %v15156_v44 = vpop.eup %15155  ;;  %9482 = vmatprep.subr.bf16.mxu0 %v14623_v37 }
 0x3d0   : > { %11349 = vst [vmem:[%s16416_s10 + $0x278] sm:$0xff] %v15156_v44  ;;  %v14650_v44 = vld [vmem:[%s20648_s1 + $0x1e54] ss:$200 sps:$4 sm:$0xff]  }
 0x3d1   : > { %v9057_v56 = vpop.f32.mrf.mxu0  ;;  %9464 = vmatmul.mubr.bf16.vlgmr.msra.gmra.mxu0 %v15568_v57  ;;  %9411 = vmatpush2.bf16.msra.mxu1 %v14615_v10  ;;  %v14642_v10 = vld [vmem:[%s20648_s1 + $0x1fe0] ss:$200 sps:$4 sm:$0xff]  }
 0x3d2   : > { %v15158_v30 = vpop.eup %15157  ;;  %9483 = vmatpush1.bf16.msra.mxu0 %v14621_v8  ;;  %9533 = vmatprep.subr.bf16.mxu1 %v14626_v58  ;;  %v14645_v8 = vld [vmem:[%s20648_s1 + $0x550] ss:$200 sps:$4 sm:$0xff]   ;;  %v14653_v58 = vld [vmem:[%s20648_s1 + $0x3c4] ss:$200 sps:$4 sm:$0xff]  }
 0x3d3   : > { %11398 = vst [vmem:[%s16416_s10 + $0x400] sm:$0xff] %v15158_v30  ;;  %v9059_v11 = vpop.f32.mrf.mxu0  ;;  %9484 = vmatprep.subr.bf16.mxu0 %v14629_v9  ;;  %9473 = vmatprep.mubr.bf16.mxu0 %v15375_v2 }
 0x3d4   : > { %v15160_v23 = vpop.eup %15159  ;;  %v9006_v14 = vpop.f32.mrf.mxu1  ;;  %9413 = vmatmul.mubr.bf16.vlgmr.msra.gmra.mxu1 %v15529_v34 }
 0x3d5   : > { %11399 = vst [vmem:[%s16416_s10 + $0x408] sm:$0xff] %v15160_v23  ;;  %v9061_v54 = vpop.f32.mrf.mxu0  ;;  %v9058_v28 = vadd.f32 %v9057_v56, %v9006_v14  ;;  %9534 = vmatpush1.bf16.msra.mxu1 %v14624_v7  ;;  %9422 = vmatprep.mubr.bf16.mxu1 %v15550_v47 }
 0x3d6   : > { %9485 = vmatpush1.bf16.msra.mxu0 %v14627_v59  ;;  %v9008_v4 = vpop.f32.mrf.mxu1  ;;  %9535 = vmatprep.subr.bf16.mxu1 %v14632_v21 }
 0x3d7   : > { %v9063_v25 = vpop.f32.mrf.mxu0  ;;  %9486 = vmatprep.subr.bf16.mxu0 %v14635_v13  ;;  %v10286_v17 = vsub.f32 %v9058_v28, %v19206_v20  ;;  %v9060_v18 = vadd.f32 %v9059_v11, %v9008_v4  ;;  %v14648_v28 = vld [vmem:[%s20648_s1 + $0x1e50] ss:$200 sps:$4 sm:$0xff]  }
 0x3d8   : > { %v9010_v26 = vpop.f32.mrf.mxu1 }
 0x3d9   : > { %v9067_v16 = vpop.f32.mrf.mxu0  ;;  %9474 = vmatmul.mubr.bf16.gmra.mxu0 %v15593_v3  ;;  %v10443_v31 = vmul.f32 %v10286_v17, %v10286_v17  ;;  %v10287_v53 = vsub.f32 %v9060_v18, %v19213_v15  ;;  %v9062_v42 = vadd.f32 %v9061_v54, %v9010_v26  ;;  %9536 = vmatpush1.bf16.msra.mxu1 %v14630_v12  ;;  %v14651_v12 = vld [vmem:[%s20648_s1 + $0x3c0] ss:$200 sps:$4 sm:$0xff]  }
 0x3da   : > { %9487 = vmatpush1.bf16.msra.mxu0 %v14633_v51  ;;  %v9012_v0 = vpop.f32.mrf.mxu1  ;;  %9537 = vmatprep.subr.bf16.mxu1 %v14638_v36  ;;  %v14659_v51 = vld [vmem:[%s20648_s1 + $0x234] ss:$200 sps:$4 sm:$0xff]   ;;  %v14654_v26 = vld [vmem:[%s20648_s1 + $0x1cc0] ss:$200 sps:$4 sm:$0xff]  }
 0x3db   : > { %9488 = vmatprep.subr.bf16.mxu0 %v14641_v60  ;;  %v9069_v32 = vpop.f32.mrf.mxu0  ;;  %v10850_v1 = vmul.f32 %v19230_v24, %v10443_v31  ;;  %v10444_v40 = vmul.f32 %v10287_v53, %v10287_v53  ;;  %v10336_v22 = vsub.f32 %v9062_v42, %v19206_v20  ;;  %v9064_v62 = vadd.f32 %v9063_v25, %v9012_v0  ;;  %v14668_v0 = vld [vmem:[%s20648_s1 + $0x19a4] ss:$200 sps:$4 sm:$0xff]  }
 0x3dc   : > { %9514 = vmatprep.mubr.bf16.mxu0 %v15548_v46  ;;  %9423 = vmatmul.mubr.bf16.gmra.mxu1 %v15531_v35  ;;  %v9016_v55 = vpop.f32.mrf.mxu1 }
 0x3dd   : > { %v9071_v49 = vpop.f32.mrf.mxu0  ;;  %v11030_v5 = vmul.f32 1.442695, %v10850_v1  ;;  %v10851_v43 = vmul.f32 %v19235_v19, %v10444_v40  ;;  %v10493_v37 = vmul.f32 %v10336_v22, %v10336_v22  ;;  %v10337_v29 = vsub.f32 %v9064_v62, %v19213_v15  ;;  %9538 = vmatpush1.bf16.msra.mxu1 %v14636_v48  ;;  %9565 = vmatprep.mubr.bf16.mxu1 %v15375_v2  ;;  %v14660_v48 = vld [vmem:[%s20648_s1 + $0x1b30] ss:$200 sps:$4 sm:$0xff]   ;;  %v14674_v40 = vld [vmem:[%s20648_s1 + $0xb9c] ss:$200 sps:$4 sm:$0xff]  }
 0x3de   : > { %9489 = vmatpush1.bf16.msra.mxu0 %v14639_v38  ;;  %9539 = vmatprep.subr.bf16.mxu1 %v14644_v52  ;;  %v9068_v9 = vadd.f32 %v9067_v16, %v9016_v55  ;;  %v9018_v56 = vpop.f32.mrf.mxu1  ;;  %v14657_v16 = vld [vmem:[%s20648_s1 + $0x230] ss:$200 sps:$4 sm:$0xff]   ;;  %v14663_v38 = vld [vmem:[%s20648_s1 + $0xa0] ss:$200 sps:$4 sm:$0xff]   ;;  %v14677_v22 = vld [vmem:[%s20648_s1 + $0x1684] ss:$200 sps:$4 sm:$0xff]  }
 0x3df   : > { %9490 = vmatprep.subr.bf16.mxu0 %v14647_v45  ;;  %v9072_v30 = vpop.f32.mrf.mxu0  ;;  %15161 = vpow2.f32 %v11030_v5  ;;  %v11032_v7 = vmul.f32 1.442695, %v10851_v43  ;;  %v10900_v59 = vmul.f32 %v19230_v24, %v10493_v37  ;;  %v10494_v11 = vmul.f32 %v10337_v29, %v10337_v29  ;;  %v14666_v45 = vld [vmem:[%s20648_s1 + $0x19a0] ss:$200 sps:$4 sm:$0xff]   ;;  %v14680_v43 = vld [vmem:[%s20648_s1 + $0xa0c] ss:$200 sps:$4 sm:$0xff]  }
 0x3e0   : > { %v10386_v21 = vsub.f32 %v9068_v9, %v19206_v20  ;;  %v9070_v13 = vadd.f32 %v9069_v32, %v9018_v56  ;;  %v9020_v23 = vpop.f32.mrf.mxu1  ;;  %v14656_v20 = vld [vmem:[%s20648_s1 + $0x1cc4] ss:$200 sps:$4 sm:$0xff]   ;;  %v14669_v32 = vld [vmem:[%s20648_s1 + $0x1810] ss:$200 sps:$4 sm:$0xff]   ;;  %v14675_v49 = vld [vmem:[%s20648_s1 + $0x1680] ss:$200 sps:$4 sm:$0xff]  }
 0x3e1   : > { %15163 = vpow2.f32 %v11032_v7  ;;  %v11130_v14 = vmul.f32 1.442695, %v10900_v59  ;;  %v10901_v54 = vmul.f32 %v19235_v19, %v10494_v11  ;;  %9540 = vmatpush1.bf16.msra.mxu1 %v14642_v10  ;;  %v14672_v55 = vld [vmem:[%s20648_s1 + $0xb98] ss:$200 sps:$4 sm:$0xff]   ;;  %v14683_v37 = vld [vmem:[%s20648_s1 + $0x14f4] ss:$200 sps:$4 sm:$0xff]  }
 0x3e2   : > { %9491 = vmatpush1.bf16.msra.mxu0 %v14645_v8  ;;  %9541 = vmatprep.subr.bf16.mxu1 %v14650_v44  ;;  %v10543_v4 = vmul.f32 %v10386_v21, %v10386_v21  ;;  %v10387_v25 = vsub.f32 %v9070_v13, %v19213_v15  ;;  %v9021_v36 = vpop.f32.mrf.mxu1  ;;  %v14662_v15 = vld [vmem:[%s20648_s1 + $0x1b34] ss:$200 sps:$4 sm:$0xff]   ;;  %v14678_v8 = vld [vmem:[%s20648_s1 + $0xa08] ss:$200 sps:$4 sm:$0xff]   ;;  %v14689_v9 = vld [vmem:[%s20648_s1 + $0x1364] ss:$200 sps:$4 sm:$0xff]  }
 0x3e3   : > { %9492 = vmatprep.subr.bf16.mxu0 %v14653_v58  ;;  %15165 = vpow2.f32 %v11130_v14  ;;  %v11132_v60 = vmul.f32 1.442695, %v10901_v54  ;;  %v14681_v44 = vld [vmem:[%s20648_s1 + $0x14f0] ss:$200 sps:$4 sm:$0xff]   ;;  %v14686_v58 = vld [vmem:[%s20648_s1 + $0x87c] ss:$200 sps:$4 sm:$0xff]  }
 0x3e4   : > { %v10950_v17 = vmul.f32 %v19230_v24, %v10543_v4  ;;  %v10544_v18 = vmul.f32 %v10387_v25, %v10387_v25  ;;  %v14665_v24 = vld [vmem:[%s20648_s1 + $0xa4] ss:$200 sps:$4 sm:$0xff]   ;;  %v14684_v59 = vld [vmem:[%s20648_s1 + $0x878] ss:$200 sps:$4 sm:$0xff]   ;;  %v14695_v13 = vld [vmem:[%s20648_s1 + $0x11d4] ss:$200 sps:$4 sm:$0xff]  }
 0x3e5   : > { %15167 = vpow2.f32 %v11132_v60  ;;  %9542 = vmatpush1.bf16.msra.mxu1 %v14648_v28  ;;  %v14687_v11 = vld [vmem:[%s20648_s1 + $0x1360] ss:$200 sps:$4 sm:$0xff]   ;;  %v14692_v21 = vld [vmem:[%s20648_s1 + $0x6ec] ss:$200 sps:$4 sm:$0xff]   ;;  %v14693_v28 = vld [vmem:[%s20648_s1 + $0x11d0] ss:$200 sps:$4 sm:$0xff]  }
 0x3e6   : > { %9493 = vmatpush1.bf16.msra.mxu0 %v14651_v12  ;;  %9543 = vmatprep.subr.bf16.mxu1 %v14656_v20  ;;  %v11230_v31 = vmul.f32 1.442695, %v10950_v17  ;;  %v10951_v53 = vmul.f32 %v19235_v19, %v10544_v18  ;;  %v14671_v19 = vld [vmem:[%s20648_s1 + $0x1814] ss:$200 sps:$4 sm:$0xff]   ;;  %v14690_v54 = vld [vmem:[%s20648_s1 + $0x6e8] ss:$200 sps:$4 sm:$0xff]  }
 0x3e7   : > { %9494 = vmatprep.subr.bf16.mxu0 %v14659_v51  ;;  %v14698_v12 = vld [vmem:[%s20648_s1 + $0x55c] ss:$200 sps:$4 sm:$0xff]   ;;  %v14696_v25 = vld [vmem:[%s20648_s1 + $0x558] ss:$200 sps:$4 sm:$0xff]   ;;  %v14704_v60 = vld [vmem:[%s20648_s1 + $0x3cc] ss:$200 sps:$4 sm:$0xff]  }
 0x3e8   : > { %15169 = vpow2.f32 %v11230_v31  ;;  %v11232_v42 = vmul.f32 1.442695, %v10951_v53  ;;  %v14701_v20 = vld [vmem:[%s20648_s1 + $0x1044] ss:$200 sps:$4 sm:$0xff]   ;;  %v14699_v36 = vld [vmem:[%s20648_s1 + $0x1040] ss:$200 sps:$4 sm:$0xff]  }
 0x3e9   : > { %9544 = vmatpush1.bf16.msra.mxu1 %v14654_v26  ;;  %v14707_v17 = vld [vmem:[%s20648_s1 + $0xeb4] ss:$200 sps:$4 sm:$0xff]   ;;  %v14702_v26 = vld [vmem:[%s20648_s1 + $0x3c8] ss:$200 sps:$4 sm:$0xff]   ;;  %v14708_v31 = vld [vmem:[%s20648_s1 + $0x238] ss:$200 sps:$4 sm:$0xff]  }
 0x3ea   : > { %9495 = vmatpush1.bf16.msra.mxu0 %v14657_v16  ;;  %9545 = vmatprep.subr.bf16.mxu1 %v14662_v15  ;;  %15171 = vpow2.f32 %v11232_v42  ;;  %v14705_v16 = vld [vmem:[%s20648_s1 + $0xeb0] ss:$200 sps:$4 sm:$0xff]   ;;  %v14710_v15 = vld [vmem:[%s20648_s1 + $0x23c] ss:$200 sps:$4 sm:$0xff]   ;;  %v14711_v53 = vld [vmem:[%s20648_s1 + $0xd20] ss:$200 sps:$4 sm:$0xff]  }
 0x3eb   : > { %9496 = vmatprep.subr.bf16.mxu0 %v14665_v24  ;;  %v14713_v24 = vld [vmem:[%s20648_s1 + $0xd24] ss:$200 sps:$4 sm:$0xff]  }
 0x3ec   : > { %v15162_v52 = vpop.eup %15161  ;;  %v14716_v42 = vld [vmem:[%s20648_s1 + $0xac] ss:$200 sps:$4 sm:$0xff]  }
 0x3ed   : > { %11300 = vst [vmem:[%s16416_s10 + $0xf0] sm:$0xff] %v15162_v52  ;;  %9546 = vmatpush1.bf16.msra.mxu1 %v14660_v48  ;;  %v14722_v48 = vld [vmem:[%s20648_s1 + $0x249c] ss:$200 sps:$4 sm:$0xff]  }
 0x3ee   : > { %9497 = vmatpush1.bf16.msra.mxu0 %v14663_v38  ;;  %v15164_v1 = vpop.eup %15163  ;;  %9547 = vmatprep.subr.bf16.mxu1 %v14668_v0  ;;  %v19433_v38 = vld [vmem:[%s20649_s2 + $0x20] sm:$0xff]  ;;  %v14714_v0 = vld [vmem:[%s20648_s1 + $0xa8] ss:$200 sps:$4 sm:$0xff]  }
 0x3ef   : > { %9498 = vmatprep.subr.bf16.mxu0 %v14671_v19  ;;  %11301 = vst [vmem:[%s16416_s10 + $0xf8] sm:$0xff] %v15164_v1  ;;  %v14720_v19 = vld [vmem:[%s20648_s1 + $0x2498] ss:$200 sps:$4 sm:$0xff]   ;;  %v14719_v52 = vld [vmem:[%s20648_s1 + $0x181c] ss:$200 sps:$4 sm:$0xff]  }
 0x3f0   : > { %v15166_v62 = vpop.eup %15165 }
 0x3f1   : > { %11350 = vst [vmem:[%s16416_s10 + $0x280] sm:$0xff] %v15166_v62  ;;  %9548 = vmatpush1.bf16.msra.mxu1 %v14666_v45  ;;  %v14728_v45 = vld [vmem:[%s20648_s1 + $0x230c] ss:$200 sps:$4 sm:$0xff]   ;;  %v14717_v62 = vld [vmem:[%s20648_s1 + $0x1818] ss:$200 sps:$4 sm:$0xff]  }
 0x3f2   : > { %9499 = vmatpush2.bf16.msra.mxu0 %v14669_v32  ;;  %v15168_v5 = vpop.eup %15167  ;;  %9584 = vmatprep.subr.bf16.mxu1 %v14674_v40  ;;  %v10137_v32 = vrot.slane %v19433_v38, %v16285_v61  ;;  %v19452_v40 = vld [vmem:[%s20650_s3 + $0x20] sm:$0xff] }
 0x3f3   : > { %9500 = vmatprep.subr.bf16.mxu0 %v14677_v22  ;;  %11351 = vst [vmem:[%s16416_s10 + $0x288] sm:$0xff] %v15168_v5 }
 0x3f4   : > { %9566 = vmatmul.mubr.bf16.vlgmr.msra.gmra.mxu1 %v15568_v57  ;;  %v19341_v29 = vpop.f32.mrf.mxu1 }
 0x3f5   : > { %v15170_v10 = vpop.eup %15169  ;;  %9585 = vmatpush1.bf16.msra.mxu1 %v14672_v55  ;;  %9575 = vmatprep.mubr.bf16.mxu1 %v15375_v2  ;;  %v19461_v55 = vrot.slane %v19433_v38, %v16291_v63 }
 0x3f6   : > { %9501 = vmatpush2.bf16.msra.mxu0 %v14675_v49  ;;  %9586 = vmatprep.subr.bf16.mxu1 %v14680_v43  ;;  %11400 = vst [vmem:[%s16416_s10 + $0x410] sm:$0xff] %v15170_v10  ;;  %v19356_v56 = vpop.f32.mrf.mxu1  ;;  %v14726_v49 = vld [vmem:[%s20648_s1 + $0x2308] ss:$200 sps:$4 sm:$0xff]   ;;  %v14725_v43 = vld [vmem:[%s20648_s1 + $0x168c] ss:$200 sps:$4 sm:$0xff]   ;;  %v10701_v10 = vrot.slane %v19452_v40, %v16285_v61 }
 0x3f7   : > { %9502 = vmatprep.subr.bf16.mxu0 %v14683_v37  ;;  %v15172_v30 = vpop.eup %15171  ;;  %v14734_v37 = vld [vmem:[%s20648_s1 + $0x217c] ss:$200 sps:$4 sm:$0xff]  }
 0x3f8   : > { %11401 = vst [vmem:[%s16416_s10 + $0x418] sm:$0xff] %v15172_v30  ;;  %v19360_v7 = vpop.f32.mrf.mxu1 }
 0x3f9   : > { %9587 = vmatpush1.bf16.msra.mxu1 %v14678_v8 }
 0x3fa   : > { %9503 = vmatpush2.bf16.msra.mxu0 %v14681_v44  ;;  %9588 = vmatprep.subr.bf16.mxu1 %v14686_v58  ;;  %v19374_v23 = vpop.f32.mrf.mxu1  ;;  %v19478_v44 = vrot.slane %v19452_v40, %v16291_v63 }
 0x3fb   : > { %9504 = vmatprep.subr.bf16.mxu0 %v14689_v9 }
 0x3fc   : > { %v19376_v14 = vpop.f32.mrf.mxu1  ;;  %9576 = vmatmul.mubr.bf16.gmra.mxu1 %v15593_v3 }
 0x3fd   : > { %9589 = vmatpush1.bf16.msra.mxu1 %v14684_v59  ;;  %9616 = vmatprep.mubr.bf16.mxu1 %v15548_v46 }
 0x3fe   : > { %9505 = vmatpush2.bf16.msra.mxu0 %v14687_v11  ;;  %9590 = vmatprep.subr.bf16.mxu1 %v14692_v21  ;;  %v19391_v51 = vpop.f32.mrf.mxu1  ;;  %v14723_v11 = vld [vmem:[%s20648_s1 + $0x1688] ss:$200 sps:$4 sm:$0xff]  }
 0x3ff   : > { %9506 = vmatprep.subr.bf16.mxu0 %v14695_v13  ;;  %v14731_v13 = vld [vmem:[%s20648_s1 + $0x14fc] ss:$200 sps:$4 sm:$0xff]  }
 0x400   : > { %v9173_v4 = vpop.f32.mrf.mxu1 }
 0x401   : > { %9591 = vmatpush1.bf16.msra.mxu1 %v14690_v54 }
 0x402   : > { %9507 = vmatpush2.bf16.msra.mxu0 %v14693_v28  ;;  %9592 = vmatprep.subr.bf16.mxu1 %v14698_v12  ;;  %v9174_v18 = vpop.f32.mrf.mxu1 }
 0x403   : > { %9508 = vmatprep.subr.bf16.mxu0 %v14701_v20  ;;  %v14729_v18 = vld [vmem:[%s20648_s1 + $0x14f8] ss:$200 sps:$4 sm:$0xff]  }
 0x405   : > { %9593 = vmatpush1.bf16.msra.mxu1 %v14696_v25 }
 0x406   : > { %9509 = vmatpush2.bf16.msra.mxu0 %v14699_v36  ;;  %9594 = vmatprep.subr.bf16.mxu1 %v14704_v60 }
 0x407   : > { %9510 = vmatprep.subr.bf16.mxu0 %v14707_v17 }
 0x409   : > { %9595 = vmatpush1.bf16.msra.mxu1 %v14702_v26  ;;  %v14738_v26 = vld [vmem:[%s20648_s1 + $0x1fe8] ss:$200 sps:$4 sm:$0xff]  }
 0x40a   : > { %9511 = vmatpush2.bf16.msra.mxu0 %v14705_v16  ;;  %9596 = vmatprep.subr.bf16.mxu1 %v14710_v15  ;;  %v14746_v16 = vld [vmem:[%s20648_s1 + $0x1e5c] ss:$200 sps:$4 sm:$0xff]  }
 0x40b   : > { %9512 = vmatprep.subr.bf16.mxu0 %v14713_v24 }
 0x40d   : > { %9597 = vmatpush1.bf16.msra.mxu1 %v14708_v31 }
 0x40e   : > { %9513 = vmatpush2.bf16.msra.mxu0 %v14711_v53  ;;  %9598 = vmatprep.subr.bf16.mxu1 %v14716_v42 }
 0x40f   : > { %9635 = vmatprep.subr.bf16.mxu0 %v14722_v48 }
 0x411   : > { %v9108_v1 = vpop.f32.mrf.mxu0  ;;  %9515 = vmatmul.mubr.bf16.vlgmr.msra.gmra.mxu0 %v15529_v34  ;;  %9599 = vmatpush1.bf16.msra.mxu1 %v14714_v0 }
 0x412   : > { %v9160_v22 = vadd.f32 %v19341_v29, %v9108_v1  ;;  %9636 = vmatpush1.bf16.msra.mxu0 %v14720_v19  ;;  %9600 = vmatprep.subr.bf16.mxu1 %v14719_v52  ;;  %v14735_v1 = vld [vmem:[%s20648_s1 + $0x1368] ss:$200 sps:$4 sm:$0xff]  }
 0x413   : > { %v9110_v5 = vpop.f32.mrf.mxu0  ;;  %9637 = vmatprep.subr.bf16.mxu0 %v14728_v45  ;;  %9524 = vmatprep.mubr.bf16.mxu0 %v15550_v47 }
 0x414   : > { %v10288_v29 = vsub.f32 %v9160_v22, %v10137_v32  ;;  %v9162_v8 = vadd.f32 %v19356_v56, %v9110_v5  ;;  %v14732_v56 = vld [vmem:[%s20648_s1 + $0x2178] ss:$200 sps:$4 sm:$0xff]  }
 0x415   : > { %v9112_v58 = vpop.f32.mrf.mxu0  ;;  %9601 = vmatpush2.bf16.msra.mxu1 %v14717_v62 }
 0x416   : > { %v10445_v9 = vmul.f32 %v10288_v29, %v10288_v29  ;;  %v10289_v30 = vsub.f32 %v9162_v8, %v19461_v55  ;;  %v9164_v59 = vadd.f32 %v19360_v7, %v9112_v58  ;;  %9638 = vmatpush1.bf16.msra.mxu0 %v14726_v49  ;;  %9602 = vmatprep.subr.bf16.mxu1 %v14725_v43  ;;  %v14740_v7 = vld [vmem:[%s20648_s1 + $0x1fec] ss:$200 sps:$4 sm:$0xff]   ;;  %v14741_v29 = vld [vmem:[%s20648_s1 + $0x11d8] ss:$200 sps:$4 sm:$0xff]   ;;  %v14750_v8 = vld [vmem:[%s20648_s1 + $0x1cc8] ss:$200 sps:$4 sm:$0xff]  }
 0x417   : > { %v9114_v21 = vpop.f32.mrf.mxu0  ;;  %9639 = vmatprep.subr.bf16.mxu0 %v14734_v37  ;;  %v14758_v58 = vld [vmem:[%s20648_s1 + $0x1b3c] ss:$200 sps:$4 sm:$0xff]  }
 0x418   : > { %v10852_v54 = vmul.f32 %v10701_v10, %v10445_v9  ;;  %v10446_v28 = vmul.f32 %v10289_v30, %v10289_v30  ;;  %v10338_v12 = vsub.f32 %v9164_v59, %v10137_v32  ;;  %v9166_v20 = vadd.f32 %v19374_v23, %v9114_v21  ;;  %v14737_v23 = vld [vmem:[%s20648_s1 + $0x136c] ss:$200 sps:$4 sm:$0xff]   ;;  %v14747_v59 = vld [vmem:[%s20648_s1 + $0x1048] ss:$200 sps:$4 sm:$0xff]  }
 0x419   : > { %v9118_v4 = vpop.f32.mrf.mxu0  ;;  %9525 = vmatmul.mubr.bf16.gmra.mxu0 %v15531_v35  ;;  %9603 = vmatpush2.bf16.msra.mxu1 %v14723_v11  ;;  %v14756_v11 = vld [vmem:[%s20648_s1 + $0x1b38] ss:$200 sps:$4 sm:$0xff]  }
 0x41a   : > { %v11034_v25 = vmul.f32 1.442695, %v10852_v54  ;;  %v10853_v36 = vmul.f32 %v19478_v44, %v10446_v28  ;;  %v10495_v60 = vmul.f32 %v10338_v12, %v10338_v12  ;;  %v10339_v17 = vsub.f32 %v9166_v20, %v19461_v55  ;;  %9640 = vmatpush1.bf16.msra.mxu0 %v14732_v56  ;;  %9604 = vmatprep.subr.bf16.mxu1 %v14731_v13  ;;  %v14755_v56 = vld [vmem:[%s20648_s1 + $0xebc] ss:$200 sps:$4 sm:$0xff]   ;;  %v14753_v13 = vld [vmem:[%s20648_s1 + $0xeb8] ss:$200 sps:$4 sm:$0xff]  }
 0x41b   : > { %9641 = vmatprep.subr.bf16.mxu0 %v14740_v7  ;;  %v9120_v15 = vpop.f32.mrf.mxu0  ;;  %v9170_v24 = vadd.f32 %v19376_v14, %v9118_v4  ;;  %9667 = vmatprep.mubr.bf16.mxu0 %v15375_v2  ;;  %v14744_v14 = vld [vmem:[%s20648_s1 + $0x1e58] ss:$200 sps:$4 sm:$0xff]   ;;  %v14762_v7 = vld [vmem:[%s20648_s1 + $0x19a8] ss:$200 sps:$4 sm:$0xff]   ;;  %v14761_v28 = vld [vmem:[%s20648_s1 + $0xd2c] ss:$200 sps:$4 sm:$0xff]  }
 0x41c   : > { %15173 = vpow2.f32 %v11034_v25  ;;  %v11036_v31 = vmul.f32 1.442695, %v10853_v36  ;;  %v10902_v53 = vmul.f32 %v10701_v10, %v10495_v60  ;;  %v10496_v42 = vmul.f32 %v10339_v17, %v10339_v17  ;;  %v14767_v12 = vld [vmem:[%s20648_s1 + $0xba4] ss:$200 sps:$4 sm:$0xff]   ;;  %v14759_v4 = vld [vmem:[%s20648_s1 + $0xd28] ss:$200 sps:$4 sm:$0xff]  }
 0x41d   : > { %v9122_v48 = vpop.f32.mrf.mxu0  ;;  %v10388_v0 = vsub.f32 %v9170_v24, %v10137_v32  ;;  %v9172_v19 = vadd.f32 %v19391_v51, %v9120_v15  ;;  %9605 = vmatpush2.bf16.msra.mxu1 %v14729_v18  ;;  %v14743_v32 = vld [vmem:[%s20648_s1 + $0x11dc] ss:$200 sps:$4 sm:$0xff]   ;;  %v14752_v51 = vld [vmem:[%s20648_s1 + $0x1ccc] ss:$200 sps:$4 sm:$0xff]   ;;  %v14765_v25 = vld [vmem:[%s20648_s1 + $0xba0] ss:$200 sps:$4 sm:$0xff]  }
 0x41e   : > { %15175 = vpow2.f32 %v11036_v31  ;;  %v11134_v52 = vmul.f32 1.442695, %v10902_v53  ;;  %v10903_v45 = vmul.f32 %v19478_v44, %v10496_v42  ;;  %9642 = vmatpush1.bf16.msra.mxu0 %v14738_v26  ;;  %9606 = vmatprep.subr.bf16.mxu1 %v14737_v23  ;;  %v14770_v60 = vld [vmem:[%s20648_s1 + $0x24a4] ss:$200 sps:$4 sm:$0xff]   ;;  %v14773_v17 = vld [vmem:[%s20648_s1 + $0xa14] ss:$200 sps:$4 sm:$0xff]   ;;  %v19596_v42 = vrot.slane %v19433_v38, %v16441_v27 }
 0x41f   : > { %9643 = vmatprep.subr.bf16.mxu0 %v14746_v16  ;;  %v10545_v22 = vmul.f32 %v10388_v0, %v10388_v0  ;;  %v9123_v62 = vpop.f32.mrf.mxu0  ;;  %v10389_v49 = vsub.f32 %v9172_v19, %v19461_v55  ;;  %v14749_v55 = vld [vmem:[%s20648_s1 + $0x104c] ss:$200 sps:$4 sm:$0xff]   ;;  %v14768_v23 = vld [vmem:[%s20648_s1 + $0x24a0] ss:$200 sps:$4 sm:$0xff]   ;;  %v14771_v16 = vld [vmem:[%s20648_s1 + $0xa10] ss:$200 sps:$4 sm:$0xff]  }
 0x420   : > { %15177 = vpow2.f32 %v11134_v52  ;;  %v11136_v5 = vmul.f32 1.442695, %v10903_v45  ;;  %v14776_v24 = vld [vmem:[%s20648_s1 + $0x2314] ss:$200 sps:$4 sm:$0xff]   ;;  %v14779_v31 = vld [vmem:[%s20648_s1 + $0x884] ss:$200 sps:$4 sm:$0xff]   ;;  %v19603_v52 = vrot.slane %v19433_v38, %v16451_v41 }
 0x421   : > { %v10952_v43 = vmul.f32 %v10701_v10, %v10545_v22  ;;  %v10546_v37 = vmul.f32 %v10389_v49, %v10389_v49  ;;  %9607 = vmatpush2.bf16.msra.mxu1 %v14735_v1  ;;  %v14774_v45 = vld [vmem:[%s20648_s1 + $0x2310] ss:$200 sps:$4 sm:$0xff]   ;;  %v14777_v1 = vld [vmem:[%s20648_s1 + $0x880] ss:$200 sps:$4 sm:$0xff]   ;;  %v14785_v22 = vld [vmem:[%s20648_s1 + $0x6f4] ss:$200 sps:$4 sm:$0xff]   ;;  %v19620_v49 = vrot.slane %v19452_v40, %v16441_v27 }
 0x422   : > { %15179 = vpow2.f32 %v11136_v5  ;;  %9644 = vmatpush1.bf16.msra.mxu0 %v14744_v14  ;;  %9608 = vmatprep.subr.bf16.mxu1 %v14743_v32 }
 0x423   : > { %9645 = vmatprep.subr.bf16.mxu0 %v14752_v51  ;;  %v11234_v10 = vmul.f32 1.442695, %v10952_v43  ;;  %v10953_v9 = vmul.f32 %v19478_v44, %v10546_v37  ;;  %v14764_v44 = vld [vmem:[%s20648_s1 + $0x19ac] ss:$200 sps:$4 sm:$0xff]   ;;  %v19625_v43 = vrot.slane %v19452_v40, %v16451_v41 }
 0x424   : > { %v14782_v51 = vld [vmem:[%s20648_s1 + $0x2184] ss:$200 sps:$4 sm:$0xff]  }
 0x425   : > { %15181 = vpow2.f32 %v11234_v10  ;;  %v11236_v30 = vmul.f32 1.442695, %v10953_v9  ;;  %9609 = vmatpush2.bf16.msra.mxu1 %v14741_v29  ;;  %v14783_v9 = vld [vmem:[%s20648_s1 + $0x6f0] ss:$200 sps:$4 sm:$0xff]  }
 0x426   : > { %9646 = vmatpush1.bf16.msra.mxu0 %v14750_v8  ;;  %9610 = vmatprep.subr.bf16.mxu1 %v14749_v55 }
 0x427   : > { %9647 = vmatprep.subr.bf16.mxu0 %v14758_v58  ;;  %15183 = vpow2.f32 %v11236_v30  ;;  %v14780_v58 = vld [vmem:[%s20648_s1 + $0x2180] ss:$200 sps:$4 sm:$0xff]  }
 0x429   : > { %v15174_v21 = vpop.eup %15173  ;;  %9611 = vmatpush2.bf16.msra.mxu1 %v14747_v59  ;;  %v14788_v59 = vld [vmem:[%s20648_s1 + $0x1ff4] ss:$200 sps:$4 sm:$0xff]  }
 0x42a   : > { %11302 = vst [vmem:[%s16416_s10 + $0x100] sm:$0xff] %v15174_v21  ;;  %9648 = vmatpush1.bf16.msra.mxu0 %v14756_v11  ;;  %9612 = vmatprep.subr.bf16.mxu1 %v14755_v56  ;;  %v14791_v11 = vld [vmem:[%s20648_s1 + $0x564] ss:$200 sps:$4 sm:$0xff]  }
 0x42b   : > { %v15176_v54 = vpop.eup %15175  ;;  %9649 = vmatprep.subr.bf16.mxu0 %v14764_v44 }
 0x42c   : > { %11303 = vst [vmem:[%s16416_s10 + $0x108] sm:$0xff] %v15176_v54 }
 0x42d   : > { %v15178_v20 = vpop.eup %15177  ;;  %9613 = vmatpush2.bf16.msra.mxu1 %v14753_v13 }
 0x42e   : > { %11352 = vst [vmem:[%s16416_s10 + $0x290] sm:$0xff] %v15178_v20  ;;  %9650 = vmatpush1.bf16.msra.mxu0 %v14762_v7  ;;  %9614 = vmatprep.subr.bf16.mxu1 %v14761_v28 }
 0x42f   : > { %v15180_v36 = vpop.eup %15179  ;;  %9686 = vmatprep.subr.bf16.mxu0 %v14767_v12 }
 0x430   : > { %11353 = vst [vmem:[%s16416_s10 + $0x298] sm:$0xff] %v15180_v36  ;;  %v14786_v36 = vld [vmem:[%s20648_s1 + $0x1ff0] ss:$200 sps:$4 sm:$0xff]  }
 0x431   : > { %v9261_v18 = vpop.f32.mrf.mxu0  ;;  %9668 = vmatmul.mubr.bf16.vlgmr.msra.gmra.mxu0 %v15568_v57  ;;  %9615 = vmatpush2.bf16.msra.mxu1 %v14759_v4 }
 0x432   : > { %v15182_v26 = vpop.eup %15181  ;;  %9687 = vmatpush1.bf16.msra.mxu0 %v14765_v25  ;;  %9737 = vmatprep.subr.bf16.mxu1 %v14770_v60  ;;  %v14789_v60 = vld [vmem:[%s20648_s1 + $0x560] ss:$200 sps:$4 sm:$0xff]  }
 0x433   : > { %11402 = vst [vmem:[%s16416_s10 + $0x420] sm:$0xff] %v15182_v26  ;;  %v9263_v15 = vpop.f32.mrf.mxu0  ;;  %9688 = vmatprep.subr.bf16.mxu0 %v14773_v17  ;;  %9677 = vmatprep.mubr.bf16.mxu0 %v15375_v2  ;;  %v14794_v17 = vld [vmem:[%s20648_s1 + $0x1e64] ss:$200 sps:$4 sm:$0xff]  }
 0x434   : > { %v15184_v53 = vpop.eup %15183  ;;  %v9210_v48 = vpop.f32.mrf.mxu1  ;;  %9617 = vmatmul.mubr.bf16.vlgmr.msra.gmra.mxu1 %v15529_v34 }
 0x435   : > { %11403 = vst [vmem:[%s16416_s10 + $0x428] sm:$0xff] %v15184_v53  ;;  %v9265_v0 = vpop.f32.mrf.mxu0  ;;  %v9262_v19 = vadd.f32 %v9261_v18, %v9210_v48  ;;  %9738 = vmatpush1.bf16.msra.mxu1 %v14768_v23  ;;  %9626 = vmatprep.mubr.bf16.mxu1 %v15550_v47  ;;  %v14797_v18 = vld [vmem:[%s20648_s1 + $0x3d4] ss:$200 sps:$4 sm:$0xff]  }
 0x436   : > { %9689 = vmatpush1.bf16.msra.mxu0 %v14771_v16  ;;  %v9212_v14 = vpop.f32.mrf.mxu1  ;;  %9739 = vmatprep.subr.bf16.mxu1 %v14776_v24 }
 0x437   : > { %v9267_v32 = vpop.f32.mrf.mxu0  ;;  %9690 = vmatprep.subr.bf16.mxu0 %v14779_v31  ;;  %v10290_v62 = vsub.f32 %v9262_v19, %v19596_v42  ;;  %v9264_v5 = vadd.f32 %v9263_v15, %v9212_v14  ;;  %v14795_v14 = vld [vmem:[%s20648_s1 + $0x3d0] ss:$200 sps:$4 sm:$0xff]  }
 0x438   : > { %v9214_v37 = vpop.f32.mrf.mxu1 }
 0x439   : > { %v9271_v29 = vpop.f32.mrf.mxu0  ;;  %9678 = vmatmul.mubr.bf16.gmra.mxu0 %v15593_v3  ;;  %v10447_v8 = vmul.f32 %v10290_v62, %v10290_v62  ;;  %v10291_v55 = vsub.f32 %v9264_v5, %v19603_v52  ;;  %v9266_v10 = vadd.f32 %v9265_v0, %v9214_v37  ;;  %9740 = vmatpush1.bf16.msra.mxu1 %v14774_v45 }
 0x43a   : > { %9691 = vmatpush1.bf16.msra.mxu0 %v14777_v1  ;;  %v9216_v30 = vpop.f32.mrf.mxu1  ;;  %9741 = vmatprep.subr.bf16.mxu1 %v14782_v51  ;;  %v14792_v1 = vld [vmem:[%s20648_s1 + $0x1e60] ss:$200 sps:$4 sm:$0xff]  }
 0x43b   : > { %9692 = vmatprep.subr.bf16.mxu0 %v14785_v22  ;;  %v9273_v56 = vpop.f32.mrf.mxu0  ;;  %v10854_v44 = vmul.f32 %v19620_v49, %v10447_v8  ;;  %v10448_v21 = vmul.f32 %v10291_v55, %v10291_v55  ;;  %v10340_v13 = vsub.f32 %v9266_v10, %v19596_v42  ;;  %v9268_v7 = vadd.f32 %v9267_v32, %v9216_v30  ;;  %v14803_v32 = vld [vmem:[%s20648_s1 + $0x244] ss:$200 sps:$4 sm:$0xff]   ;;  %v14798_v8 = vld [vmem:[%s20648_s1 + $0x1cd0] ss:$200 sps:$4 sm:$0xff]   ;;  %v14801_v55 = vld [vmem:[%s20648_s1 + $0x240] ss:$200 sps:$4 sm:$0xff]  }
 0x43c   : > { %9718 = vmatprep.mubr.bf16.mxu0 %v15548_v46  ;;  %9627 = vmatmul.mubr.bf16.gmra.mxu1 %v15531_v35  ;;  %v9220_v54 = vpop.f32.mrf.mxu1  ;;  %v14804_v30 = vld [vmem:[%s20648_s1 + $0x1b40] ss:$200 sps:$4 sm:$0xff]  }
 0x43d   : > { %v9275_v28 = vpop.f32.mrf.mxu0  ;;  %v11038_v12 = vmul.f32 1.442695, %v10854_v44  ;;  %v10855_v20 = vmul.f32 %v19625_v43, %v10448_v21  ;;  %v10497_v4 = vmul.f32 %v10340_v13, %v10340_v13  ;;  %v10341_v25 = vsub.f32 %v9268_v7, %v19603_v52  ;;  %9742 = vmatpush1.bf16.msra.mxu1 %v14780_v58  ;;  %9769 = vmatprep.mubr.bf16.mxu1 %v15375_v2  ;;  %v14810_v44 = vld [vmem:[%s20648_s1 + $0x19b0] ss:$200 sps:$4 sm:$0xff]   ;;  %v14813_v21 = vld [vmem:[%s20648_s1 + $0x1820] ss:$200 sps:$4 sm:$0xff]  }
 0x43e   : > { %9693 = vmatpush1.bf16.msra.mxu0 %v14783_v9  ;;  %9743 = vmatprep.subr.bf16.mxu1 %v14788_v59  ;;  %v9272_v26 = vadd.f32 %v9271_v29, %v9220_v54  ;;  %v9222_v23 = vpop.f32.mrf.mxu1  ;;  %v14807_v59 = vld [vmem:[%s20648_s1 + $0xb0] ss:$200 sps:$4 sm:$0xff]   ;;  %v14818_v7 = vld [vmem:[%s20648_s1 + $0xbac] ss:$200 sps:$4 sm:$0xff]  }
 0x43f   : > { %9694 = vmatprep.subr.bf16.mxu0 %v14791_v11  ;;  %v9276_v16 = vpop.f32.mrf.mxu0  ;;  %15185 = vpow2.f32 %v11038_v12  ;;  %v11040_v15 = vmul.f32 1.442695, %v10855_v20  ;;  %v10904_v24 = vmul.f32 %v19620_v49, %v10497_v4  ;;  %v10498_v31 = vmul.f32 %v10341_v25, %v10341_v25  ;;  %v14812_v11 = vld [vmem:[%s20648_s1 + $0x19b4] ss:$200 sps:$4 sm:$0xff]   ;;  %v14816_v12 = vld [vmem:[%s20648_s1 + $0xba8] ss:$200 sps:$4 sm:$0xff]  }
 0x440   : > { %v10390_v53 = vsub.f32 %v9272_v26, %v19596_v42  ;;  %v9274_v48 = vadd.f32 %v9273_v56, %v9222_v23  ;;  %v9224_v0 = vpop.f32.mrf.mxu1  ;;  %v14800_v42 = vld [vmem:[%s20648_s1 + $0x1cd4] ss:$200 sps:$4 sm:$0xff]   ;;  %v14819_v20 = vld [vmem:[%s20648_s1 + $0x1690] ss:$200 sps:$4 sm:$0xff]   ;;  %v14825_v26 = vld [vmem:[%s20648_s1 + $0x1500] ss:$200 sps:$4 sm:$0xff]  }
 0x441   : > { %15187 = vpow2.f32 %v11040_v15  ;;  %v11138_v19 = vmul.f32 1.442695, %v10904_v24  ;;  %v10905_v45 = vmul.f32 %v19625_v43, %v10498_v31  ;;  %9744 = vmatpush1.bf16.msra.mxu1 %v14786_v36  ;;  %v14821_v54 = vld [vmem:[%s20648_s1 + $0x1694] ss:$200 sps:$4 sm:$0xff]   ;;  %v14827_v36 = vld [vmem:[%s20648_s1 + $0x1504] ss:$200 sps:$4 sm:$0xff]  }
 0x442   : > { %9695 = vmatpush1.bf16.msra.mxu0 %v14789_v60  ;;  %9745 = vmatprep.subr.bf16.mxu1 %v14794_v17  ;;  %v10547_v51 = vmul.f32 %v10390_v53, %v10390_v53  ;;  %v10391_v22 = vsub.f32 %v9274_v48, %v19603_v52  ;;  %v9225_v62 = vpop.f32.mrf.mxu1  ;;  %v14806_v52 = vld [vmem:[%s20648_s1 + $0x1b44] ss:$200 sps:$4 sm:$0xff]   ;;  %v14833_v16 = vld [vmem:[%s20648_s1 + $0x1374] ss:$200 sps:$4 sm:$0xff]   ;;  %v14828_v53 = vld [vmem:[%s20648_s1 + $0x888] ss:$200 sps:$4 sm:$0xff]  }
 0x443   : > { %9696 = vmatprep.subr.bf16.mxu0 %v14797_v18  ;;  %15189 = vpow2.f32 %v11138_v19  ;;  %v11140_v5 = vmul.f32 1.442695, %v10905_v45  ;;  %v14824_v25 = vld [vmem:[%s20648_s1 + $0xa1c] ss:$200 sps:$4 sm:$0xff]   ;;  %v14822_v18 = vld [vmem:[%s20648_s1 + $0xa18] ss:$200 sps:$4 sm:$0xff]  }
 0x444   : > { %v10954_v37 = vmul.f32 %v19620_v49, %v10547_v51  ;;  %v10548_v29 = vmul.f32 %v10391_v22, %v10391_v22  ;;  %v14809_v49 = vld [vmem:[%s20648_s1 + $0xb4] ss:$200 sps:$4 sm:$0xff]   ;;  %v14831_v48 = vld [vmem:[%s20648_s1 + $0x1370] ss:$200 sps:$4 sm:$0xff]   ;;  %v14839_v19 = vld [vmem:[%s20648_s1 + $0x11e4] ss:$200 sps:$4 sm:$0xff]  }
 0x445   : > { %15191 = vpow2.f32 %v11140_v5  ;;  %9746 = vmatpush1.bf16.msra.mxu1 %v14792_v1  ;;  %v14830_v23 = vld [vmem:[%s20648_s1 + $0x88c] ss:$200 sps:$4 sm:$0xff]   ;;  %v14836_v0 = vld [vmem:[%s20648_s1 + $0x6fc] ss:$200 sps:$4 sm:$0xff]   ;;  %v14840_v5 = vld [vmem:[%s20648_s1 + $0x568] ss:$200 sps:$4 sm:$0xff]  }
 0x446   : > { %9697 = vmatpush1.bf16.msra.mxu0 %v14795_v14  ;;  %9747 = vmatprep.subr.bf16.mxu1 %v14800_v42  ;;  %v11238_v10 = vmul.f32 1.442695, %v10954_v37  ;;  %v10955_v58 = vmul.f32 %v19625_v43, %v10548_v29  ;;  %v14815_v43 = vld [vmem:[%s20648_s1 + $0x1824] ss:$200 sps:$4 sm:$0xff]   ;;  %v14834_v14 = vld [vmem:[%s20648_s1 + $0x6f8] ss:$200 sps:$4 sm:$0xff]  }
 0x447   : > { %9698 = vmatprep.subr.bf16.mxu0 %v14803_v32  ;;  %v14837_v42 = vld [vmem:[%s20648_s1 + $0x11e0] ss:$200 sps:$4 sm:$0xff]   ;;  %v14842_v32 = vld [vmem:[%s20648_s1 + $0x56c] ss:$200 sps:$4 sm:$0xff]   ;;  %v14843_v37 = vld [vmem:[%s20648_s1 + $0x1050] ss:$200 sps:$4 sm:$0xff]  }
 0x448   : > { %15193 = vpow2.f32 %v11238_v10  ;;  %v11240_v9 = vmul.f32 1.442695, %v10955_v58  ;;  %v14845_v51 = vld [vmem:[%s20648_s1 + $0x1054] ss:$200 sps:$4 sm:$0xff]  }
 0x449   : > { %9748 = vmatpush1.bf16.msra.mxu1 %v14798_v8  ;;  %v14848_v29 = vld [vmem:[%s20648_s1 + $0x3dc] ss:$200 sps:$4 sm:$0xff]   ;;  %v14854_v10 = vld [vmem:[%s20648_s1 + $0x24c] ss:$200 sps:$4 sm:$0xff]  }
 0x44a   : > { %9699 = vmatpush1.bf16.msra.mxu0 %v14801_v55  ;;  %9749 = vmatprep.subr.bf16.mxu1 %v14806_v52  ;;  %15195 = vpow2.f32 %v11240_v9  ;;  %v14851_v8 = vld [vmem:[%s20648_s1 + $0xec4] ss:$200 sps:$4 sm:$0xff]   ;;  %v14846_v52 = vld [vmem:[%s20648_s1 + $0x3d8] ss:$200 sps:$4 sm:$0xff]   ;;  %v14857_v58 = vld [vmem:[%s20648_s1 + $0xd34] ss:$200 sps:$4 sm:$0xff]  }
 0x44b   : > { %9700 = vmatprep.subr.bf16.mxu0 %v14809_v49  ;;  %v14849_v49 = vld [vmem:[%s20648_s1 + $0xec0] ss:$200 sps:$4 sm:$0xff]  }
 0x44c   : > { %v15186_v56 = vpop.eup %15185  ;;  %v14852_v9 = vld [vmem:[%s20648_s1 + $0x248] ss:$200 sps:$4 sm:$0xff]  }
 0x44d   : > { %11304 = vst [vmem:[%s16416_s10 + $0x110] sm:$0xff] %v15186_v56  ;;  %9750 = vmatpush1.bf16.msra.mxu1 %v14804_v30  ;;  %v14855_v30 = vld [vmem:[%s20648_s1 + $0xd30] ss:$200 sps:$4 sm:$0xff]  }
 0x44e   : > { %9701 = vmatpush1.bf16.msra.mxu0 %v14807_v59  ;;  %v15188_v13 = vpop.eup %15187  ;;  %9751 = vmatprep.subr.bf16.mxu1 %v14812_v11  ;;  %v14860_v59 = vld [vmem:[%s20648_s1 + $0xbc] ss:$200 sps:$4 sm:$0xff]   ;;  %v14866_v11 = vld [vmem:[%s20648_s1 + $0x24ac] ss:$200 sps:$4 sm:$0xff]   ;;  %v14864_v56 = vld [vmem:[%s20648_s1 + $0x24a8] ss:$200 sps:$4 sm:$0xff]  }
 0x44f   : > { %9702 = vmatprep.subr.bf16.mxu0 %v14815_v43  ;;  %11305 = vst [vmem:[%s16416_s10 + $0x118] sm:$0xff] %v15188_v13  ;;  %v14858_v43 = vld [vmem:[%s20648_s1 + $0xb8] ss:$200 sps:$4 sm:$0xff]   ;;  %v10153_v13 = vrot.slane %v19433_v38, %v16690_v39 }
 0x450   : > { %v15190_v28 = vpop.eup %15189 }
 0x451   : > { %11354 = vst [vmem:[%s16416_s10 + $0x2a0] sm:$0xff] %v15190_v28  ;;  %9752 = vmatpush1.bf16.msra.mxu1 %v14810_v44  ;;  %v14863_v44 = vld [vmem:[%s20648_s1 + $0x182c] ss:$200 sps:$4 sm:$0xff]   ;;  %v14861_v28 = vld [vmem:[%s20648_s1 + $0x1828] ss:$200 sps:$4 sm:$0xff]  }
 0x452   : > { %9703 = vmatpush2.bf16.msra.mxu0 %v14813_v21  ;;  %v15192_v4 = vpop.eup %15191  ;;  %9788 = vmatprep.subr.bf16.mxu1 %v14818_v7  ;;  %v14872_v21 = vld [vmem:[%s20648_s1 + $0x231c] ss:$200 sps:$4 sm:$0xff]  }
 0x453   : > { %9704 = vmatprep.subr.bf16.mxu0 %v14821_v54  ;;  %11355 = vst [vmem:[%s16416_s10 + $0x2a8] sm:$0xff] %v15192_v4 }
 0x454   : > { %9770 = vmatmul.mubr.bf16.vlgmr.msra.gmra.mxu1 %v15568_v57  ;;  %v19731_v60 = vpop.f32.mrf.mxu1 }
 0x455   : > { %v15194_v17 = vpop.eup %15193  ;;  %9789 = vmatpush1.bf16.msra.mxu1 %v14816_v12  ;;  %9779 = vmatprep.mubr.bf16.mxu1 %v15375_v2  ;;  %v19841_v12 = vrot.slane %v19433_v38, %v16696_v6 }
 0x456   : > { %9705 = vmatpush2.bf16.msra.mxu0 %v14819_v20  ;;  %9790 = vmatprep.subr.bf16.mxu1 %v14824_v25  ;;  %11404 = vst [vmem:[%s16416_s10 + $0x430] sm:$0xff] %v15194_v17  ;;  %v19746_v15 = vpop.f32.mrf.mxu1  ;;  %v14870_v20 = vld [vmem:[%s20648_s1 + $0x2318] ss:$200 sps:$4 sm:$0xff]   ;;  %v14869_v25 = vld [vmem:[%s20648_s1 + $0x169c] ss:$200 sps:$4 sm:$0xff]   ;;  %v10717_v17 = vrot.slane %v19452_v40, %v16690_v39 }
 0x457   : > { %9706 = vmatprep.subr.bf16.mxu0 %v14827_v36  ;;  %v15196_v24 = vpop.eup %15195  ;;  %v14878_v36 = vld [vmem:[%s20648_s1 + $0x218c] ss:$200 sps:$4 sm:$0xff]  }
 0x458   : > { %11405 = vst [vmem:[%s16416_s10 + $0x438] sm:$0xff] %v15196_v24  ;;  %v19750_v31 = vpop.f32.mrf.mxu1 }
 0x459   : > { %9791 = vmatpush1.bf16.msra.mxu1 %v14822_v18 }
 0x45a   : > { %9707 = vmatpush2.bf16.msra.mxu0 %v14825_v26  ;;  %9792 = vmatprep.subr.bf16.mxu1 %v14830_v23  ;;  %v19764_v45 = vpop.f32.mrf.mxu1  ;;  %v19858_v26 = vrot.slane %v19452_v40, %v16696_v6 }
 0x45b   : > { %9708 = vmatprep.subr.bf16.mxu0 %v14833_v16 }
 0x45c   : > { %v19766_v1 = vpop.f32.mrf.mxu1  ;;  %9780 = vmatmul.mubr.bf16.gmra.mxu1 %v15593_v3 }
 0x45d   : > { %9793 = vmatpush1.bf16.msra.mxu1 %v14828_v53  ;;  %9820 = vmatprep.mubr.bf16.mxu1 %v15548_v46 }
 0x45e   : > { %9709 = vmatpush2.bf16.msra.mxu0 %v14831_v48  ;;  %9794 = vmatprep.subr.bf16.mxu1 %v14836_v0  ;;  %v19781_v22 = vpop.f32.mrf.mxu1  ;;  %v14867_v48 = vld [vmem:[%s20648_s1 + $0x1698] ss:$200 sps:$4 sm:$0xff]  }
 0x45f   : > { %9710 = vmatprep.subr.bf16.mxu0 %v14839_v19  ;;  %v14875_v19 = vld [vmem:[%s20648_s1 + $0x150c] ss:$200 sps:$4 sm:$0xff]  }
 0x460   : > { %v9377_v62 = vpop.f32.mrf.mxu1 }
 0x461   : > { %9795 = vmatpush1.bf16.msra.mxu1 %v14834_v14 }
 0x462   : > { %9711 = vmatpush2.bf16.msra.mxu0 %v14837_v42  ;;  %9796 = vmatprep.subr.bf16.mxu1 %v14842_v32  ;;  %v9378_v55 = vpop.f32.mrf.mxu1 }
 0x463   : > { %9712 = vmatprep.subr.bf16.mxu0 %v14845_v51  ;;  %v14873_v55 = vld [vmem:[%s20648_s1 + $0x1508] ss:$200 sps:$4 sm:$0xff]  }
 0x465   : > { %9797 = vmatpush1.bf16.msra.mxu1 %v14840_v5 }
 0x466   : > { %9713 = vmatpush2.bf16.msra.mxu0 %v14843_v37  ;;  %9798 = vmatprep.subr.bf16.mxu1 %v14848_v29 }
 0x467   : > { %9714 = vmatprep.subr.bf16.mxu0 %v14851_v8 }
 0x469   : > { %9799 = vmatpush1.bf16.msra.mxu1 %v14846_v52  ;;  %v14882_v52 = vld [vmem:[%s20648_s1 + $0x1ff8] ss:$200 sps:$4 sm:$0xff]  }
 0x46a   : > { %9715 = vmatpush2.bf16.msra.mxu0 %v14849_v49  ;;  %9800 = vmatprep.subr.bf16.mxu1 %v14854_v10  ;;  %v14890_v49 = vld [vmem:[%s20648_s1 + $0x1e6c] ss:$200 sps:$4 sm:$0xff]  }
 0x46b   : > { %9716 = vmatprep.subr.bf16.mxu0 %v14857_v58 }
 0x46d   : > { %9801 = vmatpush1.bf16.msra.mxu1 %v14852_v9 }
 0x46e   : > { %9717 = vmatpush2.bf16.msra.mxu0 %v14855_v30  ;;  %9802 = vmatprep.subr.bf16.mxu1 %v14860_v59 }
 0x46f   : > { %9839 = vmatprep.subr.bf16.mxu0 %v14866_v11 }
 0x471   : > { %v9312_v7 = vpop.f32.mrf.mxu0  ;;  %9719 = vmatmul.mubr.bf16.vlgmr.msra.gmra.mxu0 %v15529_v34  ;;  %9803 = vmatpush1.bf16.msra.mxu1 %v14858_v43 }
 0x472   : > { %v9364_v54 = vadd.f32 %v19731_v60, %v9312_v7  ;;  %9840 = vmatpush1.bf16.msra.mxu0 %v14864_v56  ;;  %9804 = vmatprep.subr.bf16.mxu1 %v14863_v44  ;;  %v14879_v7 = vld [vmem:[%s20648_s1 + $0x1378] ss:$200 sps:$4 sm:$0xff]  }
 0x473   : > { %v9314_v4 = vpop.f32.mrf.mxu0  ;;  %9841 = vmatprep.subr.bf16.mxu0 %v14872_v21  ;;  %9728 = vmatprep.mubr.bf16.mxu0 %v15550_v47 }
 0x474   : > { %v10292_v60 = vsub.f32 %v9364_v54, %v10153_v13  ;;  %v9366_v18 = vadd.f32 %v19746_v15, %v9314_v4  ;;  %v14876_v15 = vld [vmem:[%s20648_s1 + $0x2188] ss:$200 sps:$4 sm:$0xff]  }
 0x475   : > { %v9316_v23 = vpop.f32.mrf.mxu0  ;;  %9805 = vmatpush2.bf16.msra.mxu1 %v14861_v28 }
 0x476   : > { %v10449_v16 = vmul.f32 %v10292_v60, %v10292_v60  ;;  %v10293_v24 = vsub.f32 %v9366_v18, %v19841_v12  ;;  %v9368_v53 = vadd.f32 %v19750_v31, %v9316_v23  ;;  %9842 = vmatpush1.bf16.msra.mxu0 %v14870_v20  ;;  %9806 = vmatprep.subr.bf16.mxu1 %v14869_v25  ;;  %v14884_v31 = vld [vmem:[%s20648_s1 + $0x1ffc] ss:$200 sps:$4 sm:$0xff]   ;;  %v14885_v60 = vld [vmem:[%s20648_s1 + $0x11e8] ss:$200 sps:$4 sm:$0xff]   ;;  %v14894_v18 = vld [vmem:[%s20648_s1 + $0x1cd8] ss:$200 sps:$4 sm:$0xff]  }
 0x477   : > { %v9318_v0 = vpop.f32.mrf.mxu0  ;;  %9843 = vmatprep.subr.bf16.mxu0 %v14878_v36  ;;  %v14902_v23 = vld [vmem:[%s20648_s1 + $0x1b4c] ss:$200 sps:$4 sm:$0xff]  }
 0x478   : > { %v10856_v14 = vmul.f32 %v10717_v17, %v10449_v16  ;;  %v10450_v42 = vmul.f32 %v10293_v24, %v10293_v24  ;;  %v10342_v32 = vsub.f32 %v9368_v53, %v10153_v13  ;;  %v9370_v51 = vadd.f32 %v19764_v45, %v9318_v0  ;;  %v14881_v45 = vld [vmem:[%s20648_s1 + $0x137c] ss:$200 sps:$4 sm:$0xff]   ;;  %v14891_v53 = vld [vmem:[%s20648_s1 + $0x1058] ss:$200 sps:$4 sm:$0xff]  }
 0x479   : > { %v9322_v62 = vpop.f32.mrf.mxu0  ;;  %9729 = vmatmul.mubr.bf16.gmra.mxu0 %v15531_v35  ;;  %9807 = vmatpush2.bf16.msra.mxu1 %v14867_v48  ;;  %v14900_v48 = vld [vmem:[%s20648_s1 + $0x1b48] ss:$200 sps:$4 sm:$0xff]  }
 0x47a   : > { %v11042_v5 = vmul.f32 1.442695, %v10856_v14  ;;  %v10857_v37 = vmul.f32 %v19858_v26, %v10450_v42  ;;  %v10499_v29 = vmul.f32 %v10342_v32, %v10342_v32  ;;  %v10343_v8 = vsub.f32 %v9370_v51, %v19841_v12  ;;  %9844 = vmatpush1.bf16.msra.mxu0 %v14876_v15  ;;  %9808 = vmatprep.subr.bf16.mxu1 %v14875_v19  ;;  %v14899_v15 = vld [vmem:[%s20648_s1 + $0xecc] ss:$200 sps:$4 sm:$0xff]   ;;  %v14897_v19 = vld [vmem:[%s20648_s1 + $0xec8] ss:$200 sps:$4 sm:$0xff]  }
 0x47b   : > { %9845 = vmatprep.subr.bf16.mxu0 %v14884_v31  ;;  %v9324_v10 = vpop.f32.mrf.mxu0  ;;  %v9374_v58 = vadd.f32 %v19766_v1, %v9322_v62  ;;  %9871 = vmatprep.mubr.bf16.mxu0 %v15375_v2  ;;  %v14888_v1 = vld [vmem:[%s20648_s1 + $0x1e68] ss:$200 sps:$4 sm:$0xff]   ;;  %v14906_v31 = vld [vmem:[%s20648_s1 + $0x19b8] ss:$200 sps:$4 sm:$0xff]   ;;  %v14905_v42 = vld [vmem:[%s20648_s1 + $0xd3c] ss:$200 sps:$4 sm:$0xff]  }
 0x47c   : > { %15197 = vpow2.f32 %v11042_v5  ;;  %v11044_v9 = vmul.f32 1.442695, %v10857_v37  ;;  %v10906_v30 = vmul.f32 %v10717_v17, %v10499_v29  ;;  %v10500_v59 = vmul.f32 %v10343_v8, %v10343_v8  ;;  %v14911_v32 = vld [vmem:[%s20648_s1 + $0xbb4] ss:$200 sps:$4 sm:$0xff]   ;;  %v14903_v62 = vld [vmem:[%s20648_s1 + $0xd38] ss:$200 sps:$4 sm:$0xff]  }
 0x47d   : > { %v9326_v11 = vpop.f32.mrf.mxu0  ;;  %v10392_v43 = vsub.f32 %v9374_v58, %v10153_v13  ;;  %v9376_v56 = vadd.f32 %v19781_v22, %v9324_v10  ;;  %9809 = vmatpush2.bf16.msra.mxu1 %v14873_v55  ;;  %v14887_v13 = vld [vmem:[%s20648_s1 + $0x11ec] ss:$200 sps:$4 sm:$0xff]   ;;  %v14896_v22 = vld [vmem:[%s20648_s1 + $0x1cdc] ss:$200 sps:$4 sm:$0xff]   ;;  %v14909_v5 = vld [vmem:[%s20648_s1 + $0xbb0] ss:$200 sps:$4 sm:$0xff]  }
 0x47e   : > { %15199 = vpow2.f32 %v11044_v9  ;;  %v11142_v44 = vmul.f32 1.442695, %v10906_v30  ;;  %v10907_v21 = vmul.f32 %v19858_v26, %v10500_v59  ;;  %9846 = vmatpush1.bf16.msra.mxu0 %v14882_v52  ;;  %9810 = vmatprep.subr.bf16.mxu1 %v14881_v45  ;;  %v14914_v29 = vld [vmem:[%s20648_s1 + $0xa24] ss:$200 sps:$4 sm:$0xff]   ;;  %v14932_v8 = vld [vmem:[%s20648_s1 + $0x24b4] ss:$200 sps:$4 sm:$0xff]   ;;  %v19976_v59 = vrot.slane %v19433_v38, %v16848_v50 }
 0x47f   : > { %9847 = vmatprep.subr.bf16.mxu0 %v14890_v49  ;;  %v10549_v54 = vmul.f32 %v10392_v43, %v10392_v43  ;;  %v9327_v28 = vpop.f32.mrf.mxu0  ;;  %v10393_v20 = vsub.f32 %v9376_v56, %v19841_v12  ;;  %v14893_v12 = vld [vmem:[%s20648_s1 + $0x105c] ss:$200 sps:$4 sm:$0xff]   ;;  %v14912_v45 = vld [vmem:[%s20648_s1 + $0xa20] ss:$200 sps:$4 sm:$0xff]   ;;  %v14930_v49 = vld [vmem:[%s20648_s1 + $0x24b0] ss:$200 sps:$4 sm:$0xff]  }
 0x480   : > { %15201 = vpow2.f32 %v11142_v44  ;;  %v11144_v4 = vmul.f32 1.442695, %v10907_v21  ;;  %v14917_v58 = vld [vmem:[%s20648_s1 + $0x894] ss:$200 sps:$4 sm:$0xff]   ;;  %v14938_v9 = vld [vmem:[%s20648_s1 + $0x2324] ss:$200 sps:$4 sm:$0xff]   ;;  %v19983_v44 = vrot.slane %v19433_v38, %v16858_v33  ;;  %v20000_v28 = vrot.slane %v19452_v40, %v16848_v50 }
 0x481   : > { %v10956_v25 = vmul.f32 %v10717_v17, %v10549_v54  ;;  %v10550_v36 = vmul.f32 %v10393_v20, %v10393_v20  ;;  %9811 = vmatpush2.bf16.msra.mxu1 %v14879_v7  ;;  %v14915_v21 = vld [vmem:[%s20648_s1 + $0x890] ss:$200 sps:$4 sm:$0xff]   ;;  %v14936_v7 = vld [vmem:[%s20648_s1 + $0x2320] ss:$200 sps:$4 sm:$0xff]   ;;  %v14944_v38 = vld [vmem:[%s20648_s1 + $0x2194] ss:$200 sps:$4 sm:$0xff]  }
 0x482   : > { %15203 = vpow2.f32 %v11144_v4  ;;  %9848 = vmatpush1.bf16.msra.mxu0 %v14888_v1  ;;  %9812 = vmatprep.subr.bf16.mxu1 %v14887_v13  ;;  %v20005_v4 = vrot.slane %v19452_v40, %v16858_v33 }
 0x483   : > { %9849 = vmatprep.subr.bf16.mxu0 %v14896_v22  ;;  %v11242_v17 = vmul.f32 1.442695, %v10956_v25  ;;  %v10957_v16 = vmul.f32 %v19858_v26, %v10550_v36  ;;  %v14908_v26 = vld [vmem:[%s20648_s1 + $0x19bc] ss:$200 sps:$4 sm:$0xff]  }
 0x484   : > { %v14920_v22 = vld [vmem:[%s20648_s1 + $0x704] ss:$200 sps:$4 sm:$0xff]  }
 0x485   : > { %15205 = vpow2.f32 %v11242_v17  ;;  %v11244_v24 = vmul.f32 1.442695, %v10957_v16  ;;  %9813 = vmatpush2.bf16.msra.mxu1 %v14885_v60  ;;  %v14918_v17 = vld [vmem:[%s20648_s1 + $0x700] ss:$200 sps:$4 sm:$0xff]   ;;  %v14923_v16 = vld [vmem:[%s20648_s1 + $0x574] ss:$200 sps:$4 sm:$0xff]  }
 0x486   : > { %9850 = vmatpush1.bf16.msra.mxu0 %v14894_v18  ;;  %9814 = vmatprep.subr.bf16.mxu1 %v14893_v12 }
 0x487   : > { %9851 = vmatprep.subr.bf16.mxu0 %v14902_v23  ;;  %15207 = vpow2.f32 %v11244_v24  ;;  %v14942_v23 = vld [vmem:[%s20648_s1 + $0x2190] ss:$200 sps:$4 sm:$0xff]   ;;  %v14950_v24 = vld [vmem:[%s20648_s1 + $0x2004] ss:$200 sps:$4 sm:$0xff]  }
 0x489   : > { %v15198_v0 = vpop.eup %15197  ;;  %9815 = vmatpush2.bf16.msra.mxu1 %v14891_v53 }
 0x48a   : > { %11306 = vst [vmem:[%s16416_s10 + $0x120] sm:$0xff] %v15198_v0  ;;  %9852 = vmatpush1.bf16.msra.mxu0 %v14900_v48  ;;  %9816 = vmatprep.subr.bf16.mxu1 %v14899_v15 }
 0x48b   : > { %v15200_v14 = vpop.eup %15199  ;;  %9853 = vmatprep.subr.bf16.mxu0 %v14908_v26 }
 0x48c   : > { %11307 = vst [vmem:[%s16416_s10 + $0x128] sm:$0xff] %v15200_v14 }
 0x48d   : > { %v15202_v51 = vpop.eup %15201  ;;  %9817 = vmatpush2.bf16.msra.mxu1 %v14897_v19 }
 0x48e   : > { %11356 = vst [vmem:[%s16416_s10 + $0x2b0] sm:$0xff] %v15202_v51  ;;  %9854 = vmatpush1.bf16.msra.mxu0 %v14906_v31  ;;  %9818 = vmatprep.subr.bf16.mxu1 %v14905_v42 }
 0x48f   : > { %v15204_v37 = vpop.eup %15203  ;;  %9890 = vmatprep.subr.bf16.mxu0 %v14911_v32 }
 0x490   : > { %11357 = vst [vmem:[%s16416_s10 + $0x2b8] sm:$0xff] %v15204_v37  ;;  %v14956_v37 = vld [vmem:[%s20648_s1 + $0x1e74] ss:$200 sps:$4 sm:$0xff]  }
 0x491   : > { %v9465_v55 = vpop.f32.mrf.mxu0  ;;  %9872 = vmatmul.mubr.bf16.vlgmr.msra.gmra.mxu0 %v15568_v57  ;;  %9819 = vmatpush2.bf16.msra.mxu1 %v14903_v62  ;;  %v14921_v62 = vld [vmem:[%s20648_s1 + $0x570] ss:$200 sps:$4 sm:$0xff]  }
 0x492   : > { %v15206_v52 = vpop.eup %15205  ;;  %9891 = vmatpush1.bf16.msra.mxu0 %v14909_v5  ;;  %9941 = vmatprep.subr.bf16.mxu1 %v14932_v8  ;;  %v14926_v5 = vld [vmem:[%s20648_s1 + $0x3e4] ss:$200 sps:$4 sm:$0xff]  }
 0x493   : > { %11406 = vst [vmem:[%s16416_s10 + $0x440] sm:$0xff] %v15206_v52  ;;  %v9467_v10 = vpop.f32.mrf.mxu0  ;;  %9892 = vmatprep.subr.bf16.mxu0 %v14914_v29  ;;  %9881 = vmatprep.mubr.bf16.mxu0 %v15375_v2 }
 0x494   : > { %v15208_v30 = vpop.eup %15207  ;;  %v9414_v11 = vpop.f32.mrf.mxu1  ;;  %9821 = vmatmul.mubr.bf16.vlgmr.msra.gmra.mxu1 %v15529_v34 }
 0x495   : > { %11407 = vst [vmem:[%s16416_s10 + $0x448] sm:$0xff] %v15208_v30  ;;  %v9469_v43 = vpop.f32.mrf.mxu0  ;;  %v9466_v56 = vadd.f32 %v9465_v55, %v9414_v11  ;;  %9942 = vmatpush1.bf16.msra.mxu1 %v14930_v49  ;;  %9830 = vmatprep.mubr.bf16.mxu1 %v15550_v47 }
 0x496   : > { %9893 = vmatpush1.bf16.msra.mxu0 %v14912_v45  ;;  %v9416_v1 = vpop.f32.mrf.mxu1  ;;  %9943 = vmatprep.subr.bf16.mxu1 %v14938_v9 }
 0x497   : > { %v9471_v13 = vpop.f32.mrf.mxu0  ;;  %9894 = vmatprep.subr.bf16.mxu0 %v14917_v58  ;;  %v10294_v54 = vsub.f32 %v9466_v56, %v19976_v59  ;;  %v9468_v20 = vadd.f32 %v9467_v10, %v9416_v1  ;;  %v14954_v56 = vld [vmem:[%s20648_s1 + $0x1e70] ss:$200 sps:$4 sm:$0xff]  }
 0x498   : > { %v9418_v25 = vpop.f32.mrf.mxu1 }
 0x499   : > { %9882 = vmatmul.mubr.bf16.gmra.mxu0 %v15593_v3  ;;  %v9475_v36 = vpop.f32.mrf.mxu0  ;;  %v10451_v60 = vmul.f32 %v10294_v54, %v10294_v54  ;;  %v10295_v18 = vsub.f32 %v9468_v20, %v19983_v44  ;;  %v9470_v12 = vadd.f32 %v9469_v43, %v9418_v25  ;;  %9944 = vmatpush1.bf16.msra.mxu1 %v14936_v7  ;;  %v14924_v43 = vld [vmem:[%s20648_s1 + $0x3e0] ss:$200 sps:$4 sm:$0xff]   ;;  %v14927_v20 = vld [vmem:[%s20648_s1 + $0x250] ss:$200 sps:$4 sm:$0xff]  }
 0x49a   : > { %9895 = vmatpush1.bf16.msra.mxu0 %v14915_v21  ;;  %v9420_v40 = vpop.f32.mrf.mxu1  ;;  %9945 = vmatprep.subr.bf16.mxu1 %v14944_v38  ;;  %v14962_v21 = vld [vmem:[%s20648_s1 + $0x1ce4] ss:$200 sps:$4 sm:$0xff]   ;;  %v14960_v25 = vld [vmem:[%s20648_s1 + $0x1ce0] ss:$200 sps:$4 sm:$0xff]  }
 0x49b   : > { %9896 = vmatprep.subr.bf16.mxu0 %v14920_v22  ;;  %v9477_v53 = vpop.f32.mrf.mxu0  ;;  %v10858_v48 = vmul.f32 %v20000_v28, %v10451_v60  ;;  %v10452_v15 = vmul.f32 %v10295_v18, %v10295_v18  ;;  %v10344_v26 = vsub.f32 %v9470_v12, %v19976_v59  ;;  %v9472_v0 = vadd.f32 %v9471_v13, %v9420_v40  ;;  %v14933_v12 = vld [vmem:[%s20648_s1 + $0xc0] ss:$200 sps:$4 sm:$0xff]  }
 0x49c   : > { %9922 = vmatprep.mubr.bf16.mxu0 %v15548_v46  ;;  %9831 = vmatmul.mubr.bf16.gmra.mxu1 %v15531_v35  ;;  %v9424_v19 = vpop.f32.mrf.mxu1  ;;  %v14948_v46 = vld [vmem:[%s20648_s1 + $0x2000] ss:$200 sps:$4 sm:$0xff]  }
 0x49d   : > { %v9479_v31 = vpop.f32.mrf.mxu0  ;;  %v11046_v14 = vmul.f32 1.442695, %v10858_v48  ;;  %v10859_v42 = vmul.f32 %v20005_v4, %v10452_v15  ;;  %v10501_v32 = vmul.f32 %v10344_v26, %v10344_v26  ;;  %v10345_v51 = vsub.f32 %v9472_v0, %v19983_v44  ;;  %9946 = vmatpush1.bf16.msra.mxu1 %v14942_v23  ;;  %9973 = vmatprep.mubr.bf16.mxu1 %v15375_v2  ;;  %v14941_v23 = vld [vmem:[%s20648_s1 + $0x1834] ss:$200 sps:$4 sm:$0xff]   ;;  %v14947_v48 = vld [vmem:[%s20648_s1 + $0x16a4] ss:$200 sps:$4 sm:$0xff]  }
 0x49e   : > { %9897 = vmatpush1.bf16.msra.mxu0 %v14918_v17  ;;  %9947 = vmatprep.subr.bf16.mxu1 %v14950_v24  ;;  %v9476_v29 = vadd.f32 %v9475_v36, %v9424_v19  ;;  %v9426_v8 = vpop.f32.mrf.mxu1  ;;  %v14966_v17 = vld [vmem:[%s20648_s1 + $0x1b50] ss:$200 sps:$4 sm:$0xff]   ;;  %v14972_v24 = vld [vmem:[%s20648_s1 + $0x19c0] ss:$200 sps:$4 sm:$0xff]   ;;  %v14953_v19 = vld [vmem:[%s20648_s1 + $0x1514] ss:$200 sps:$4 sm:$0xff]  }
 0x49f   : > { %9898 = vmatprep.subr.bf16.mxu0 %v14923_v16  ;;  %v9480_v55 = vpop.f32.mrf.mxu0  ;;  %15209 = vpow2.f32 %v11046_v14  ;;  %v11048_v52 = vmul.f32 1.442695, %v10859_v42  ;;  %v10908_v45 = vmul.f32 %v20000_v28, %v10501_v32  ;;  %v10502_v49 = vmul.f32 %v10345_v51, %v10345_v51  ;;  %v14939_v16 = vld [vmem:[%s20648_s1 + $0x1830] ss:$200 sps:$4 sm:$0xff]   ;;  %v14945_v26 = vld [vmem:[%s20648_s1 + $0x16a0] ss:$200 sps:$4 sm:$0xff]  }
 0x4a0   : > { %v10394_v10 = vsub.f32 %v9476_v29, %v19976_v59  ;;  %v9478_v58 = vadd.f32 %v9477_v53, %v9426_v8  ;;  %v9428_v9 = vpop.f32.mrf.mxu1  ;;  %v14929_v59 = vld [vmem:[%s20648_s1 + $0x254] ss:$200 sps:$4 sm:$0xff]   ;;  %v14951_v42 = vld [vmem:[%s20648_s1 + $0x1510] ss:$200 sps:$4 sm:$0xff]   ;;  %v14959_v32 = vld [vmem:[%s20648_s1 + $0x1384] ss:$200 sps:$4 sm:$0xff]  }
 0x4a1   : > { %15211 = vpow2.f32 %v11048_v52  ;;  %v11146_v30 = vmul.f32 1.442695, %v10908_v45  ;;  %v10909_v11 = vmul.f32 %v20005_v4, %v10502_v49  ;;  %9948 = vmatpush1.bf16.msra.mxu1 %v14948_v46  ;;  %v14963_v29 = vld [vmem:[%s20648_s1 + $0x11f0] ss:$200 sps:$4 sm:$0xff]   ;;  %v14971_v8 = vld [vmem:[%s20648_s1 + $0x1064] ss:$200 sps:$4 sm:$0xff]  }
 0x4a2   : > { %9899 = vmatpush1.bf16.msra.mxu0 %v14921_v62  ;;  %9949 = vmatprep.subr.bf16.mxu1 %v14956_v37  ;;  %v10551_v7 = vmul.f32 %v10394_v10, %v10394_v10  ;;  %v10395_v1 = vsub.f32 %v9478_v58, %v19983_v44  ;;  %v9429_v13 = vpop.f32.mrf.mxu1  ;;  %v14935_v44 = vld [vmem:[%s20648_s1 + $0xc4] ss:$200 sps:$4 sm:$0xff]   ;;  %v14969_v45 = vld [vmem:[%s20648_s1 + $0x1060] ss:$200 sps:$4 sm:$0xff]   ;;  %v14975_v10 = vld [vmem:[%s20648_s1 + $0xed0] ss:$200 sps:$4 sm:$0xff]  }
 0x4a3   : > { %9900 = vmatprep.subr.bf16.mxu0 %v14926_v5  ;;  %15213 = vpow2.f32 %v11146_v30  ;;  %v11148_v22 = vmul.f32 1.442695, %v10909_v11  ;;  %v14980_v58 = vld [vmem:[%s20648_s1 + $0xd44] ss:$200 sps:$4 sm:$0xff]   ;;  %v14978_v9 = vld [vmem:[%s20648_s1 + $0xd40] ss:$200 sps:$4 sm:$0xff]  }
 0x4a4   : > { %v10958_v38 = vmul.f32 %v20000_v28, %v10551_v7  ;;  %v10552_v54 = vmul.f32 %v10395_v1, %v10395_v1  ;;  %v14968_v28 = vld [vmem:[%s20648_s1 + $0x1b54] ss:$200 sps:$4 sm:$0xff]   ;;  %v20142_v30 = vld [vmem:[%s20649_s2 + $0x28] sm:$0xff] }
 0x4a5   : > { %15215 = vpow2.f32 %v11148_v22  ;;  %9950 = vmatpush1.bf16.msra.mxu1 %v14954_v56  ;;  %v10169_v11 = vrot.slane %v20142_v30, %v16285_v61  ;;  %v20149_v56 = vld [vmem:[%s20650_s3 + $0x28] sm:$0xff] }
 0x4a6   : > { %9901 = vmatpush1.bf16.msra.mxu0 %v14924_v43  ;;  %9951 = vmatprep.subr.bf16.mxu1 %v14962_v21  ;;  %v11246_v36 = vmul.f32 1.442695, %v10958_v38  ;;  %v10959_v60 = vmul.f32 %v20005_v4, %v10552_v54  ;;  %v14974_v4 = vld [vmem:[%s20648_s1 + $0x19c4] ss:$200 sps:$4 sm:$0xff]   ;;  %v10173_v21 = vrot.slane %v20142_v30, %v16291_v63  ;;  %v10733_v13 = vrot.slane %v20149_v56, %v16285_v61 }
 0x4a7   : > { %9902 = vmatprep.subr.bf16.mxu0 %v14929_v59 }
 0x4a8   : > { %15217 = vpow2.f32 %v11246_v36  ;;  %v11248_v18 = vmul.f32 1.442695, %v10959_v60 }
 0x4a9   : > { %9952 = vmatpush1.bf16.msra.mxu1 %v14960_v25  ;;  %v10737_v25 = vrot.slane %v20149_v56, %v16291_v63 }
 0x4aa   : > { %9903 = vmatpush1.bf16.msra.mxu0 %v14927_v20  ;;  %9953 = vmatprep.subr.bf16.mxu1 %v14968_v28  ;;  %15219 = vpow2.f32 %v11248_v18 }
 0x4ab   : > { %9904 = vmatprep.subr.bf16.mxu0 %v14935_v44 }
 0x4ac   : > { %v15210_v40 = vpop.eup %15209 }
 0x4ad   : > { %11308 = vst [vmem:[%s16416_s10 + $0x130] sm:$0xff] %v15210_v40  ;;  %9954 = vmatpush1.bf16.msra.mxu1 %v14966_v17 }
 0x4ae   : > { %9905 = vmatpush1.bf16.msra.mxu0 %v14933_v12  ;;  %v15212_v53 = vpop.eup %15211  ;;  %9955 = vmatprep.subr.bf16.mxu1 %v14974_v4 }
 0x4af   : > { %9906 = vmatprep.subr.bf16.mxu0 %v14941_v23  ;;  %11309 = vst [vmem:[%s16416_s10 + $0x138] sm:$0xff] %v15212_v53 }
 0x4b0   : > { %v15214_v15 = vpop.eup %15213 }
 0x4b1   : > { %11358 = vst [vmem:[%s16416_s10 + $0x2c0] sm:$0xff] %v15214_v15  ;;  %9956 = vmatpush1.bf16.msra.mxu1 %v14972_v24 }
 0x4b2   : > { %9907 = vmatpush2.bf16.msra.mxu0 %v14939_v16  ;;  %v15216_v0 = vpop.eup %15215 }
 0x4b3   : > { %9908 = vmatprep.subr.bf16.mxu0 %v14947_v48  ;;  %11359 = vst [vmem:[%s16416_s10 + $0x2c8] sm:$0xff] %v15216_v0 }
 0x4b4   : > { %9974 = vmatmul.mubr.bf16.vlgmr.msra.gmra.mxu1 %v15568_v57  ;;  %v9567_v31 = vpop.f32.mrf.mxu1  ;;  %v14957_v57 = vld [vmem:[%s20648_s1 + $0x1380] ss:$200 sps:$4 sm:$0xff]  }
 0x4b5   : > { %v15218_v14 = vpop.eup %15217  ;;  %9983 = vmatprep.mubr.bf16.mxu1 %v15375_v2  ;;  %v14965_v2 = vld [vmem:[%s20648_s1 + $0x11f4] ss:$200 sps:$4 sm:$0xff]  }
 0x4b6   : > { %9909 = vmatpush2.bf16.msra.mxu0 %v14945_v26  ;;  %11408 = vst [vmem:[%s16416_s10 + $0x450] sm:$0xff] %v15218_v14  ;;  %v9569_v51 = vpop.f32.mrf.mxu1 }
 0x4b7   : > { %9910 = vmatprep.subr.bf16.mxu0 %v14953_v19  ;;  %v15220_v62 = vpop.eup %15219 }
 0x4b8   : > { %11409 = vst [vmem:[%s16416_s10 + $0x458] sm:$0xff] %v15220_v62  ;;  %v9571_v46 = vpop.f32.mrf.mxu1 }
 0x4ba   : > { %9911 = vmatpush2.bf16.msra.mxu0 %v14951_v42  ;;  %v9573_v5 = vpop.f32.mrf.mxu1 }
 0x4bb   : > { %9912 = vmatprep.subr.bf16.mxu0 %v14959_v32 }
 0x4bc   : > { %9984 = vmatmul.mubr.bf16.gmra.mxu1 %v15593_v3  ;;  %v9577_v37 = vpop.f32.mrf.mxu1  ;;  %v14977_v3 = vld [vmem:[%s20648_s1 + $0xed4] ss:$200 sps:$4 sm:$0xff]  }
 0x4be   : > { %9913 = vmatpush2.bf16.msra.mxu0 %v14957_v57  ;;  %v9579_v55 = vpop.f32.mrf.mxu1 }
 0x4bf   : > { %9914 = vmatprep.subr.bf16.mxu0 %v14965_v2 }
 0x4c0   : > { %v9581_v52 = vpop.f32.mrf.mxu1 }
 0x4c2   : > { %9915 = vmatpush2.bf16.msra.mxu0 %v14963_v29  ;;  %v9582_v49 = vpop.f32.mrf.mxu1 }
 0x4c3   : > { %9916 = vmatprep.subr.bf16.mxu0 %v14971_v8  ;;  %v10177_v49 = vrot.slane %v20142_v30, %v16441_v27 }
 0x4c6   : > { %9917 = vmatpush2.bf16.msra.mxu0 %v14969_v45 }
 0x4c7   : > { %9918 = vmatprep.subr.bf16.mxu0 %v14977_v3 }
 0x4ca   : > { %9919 = vmatpush2.bf16.msra.mxu0 %v14975_v10 }
 0x4cb   : > { %9920 = vmatprep.subr.bf16.mxu0 %v14980_v58 }
 0x4ce   : > { %9921 = vmatpush2.bf16.msra.mxu0 %v14978_v9 }
 0x4d1   : > { %v9516_v43 = vpop.f32.mrf.mxu0  ;;  %9923 = vmatmul.mubr.bf16.vlgmr.msra.gmra.mxu0 %v15529_v34 }
 0x4d2   : > { %v9568_v59 = vadd.f32 %v9567_v31, %v9516_v43  ;;  %9932 = vmatprep.mubr.bf16.mxu0 %v15550_v47 }
 0x4d3   : > { %v9518_v7 = vpop.f32.mrf.mxu0 }
 0x4d4   : > { %v10296_v1 = vsub.f32 %v9568_v59, %v10169_v11  ;;  %v9570_v22 = vadd.f32 %v9569_v51, %v9518_v7  ;;  %v10741_v7 = vrot.slane %v20149_v56, %v16441_v27 }
 0x4d5   : > { %v9520_v38 = vpop.f32.mrf.mxu0 }
 0x4d6   : > { %v10453_v54 = vmul.f32 %v10296_v1, %v10296_v1  ;;  %v10297_v20 = vsub.f32 %v9570_v22, %v10173_v21  ;;  %v9572_v44 = vadd.f32 %v9571_v46, %v9520_v38 }
 0x4d7   : > { %v9522_v34 = vpop.f32.mrf.mxu0 }
 0x4d8   : > { %v10860_v28 = vmul.f32 %v10733_v13, %v10453_v54  ;;  %v10454_v36 = vmul.f32 %v10297_v20, %v10297_v20  ;;  %v10346_v60 = vsub.f32 %v9572_v44, %v10169_v11  ;;  %v9574_v18 = vadd.f32 %v9573_v5, %v9522_v34 }
 0x4d9   : > { %9933 = vmatmul.mubr.bf16.gmra.mxu0 %v15531_v35  ;;  %v9526_v47 = vpop.f32.mrf.mxu0  ;;  %v10745_v20 = vrot.slane %v20149_v56, %v16451_v41 }
 0x4da   : > { %v11050_v12 = vmul.f32 1.442695, %v10860_v28  ;;  %v10861_v17 = vmul.f32 %v10737_v25, %v10454_v36  ;;  %v10503_v23 = vmul.f32 %v10346_v60, %v10346_v60  ;;  %v10347_v4 = vsub.f32 %v9574_v18, %v10173_v21 }
 0x4db   : > { %v9528_v40 = vpop.f32.mrf.mxu0  ;;  %v9578_v16 = vadd.f32 %v9577_v37, %v9526_v47 }
 0x4dc   : > { %15221 = vpow2.f32 %v11050_v12  ;;  %v11052_v24 = vmul.f32 1.442695, %v10861_v17  ;;  %v10910_v53 = vmul.f32 %v10733_v13, %v10503_v23  ;;  %v10504_v48 = vmul.f32 %v10347_v4, %v10347_v4 }
 0x4dd   : > { %v9530_v15 = vpop.f32.mrf.mxu0  ;;  %v10396_v26 = vsub.f32 %v9578_v16, %v10169_v11  ;;  %v9580_v0 = vadd.f32 %v9579_v55, %v9528_v40  ;;  %v10181_v11 = vrot.slane %v20142_v30, %v16451_v41 }
 0x4de   : > { %15223 = vpow2.f32 %v11052_v24  ;;  %v11150_v19 = vmul.f32 1.442695, %v10910_v53  ;;  %v10911_v31 = vmul.f32 %v10737_v25, %v10504_v48 }
 0x4df   : > { %v10553_v14 = vmul.f32 %v10396_v26, %v10396_v26  ;;  %v9531_v35 = vpop.f32.mrf.mxu0  ;;  %v10397_v42 = vsub.f32 %v9580_v0, %v10173_v21 }
 0x4e0   : > { %15225 = vpow2.f32 %v11150_v19  ;;  %v11152_v32 = vmul.f32 1.442695, %v10911_v31 }
 0x4e1   : > { %v10960_v51 = vmul.f32 %v10733_v13, %v10553_v14  ;;  %v10554_v62 = vmul.f32 %v10397_v42, %v10397_v42 }
 0x4e2   : > { %15227 = vpow2.f32 %v11152_v32 }
 0x4e3   : > { %v11250_v46 = vmul.f32 1.442695, %v10960_v51  ;;  %v10961_v57 = vmul.f32 %v10737_v25, %v10554_v62 }
 0x4e5   : > { %15229 = vpow2.f32 %v11250_v46  ;;  %v11252_v2 = vmul.f32 1.442695, %v10961_v57 }
 0x4e7   : > { %15231 = vpow2.f32 %v11252_v2 }
 0x4e9   : > { %v15222_v5 = vpop.eup %15221 }
 0x4ea   : > { %11310 = vst [vmem:[%s16416_s10 + $0x140] sm:$0xff] %v15222_v5 }
 0x4eb   : > { %v15224_v37 = vpop.eup %15223 }
 0x4ec   : > { %11311 = vst [vmem:[%s16416_s10 + $0x148] sm:$0xff] %v15224_v37 }
 0x4ed   : > { %v15226_v29 = vpop.eup %15225 }
 0x4ee   : > { %11360 = vst [vmem:[%s16416_s10 + $0x2d0] sm:$0xff] %v15226_v29 }
 0x4ef   : > { %v15228_v8 = vpop.eup %15227 }
 0x4f0   : > { %11361 = vst [vmem:[%s16416_s10 + $0x2d8] sm:$0xff] %v15228_v8 }
 0x4f1   : > { %v9669_v55 = vpop.f32.mrf.mxu0 }
 0x4f2   : > { %v15230_v52 = vpop.eup %15229 }
 0x4f3   : > { %11410 = vst [vmem:[%s16416_s10 + $0x460] sm:$0xff] %v15230_v52  ;;  %v9671_v45 = vpop.f32.mrf.mxu0 }
 0x4f4   : > { %v15232_v3 = vpop.eup %15231  ;;  %v9618_v10 = vpop.f32.mrf.mxu1 }
 0x4f5   : > { %11411 = vst [vmem:[%s16416_s10 + $0x468] sm:$0xff] %v15232_v3  ;;  %v9673_v58 = vpop.f32.mrf.mxu0  ;;  %v9670_v9 = vadd.f32 %v9669_v55, %v9618_v10 }
 0x4f6   : > { %v9620_v43 = vpop.f32.mrf.mxu1 }
 0x4f7   : > { %v9675_v59 = vpop.f32.mrf.mxu0  ;;  %v10298_v21 = vsub.f32 %v9670_v9, %v10177_v49  ;;  %v9672_v1 = vadd.f32 %v9671_v45, %v9620_v43 }
 0x4f8   : > { %v9622_v13 = vpop.f32.mrf.mxu1 }
 0x4f9   : > { %v9679_v22 = vpop.f32.mrf.mxu0  ;;  %v10455_v38 = vmul.f32 %v10298_v21, %v10298_v21  ;;  %v10299_v54 = vsub.f32 %v9672_v1, %v10181_v11  ;;  %v9674_v25 = vadd.f32 %v9673_v58, %v9622_v13  ;;  %v10189_v1 = vrot.slane %v20142_v30, %v16696_v6 }
 0x4fa   : > { %v9624_v44 = vpop.f32.mrf.mxu1 }
 0x4fb   : > { %v9681_v34 = vpop.f32.mrf.mxu0  ;;  %v10862_v28 = vmul.f32 %v10741_v7, %v10455_v38  ;;  %v10456_v36 = vmul.f32 %v10299_v54, %v10299_v54  ;;  %v10348_v60 = vsub.f32 %v9674_v25, %v10177_v49  ;;  %v9676_v18 = vadd.f32 %v9675_v59, %v9624_v44 }
 0x4fc   : > { %v9628_v47 = vpop.f32.mrf.mxu1  ;;  %v10185_v59 = vrot.slane %v20142_v30, %v16690_v39  ;;  %v10749_v38 = vrot.slane %v20149_v56, %v16690_v39 }
 0x4fd   : > { %v9683_v12 = vpop.f32.mrf.mxu0  ;;  %v11054_v17 = vmul.f32 1.442695, %v10862_v28  ;;  %v10863_v23 = vmul.f32 %v10745_v20, %v10456_v36  ;;  %v10505_v27 = vmul.f32 %v10348_v60, %v10348_v60  ;;  %v10349_v4 = vsub.f32 %v9676_v18, %v10181_v11 }
 0x4fe   : > { %v9680_v40 = vadd.f32 %v9679_v22, %v9628_v47  ;;  %v9630_v16 = vpop.f32.mrf.mxu1 }
 0x4ff   : > { %v9684_v24 = vpop.f32.mrf.mxu0  ;;  %15233 = vpow2.f32 %v11054_v17  ;;  %v11056_v53 = vmul.f32 1.442695, %v10863_v23  ;;  %v10912_v48 = vmul.f32 %v10741_v7, %v10505_v27  ;;  %v10506_v41 = vmul.f32 %v10349_v4, %v10349_v4 }
 0x500   : > { %v10398_v15 = vsub.f32 %v9680_v40, %v10177_v49  ;;  %v9682_v26 = vadd.f32 %v9681_v34, %v9630_v16  ;;  %v9632_v0 = vpop.f32.mrf.mxu1  ;;  %v10753_v34 = vrot.slane %v20149_v56, %v16696_v6 }
 0x501   : > { %15235 = vpow2.f32 %v11056_v53  ;;  %v11154_v19 = vmul.f32 1.442695, %v10912_v48  ;;  %v10913_v31 = vmul.f32 %v10745_v20, %v10506_v41 }
 0x502   : > { %v10555_v14 = vmul.f32 %v10398_v15, %v10398_v15  ;;  %v10399_v35 = vsub.f32 %v9682_v26, %v10181_v11  ;;  %v9633_v42 = vpop.f32.mrf.mxu1 }
 0x503   : > { %15237 = vpow2.f32 %v11154_v19  ;;  %v11156_v32 = vmul.f32 1.442695, %v10913_v31 }
 0x504   : > { %v10962_v51 = vmul.f32 %v10741_v7, %v10555_v14  ;;  %v10556_v62 = vmul.f32 %v10399_v35, %v10399_v35 }
 0x505   : > { %15239 = vpow2.f32 %v11156_v32 }
 0x506   : > { %v11254_v46 = vmul.f32 1.442695, %v10962_v51  ;;  %v10963_v57 = vmul.f32 %v10745_v20, %v10556_v62 }
 0x508   : > { %15241 = vpow2.f32 %v11254_v46  ;;  %v11256_v2 = vmul.f32 1.442695, %v10963_v57 }
 0x50a   : > { %15243 = vpow2.f32 %v11256_v2 }
 0x50c   : > { %v15234_v5 = vpop.eup %15233 }
 0x50d   : > { %11312 = vst [vmem:[%s16416_s10 + $0x150] sm:$0xff] %v15234_v5 }
 0x50e   : > { %v15236_v37 = vpop.eup %15235 }
 0x50f   : > { %11313 = vst [vmem:[%s16416_s10 + $0x158] sm:$0xff] %v15236_v37 }
 0x510   : > { %v15238_v29 = vpop.eup %15237 }
 0x511   : > { %11362 = vst [vmem:[%s16416_s10 + $0x2e0] sm:$0xff] %v15238_v29 }
 0x512   : > { %v15240_v8 = vpop.eup %15239 }
 0x513   : > { %11363 = vst [vmem:[%s16416_s10 + $0x2e8] sm:$0xff] %v15240_v8 }
 0x514   : > { %v9771_v55 = vpop.f32.mrf.mxu1 }
 0x515   : > { %v15242_v52 = vpop.eup %15241 }
 0x516   : > { %11412 = vst [vmem:[%s16416_s10 + $0x470] sm:$0xff] %v15242_v52  ;;  %v9773_v45 = vpop.f32.mrf.mxu1 }
 0x517   : > { %v15244_v3 = vpop.eup %15243 }
 0x518   : > { %11413 = vst [vmem:[%s16416_s10 + $0x478] sm:$0xff] %v15244_v3  ;;  %v9775_v49 = vpop.f32.mrf.mxu1 }
 0x51a   : > { %v9777_v10 = vpop.f32.mrf.mxu1 }
 0x51c   : > { %v9781_v58 = vpop.f32.mrf.mxu1 }
 0x51e   : > { %v9783_v9 = vpop.f32.mrf.mxu1 }
 0x520   : > { %v9785_v11 = vpop.f32.mrf.mxu1 }
 0x522   : > { %v9786_v43 = vpop.f32.mrf.mxu1 }
 0x531   : > { %v9720_v21 = vpop.f32.mrf.mxu0 }
 0x532   : > { %v9772_v7 = vadd.f32 %v9771_v55, %v9720_v21 }
 0x533   : > { %v9722_v13 = vpop.f32.mrf.mxu0 }
 0x534   : > { %v10300_v22 = vsub.f32 %v9772_v7, %v10185_v59  ;;  %v9774_v54 = vadd.f32 %v9773_v45, %v9722_v13  ;;  %v10193_v45 = vrot.slane %v20142_v30, %v16848_v50 }
 0x535   : > { %v9724_v20 = vpop.f32.mrf.mxu0 }
 0x536   : > { %v10457_v25 = vmul.f32 %v10300_v22, %v10300_v22  ;;  %v10301_v44 = vsub.f32 %v9774_v54, %v10189_v1  ;;  %v9776_v28 = vadd.f32 %v9775_v49, %v9724_v20 }
 0x537   : > { %v9726_v36 = vpop.f32.mrf.mxu0 }
 0x538   : > { %v10864_v60 = vmul.f32 %v10749_v38, %v10457_v25  ;;  %v10458_v18 = vmul.f32 %v10301_v44, %v10301_v44  ;;  %v10350_v47 = vsub.f32 %v9776_v28, %v10185_v59  ;;  %v9778_v12 = vadd.f32 %v9777_v10, %v9726_v36 }
 0x539   : > { %v9730_v17 = vpop.f32.mrf.mxu0 }
 0x53a   : > { %v11058_v23 = vmul.f32 1.442695, %v10864_v60  ;;  %v10865_v27 = vmul.f32 %v10753_v34, %v10458_v18  ;;  %v10507_v4 = vmul.f32 %v10350_v47, %v10350_v47  ;;  %v10351_v40 = vsub.f32 %v9778_v12, %v10189_v1 }
 0x53b   : > { %v9732_v16 = vpop.f32.mrf.mxu0  ;;  %v9782_v39 = vadd.f32 %v9781_v58, %v9730_v17  ;;  %v10197_v58 = vrot.slane %v20142_v30, %v16858_v33 }
 0x53c   : > { %15245 = vpow2.f32 %v11058_v23  ;;  %v11060_v24 = vmul.f32 1.442695, %v10865_v27  ;;  %v10914_v53 = vmul.f32 %v10749_v38, %v10507_v4  ;;  %v10508_v48 = vmul.f32 %v10351_v40, %v10351_v40 }
 0x53d   : > { %v9734_v41 = vpop.f32.mrf.mxu0  ;;  %v10400_v15 = vsub.f32 %v9782_v39, %v10185_v59  ;;  %v9784_v6 = vadd.f32 %v9783_v9, %v9732_v16  ;;  %v10757_v59 = vrot.slane %v20149_v56, %v16848_v50 }
 0x53e   : > { %15247 = vpow2.f32 %v11060_v24  ;;  %v11158_v26 = vmul.f32 1.442695, %v10914_v53  ;;  %v10915_v0 = vmul.f32 %v10753_v34, %v10508_v48 }
 0x53f   : > { %v10557_v19 = vmul.f32 %v10400_v15, %v10400_v15  ;;  %v9735_v31 = vpop.f32.mrf.mxu0  ;;  %v10401_v14 = vsub.f32 %v9784_v6, %v10189_v1 }
 0x540   : > { %15249 = vpow2.f32 %v11158_v26  ;;  %v11160_v35 = vmul.f32 1.442695, %v10915_v0 }
 0x541   : > { %v10964_v42 = vmul.f32 %v10749_v38, %v10557_v19  ;;  %v10558_v32 = vmul.f32 %v10401_v14, %v10401_v14  ;;  %v10761_v38 = vrot.slane %v20149_v56, %v16858_v33 }
 0x542   : > { %15251 = vpow2.f32 %v11160_v35 }
 0x543   : > { %v11258_v51 = vmul.f32 1.442695, %v10964_v42  ;;  %v10965_v62 = vmul.f32 %v10753_v34, %v10558_v32 }
 0x545   : > { %15253 = vpow2.f32 %v11258_v51  ;;  %v11260_v46 = vmul.f32 1.442695, %v10965_v62 }
 0x547   : > { %15255 = vpow2.f32 %v11260_v46 }
 0x549   : > { %v15246_v57 = vpop.eup %15245 }
 0x54a   : > { %11314 = vst [vmem:[%s16416_s10 + $0x160] sm:$0xff] %v15246_v57 }
 0x54b   : > { %v15248_v2 = vpop.eup %15247 }
 0x54c   : > { %11315 = vst [vmem:[%s16416_s10 + $0x168] sm:$0xff] %v15248_v2 }
 0x54d   : > { %v15250_v5 = vpop.eup %15249 }
 0x54e   : > { %11364 = vst [vmem:[%s16416_s10 + $0x2f0] sm:$0xff] %v15250_v5 }
 0x54f   : > { %v15252_v37 = vpop.eup %15251 }
 0x550   : > { %11365 = vst [vmem:[%s16416_s10 + $0x2f8] sm:$0xff] %v15252_v37 }
 0x551   : > { %v9873_v29 = vpop.f32.mrf.mxu0 }
 0x552   : > { %v15254_v8 = vpop.eup %15253 }
 0x553   : > { %11414 = vst [vmem:[%s16416_s10 + $0x480] sm:$0xff] %v15254_v8  ;;  %v9875_v55 = vpop.f32.mrf.mxu0 }
 0x554   : > { %v15256_v52 = vpop.eup %15255  ;;  %v9822_v3 = vpop.f32.mrf.mxu1 }
 0x555   : > { %11415 = vst [vmem:[%s16416_s10 + $0x488] sm:$0xff] %v15256_v52  ;;  %v9877_v49 = vpop.f32.mrf.mxu0  ;;  %v9874_v10 = vadd.f32 %v9873_v29, %v9822_v3 }
 0x556   : > { %v9824_v9 = vpop.f32.mrf.mxu1 }
 0x557   : > { %v9879_v11 = vpop.f32.mrf.mxu0  ;;  %v10302_v43 = vsub.f32 %v9874_v10, %v10193_v45  ;;  %v9876_v21 = vadd.f32 %v9875_v55, %v9824_v9  ;;  %v10412_v10 = vld [vmem:[%s20650_s3 + $0x30] sm:$0x3] }
 0x558   : > { %v9826_v7 = vpop.f32.mrf.mxu1 }
 0x559   : > { %v9883_v1 = vpop.f32.mrf.mxu0  ;;  %v10459_v13 = vmul.f32 %v10302_v43, %v10302_v43  ;;  %v10303_v22 = vsub.f32 %v9876_v21, %v10197_v58  ;;  %v9878_v54 = vadd.f32 %v9877_v49, %v9826_v7 }
 0x55a   : > { %v9828_v20 = vpop.f32.mrf.mxu1 }
 0x55b   : > { %v9885_v25 = vpop.f32.mrf.mxu0  ;;  %v10866_v44 = vmul.f32 %v10757_v59, %v10459_v13  ;;  %v10460_v34 = vmul.f32 %v10303_v22, %v10303_v22  ;;  %v10352_v30 = vsub.f32 %v9878_v54, %v10193_v45  ;;  %v9880_v28 = vadd.f32 %v9879_v11, %v9828_v20 }
 0x55c   : > { %v9832_v36 = vpop.f32.mrf.mxu1  ;;  %v10769_v22 = vrot.slane %v10412_v10, %v16291_v63 }
 0x55d   : > { %v9887_v60 = vpop.f32.mrf.mxu0  ;;  %v11062_v18 = vmul.f32 1.442695, %v10866_v44  ;;  %v10867_v47 = vmul.f32 %v10761_v38, %v10460_v34  ;;  %v10509_v50 = vmul.f32 %v10352_v30, %v10352_v30  ;;  %v10353_v12 = vsub.f32 %v9880_v28, %v10197_v58 }
 0x55e   : > { %v9884_v17 = vadd.f32 %v9883_v1, %v9832_v36  ;;  %v9834_v23 = vpop.f32.mrf.mxu1 }
 0x55f   : > { %v9888_v27 = vpop.f32.mrf.mxu0  ;;  %15257 = vpow2.f32 %v11062_v18  ;;  %v11064_v4 = vmul.f32 1.442695, %v10867_v47  ;;  %v10916_v40 = vmul.f32 %v10757_v59, %v10509_v50  ;;  %v10510_v33 = vmul.f32 %v10353_v12, %v10353_v12 }
 0x560   : > { %v10402_v56 = vsub.f32 %v9884_v17, %v10193_v45  ;;  %v9886_v16 = vadd.f32 %v9885_v25, %v9834_v23  ;;  %v9836_v39 = vpop.f32.mrf.mxu1  ;;  %v9998_v45 = vld [vmem:[%s20649_s2 + $0x30] sm:$0x3] }
 0x561   : > { %15259 = vpow2.f32 %v11064_v4  ;;  %v11162_v24 = vmul.f32 1.442695, %v10916_v40  ;;  %v10917_v53 = vmul.f32 %v10761_v38, %v10510_v33  ;;  %v10201_v3 = vrot.slane %v9998_v45, %v16285_v61 }
 0x562   : > { %v10559_v48 = vmul.f32 %v10402_v56, %v10402_v56  ;;  %v10403_v41 = vsub.f32 %v9886_v16, %v10197_v58  ;;  %v9837_v15 = vpop.f32.mrf.mxu1  ;;  %v10205_v9 = vrot.slane %v9998_v45, %v16291_v63 }
 0x563   : > { %15261 = vpow2.f32 %v11162_v24  ;;  %v11164_v6 = vmul.f32 1.442695, %v10917_v53 }
 0x564   : > { %v10966_v26 = vmul.f32 %v10757_v59, %v10559_v48  ;;  %v10560_v0 = vmul.f32 %v10403_v41, %v10403_v41  ;;  %v10765_v59 = vrot.slane %v10412_v10, %v16285_v61 }
 0x565   : > { %15263 = vpow2.f32 %v11164_v6 }
 0x566   : > { %v11262_v19 = vmul.f32 1.442695, %v10966_v26  ;;  %v10967_v31 = vmul.f32 %v10761_v38, %v10560_v0 }
 0x568   : > { %15265 = vpow2.f32 %v11262_v19  ;;  %v11264_v14 = vmul.f32 1.442695, %v10967_v31 }
 0x56a   : > { %15267 = vpow2.f32 %v11264_v14 }
 0x56c   : > { %v15258_v35 = vpop.eup %15257 }
 0x56d   : > { %11316 = vst [vmem:[%s16416_s10 + $0x170] sm:$0xff] %v15258_v35 }
 0x56e   : > { %v15260_v42 = vpop.eup %15259 }
 0x56f   : > { %11317 = vst [vmem:[%s16416_s10 + $0x178] sm:$0xff] %v15260_v42 }
 0x570   : > { %v15262_v32 = vpop.eup %15261 }
 0x571   : > { %11366 = vst [vmem:[%s16416_s10 + $0x300] sm:$0xff] %v15262_v32 }
 0x572   : > { %v15264_v51 = vpop.eup %15263 }
 0x573   : > { %11367 = vst [vmem:[%s16416_s10 + $0x308] sm:$0xff] %v15264_v51 }
 0x574   : > { %v9975_v62 = vpop.f32.mrf.mxu1 }
 0x575   : > { %v15266_v46 = vpop.eup %15265 }
 0x576   : > { %11416 = vst [vmem:[%s16416_s10 + $0x490] sm:$0xff] %v15266_v46  ;;  %v9977_v57 = vpop.f32.mrf.mxu1 }
 0x577   : > { %v15268_v2 = vpop.eup %15267 }
 0x578   : > { %11417 = vst [vmem:[%s16416_s10 + $0x498] sm:$0xff] %v15268_v2  ;;  %v9979_v5 = vpop.f32.mrf.mxu1 }
 0x57a   : > { %v9981_v37 = vpop.f32.mrf.mxu1 }
 0x57c   : > { %v9985_v29 = vpop.f32.mrf.mxu1 }
 0x57e   : > { %v9987_v8 = vpop.f32.mrf.mxu1 }
 0x580   : > { %v9989_v55 = vpop.f32.mrf.mxu1 }
 0x582   : > { %v9990_v52 = vpop.f32.mrf.mxu1 }
 0x591   : > { %v9924_v49 = vpop.f32.mrf.mxu0 }
 0x592   : > { %v9976_v58 = vadd.f32 %v9975_v62, %v9924_v49 }
 0x593   : > { %v9926_v11 = vpop.f32.mrf.mxu0 }
 0x594   : > { %v10304_v43 = vsub.f32 %v9976_v58, %v10201_v3  ;;  %v9978_v21 = vadd.f32 %v9977_v57, %v9926_v11 }
 0x595   : > { %v9928_v7 = vpop.f32.mrf.mxu0 }
 0x596   : > { %v10461_v1 = vmul.f32 %v10304_v43, %v10304_v43  ;;  %v10305_v13 = vsub.f32 %v9978_v21, %v10205_v9  ;;  %v9980_v38 = vadd.f32 %v9979_v5, %v9928_v7 }
 0x597   : > { %v9930_v54 = vpop.f32.mrf.mxu0 }
 0x598   : > { %v10868_v20 = vmul.f32 %v10765_v59, %v10461_v1  ;;  %v10462_v25 = vmul.f32 %v10305_v13, %v10305_v13  ;;  %v10354_v44 = vsub.f32 %v9980_v38, %v10201_v3  ;;  %v9982_v34 = vadd.f32 %v9981_v37, %v9930_v54 }
 0x599   : > { %v9934_v30 = vpop.f32.mrf.mxu0 }
 0x59a   : > { %v11066_v28 = vmul.f32 1.442695, %v10868_v20  ;;  %v10869_v36 = vmul.f32 %v10769_v22, %v10462_v25  ;;  %v10511_v60 = vmul.f32 %v10354_v44, %v10354_v44  ;;  %v10355_v18 = vsub.f32 %v9982_v34, %v10205_v9 }
 0x59b   : > { %v9986_v47 = vadd.f32 %v9985_v29, %v9934_v30  ;;  %v9936_v50 = vpop.f32.mrf.mxu0 }
 0x59c   : > { %15269 = vpow2.f32 %v11066_v28  ;;  %v11068_v61 = vmul.f32 1.442695, %v10869_v36  ;;  %v10918_v12 = vmul.f32 %v10765_v59, %v10511_v60  ;;  %v10512_v17 = vmul.f32 %v10355_v18, %v10355_v18 }
 0x59d   : > { %v10404_v23 = vsub.f32 %v9986_v47, %v10201_v3  ;;  %v9988_v27 = vadd.f32 %v9987_v8, %v9936_v50  ;;  %v9938_v63 = vpop.f32.mrf.mxu0 }
 0x59e   : > { %15271 = vpow2.f32 %v11068_v61  ;;  %v11166_v4 = vmul.f32 1.442695, %v10918_v12  ;;  %v10919_v40 = vmul.f32 %v10769_v22, %v10512_v17 }
 0x59f   : > { %v10561_v33 = vmul.f32 %v10404_v23, %v10404_v23  ;;  %v10405_v56 = vsub.f32 %v9988_v27, %v10205_v9  ;;  %v9939_v16 = vpop.f32.mrf.mxu0 }
 0x5a0   : > { %15273 = vpow2.f32 %v11166_v4  ;;  %v11168_v39 = vmul.f32 1.442695, %v10919_v40 }
 0x5a1   : > { %v10968_v24 = vmul.f32 %v10765_v59, %v10561_v33  ;;  %v10562_v53 = vmul.f32 %v10405_v56, %v10405_v56 }
 0x5a2   : > { %15275 = vpow2.f32 %v11168_v39 }
 0x5a3   : > { %v11266_v48 = vmul.f32 1.442695, %v10968_v24  ;;  %v10969_v41 = vmul.f32 %v10769_v22, %v10562_v53 }
 0x5a5   : > { %15277 = vpow2.f32 %v11266_v48  ;;  %v11268_v15 = vmul.f32 1.442695, %v10969_v41 }
 0x5a7   : > { %15279 = vpow2.f32 %v11268_v15 }
 0x5a9   : > { %v15270_v6 = vpop.eup %15269 }
 0x5aa   : > { %11318 = vst [vmem:[%s16416_s10 + $0x180] sm:$0xff] %v15270_v6 }
 0x5ab   : > { %v15272_v26 = vpop.eup %15271 }
 0x5ac   : > { %11319 = vst [vmem:[%s16416_s10 + $0x188] sm:$0xff] %v15272_v26 }
 0x5ad   : > { %v15274_v0 = vpop.eup %15273 }
 0x5ae   : > { %11368 = vst [vmem:[%s16416_s10 + $0x310] sm:$0xff] %v15274_v0 }
 0x5af   : > { %v15276_v19 = vpop.eup %15275 }
 0x5b0   : > { %11369 = vst [vmem:[%s16416_s10 + $0x318] sm:$0xff] %v15276_v19 }
 0x5b1   : > { %11426 = sbr.rel (!%p15426_p4) target bundleno = 1562 (0x61a), region = 40 }
 0x5b2   : > { %v15278_v31 = vpop.eup %15277 }
 0x5b3   : > { %11418 = vst [vmem:[%s16416_s10 + $0x4a0] sm:$0xff] %v15278_v31 }
 0x5b4   : > { %v15280_v14 = vpop.eup %15279 }
 0x5b5   : > { %11419 = vst [vmem:[%s16416_s10 + $0x4a8] sm:$0xff] %v15280_v14 }
 0x5b6   : > { %s20667_s13 = smov (!%p11429_p8, %s11428_s13), 3 }
 0x5b7   : > { %s13078_s24 = smul.u32 6400, %s20667_s13 }
 0x5b9   : > { %p13081_p9 = scmp.eq.s32.totalorder %s13078_s24, 0 }
 0x5ba   : > { %s20237_s25 = sshrl.u32 (!%p13081_p9), %s20667_s13, 1 }
 0x5bb   : > { %11439 = sbr.rel (%p13081_p9) target bundleno = 1562 (0x61a), region = 44  ;;  %p13082_p10 = scmp.le.s32.totalorder (!%p13081_p9), %s20237_s25, 0 }
 0x5c0   : > { %11828 = sbr.rel (%p13082_p10) target bundleno = 1528 (0x5f8), region = 92  ;;  %s20653_s18 = smov (!%p13082_p10), %s20231_s21 }
 0x5c1   : > { %s20654_s23 = smov (!%p13082_p10), %s16416_s10  ;;  %s20246_s20 = smov (!%p13082_p10), 0  }
 0x5c2   : > { %s20248_s26 = smov (!%p13082_p10), 0  }
 0x5c5 LB: >> { %v11452_v35 = vld [vmem:[%s15349_s23] sm:$0xff]  ;;  %v11454_v42 = vld [vmem:[%s15349_s23 + $0x190] sm:$0xff]  ;;  %v11456_v32 = vld [vmem:[%s15349_s23 + $0x8] sm:$0xff]  ;;  %s11652_s27 = sadd.s32 1, %s15353_s20  ;;  %s11446_s26 = sadd.s32 1, %s15357_s26   ;;  %s15357_s26 = sphi %s20248_s26, %s11446_s26   ;;  %s15353_s20 = sphi %s20246_s20, %s20657_s20   ;;  %s15349_s23 = sphi %s20654_s23, %s20656_s23   ;;  %s15345_s18 = sphi %s20653_s18, %s20655_s18  }
 0x5c6   : >> { %11453 = vst [vmem:[%s15345_s18] sm:$0xff] %v11452_v35  ;;  %11455 = vst [vmem:[%s15345_s18 + $0x190] sm:$0xff] %v11454_v42  ;;  %v11458_v51 = vld [vmem:[%s15349_s23 + $0x198] sm:$0xff]  ;;  %v11460_v62 = vld [vmem:[%s15349_s23 + $0x10] sm:$0xff]  ;;  %p11653_p11 = scmp.ge.s32.totalorder %s11652_s27, %s20237_s25  ;;  %p11445_p12 = scmp.ge.s32.totalorder %s11446_s26, %s20237_s25 }
 0x5c7   : >> { %11457 = vst [vmem:[%s15345_s18 + $0x8] sm:$0xff] %v11456_v32  ;;  %v11462_v46 = vld [vmem:[%s15349_s23 + $0x1a0] sm:$0xff]  ;;  %11459 = vst [vmem:[%s15345_s18 + $0x198] sm:$0xff] %v11458_v51  ;;  %v11464_v57 = vld [vmem:[%s15349_s23 + $0x18] sm:$0xff] }
 0x5c8   : >> { %11461 = vst [vmem:[%s15345_s18 + $0x10] sm:$0xff] %v11460_v62  ;;  %11463 = vst [vmem:[%s15345_s18 + $0x1a0] sm:$0xff] %v11462_v46  ;;  %v11466_v2 = vld [vmem:[%s15349_s23 + $0x1a8] sm:$0xff]  ;;  %v11468_v5 = vld [vmem:[%s15349_s23 + $0x20] sm:$0xff]  ;;  %s20669_s27 = smov (%p11653_p11, %s11652_s27), 0 }
 0x5c9   : >> { %11465 = vst [vmem:[%s15345_s18 + $0x18] sm:$0xff] %v11464_v57  ;;  %11467 = vst [vmem:[%s15345_s18 + $0x1a8] sm:$0xff] %v11466_v2  ;;  %v11470_v37 = vld [vmem:[%s15349_s23 + $0x1b0] sm:$0xff]  ;;  %v11472_v29 = vld [vmem:[%s15349_s23 + $0x28] sm:$0xff]  ;;  %s11655_s28 = smul.u32 800, %s20669_s27  ;;  %s20657_s20 = smov %s20669_s27 }
 0x5ca   : >> { %11469 = vst [vmem:[%s15345_s18 + $0x20] sm:$0xff] %v11468_v5  ;;  %v11474_v8 = vld [vmem:[%s15349_s23 + $0x1b8] sm:$0xff]  ;;  %11471 = vst [vmem:[%s15345_s18 + $0x1b0] sm:$0xff] %v11470_v37  ;;  %v11476_v55 = vld [vmem:[%s15349_s23 + $0x30] sm:$0xff] }
 0x5cb   : >> { %11473 = vst [vmem:[%s15345_s18 + $0x28] sm:$0xff] %v11472_v29  ;;  %11475 = vst [vmem:[%s15345_s18 + $0x1b8] sm:$0xff] %v11474_v8  ;;  %v11478_v52 = vld [vmem:[%s15349_s23 + $0x1c0] sm:$0xff]  ;;  %v11480_v45 = vld [vmem:[%s15349_s23 + $0x38] sm:$0xff]  ;;  %s20310_s29 = scalar_lea.vmem %s16416_s10, %s11655_s28 [#allocation2]   ;;  %s20313_s30 = scalar_lea.vmem %s20231_s21, %s11655_s28  }
 0x5cc   : >> { %11477 = vst [vmem:[%s15345_s18 + $0x30] sm:$0xff] %v11476_v55  ;;  %11479 = vst [vmem:[%s15345_s18 + $0x1c0] sm:$0xff] %v11478_v52  ;;  %v11482_v3 = vld [vmem:[%s15349_s23 + $0x1c8] sm:$0xff]  ;;  %v11484_v49 = vld [vmem:[%s15349_s23 + $0x40] sm:$0xff] }
 0x5cd   : >> { %11481 = vst [vmem:[%s15345_s18 + $0x38] sm:$0xff] %v11480_v45  ;;  %v11486_v10 = vld [vmem:[%s15349_s23 + $0x1d0] sm:$0xff]  ;;  %11483 = vst [vmem:[%s15345_s18 + $0x1c8] sm:$0xff] %v11482_v3  ;;  %v11488_v58 = vld [vmem:[%s15349_s23 + $0x48] sm:$0xff] }
 0x5ce   : >> { %11485 = vst [vmem:[%s15345_s18 + $0x40] sm:$0xff] %v11484_v49  ;;  %11487 = vst [vmem:[%s15345_s18 + $0x1d0] sm:$0xff] %v11486_v10  ;;  %v11490_v9 = vld [vmem:[%s15349_s23 + $0x1d8] sm:$0xff]  ;;  %v11492_v11 = vld [vmem:[%s15349_s23 + $0x50] sm:$0xff] }
 0x5cf   : >> { %11489 = vst [vmem:[%s15345_s18 + $0x48] sm:$0xff] %v11488_v58  ;;  %11491 = vst [vmem:[%s15345_s18 + $0x1d8] sm:$0xff] %v11490_v9  ;;  %v11494_v43 = vld [vmem:[%s15349_s23 + $0x1e0] sm:$0xff]  ;;  %v11496_v59 = vld [vmem:[%s15349_s23 + $0x58] sm:$0xff] }
 0x5d0   : >> { %11493 = vst [vmem:[%s15345_s18 + $0x50] sm:$0xff] %v11492_v11  ;;  %v11498_v21 = vld [vmem:[%s15349_s23 + $0x1e8] sm:$0xff]  ;;  %11495 = vst [vmem:[%s15345_s18 + $0x1e0] sm:$0xff] %v11494_v43  ;;  %v11500_v7 = vld [vmem:[%s15349_s23 + $0x60] sm:$0xff] }
 0x5d1   : >> { %11497 = vst [vmem:[%s15345_s18 + $0x58] sm:$0xff] %v11496_v59  ;;  %11499 = vst [vmem:[%s15345_s18 + $0x1e8] sm:$0xff] %v11498_v21  ;;  %v11502_v1 = vld [vmem:[%s15349_s23 + $0x1f0] sm:$0xff]  ;;  %v11504_v13 = vld [vmem:[%s15349_s23 + $0x68] sm:$0xff] }
 0x5d2   : >> { %11501 = vst [vmem:[%s15345_s18 + $0x60] sm:$0xff] %v11500_v7  ;;  %11503 = vst [vmem:[%s15345_s18 + $0x1f0] sm:$0xff] %v11502_v1  ;;  %v11506_v22 = vld [vmem:[%s15349_s23 + $0x1f8] sm:$0xff]  ;;  %v11508_v38 = vld [vmem:[%s15349_s23 + $0x70] sm:$0xff] }
 0x5d3   : >> { %11505 = vst [vmem:[%s15345_s18 + $0x68] sm:$0xff] %v11504_v13  ;;  %v11510_v54 = vld [vmem:[%s15349_s23 + $0x200] sm:$0xff]  ;;  %11507 = vst [vmem:[%s15345_s18 + $0x1f8] sm:$0xff] %v11506_v22  ;;  %v11512_v20 = vld [vmem:[%s15349_s23 + $0x78] sm:$0xff] }
 0x5d4   : >> { %11509 = vst [vmem:[%s15345_s18 + $0x70] sm:$0xff] %v11508_v38  ;;  %11511 = vst [vmem:[%s15345_s18 + $0x200] sm:$0xff] %v11510_v54  ;;  %v11514_v25 = vld [vmem:[%s15349_s23 + $0x208] sm:$0xff]  ;;  %v11516_v44 = vld [vmem:[%s15349_s23 + $0x80] sm:$0xff] }
 0x5d5   : >> { %11513 = vst [vmem:[%s15345_s18 + $0x78] sm:$0xff] %v11512_v20  ;;  %11515 = vst [vmem:[%s15345_s18 + $0x208] sm:$0xff] %v11514_v25  ;;  %v11518_v34 = vld [vmem:[%s15349_s23 + $0x210] sm:$0xff]  ;;  %v11520_v30 = vld [vmem:[%s15349_s23 + $0x88] sm:$0xff] }
 0x5d6   : >> { %11517 = vst [vmem:[%s15345_s18 + $0x80] sm:$0xff] %v11516_v44  ;;  %v11522_v28 = vld [vmem:[%s15349_s23 + $0x218] sm:$0xff]  ;;  %11519 = vst [vmem:[%s15345_s18 + $0x210] sm:$0xff] %v11518_v34  ;;  %v11524_v36 = vld [vmem:[%s15349_s23 + $0x90] sm:$0xff] }
 0x5d7   : >> { %11521 = vst [vmem:[%s15345_s18 + $0x88] sm:$0xff] %v11520_v30  ;;  %11523 = vst [vmem:[%s15345_s18 + $0x218] sm:$0xff] %v11522_v28  ;;  %v11526_v60 = vld [vmem:[%s15349_s23 + $0x220] sm:$0xff]  ;;  %v11528_v18 = vld [vmem:[%s15349_s23 + $0x98] sm:$0xff] }
 0x5d8   : >> { %11525 = vst [vmem:[%s15345_s18 + $0x90] sm:$0xff] %v11524_v36  ;;  %11527 = vst [vmem:[%s15345_s18 + $0x220] sm:$0xff] %v11526_v60  ;;  %v11530_v47 = vld [vmem:[%s15349_s23 + $0x228] sm:$0xff]  ;;  %v11532_v50 = vld [vmem:[%s15349_s23 + $0xa0] sm:$0xff] }
 0x5d9   : >> { %11529 = vst [vmem:[%s15345_s18 + $0x98] sm:$0xff] %v11528_v18  ;;  %v11534_v61 = vld [vmem:[%s15349_s23 + $0x230] sm:$0xff]  ;;  %11531 = vst [vmem:[%s15345_s18 + $0x228] sm:$0xff] %v11530_v47  ;;  %v11536_v12 = vld [vmem:[%s15349_s23 + $0xa8] sm:$0xff] }
 0x5da   : >> { %11533 = vst [vmem:[%s15345_s18 + $0xa0] sm:$0xff] %v11532_v50  ;;  %11535 = vst [vmem:[%s15345_s18 + $0x230] sm:$0xff] %v11534_v61  ;;  %v11538_v17 = vld [vmem:[%s15349_s23 + $0x238] sm:$0xff]  ;;  %v11540_v23 = vld [vmem:[%s15349_s23 + $0xb0] sm:$0xff] }
 0x5db   : >> { %11537 = vst [vmem:[%s15345_s18 + $0xa8] sm:$0xff] %v11536_v12  ;;  %11539 = vst [vmem:[%s15345_s18 + $0x238] sm:$0xff] %v11538_v17  ;;  %v11542_v27 = vld [vmem:[%s15349_s23 + $0x240] sm:$0xff]  ;;  %v11544_v63 = vld [vmem:[%s15349_s23 + $0xb8] sm:$0xff] }
 0x5dc   : >> { %11541 = vst [vmem:[%s15345_s18 + $0xb0] sm:$0xff] %v11540_v23  ;;  %v11546_v4 = vld [vmem:[%s15349_s23 + $0x248] sm:$0xff]  ;;  %11543 = vst [vmem:[%s15345_s18 + $0x240] sm:$0xff] %v11542_v27  ;;  %v11548_v40 = vld [vmem:[%s15349_s23 + $0xc0] sm:$0xff] }
 0x5dd   : >> { %11545 = vst [vmem:[%s15345_s18 + $0xb8] sm:$0xff] %v11544_v63  ;;  %11547 = vst [vmem:[%s15345_s18 + $0x248] sm:$0xff] %v11546_v4  ;;  %v11550_v33 = vld [vmem:[%s15349_s23 + $0x250] sm:$0xff]  ;;  %v11552_v56 = vld [vmem:[%s15349_s23 + $0xc8] sm:$0xff] }
 0x5de   : >> { %11549 = vst [vmem:[%s15345_s18 + $0xc0] sm:$0xff] %v11548_v40  ;;  %11551 = vst [vmem:[%s15345_s18 + $0x250] sm:$0xff] %v11550_v33  ;;  %v11554_v16 = vld [vmem:[%s15349_s23 + $0x258] sm:$0xff]  ;;  %v11556_v39 = vld [vmem:[%s15349_s23 + $0xd0] sm:$0xff] }
 0x5df   : >> { %11553 = vst [vmem:[%s15345_s18 + $0xc8] sm:$0xff] %v11552_v56  ;;  %v11558_v24 = vld [vmem:[%s15349_s23 + $0x260] sm:$0xff]  ;;  %11555 = vst [vmem:[%s15345_s18 + $0x258] sm:$0xff] %v11554_v16  ;;  %v11560_v53 = vld [vmem:[%s15349_s23 + $0xd8] sm:$0xff] }
 0x5e0   : >> { %11557 = vst [vmem:[%s15345_s18 + $0xd0] sm:$0xff] %v11556_v39  ;;  %11559 = vst [vmem:[%s15345_s18 + $0x260] sm:$0xff] %v11558_v24  ;;  %v11562_v48 = vld [vmem:[%s15349_s23 + $0x268] sm:$0xff]  ;;  %v11564_v41 = vld [vmem:[%s15349_s23 + $0xe0] sm:$0xff] }
 0x5e1   : >> { %11561 = vst [vmem:[%s15345_s18 + $0xd8] sm:$0xff] %v11560_v53  ;;  %11563 = vst [vmem:[%s15345_s18 + $0x268] sm:$0xff] %v11562_v48  ;;  %v11566_v15 = vld [vmem:[%s15349_s23 + $0x270] sm:$0xff]  ;;  %v11568_v6 = vld [vmem:[%s15349_s23 + $0xe8] sm:$0xff] }
 0x5e2   : >> { %11565 = vst [vmem:[%s15345_s18 + $0xe0] sm:$0xff] %v11564_v41  ;;  %v11570_v26 = vld [vmem:[%s15349_s23 + $0x278] sm:$0xff]  ;;  %11567 = vst [vmem:[%s15345_s18 + $0x270] sm:$0xff] %v11566_v15  ;;  %v11572_v0 = vld [vmem:[%s15349_s23 + $0xf0] sm:$0xff] }
 0x5e3   : >> { %11569 = vst [vmem:[%s15345_s18 + $0xe8] sm:$0xff] %v11568_v6  ;;  %11571 = vst [vmem:[%s15345_s18 + $0x278] sm:$0xff] %v11570_v26  ;;  %v11574_v19 = vld [vmem:[%s15349_s23 + $0x280] sm:$0xff]  ;;  %v11576_v31 = vld [vmem:[%s15349_s23 + $0xf8] sm:$0xff] }
 0x5e4   : >> { %11573 = vst [vmem:[%s15345_s18 + $0xf0] sm:$0xff] %v11572_v0  ;;  %11575 = vst [vmem:[%s15345_s18 + $0x280] sm:$0xff] %v11574_v19  ;;  %v11578_v14 = vld [vmem:[%s15349_s23 + $0x288] sm:$0xff]  ;;  %v11580_v35 = vld [vmem:[%s15349_s23 + $0x100] sm:$0xff] }
 0x5e5   : >> { %11577 = vst [vmem:[%s15345_s18 + $0xf8] sm:$0xff] %v11576_v31  ;;  %v11582_v42 = vld [vmem:[%s15349_s23 + $0x290] sm:$0xff]  ;;  %11579 = vst [vmem:[%s15345_s18 + $0x288] sm:$0xff] %v11578_v14  ;;  %v11584_v32 = vld [vmem:[%s15349_s23 + $0x108] sm:$0xff] }
 0x5e6   : >> { %11581 = vst [vmem:[%s15345_s18 + $0x100] sm:$0xff] %v11580_v35  ;;  %11583 = vst [vmem:[%s15345_s18 + $0x290] sm:$0xff] %v11582_v42  ;;  %v11586_v51 = vld [vmem:[%s15349_s23 + $0x298] sm:$0xff]  ;;  %v11588_v62 = vld [vmem:[%s15349_s23 + $0x110] sm:$0xff] }
 0x5e7   : >> { %11585 = vst [vmem:[%s15345_s18 + $0x108] sm:$0xff] %v11584_v32  ;;  %11587 = vst [vmem:[%s15345_s18 + $0x298] sm:$0xff] %v11586_v51  ;;  %v11590_v46 = vld [vmem:[%s15349_s23 + $0x2a0] sm:$0xff]  ;;  %v11592_v57 = vld [vmem:[%s15349_s23 + $0x118] sm:$0xff] }
 0x5e8   : >> { %11589 = vst [vmem:[%s15345_s18 + $0x110] sm:$0xff] %v11588_v62  ;;  %v11594_v2 = vld [vmem:[%s15349_s23 + $0x2a8] sm:$0xff]  ;;  %11591 = vst [vmem:[%s15345_s18 + $0x2a0] sm:$0xff] %v11590_v46  ;;  %v11596_v5 = vld [vmem:[%s15349_s23 + $0x120] sm:$0xff] }
 0x5e9   : >> { %11593 = vst [vmem:[%s15345_s18 + $0x118] sm:$0xff] %v11592_v57  ;;  %11595 = vst [vmem:[%s15345_s18 + $0x2a8] sm:$0xff] %v11594_v2  ;;  %v11598_v37 = vld [vmem:[%s15349_s23 + $0x2b0] sm:$0xff]  ;;  %v11600_v29 = vld [vmem:[%s15349_s23 + $0x128] sm:$0xff] }
 0x5ea   : >> { %11597 = vst [vmem:[%s15345_s18 + $0x120] sm:$0xff] %v11596_v5  ;;  %11599 = vst [vmem:[%s15345_s18 + $0x2b0] sm:$0xff] %v11598_v37  ;;  %v11602_v8 = vld [vmem:[%s15349_s23 + $0x2b8] sm:$0xff]  ;;  %v11604_v55 = vld [vmem:[%s15349_s23 + $0x130] sm:$0xff] }
 0x5eb   : >> { %11601 = vst [vmem:[%s15345_s18 + $0x128] sm:$0xff] %v11600_v29  ;;  %v11606_v52 = vld [vmem:[%s15349_s23 + $0x2c0] sm:$0xff]  ;;  %11603 = vst [vmem:[%s15345_s18 + $0x2b8] sm:$0xff] %v11602_v8  ;;  %v11608_v45 = vld [vmem:[%s15349_s23 + $0x138] sm:$0xff] }
 0x5ec   : >> { %11605 = vst [vmem:[%s15345_s18 + $0x130] sm:$0xff] %v11604_v55  ;;  %11607 = vst [vmem:[%s15345_s18 + $0x2c0] sm:$0xff] %v11606_v52  ;;  %v11610_v3 = vld [vmem:[%s15349_s23 + $0x2c8] sm:$0xff]  ;;  %v11612_v49 = vld [vmem:[%s15349_s23 + $0x140] sm:$0xff] }
 0x5ed   : >> { %11609 = vst [vmem:[%s15345_s18 + $0x138] sm:$0xff] %v11608_v45  ;;  %11611 = vst [vmem:[%s15345_s18 + $0x2c8] sm:$0xff] %v11610_v3  ;;  %v11614_v10 = vld [vmem:[%s15349_s23 + $0x2d0] sm:$0xff]  ;;  %v11616_v58 = vld [vmem:[%s15349_s23 + $0x148] sm:$0xff] }
 0x5ee   : >> { %11613 = vst [vmem:[%s15345_s18 + $0x140] sm:$0xff] %v11612_v49  ;;  %v11618_v9 = vld [vmem:[%s15349_s23 + $0x2d8] sm:$0xff]  ;;  %11615 = vst [vmem:[%s15345_s18 + $0x2d0] sm:$0xff] %v11614_v10  ;;  %v11620_v11 = vld [vmem:[%s15349_s23 + $0x150] sm:$0xff] }
 0x5ef   : >> { %11617 = vst [vmem:[%s15345_s18 + $0x148] sm:$0xff] %v11616_v58  ;;  %11619 = vst [vmem:[%s15345_s18 + $0x2d8] sm:$0xff] %v11618_v9  ;;  %v11622_v43 = vld [vmem:[%s15349_s23 + $0x2e0] sm:$0xff]  ;;  %v11624_v59 = vld [vmem:[%s15349_s23 + $0x158] sm:$0xff] }
 0x5f0   : >> { %11621 = vst [vmem:[%s15345_s18 + $0x150] sm:$0xff] %v11620_v11  ;;  %11623 = vst [vmem:[%s15345_s18 + $0x2e0] sm:$0xff] %v11622_v43  ;;  %v11626_v21 = vld [vmem:[%s15349_s23 + $0x2e8] sm:$0xff]  ;;  %v11628_v7 = vld [vmem:[%s15349_s23 + $0x160] sm:$0xff] }
 0x5f1   : >> { %11625 = vst [vmem:[%s15345_s18 + $0x158] sm:$0xff] %v11624_v59  ;;  %v11630_v1 = vld [vmem:[%s15349_s23 + $0x2f0] sm:$0xff]  ;;  %11627 = vst [vmem:[%s15345_s18 + $0x2e8] sm:$0xff] %v11626_v21  ;;  %v11632_v13 = vld [vmem:[%s15349_s23 + $0x168] sm:$0xff] }
 0x5f2   : >> { %11629 = vst [vmem:[%s15345_s18 + $0x160] sm:$0xff] %v11628_v7  ;;  %11631 = vst [vmem:[%s15345_s18 + $0x2f0] sm:$0xff] %v11630_v1  ;;  %v11634_v22 = vld [vmem:[%s15349_s23 + $0x2f8] sm:$0xff]  ;;  %v11636_v38 = vld [vmem:[%s15349_s23 + $0x170] sm:$0xff] }
 0x5f3   : >> { %11633 = vst [vmem:[%s15345_s18 + $0x168] sm:$0xff] %v11632_v13  ;;  %11635 = vst [vmem:[%s15345_s18 + $0x2f8] sm:$0xff] %v11634_v22  ;;  %v11638_v54 = vld [vmem:[%s15349_s23 + $0x300] sm:$0xff]  ;;  %v11640_v20 = vld [vmem:[%s15349_s23 + $0x178] sm:$0xff]  ;;  %11448 = sbr.rel (!%p11445_p12) target bundleno = 1477 (0x5c5), region = 98 }
 0x5f4   : >> { %11637 = vst [vmem:[%s15345_s18 + $0x170] sm:$0xff] %v11636_v38  ;;  %v11642_v25 = vld [vmem:[%s15349_s23 + $0x308] sm:$0xff]  ;;  %11639 = vst [vmem:[%s15345_s18 + $0x300] sm:$0xff] %v11638_v54  ;;  %v11644_v44 = vld [vmem:[%s15349_s23 + $0x180] sm:$0xff] }
 0x5f5   : >> { %11641 = vst [vmem:[%s15345_s18 + $0x178] sm:$0xff] %v11640_v20  ;;  %11643 = vst [vmem:[%s15345_s18 + $0x308] sm:$0xff] %v11642_v25  ;;  %v11646_v34 = vld [vmem:[%s15349_s23 + $0x310] sm:$0xff]  ;;  %v11648_v30 = vld [vmem:[%s15349_s23 + $0x188] sm:$0xff] }
 0x5f6   : >> { %11645 = vst [vmem:[%s15345_s18 + $0x180] sm:$0xff] %v11644_v44  ;;  %11647 = vst [vmem:[%s15345_s18 + $0x310] sm:$0xff] %v11646_v34  ;;  %v11650_v28 = vld [vmem:[%s15349_s23 + $0x318] sm:$0xff]  ;;  %s20656_s23 = smov %s20310_s29 }
 0x5f7   : >> { %11649 = vst [vmem:[%s15345_s18 + $0x188] sm:$0xff] %v11648_v30  ;;  %11651 = vst [vmem:[%s15345_s18 + $0x318] sm:$0xff] %v11650_v28  ;;  %s20655_s18 = smov %s20313_s30 }
 0x5f8 PF: > { %s20484_s5 = sand.u32 1, %s20667_s13   ;;  %s13084_s6 = smul.u32 800, %s20237_s25 }
 0x5f9   : > { %p13086_p13 = scmp.le.s32.totalorder %s20484_s5, 0 }
 0x5fa   : > { %s20488_s7 = scalar_lea.vmem %s16416_s10, %s13084_s6 [#allocation2]   ;;  %s20491_s8 = scalar_lea.vmem %s20231_s21, %s13084_s6  }
 0x5fb   : > { %11842 = sbr.rel (%p13086_p13) target bundleno = 1562 (0x61a), region = 103  ;;  %s20658_s9 = smov (!%p13086_p13), %s20491_s8 }
 0x5fc   : > { %s20659_s15 = smov (!%p13086_p13), %s20488_s7  ;;  %s20500_s11 = smov (!%p13086_p13), 0  }
 0x5fd   : > { %s20502_s14 = smov (!%p13086_p13), 0  }
 0x600 LB: >> { %v11675_v36 = vld [vmem:[%s15365_s15] sm:$0xff]  ;;  %v11677_v60 = vld [vmem:[%s15365_s15 + $0x8] sm:$0xff]  ;;  %v11679_v18 = vld [vmem:[%s15365_s15 + $0x10] sm:$0xff]  ;;  %s11775_s10 = sadd.s32 1, %s15369_s11  ;;  %s11669_s14 = sadd.s32 1, %s15373_s14   ;;  %s15373_s14 = sphi %s20502_s14, %s11669_s14   ;;  %s15369_s11 = sphi %s20500_s11, %s20662_s11   ;;  %s15365_s15 = sphi %s20659_s15, %s20661_s15   ;;  %s15361_s9 = sphi %s20658_s9, %s20660_s9  }
 0x601   : >> { %11676 = vst [vmem:[%s15361_s9] sm:$0xff] %v11675_v36  ;;  %11678 = vst [vmem:[%s15361_s9 + $0x8] sm:$0xff] %v11677_v60  ;;  %v11681_v47 = vld [vmem:[%s15365_s15 + $0x18] sm:$0xff]  ;;  %v11683_v50 = vld [vmem:[%s15365_s15 + $0x20] sm:$0xff]  ;;  %p11776_p0 = scmp.ge.s32.totalorder %s11775_s10, %s20484_s5  ;;  %p11668_p1 = scmp.ge.s32.totalorder %s11669_s14, %s20484_s5 }
 0x602   : >> { %11680 = vst [vmem:[%s15361_s9 + $0x10] sm:$0xff] %v11679_v18  ;;  %v11685_v61 = vld [vmem:[%s15365_s15 + $0x28] sm:$0xff]  ;;  %11682 = vst [vmem:[%s15361_s9 + $0x18] sm:$0xff] %v11681_v47  ;;  %v11687_v12 = vld [vmem:[%s15365_s15 + $0x30] sm:$0xff] }
 0x603   : >> { %11684 = vst [vmem:[%s15361_s9 + $0x20] sm:$0xff] %v11683_v50  ;;  %11686 = vst [vmem:[%s15361_s9 + $0x28] sm:$0xff] %v11685_v61  ;;  %v11689_v17 = vld [vmem:[%s15365_s15 + $0x38] sm:$0xff]  ;;  %v11691_v23 = vld [vmem:[%s15365_s15 + $0x40] sm:$0xff]  ;;  %s20671_s10 = smov (%p11776_p0, %s11775_s10), 0 }
 0x604   : >> { %11688 = vst [vmem:[%s15361_s9 + $0x30] sm:$0xff] %v11687_v12  ;;  %11690 = vst [vmem:[%s15361_s9 + $0x38] sm:$0xff] %v11689_v17  ;;  %v11693_v27 = vld [vmem:[%s15365_s15 + $0x48] sm:$0xff]  ;;  %v11695_v63 = vld [vmem:[%s15365_s15 + $0x50] sm:$0xff]  ;;  %s11778_s13 = smul.u32 400, %s20671_s10  ;;  %s20662_s11 = smov %s20671_s10 }
 0x605   : >> { %11692 = vst [vmem:[%s15361_s9 + $0x40] sm:$0xff] %v11691_v23  ;;  %v11697_v4 = vld [vmem:[%s15365_s15 + $0x58] sm:$0xff]  ;;  %11694 = vst [vmem:[%s15361_s9 + $0x48] sm:$0xff] %v11693_v27  ;;  %v11699_v40 = vld [vmem:[%s15365_s15 + $0x60] sm:$0xff] }
 0x606   : >> { %11696 = vst [vmem:[%s15361_s9 + $0x50] sm:$0xff] %v11695_v63  ;;  %11698 = vst [vmem:[%s15361_s9 + $0x58] sm:$0xff] %v11697_v4  ;;  %v11701_v33 = vld [vmem:[%s15365_s15 + $0x68] sm:$0xff]  ;;  %v11703_v56 = vld [vmem:[%s15365_s15 + $0x70] sm:$0xff]  ;;  %s20564_s12 = scalar_lea.vmem %s20488_s7, %s11778_s13 [#allocation2]   ;;  %s20567_s17 = scalar_lea.vmem %s20491_s8, %s11778_s13  }
 0x607   : >> { %11700 = vst [vmem:[%s15361_s9 + $0x60] sm:$0xff] %v11699_v40  ;;  %11702 = vst [vmem:[%s15361_s9 + $0x68] sm:$0xff] %v11701_v33  ;;  %v11705_v16 = vld [vmem:[%s15365_s15 + $0x78] sm:$0xff]  ;;  %v11707_v39 = vld [vmem:[%s15365_s15 + $0x80] sm:$0xff] }
 0x608   : >> { %11704 = vst [vmem:[%s15361_s9 + $0x70] sm:$0xff] %v11703_v56  ;;  %v11709_v24 = vld [vmem:[%s15365_s15 + $0x88] sm:$0xff]  ;;  %11706 = vst [vmem:[%s15361_s9 + $0x78] sm:$0xff] %v11705_v16  ;;  %v11711_v53 = vld [vmem:[%s15365_s15 + $0x90] sm:$0xff] }
 0x609   : >> { %11708 = vst [vmem:[%s15361_s9 + $0x80] sm:$0xff] %v11707_v39  ;;  %11710 = vst [vmem:[%s15361_s9 + $0x88] sm:$0xff] %v11709_v24  ;;  %v11713_v48 = vld [vmem:[%s15365_s15 + $0x98] sm:$0xff]  ;;  %v11715_v41 = vld [vmem:[%s15365_s15 + $0xa0] sm:$0xff] }
 0x60a   : >> { %11712 = vst [vmem:[%s15361_s9 + $0x90] sm:$0xff] %v11711_v53  ;;  %11714 = vst [vmem:[%s15361_s9 + $0x98] sm:$0xff] %v11713_v48  ;;  %v11717_v15 = vld [vmem:[%s15365_s15 + $0xa8] sm:$0xff]  ;;  %v11719_v6 = vld [vmem:[%s15365_s15 + $0xb0] sm:$0xff] }
 0x60b   : >> { %11716 = vst [vmem:[%s15361_s9 + $0xa0] sm:$0xff] %v11715_v41  ;;  %v11721_v26 = vld [vmem:[%s15365_s15 + $0xb8] sm:$0xff]  ;;  %11718 = vst [vmem:[%s15361_s9 + $0xa8] sm:$0xff] %v11717_v15  ;;  %v11723_v0 = vld [vmem:[%s15365_s15 + $0xc0] sm:$0xff] }
 0x60c   : >> { %11720 = vst [vmem:[%s15361_s9 + $0xb0] sm:$0xff] %v11719_v6  ;;  %11722 = vst [vmem:[%s15361_s9 + $0xb8] sm:$0xff] %v11721_v26  ;;  %v11725_v19 = vld [vmem:[%s15365_s15 + $0xc8] sm:$0xff]  ;;  %v11727_v31 = vld [vmem:[%s15365_s15 + $0xd0] sm:$0xff] }
 0x60d   : >> { %11724 = vst [vmem:[%s15361_s9 + $0xc0] sm:$0xff] %v11723_v0  ;;  %11726 = vst [vmem:[%s15361_s9 + $0xc8] sm:$0xff] %v11725_v19  ;;  %v11729_v14 = vld [vmem:[%s15365_s15 + $0xd8] sm:$0xff]  ;;  %v11731_v35 = vld [vmem:[%s15365_s15 + $0xe0] sm:$0xff] }
 0x60e   : >> { %11728 = vst [vmem:[%s15361_s9 + $0xd0] sm:$0xff] %v11727_v31  ;;  %v11733_v42 = vld [vmem:[%s15365_s15 + $0xe8] sm:$0xff]  ;;  %11730 = vst [vmem:[%s15361_s9 + $0xd8] sm:$0xff] %v11729_v14  ;;  %v11735_v32 = vld [vmem:[%s15365_s15 + $0xf0] sm:$0xff] }
 0x60f   : >> { %11732 = vst [vmem:[%s15361_s9 + $0xe0] sm:$0xff] %v11731_v35  ;;  %11734 = vst [vmem:[%s15361_s9 + $0xe8] sm:$0xff] %v11733_v42  ;;  %v11737_v51 = vld [vmem:[%s15365_s15 + $0xf8] sm:$0xff]  ;;  %v11739_v62 = vld [vmem:[%s15365_s15 + $0x100] sm:$0xff] }
 0x610   : >> { %11736 = vst [vmem:[%s15361_s9 + $0xf0] sm:$0xff] %v11735_v32  ;;  %11738 = vst [vmem:[%s15361_s9 + $0xf8] sm:$0xff] %v11737_v51  ;;  %v11741_v46 = vld [vmem:[%s15365_s15 + $0x108] sm:$0xff]  ;;  %v11743_v57 = vld [vmem:[%s15365_s15 + $0x110] sm:$0xff] }
 0x611   : >> { %11740 = vst [vmem:[%s15361_s9 + $0x100] sm:$0xff] %v11739_v62  ;;  %v11745_v2 = vld [vmem:[%s15365_s15 + $0x118] sm:$0xff]  ;;  %11742 = vst [vmem:[%s15361_s9 + $0x108] sm:$0xff] %v11741_v46  ;;  %v11747_v5 = vld [vmem:[%s15365_s15 + $0x120] sm:$0xff] }
 0x612   : >> { %11744 = vst [vmem:[%s15361_s9 + $0x110] sm:$0xff] %v11743_v57  ;;  %11746 = vst [vmem:[%s15361_s9 + $0x118] sm:$0xff] %v11745_v2  ;;  %v11749_v37 = vld [vmem:[%s15365_s15 + $0x128] sm:$0xff]  ;;  %v11751_v29 = vld [vmem:[%s15365_s15 + $0x130] sm:$0xff] }
 0x613   : >> { %11748 = vst [vmem:[%s15361_s9 + $0x120] sm:$0xff] %v11747_v5  ;;  %11750 = vst [vmem:[%s15361_s9 + $0x128] sm:$0xff] %v11749_v37  ;;  %v11753_v8 = vld [vmem:[%s15365_s15 + $0x138] sm:$0xff]  ;;  %v11755_v55 = vld [vmem:[%s15365_s15 + $0x140] sm:$0xff] }
 0x614   : >> { %11752 = vst [vmem:[%s15361_s9 + $0x130] sm:$0xff] %v11751_v29  ;;  %v11757_v52 = vld [vmem:[%s15365_s15 + $0x148] sm:$0xff]  ;;  %11754 = vst [vmem:[%s15361_s9 + $0x138] sm:$0xff] %v11753_v8  ;;  %v11759_v45 = vld [vmem:[%s15365_s15 + $0x150] sm:$0xff] }
 0x615   : >> { %11756 = vst [vmem:[%s15361_s9 + $0x140] sm:$0xff] %v11755_v55  ;;  %11758 = vst [vmem:[%s15361_s9 + $0x148] sm:$0xff] %v11757_v52  ;;  %v11761_v3 = vld [vmem:[%s15365_s15 + $0x158] sm:$0xff]  ;;  %v11763_v49 = vld [vmem:[%s15365_s15 + $0x160] sm:$0xff]  ;;  %11671 = sbr.rel (!%p11668_p1) target bundleno = 1536 (0x600), region = 109 }
 0x616   : >> { %11760 = vst [vmem:[%s15361_s9 + $0x150] sm:$0xff] %v11759_v45  ;;  %11762 = vst [vmem:[%s15361_s9 + $0x158] sm:$0xff] %v11761_v3  ;;  %v11765_v10 = vld [vmem:[%s15365_s15 + $0x168] sm:$0xff]  ;;  %v11767_v58 = vld [vmem:[%s15365_s15 + $0x170] sm:$0xff] }
 0x617   : >> { %11764 = vst [vmem:[%s15361_s9 + $0x160] sm:$0xff] %v11763_v49  ;;  %v11769_v9 = vld [vmem:[%s15365_s15 + $0x178] sm:$0xff]  ;;  %11766 = vst [vmem:[%s15361_s9 + $0x168] sm:$0xff] %v11765_v10  ;;  %v11771_v11 = vld [vmem:[%s15365_s15 + $0x180] sm:$0xff] }
 0x618   : >> { %11768 = vst [vmem:[%s15361_s9 + $0x170] sm:$0xff] %v11767_v58  ;;  %11770 = vst [vmem:[%s15361_s9 + $0x178] sm:$0xff] %v11769_v9  ;;  %v11773_v43 = vld [vmem:[%s15365_s15 + $0x188] sm:$0xff]  ;;  %s20661_s15 = smov %s20564_s12 }
 0x619   : >> { %11772 = vst [vmem:[%s15361_s9 + $0x180] sm:$0xff] %v11771_v11  ;;  %11774 = vst [vmem:[%s15361_s9 + $0x188] sm:$0xff] %v11773_v43  ;;  %s20660_s9 = smov %s20567_s17 }
 0x61a PF: > { %p11_p2 = scmp.ge.s32.totalorder %s15416_s19, 4   ;;  %s20663_s15 = smov %s15337_s16 }
 0x61b   : > { %s20664_s16 = smov %s15424_s22  ;;  %s20665_s17 = smov %s15416_s19 }
 0x61c   :  { %13 = sbr.rel (!%p11_p2) target bundleno = 2 (0x2), region = 120 }

</bundles_post_ra>
